<compile_context>
chip_gen: v7x
topology: tpu7x:2x2x1
jax: 0.10.0
libtpu: 0.0.40
codegen_flags: <defaults>
</compile_context>

<pallas_src>
import jax
import jax.numpy as jnp
from jax.experimental import pallas as pl
from jax.experimental.pallas import tpu as pltpu


# ----------------------------------------------------------------------------
# Pallas kernel: fused BN-affine + ReLU prologue, bf16 MXU matmul, bf16 store
# ----------------------------------------------------------------------------
def _bn_relu_matmul_kernel(x_ref, scale_ref, shift_ref, w_ref, o_ref):
    # f32 VPU math for the affine/ReLU (v5e has no bf16 VPU), bf16 operands for the MXU.
    x = jnp.maximum(x_ref[...] * scale_ref[...] + shift_ref[...], 0.0)
    acc = jnp.dot(x.astype(jnp.bfloat16), w_ref[...],
                  preferred_element_type=jnp.float32)
    o_ref[...] = acc.astype(jnp.bfloat16)       # bf16 store: halves patch HBM traffic


# ----------------------------------------------------------------------------
# Tiling helper (VMEM-budget aware, >= 2 grid steps for v7x megacore)
# ----------------------------------------------------------------------------
def _pick_tm(m, k_dim, n_dim, cap=4096, budget=12 * 1024 * 1024):
    for tm in range(min(cap, m), 0, -1):
        if m % tm:
            continue
        if tm % 8 != 0 and tm != m:             # (8, 128) sublane rule
            continue
        if m >= 16 and tm == m:                 # keep >= 2 steps so v7x's 2 TCs both work
            continue
        # double-buffered x tile (f32) + out tile (bf16) + resident bf16 weight
        need = 2 * (tm * k_dim * 4 + tm * n_dim * 2) + 2 * (k_dim * n_dim * 2)
        if need > budget:
            continue
        return tm
    return m


def bn_relu_matmul(x, scale, shift, w_big):
    """x: (M, K) f32; w_big: (K, N) bf16 -> (M, N) bf16 patch with fused BN/ReLU prologue."""
    m, k = x.shape
    n = w_big.shape[1]
    tm = _pick_tm(m, k, n)
    flops = 2 * m * k * n
    bytes_accessed = m * k * 4 + k * n * 2 + m * n * 2 + 2 * k * 4
    return pl.pallas_call(
        _bn_relu_matmul_kernel,
        out_shape=jax.ShapeDtypeStruct((m, n), jnp.bfloat16),
        grid=(m // tm,),
        in_specs=[
            pl.BlockSpec((tm, k), lambda i: (i, 0)),
            pl.BlockSpec((1, k), lambda i: (0, 0)),
            pl.BlockSpec((1, k), lambda i: (0, 0)),
            pl.BlockSpec((k, n), lambda i: (0, 0)),
        ],
        out_specs=pl.BlockSpec((tm, n), lambda i: (i, 0)),
        compiler_params=pltpu.CompilerParams(
            dimension_semantics=("parallel",),
            vmem_limit_bytes=32 * 1024 * 1024),
        cost_estimate=pl.CostEstimate(flops=flops, transcendentals=0,
                                      bytes_accessed=bytes_accessed),
    )(x, scale.reshape(1, k).astype(jnp.float32),
      shift.reshape(1, k).astype(jnp.float32), w_big)


# ----------------------------------------------------------------------------
# col2im (overlap-add) for stride=2, pad=1, k=4 — dense shift/add/interleave XLA glue.
# TODO(synk): only the DCGAN config (s2/p1/k4) is implemented; layer 0 (1x1, s1/p0) is a
# plain reshape handled by the caller.
# ----------------------------------------------------------------------------
def col2im_s2p1k4(patch):
    """patch: (B, H, W, 4, 4, C) f32 -> (B, 2H, 2W, C)."""
    b, h, w, _, _, c = patch.shape
    # rows: out[2q]   = patch[q, ky=1] + patch[q-1, ky=3]
    #       out[2q+1] = patch[q, ky=2] + patch[q+1, ky=0]
    t1 = patch[:, :, :, 1]
    t3 = patch[:, :, :, 3]
    t3 = jnp.concatenate([jnp.zeros_like(t3[:, :1]), t3[:, :-1]], axis=1)
    even_rows = t1 + t3
    t2 = patch[:, :, :, 2]
    t0 = patch[:, :, :, 0]
    t0 = jnp.concatenate([t0[:, 1:], jnp.zeros_like(t0[:, :1])], axis=1)
    odd_rows = t2 + t0
    rows = jnp.stack([even_rows, odd_rows], axis=2).reshape(b, 2 * h, w, 4, c)
    # columns: same decomposition along kx / W
    c1 = rows[:, :, :, 1]
    c3 = rows[:, :, :, 3]
    c3 = jnp.concatenate([jnp.zeros_like(c3[:, :, :1]), c3[:, :, :-1]], axis=2)
    even_cols = c1 + c3
    c2 = rows[:, :, :, 2]
    c0 = rows[:, :, :, 0]
    c0 = jnp.concatenate([c0[:, :, 1:], jnp.zeros_like(c0[:, :, :1])], axis=2)
    odd_cols = c2 + c0
    return jnp.stack([even_cols, odd_cols], axis=3).reshape(b, 2 * h, 2 * w, c)


# ----------------------------------------------------------------------------
# Generator forward
# ----------------------------------------------------------------------------
def dcgan_generator_forward(x_nchw, params, eps=1e-5):
    b = x_nchw.shape[0]
    x = jnp.transpose(x_nchw, (0, 2, 3, 1)).astype(jnp.float32)          # NCHW -> NHWC

    # ---- layer 0: 1x1 spatial, M = batch — plain XLA matmul (Pallas = launch overhead) ----
    w_big, _, _, stride, pad, kk, cout, cout_pad = params[0]
    patch = jnp.dot(x.reshape(b, -1).astype(jnp.bfloat16), w_big,
                    preferred_element_type=jnp.float32)
    patch = patch.reshape(b, 1, 1, kk, kk, cout_pad)[..., :cout]
    y = patch.reshape(b, kk, kk, cout)                                   # s1/p0, 1x1 input
    h, w_sp, c = kk, kk, cout

    # ---- layers 1..5: fused BN/ReLU + matmul (Pallas) + overlap-add (XLA glue) ----
    for li in range(1, len(params)):
        w_big, _, _, stride, pad, kk, cout, cout_pad = params[li]
        assert stride == 2 and pad == 1 and kk == 4
        gamma, beta = params[li - 1][1], params[li - 1][2]               # BN follows conv li-1
        y2d = y.reshape(b * h * w_sp, c)
        # training-mode BatchNorm2d batch stats (biased variance); XLA fuses these
        # reductions into the pass that produced y (no separate Pallas launch).
        mean = jnp.mean(y2d, axis=0)
        var = jnp.maximum(jnp.mean(y2d * y2d, axis=0) - mean * mean, 0.0)
        scale = gamma * jax.lax.rsqrt(var + eps)
        shift = beta - mean * scale
        patch = bn_relu_matmul(y2d, scale, shift, w_big)                 # (M, 16*cout_pad) bf16
        patch = patch.reshape(b, h, w_sp, kk, kk, cout_pad)[..., :cout].astype(jnp.float32)
        y = col2im_s2p1k4(patch)
        h, w_sp, c = y.shape[1], y.shape[2], y.shape[3]

    out = jnp.tanh(y)                                                    # final Tanh (XLA-fused)
    return jnp.transpose(out, (0, 3, 1, 2))                              # NHWC -> NCHW


def init_params(key, noise_dim=32, base=8, out_channels=3):
    chans = [noise_dim, base * 16, base * 8, base * 4, base * 2, base, out_channels]
    strides = [1, 2, 2, 2, 2, 2]
    pads = [0, 1, 1, 1, 1, 1]
    k = 4
    raw, prepared = [], []
    for i in range(6):
        key, sub = jax.random.split(key)
        cin, cout = chans[i], chans[i + 1]
        w_t = jax.random.normal(sub, (cin, cout, k, k), jnp.float32) * 0.02
        gamma = jnp.ones((cout,), jnp.float32)      # BatchNorm2d default weight
        beta = jnp.zeros((cout,), jnp.float32)      # BatchNorm2d default bias
        raw.append((w_t, gamma, beta, strides[i], pads[i]))
        # Hoisted weight prep: input-driven deconv weight (Cin, k*k*Cout_pad), bf16.
        # Cout is zero-padded to a multiple of 8 so N = k*k*Cout_pad is a multiple of 128
        # (lane-dense, unmasked stores) — only the last layer (3 -> 8) actually pads.
        cout_pad = ((cout + 7) // 8) * 8
        w_nhwc = jnp.transpose(w_t, (0, 2, 3, 1))                        # (Cin, ky, kx, Cout)
        w_nhwc = jnp.pad(w_nhwc, ((0, 0), (0, 0), (0, 0), (0, cout_pad - cout)))
        w_big = w_nhwc.reshape(cin, k * k * cout_pad).astype(jnp.bfloat16)
        prepared.append((w_big, gamma, beta, strides[i], pads[i], k, cout, cout_pad))
    return raw, prepared


# ----------------------------------------------------------------------------
# Pure-JAX reference (definitional ConvTranspose2d via strided overlap-add)
# ----------------------------------------------------------------------------
def reference_forward(x_nchw, raw_params, eps=1e-5):
    x = jnp.transpose(x_nchw, (0, 2, 3, 1)).astype(jnp.float32)
    n_layers = len(raw_params)
    for li, (w_t, gamma, beta, stride, pad) in enumerate(raw_params):
        b, h, w, _ = x.shape
        cout, k = w_t.shape[1], w_t.shape[2]
        contrib = jnp.einsum("bhwc,cokl->bhwklo", x.astype(jnp.bfloat16),
                             w_t.astype(jnp.bfloat16),
                             preferred_element_type=jnp.float32)
        full_h, full_w = (h - 1) * stride + k, (w - 1) * stride + k
        full = jnp.zeros((b, full_h, full_w, cout), jnp.float32)
        for ky in range(k):
            for kx in range(k):
                full = full.at[:, ky:ky + (h - 1) * stride + 1:stride,
                                  kx:kx + (w - 1) * stride + 1:stride, :].add(
                    contrib[:, :, :, ky, kx, :])
        y = full[:, pad:full_h - pad, pad:full_w - pad, :]
        if li < n_layers - 1:
            mean = jnp.mean(y, axis=(0, 1, 2))
            var = jnp.maximum(jnp.mean(jnp.square(y), axis=(0, 1, 2)) - mean * mean, 0.0)
            y = (y - mean) * (gamma * jax.lax.rsqrt(var + eps)) + beta
            x = jnp.maximum(y, 0.0)
        else:
            x = jnp.tanh(y)
    return jnp.transpose(x, (0, 3, 1, 2))


if __name__ == "__main__":
    key = jax.random.PRNGKey(0)
    kx, kp = jax.random.split(key)

    noise_dim = 32           # scaled-down from the module's default of 100
    batch = 2
    x = jax.random.normal(kx, (batch, noise_dim, 1, 1), jnp.float32)
    raw_params, params = init_params(kp, noise_dim=noise_dim, base=8, out_channels=3)

    fwd = jax.jit(lambda z: dcgan_generator_forward(z, params))
    out = jax.block_until_ready(fwd(x))

    assert out.shape == (batch, 3, 128, 128), out.shape
    assert bool(jnp.all(jnp.isfinite(out)))
    assert bool(jnp.all(jnp.abs(out) <= 1.0 + 1e-6))   # tanh output range

    ref = jax.block_until_ready(reference_forward(x, raw_params))
    max_diff = float(jnp.max(jnp.abs(out - ref)))
    # both pipelines use bf16 MXU operands; the kernel additionally stores the patch bf16
    assert max_diff < 7.5e-2, max_diff

    print("KERNEL_OK")
</pallas_src>

<mosaic_0001>
module attributes {stable_mosaic.version = 11 : i64} {
  func.func @_bn_relu_matmul_kernel(%arg0: i32, %arg1: memref<16x128xf32, #tpu.memory_space<vmem>>, %arg2: memref<1x128xf32, #tpu.memory_space<vmem>>, %arg3: memref<1x128xf32, #tpu.memory_space<vmem>>, %arg4: memref<128x1024xbf16, #tpu.memory_space<vmem>>, %arg5: memref<16x1024xbf16, #tpu.memory_space<vmem>>) attributes {dimension_semantics = [#tpu.dimension_semantics<parallel>], iteration_bounds = array<i64: 2>, scalar_prefetch = 0 : i64, scratch_operands = 0 : i64, tpu.core_type = #tpu.core_type<tc>, window_params = [{transform_indices = @transform_0, window_bounds = array<i64: 16, 128>}, {pipeline_mode = #tpu.pipeline_mode<synchronous>, transform_indices = @transform_1, window_bounds = array<i64: 1, 128>}, {pipeline_mode = #tpu.pipeline_mode<synchronous>, transform_indices = @transform_2, window_bounds = array<i64: 1, 128>}, {pipeline_mode = #tpu.pipeline_mode<synchronous>, transform_indices = @transform_3, window_bounds = array<i64: 128, 1024>}, {transform_indices = @transform_4, window_bounds = array<i64: 16, 1024>}]} {
    %c0 = arith.constant 0 : index
    %c0_0 = arith.constant 0 : index
    %0 = vector.load %arg1[%c0, %c0_0] : memref<16x128xf32, #tpu.memory_space<vmem>>, vector<16x128xf32>
    %c0_1 = arith.constant 0 : index
    %c0_2 = arith.constant 0 : index
    %1 = vector.load %arg2[%c0_1, %c0_2] : memref<1x128xf32, #tpu.memory_space<vmem>>, vector<1x128xf32>
    %2 = vector.broadcast %1 : vector<1x128xf32> to vector<16x128xf32>
    %3 = arith.mulf %0, %2 : vector<16x128xf32>
    %c0_3 = arith.constant 0 : index
    %c0_4 = arith.constant 0 : index
    %4 = vector.load %arg3[%c0_3, %c0_4] : memref<1x128xf32, #tpu.memory_space<vmem>>, vector<1x128xf32>
    %5 = vector.broadcast %4 : vector<1x128xf32> to vector<16x128xf32>
    %6 = arith.addf %3, %5 : vector<16x128xf32>
    %cst = arith.constant 0.000000e+00 : f32
    %7 = vector.broadcast %cst : f32 to vector<16x128xf32>
    %8 = arith.maximumf %6, %7 : vector<16x128xf32>
    %9 = arith.truncf %8 : vector<16x128xf32> to vector<16x128xbf16>
    %c0_5 = arith.constant 0 : index
    %c0_6 = arith.constant 0 : index
    %10 = vector.load %arg4[%c0_5, %c0_6] : memref<128x1024xbf16, #tpu.memory_space<vmem>>, vector<128x1024xbf16>
    %cst_7 = arith.constant dense<0.000000e+00> : vector<16x1024xf32>
    %11 = tpu.matmul %9, %10, %cst_7 {dimension_numbers = #tpu.dot_dimension_numbers<[1], [0], [0], [1], [0, 0, 1, 1], [], []>} : vector<16x128xbf16>, vector<128x1024xbf16>, vector<16x1024xf32> -> vector<16x1024xf32>
    %12 = arith.truncf %11 : vector<16x1024xf32> to vector<16x1024xbf16>
    %c0_8 = arith.constant 0 : index
    %c0_9 = arith.constant 0 : index
    %13 = vector.load %arg5[%c0_8, %c0_9] : memref<16x1024xbf16, #tpu.memory_space<vmem>>, vector<16x1024xbf16>
    tpu.vector_store %arg5[%c0_8, %c0_9], %12 {strides = array<i32>} : memref<16x1024xbf16, #tpu.memory_space<vmem>>, vector<16x1024xbf16>,
    return
  }
  func.func @transform_0(%arg0: i32) -> (i32, i32) {
    %c0_i32 = arith.constant 0 : i32
    %c0_i32_0 = arith.constant 0 : i32
    return %arg0, %c0_i32 : i32, i32
  }
  func.func @transform_1(%arg0: i32) -> (i32, i32) {
    %c0_i32 = arith.constant 0 : i32
    %c0_i32_0 = arith.constant 0 : i32
    %c0_i32_1 = arith.constant 0 : i32
    return %c0_i32, %c0_i32_0 : i32, i32
  }
  func.func @transform_2(%arg0: i32) -> (i32, i32) {
    %c0_i32 = arith.constant 0 : i32
    %c0_i32_0 = arith.constant 0 : i32
    %c0_i32_1 = arith.constant 0 : i32
    return %c0_i32, %c0_i32_0 : i32, i32
  }
  func.func @transform_3(%arg0: i32) -> (i32, i32) {
    %c0_i32 = arith.constant 0 : i32
    %c0_i32_0 = arith.constant 0 : i32
    %c0_i32_1 = arith.constant 0 : i32
    return %c0_i32, %c0_i32_0 : i32, i32
  }
  func.func @transform_4(%arg0: i32) -> (i32, i32) {
    %c0_i32 = arith.constant 0 : i32
    %c0_i32_0 = arith.constant 0 : i32
    return %arg0, %c0_i32 : i32, i32
  }
}

module attributes {stable_mosaic.version = 11 : i64} {
  func.func @_bn_relu_matmul_kernel(%arg0: i32, %arg1: memref<64x64xf32, #tpu.memory_space<vmem>>, %arg2: memref<1x64xf32, #tpu.memory_space<vmem>>, %arg3: memref<1x64xf32, #tpu.memory_space<vmem>>, %arg4: memref<64x512xbf16, #tpu.memory_space<vmem>>, %arg5: memref<64x512xbf16, #tpu.memory_space<vmem>>) attributes {dimension_semantics = [#tpu.dimension_semantics<parallel>], iteration_bounds = array<i64: 2>, scalar_prefetch = 0 : i64, scratch_operands = 0 : i64, tpu.core_type = #tpu.core_type<tc>, window_params = [{transform_indices = @transform_0, window_bounds = array<i64: 64, 64>}, {pipeline_mode = #tpu.pipeline_mode<synchronous>, transform_indices = @transform_1, window_bounds = array<i64: 1, 64>}, {pipeline_mode = #tpu.pipeline_mode<synchronous>, transform_indices = @transform_2, window_bounds = array<i64: 1, 64>}, {pipeline_mode = #tpu.pipeline_mode<synchronous>, transform_indices = @transform_3, window_bounds = array<i64: 64, 512>}, {transform_indices = @transform_4, window_bounds = array<i64: 64, 512>}]} {
    %c0 = arith.constant 0 : index
    %c0_0 = arith.constant 0 : index
    %0 = vector.load %arg1[%c0, %c0_0] : memref<64x64xf32, #tpu.memory_space<vmem>>, vector<64x64xf32>
    %c0_1 = arith.constant 0 : index
    %c0_2 = arith.constant 0 : index
    %1 = vector.load %arg2[%c0_1, %c0_2] : memref<1x64xf32, #tpu.memory_space<vmem>>, vector<1x64xf32>
    %2 = vector.broadcast %1 : vector<1x64xf32> to vector<64x64xf32>
    %3 = arith.mulf %0, %2 : vector<64x64xf32>
    %c0_3 = arith.constant 0 : index
    %c0_4 = arith.constant 0 : index
    %4 = vector.load %arg3[%c0_3, %c0_4] : memref<1x64xf32, #tpu.memory_space<vmem>>, vector<1x64xf32>
    %5 = vector.broadcast %4 : vector<1x64xf32> to vector<64x64xf32>
    %6 = arith.addf %3, %5 : vector<64x64xf32>
    %cst = arith.constant 0.000000e+00 : f32
    %7 = vector.broadcast %cst : f32 to vector<64x64xf32>
    %8 = arith.maximumf %6, %7 : vector<64x64xf32>
    %9 = arith.truncf %8 : vector<64x64xf32> to vector<64x64xbf16>
    %c0_5 = arith.constant 0 : index
    %c0_6 = arith.constant 0 : index
    %10 = vector.load %arg4[%c0_5, %c0_6] : memref<64x512xbf16, #tpu.memory_space<vmem>>, vector<64x512xbf16>
    %cst_7 = arith.constant dense<0.000000e+00> : vector<64x512xf32>
    %11 = tpu.matmul %9, %10, %cst_7 {dimension_numbers = #tpu.dot_dimension_numbers<[1], [0], [0], [1], [0, 0, 1, 1], [], []>} : vector<64x64xbf16>, vector<64x512xbf16>, vector<64x512xf32> -> vector<64x512xf32>
    %12 = arith.truncf %11 : vector<64x512xf32> to vector<64x512xbf16>
    %c0_8 = arith.constant 0 : index
    %c0_9 = arith.constant 0 : index
    %13 = vector.load %arg5[%c0_8, %c0_9] : memref<64x512xbf16, #tpu.memory_space<vmem>>, vector<64x512xbf16>
    tpu.vector_store %arg5[%c0_8, %c0_9], %12 {strides = array<i32>} : memref<64x512xbf16, #tpu.memory_space<vmem>>, vector<64x512xbf16>,
    return
  }
  func.func @transform_0(%arg0: i32) -> (i32, i32) {
    %c0_i32 = arith.constant 0 : i32
    %c0_i32_0 = arith.constant 0 : i32
    return %arg0, %c0_i32 : i32, i32
  }
  func.func @transform_1(%arg0: i32) -> (i32, i32) {
    %c0_i32 = arith.constant 0 : i32
    %c0_i32_0 = arith.constant 0 : i32
    %c0_i32_1 = arith.constant 0 : i32
    return %c0_i32, %c0_i32_0 : i32, i32
  }
  func.func @transform_2(%arg0: i32) -> (i32, i32) {
    %c0_i32 = arith.constant 0 : i32
    %c0_i32_0 = arith.constant 0 : i32
    %c0_i32_1 = arith.constant 0 : i32
    return %c0_i32, %c0_i32_0 : i32, i32
  }
  func.func @transform_3(%arg0: i32) -> (i32, i32) {
    %c0_i32 = arith.constant 0 : i32
    %c0_i32_0 = arith.constant 0 : i32
    %c0_i32_1 = arith.constant 0 : i32
    return %c0_i32, %c0_i32_0 : i32, i32
  }
  func.func @transform_4(%arg0: i32) -> (i32, i32) {
    %c0_i32 = arith.constant 0 : i32
    %c0_i32_0 = arith.constant 0 : i32
    return %arg0, %c0_i32 : i32, i32
  }
}

module attributes {stable_mosaic.version = 11 : i64} {
  func.func @_bn_relu_matmul_kernel(%arg0: i32, %arg1: memref<256x32xf32, #tpu.memory_space<vmem>>, %arg2: memref<1x32xf32, #tpu.memory_space<vmem>>, %arg3: memref<1x32xf32, #tpu.memory_space<vmem>>, %arg4: memref<32x256xbf16, #tpu.memory_space<vmem>>, %arg5: memref<256x256xbf16, #tpu.memory_space<vmem>>) attributes {dimension_semantics = [#tpu.dimension_semantics<parallel>], iteration_bounds = array<i64: 2>, scalar_prefetch = 0 : i64, scratch_operands = 0 : i64, tpu.core_type = #tpu.core_type<tc>, window_params = [{transform_indices = @transform_0, window_bounds = array<i64: 256, 32>}, {pipeline_mode = #tpu.pipeline_mode<synchronous>, transform_indices = @transform_1, window_bounds = array<i64: 1, 32>}, {pipeline_mode = #tpu.pipeline_mode<synchronous>, transform_indices = @transform_2, window_bounds = array<i64: 1, 32>}, {pipeline_mode = #tpu.pipeline_mode<synchronous>, transform_indices = @transform_3, window_bounds = array<i64: 32, 256>}, {transform_indices = @transform_4, window_bounds = array<i64: 256, 256>}]} {
    %c0 = arith.constant 0 : index
    %c0_0 = arith.constant 0 : index
    %0 = vector.load %arg1[%c0, %c0_0] : memref<256x32xf32, #tpu.memory_space<vmem>>, vector<256x32xf32>
    %c0_1 = arith.constant 0 : index
    %c0_2 = arith.constant 0 : index
    %1 = vector.load %arg2[%c0_1, %c0_2] : memref<1x32xf32, #tpu.memory_space<vmem>>, vector<1x32xf32>
    %2 = vector.broadcast %1 : vector<1x32xf32> to vector<256x32xf32>
    %3 = arith.mulf %0, %2 : vector<256x32xf32>
    %c0_3 = arith.constant 0 : index
    %c0_4 = arith.constant 0 : index
    %4 = vector.load %arg3[%c0_3, %c0_4] : memref<1x32xf32, #tpu.memory_space<vmem>>, vector<1x32xf32>
    %5 = vector.broadcast %4 : vector<1x32xf32> to vector<256x32xf32>
    %6 = arith.addf %3, %5 : vector<256x32xf32>
    %cst = arith.constant 0.000000e+00 : f32
    %7 = vector.broadcast %cst : f32 to vector<256x32xf32>
    %8 = arith.maximumf %6, %7 : vector<256x32xf32>
    %9 = arith.truncf %8 : vector<256x32xf32> to vector<256x32xbf16>
    %c0_5 = arith.constant 0 : index
    %c0_6 = arith.constant 0 : index
    %10 = vector.load %arg4[%c0_5, %c0_6] : memref<32x256xbf16, #tpu.memory_space<vmem>>, vector<32x256xbf16>
    %cst_7 = arith.constant dense<0.000000e+00> : vector<256x256xf32>
    %11 = tpu.matmul %9, %10, %cst_7 {dimension_numbers = #tpu.dot_dimension_numbers<[1], [0], [0], [1], [0, 0, 1, 1], [], []>} : vector<256x32xbf16>, vector<32x256xbf16>, vector<256x256xf32> -> vector<256x256xf32>
    %12 = arith.truncf %11 : vector<256x256xf32> to vector<256x256xbf16>
    %c0_8 = arith.constant 0 : index
    %c0_9 = arith.constant 0 : index
    %13 = vector.load %arg5[%c0_8, %c0_9] : memref<256x256xbf16, #tpu.memory_space<vmem>>, vector<256x256xbf16>
    tpu.vector_store %arg5[%c0_8, %c0_9], %12 {strides = array<i32>} : memref<256x256xbf16, #tpu.memory_space<vmem>>, vector<256x256xbf16>,
    return
  }
  func.func @transform_0(%arg0: i32) -> (i32, i32) {
    %c0_i32 = arith.constant 0 : i32
    %c0_i32_0 = arith.constant 0 : i32
    return %arg0, %c0_i32 : i32, i32
  }
  func.func @transform_1(%arg0: i32) -> (i32, i32) {
    %c0_i32 = arith.constant 0 : i32
    %c0_i32_0 = arith.constant 0 : i32
    %c0_i32_1 = arith.constant 0 : i32
    return %c0_i32, %c0_i32_0 : i32, i32
  }
  func.func @transform_2(%arg0: i32) -> (i32, i32) {
    %c0_i32 = arith.constant 0 : i32
    %c0_i32_0 = arith.constant 0 : i32
    %c0_i32_1 = arith.constant 0 : i32
    return %c0_i32, %c0_i32_0 : i32, i32
  }
  func.func @transform_3(%arg0: i32) -> (i32, i32) {
    %c0_i32 = arith.constant 0 : i32
    %c0_i32_0 = arith.constant 0 : i32
    %c0_i32_1 = arith.constant 0 : i32
    return %c0_i32, %c0_i32_0 : i32, i32
  }
  func.func @transform_4(%arg0: i32) -> (i32, i32) {
    %c0_i32 = arith.constant 0 : i32
    %c0_i32_0 = arith.constant 0 : i32
    return %arg0, %c0_i32 : i32, i32
  }
}

module attributes {stable_mosaic.version = 11 : i64} {
  func.func @_bn_relu_matmul_kernel(%arg0: i32, %arg1: memref<1024x16xf32, #tpu.memory_space<vmem>>, %arg2: memref<1x16xf32, #tpu.memory_space<vmem>>, %arg3: memref<1x16xf32, #tpu.memory_space<vmem>>, %arg4: memref<16x128xbf16, #tpu.memory_space<vmem>>, %arg5: memref<1024x128xbf16, #tpu.memory_space<vmem>>) attributes {dimension_semantics = [#tpu.dimension_semantics<parallel>], iteration_bounds = array<i64: 2>, scalar_prefetch = 0 : i64, scratch_operands = 0 : i64, tpu.core_type = #tpu.core_type<tc>, window_params = [{transform_indices = @transform_0, window_bounds = array<i64: 1024, 16>}, {pipeline_mode = #tpu.pipeline_mode<synchronous>, transform_indices = @transform_1, window_bounds = array<i64: 1, 16>}, {pipeline_mode = #tpu.pipeline_mode<synchronous>, transform_indices = @transform_2, window_bounds = array<i64: 1, 16>}, {pipeline_mode = #tpu.pipeline_mode<synchronous>, transform_indices = @transform_3, window_bounds = array<i64: 16, 128>}, {transform_indices = @transform_4, window_bounds = array<i64: 1024, 128>}]} {
    %c0 = arith.constant 0 : index
    %c0_0 = arith.constant 0 : index
    %0 = vector.load %arg1[%c0, %c0_0] : memref<1024x16xf32, #tpu.memory_space<vmem>>, vector<1024x16xf32>
    %c0_1 = arith.constant 0 : index
    %c0_2 = arith.constant 0 : index
    %1 = vector.load %arg2[%c0_1, %c0_2] : memref<1x16xf32, #tpu.memory_space<vmem>>, vector<1x16xf32>
    %2 = vector.broadcast %1 : vector<1x16xf32> to vector<1024x16xf32>
    %3 = arith.mulf %0, %2 : vector<1024x16xf32>
    %c0_3 = arith.constant 0 : index
    %c0_4 = arith.constant 0 : index
    %4 = vector.load %arg3[%c0_3, %c0_4] : memref<1x16xf32, #tpu.memory_space<vmem>>, vector<1x16xf32>
    %5 = vector.broadcast %4 : vector<1x16xf32> to vector<1024x16xf32>
    %6 = arith.addf %3, %5 : vector<1024x16xf32>
    %cst = arith.constant 0.000000e+00 : f32
    %7 = vector.broadcast %cst : f32 to vector<1024x16xf32>
    %8 = arith.maximumf %6, %7 : vector<1024x16xf32>
    %9 = arith.truncf %8 : vector<1024x16xf32> to vector<1024x16xbf16>
    %c0_5 = arith.constant 0 : index
    %c0_6 = arith.constant 0 : index
    %10 = vector.load %arg4[%c0_5, %c0_6] : memref<16x128xbf16, #tpu.memory_space<vmem>>, vector<16x128xbf16>
    %cst_7 = arith.constant dense<0.000000e+00> : vector<1024x128xf32>
    %11 = tpu.matmul %9, %10, %cst_7 {dimension_numbers = #tpu.dot_dimension_numbers<[1], [0], [0], [1], [0, 0, 1, 1], [], []>} : vector<1024x16xbf16>, vector<16x128xbf16>, vector<1024x128xf32> -> vector<1024x128xf32>
    %12 = arith.truncf %11 : vector<1024x128xf32> to vector<1024x128xbf16>
    %c0_8 = arith.constant 0 : index
    %c0_9 = arith.constant 0 : index
    %13 = vector.load %arg5[%c0_8, %c0_9] : memref<1024x128xbf16, #tpu.memory_space<vmem>>, vector<1024x128xbf16>
    tpu.vector_store %arg5[%c0_8, %c0_9], %12 {strides = array<i32>} : memref<1024x128xbf16, #tpu.memory_space<vmem>>, vector<1024x128xbf16>,
    return
  }
  func.func @transform_0(%arg0: i32) -> (i32, i32) {
    %c0_i32 = arith.constant 0 : i32
    %c0_i32_0 = arith.constant 0 : i32
    return %arg0, %c0_i32 : i32, i32
  }
  func.func @transform_1(%arg0: i32) -> (i32, i32) {
    %c0_i32 = arith.constant 0 : i32
    %c0_i32_0 = arith.constant 0 : i32
    %c0_i32_1 = arith.constant 0 : i32
    return %c0_i32, %c0_i32_0 : i32, i32
  }
  func.func @transform_2(%arg0: i32) -> (i32, i32) {
    %c0_i32 = arith.constant 0 : i32
    %c0_i32_0 = arith.constant 0 : i32
    %c0_i32_1 = arith.constant 0 : i32
    return %c0_i32, %c0_i32_0 : i32, i32
  }
  func.func @transform_3(%arg0: i32) -> (i32, i32) {
    %c0_i32 = arith.constant 0 : i32
    %c0_i32_0 = arith.constant 0 : i32
    %c0_i32_1 = arith.constant 0 : i32
    return %c0_i32, %c0_i32_0 : i32, i32
  }
  func.func @transform_4(%arg0: i32) -> (i32, i32) {
    %c0_i32 = arith.constant 0 : i32
    %c0_i32_0 = arith.constant 0 : i32
    return %arg0, %c0_i32 : i32, i32
  }
}

module attributes {stable_mosaic.version = 11 : i64} {
  func.func @_bn_relu_matmul_kernel(%arg0: i32, %arg1: memref<4096x8xf32, #tpu.memory_space<vmem>>, %arg2: memref<1x8xf32, #tpu.memory_space<vmem>>, %arg3: memref<1x8xf32, #tpu.memory_space<vmem>>, %arg4: memref<8x128xbf16, #tpu.memory_space<vmem>>, %arg5: memref<4096x128xbf16, #tpu.memory_space<vmem>>) attributes {dimension_semantics = [#tpu.dimension_semantics<parallel>], iteration_bounds = array<i64: 2>, scalar_prefetch = 0 : i64, scratch_operands = 0 : i64, tpu.core_type = #tpu.core_type<tc>, window_params = [{transform_indices = @transform_0, window_bounds = array<i64: 4096, 8>}, {pipeline_mode = #tpu.pipeline_mode<synchronous>, transform_indices = @transform_1, window_bounds = array<i64: 1, 8>}, {pipeline_mode = #tpu.pipeline_mode<synchronous>, transform_indices = @transform_2, window_bounds = array<i64: 1, 8>}, {pipeline_mode = #tpu.pipeline_mode<synchronous>, transform_indices = @transform_3, window_bounds = array<i64: 8, 128>}, {transform_indices = @transform_4, window_bounds = array<i64: 4096, 128>}]} {
    %c0 = arith.constant 0 : index
    %c0_0 = arith.constant 0 : index
    %0 = vector.load %arg1[%c0, %c0_0] : memref<4096x8xf32, #tpu.memory_space<vmem>>, vector<4096x8xf32>
    %c0_1 = arith.constant 0 : index
    %c0_2 = arith.constant 0 : index
    %1 = vector.load %arg2[%c0_1, %c0_2] : memref<1x8xf32, #tpu.memory_space<vmem>>, vector<1x8xf32>
    %2 = vector.broadcast %1 : vector<1x8xf32> to vector<4096x8xf32>
    %3 = arith.mulf %0, %2 : vector<4096x8xf32>
    %c0_3 = arith.constant 0 : index
    %c0_4 = arith.constant 0 : index
    %4 = vector.load %arg3[%c0_3, %c0_4] : memref<1x8xf32, #tpu.memory_space<vmem>>, vector<1x8xf32>
    %5 = vector.broadcast %4 : vector<1x8xf32> to vector<4096x8xf32>
    %6 = arith.addf %3, %5 : vector<4096x8xf32>
    %cst = arith.constant 0.000000e+00 : f32
    %7 = vector.broadcast %cst : f32 to vector<4096x8xf32>
    %8 = arith.maximumf %6, %7 : vector<4096x8xf32>
    %9 = arith.truncf %8 : vector<4096x8xf32> to vector<4096x8xbf16>
    %c0_5 = arith.constant 0 : index
    %c0_6 = arith.constant 0 : index
    %10 = vector.load %arg4[%c0_5, %c0_6] : memref<8x128xbf16, #tpu.memory_space<vmem>>, vector<8x128xbf16>
    %cst_7 = arith.constant dense<0.000000e+00> : vector<4096x128xf32>
    %11 = tpu.matmul %9, %10, %cst_7 {dimension_numbers = #tpu.dot_dimension_numbers<[1], [0], [0], [1], [0, 0, 1, 1], [], []>} : vector<4096x8xbf16>, vector<8x128xbf16>, vector<4096x128xf32> -> vector<4096x128xf32>
    %12 = arith.truncf %11 : vector<4096x128xf32> to vector<4096x128xbf16>
    %c0_8 = arith.constant 0 : index
    %c0_9 = arith.constant 0 : index
    %13 = vector.load %arg5[%c0_8, %c0_9] : memref<4096x128xbf16, #tpu.memory_space<vmem>>, vector<4096x128xbf16>
    tpu.vector_store %arg5[%c0_8, %c0_9], %12 {strides = array<i32>} : memref<4096x128xbf16, #tpu.memory_space<vmem>>, vector<4096x128xbf16>,
    return
  }
  func.func @transform_0(%arg0: i32) -> (i32, i32) {
    %c0_i32 = arith.constant 0 : i32
    %c0_i32_0 = arith.constant 0 : i32
    return %arg0, %c0_i32 : i32, i32
  }
  func.func @transform_1(%arg0: i32) -> (i32, i32) {
    %c0_i32 = arith.constant 0 : i32
    %c0_i32_0 = arith.constant 0 : i32
    %c0_i32_1 = arith.constant 0 : i32
    return %c0_i32, %c0_i32_0 : i32, i32
  }
  func.func @transform_2(%arg0: i32) -> (i32, i32) {
    %c0_i32 = arith.constant 0 : i32
    %c0_i32_0 = arith.constant 0 : i32
    %c0_i32_1 = arith.constant 0 : i32
    return %c0_i32, %c0_i32_0 : i32, i32
  }
  func.func @transform_3(%arg0: i32) -> (i32, i32) {
    %c0_i32 = arith.constant 0 : i32
    %c0_i32_0 = arith.constant 0 : i32
    %c0_i32_1 = arith.constant 0 : i32
    return %c0_i32, %c0_i32_0 : i32, i32
  }
  func.func @transform_4(%arg0: i32) -> (i32, i32) {
    %c0_i32 = arith.constant 0 : i32
    %c0_i32_0 = arith.constant 0 : i32
    return %arg0, %c0_i32 : i32, i32
  }
}

</mosaic_0001>

<bundles_post_ra>
// kernel: _lambda_.5
= control target key start
LH: loop header
LB: loop body
LE: loop exit
PB: predicated region body
PF: predicated region fallthrough
CT: control target
= control target key end

     0   :  { %s1035_s15 = smov 0   ;;  %s1270_s0 = inlined_call_operand.vmem [shape: f32[32,128], index: 0, kind: input, shape index: {}]   ;;  %s1271_s1 = inlined_call_operand.vmem [shape: f32[1,128], index: 1, kind: input, shape index: {}]   ;;  %s1272_s2 = inlined_call_operand.vmem [shape: f32[1,128], index: 2, kind: input, shape index: {}]   ;;  %s1273_s3 = inlined_call_operand.vmem [shape: bf16[128,1024], index: 3, kind: input, shape index: {}]   ;;  %s1274_s4 = inlined_call_operand.vmem [shape: bf16[32,1024], index: 4, kind: output, shape index: {}]  }
   0x1 LB: > { %s897_s16 = sadd.s32 4294967295, %s1007_s15   ;;  %p901_p0 = scmp.ge.s32.totalorder %s1007_s15, 1  ;;  %s1007_s15 = sphi %s1035_s15, %s14_s15  }
   0x2   : > { %p163_p1 = scmp.lt.s32.totalorder %s1007_s15, 3 }
   0x4   : > { %p164_p2 = pnand %p901_p0, %p163_p1 }
   0x5   : > { %v227_v0 = vld [vmem:[%s1273_s3] sm:$0xff] (!%p164_p2)  ;;  %v228_v2 = vld [vmem:[%s1273_s3 + $0x8] sm:$0xff] (!%p164_p2)  ;;  %s1052_s23 = sshll.u32 (!%p164_p2), %s897_s16, 1  ;;  %v1009_v8 = vmov (!%p164_p2), 0  }
   0x6   : > { %167 = sbr.rel (%p164_p2) target bundleno = 291 (0x123), region = 36  ;;  %v231_v1 = vld [vmem:[%s1273_s3 + $0x20] sm:$0xff] (!%p164_p2)  ;;  %v232_v4 = vld [vmem:[%s1273_s3 + $0x28] sm:$0xff] (!%p164_p2)  ;;  %643 = vmatprep.mubr.bf16.mxu0 (!%p164_p2), %v1009_v8  ;;  %686 = vmatprep.mubr.bf16.mxu1 (!%p164_p2), %v1009_v8  ;;  %p191_p3 = scmp.lt.s32.totalorder (!%p164_p2), %s1052_s23, 3 }
   0x7   : > { %v910_v3 = vcombine.high (!%p164_p2), %v227_v0, %v231_v1  ;;  %v909_v5 = vcombine.low (!%p164_p2), %v227_v0, %v231_v1  ;;  %v235_v6 = vld [vmem:[%s1273_s3 + $0x40] sm:$0xff] (!%p164_p2)  ;;  %v912_v9 = vcombine.high (!%p164_p2), %v228_v2, %v232_v4  ;;  %v911_v10 = vcombine.low (!%p164_p2), %v228_v2, %v232_v4  ;;  %v236_v12 = vld [vmem:[%s1273_s3 + $0x48] sm:$0xff] (!%p164_p2) }
   0x8   : > { %v239_v7 = vld [vmem:[%s1273_s3 + $0x60] sm:$0xff] (!%p164_p2)  ;;  %v240_v13 = vld [vmem:[%s1273_s3 + $0x68] sm:$0xff] (!%p164_p2) }
   0x9   : > { %v918_v11 = vcombine.high (!%p164_p2), %v235_v6, %v239_v7  ;;  %v243_v14 = vld [vmem:[%s1273_s3 + $0x80] sm:$0xff] (!%p164_p2)  ;;  %611 = vmatprep.subr.bf16.mxu0 (!%p164_p2), %v910_v3  ;;  %v920_v15 = vcombine.high (!%p164_p2), %v236_v12, %v240_v13  ;;  %v244_v17 = vld [vmem:[%s1273_s3 + $0x88] sm:$0xff] (!%p164_p2)  ;;  %654 = vmatprep.subr.bf16.mxu1 (!%p164_p2), %v912_v9  ;;  %v917_v19 = vcombine.low (!%p164_p2), %v235_v6, %v239_v7  ;;  %v229_v7 = vld [vmem:[%s1273_s3 + $0x10] sm:$0xff] (!%p164_p2) }
   0xa   : > { %v247_v16 = vld [vmem:[%s1273_s3 + $0xa0] sm:$0xff] (!%p164_p2)  ;;  %v248_v18 = vld [vmem:[%s1273_s3 + $0xa8] sm:$0xff] (!%p164_p2)  ;;  %612 = vmatpush1.bf16.msra.mxu0 (!%p164_p2), %v909_v5  ;;  %655 = vmatpush1.bf16.msra.mxu1 (!%p164_p2), %v911_v10  ;;  %v919_v20 = vcombine.low (!%p164_p2), %v236_v12, %v240_v13  ;;  %v233_v9 = vld [vmem:[%s1273_s3 + $0x30] sm:$0xff] (!%p164_p2) }
   0xb   : > { %613 = vmatprep.subr.bf16.mxu0 (!%p164_p2), %v918_v11  ;;  %v926_v21 = vcombine.high (!%p164_p2), %v243_v14, %v247_v16  ;;  %656 = vmatprep.subr.bf16.mxu1 (!%p164_p2), %v920_v15  ;;  %v928_v22 = vcombine.high (!%p164_p2), %v244_v17, %v248_v18  ;;  %v251_v23 = vld [vmem:[%s1273_s3 + $0xc0] sm:$0xff] (!%p164_p2)  ;;  %v252_v25 = vld [vmem:[%s1273_s3 + $0xc8] sm:$0xff] (!%p164_p2)  ;;  %v925_v27 = vcombine.low (!%p164_p2), %v243_v14, %v247_v16  ;;  %v230_v12 = vld [vmem:[%s1273_s3 + $0x18] sm:$0xff] (!%p164_p2) }
   0xc   : > { %v255_v24 = vld [vmem:[%s1273_s3 + $0xe0] sm:$0xff] (!%p164_p2)  ;;  %v256_v26 = vld [vmem:[%s1273_s3 + $0xe8] sm:$0xff] (!%p164_p2)  ;;  %v927_v28 = vcombine.low (!%p164_p2), %v244_v17, %v248_v18  ;;  %v234_v13 = vld [vmem:[%s1273_s3 + $0x38] sm:$0xff] (!%p164_p2)  ;;  %v914_v16 = vcombine.high (!%p164_p2), %v229_v7, %v233_v9 }
   0xd   : > { %s1276_s23 = smov (!%p191_p3, %s1052_s23), 3  ;;  %v934_v29 = vcombine.high %v251_v23, %v255_v24  ;;  %v936_v30 = vcombine.high %v252_v25, %v256_v26  ;;  %v259_v31 = vld [vmem:[%s1273_s3 + $0x100] sm:$0xff]  ;;  %v260_v33 = vld [vmem:[%s1273_s3 + $0x108] sm:$0xff]  ;;  %v933_v35 = vcombine.low %v251_v23, %v255_v24  ;;  %v935_v36 = vcombine.low %v252_v25, %v256_v26  ;;  %v237_v18 = vld [vmem:[%s1273_s3 + $0x50] sm:$0xff] }
   0xe   : > { %614 = vmatpush1.bf16.msra.mxu0 %v917_v19  ;;  %657 = vmatpush1.bf16.msra.mxu1 %v919_v20  ;;  %v263_v32 = vld [vmem:[%s1273_s3 + $0x120] sm:$0xff]  ;;  %s903_s30 = sshll.u32 %s1276_s23, 3  ;;  %v264_v34 = vld [vmem:[%s1273_s3 + $0x128] sm:$0xff]  ;;  %v916_v17 = vcombine.high %v230_v12, %v234_v13  ;;  %v241_v19 = vld [vmem:[%s1273_s3 + $0x70] sm:$0xff]  ;;  %v913_v23 = vcombine.low %v229_v7, %v233_v9  ;;  %v915_v24 = vcombine.low %v230_v12, %v234_v13  ;;  %s983_s8 = sshll.u32 %s1276_s23, 5 }
   0xf   : > { %615 = vmatprep.subr.bf16.mxu0 %v926_v21  ;;  %658 = vmatprep.subr.bf16.mxu1 %v928_v22  ;;  %v942_v37 = vcombine.high %v259_v31, %v263_v32  ;;  %s194_s11 = scalar_lea.vmem %s1270_s0, %s903_s30  ;;  %v944_v38 = vcombine.high %v260_v33, %v264_v34  ;;  %v267_v39 = vld [vmem:[%s1273_s3 + $0x140] sm:$0xff]  ;;  %v268_v41 = vld [vmem:[%s1273_s3 + $0x148] sm:$0xff]  ;;  %v941_v43 = vcombine.low %v259_v31, %v263_v32  ;;  %v238_v21 = vld [vmem:[%s1273_s3 + $0x58] sm:$0xff] }
  0x10   : > { %v271_v40 = vld [vmem:[%s1273_s3 + $0x160] sm:$0xff]  ;;  %v272_v42 = vld [vmem:[%s1273_s3 + $0x168] sm:$0xff]  ;;  %v943_v47 = vcombine.low %v260_v33, %v264_v34  ;;  %v242_v22 = vld [vmem:[%s1273_s3 + $0x78] sm:$0xff]  ;;  %v922_v25 = vcombine.high %v237_v18, %v241_v19  ;;  %v921_v31 = vcombine.low %v237_v18, %v241_v19 }
  0x11   : > { %v204_v44 = vld [vmem:[%s194_s11] sm:$0xff]  ;;  %v205_v45 = vld [vmem:[%s194_s11 + $0x8] sm:$0xff]  ;;  %v950_v48 = vcombine.high %v267_v39, %v271_v40  ;;  %v952_v49 = vcombine.high %v268_v41, %v272_v42  ;;  %v949_v56 = vcombine.low %v267_v39, %v271_v40  ;;  %v951_v58 = vcombine.low %v268_v41, %v272_v42  ;;  %s201_s11 = scalar_lea.vmem %s1274_s4, %s983_s8 }
  0x12   : > { %616 = vmatpush1.bf16.msra.mxu0 %v925_v27  ;;  %659 = vmatpush1.bf16.msra.mxu1 %v927_v28  ;;  %v907_v46 = vld [vmem:[%s1271_s1] ss:$0 sm:$0xff]  ;;  %v276_v52 = vld [vmem:[%s1273_s3 + $0x188] sm:$0xff]  ;;  %v924_v26 = vcombine.high %v238_v21, %v242_v22  ;;  %v245_v27 = vld [vmem:[%s1273_s3 + $0x90] sm:$0xff]  ;;  %v923_v32 = vcombine.low %v238_v21, %v242_v22 }
  0x13   : > { %617 = vmatprep.subr.bf16.mxu0 %v934_v29  ;;  %660 = vmatprep.subr.bf16.mxu1 %v936_v30  ;;  %v275_v50 = vld [vmem:[%s1273_s3 + $0x180] sm:$0xff]  ;;  %v280_v53 = vld [vmem:[%s1273_s3 + $0x1a8] sm:$0xff]  ;;  %v213_v54 = vmul.f32 %v907_v46, %v204_v44  ;;  %v214_v55 = vmul.f32 %v907_v46, %v205_v45  ;;  %v249_v28 = vld [vmem:[%s1273_s3 + $0xb0] sm:$0xff] }
  0x14   : > { %v279_v51 = vld [vmem:[%s1273_s3 + $0x1a0] sm:$0xff]  ;;  %v960_v60 = vcombine.high %v276_v52, %v280_v53  ;;  %v284_v63 = vld [vmem:[%s1273_s3 + $0x1c8] sm:$0xff]  ;;  %v959_v4 = vcombine.low %v276_v52, %v280_v53  ;;  %v246_v29 = vld [vmem:[%s1273_s3 + $0x98] sm:$0xff]  ;;  %v930_v33 = vcombine.high %v245_v27, %v249_v28  ;;  %v929_v39 = vcombine.low %v245_v27, %v249_v28 }
  0x15   : > { %v908_v57 = vld [vmem:[%s1272_s2] ss:$0 sm:$0xff]  ;;  %v958_v59 = vcombine.high %v275_v50, %v279_v51  ;;  %v288_v0 = vld [vmem:[%s1273_s3 + $0x1e8] sm:$0xff]  ;;  %v957_v3 = vcombine.low %v275_v50, %v279_v51  ;;  %v250_v30 = vld [vmem:[%s1273_s3 + $0xb8] sm:$0xff] }
  0x16   : > { %618 = vmatpush1.bf16.msra.mxu0 %v933_v35  ;;  %661 = vmatpush1.bf16.msra.mxu1 %v935_v36  ;;  %v283_v61 = vld [vmem:[%s1273_s3 + $0x1c0] sm:$0xff]  ;;  %v222_v1 = vadd.f32 %v908_v57, %v213_v54  ;;  %v223_v2 = vadd.f32 %v908_v57, %v214_v55  ;;  %v968_v6 = vcombine.high %v284_v63, %v288_v0  ;;  %v253_v35 = vld [vmem:[%s1273_s3 + $0xd0] sm:$0xff]  ;;  %v266_v45 = vld [vmem:[%s1273_s3 + $0x138] sm:$0xff] }
  0x17   : > { %619 = vmatprep.subr.bf16.mxu0 %v942_v37  ;;  %662 = vmatprep.subr.bf16.mxu1 %v944_v38  ;;  %v287_v62 = vld [vmem:[%s1273_s3 + $0x1e0] sm:$0xff]  ;;  %v967_v15 = vcombine.low %v284_v63, %v288_v0  ;;  %v932_v34 = vcombine.high %v246_v29, %v250_v30  ;;  %v257_v36 = vld [vmem:[%s1273_s3 + $0xf0] sm:$0xff]  ;;  %v254_v37 = vld [vmem:[%s1273_s3 + $0xd8] sm:$0xff]  ;;  %v931_v40 = vcombine.low %v246_v29, %v250_v30 }
  0x18   : > { %v966_v5 = vcombine.high %v283_v61, %v287_v62  ;;  %v224_v10 = vmax.f32 %v222_v1, 0.0  ;;  %v225_v11 = vmax.f32 %v223_v2, 0.0  ;;  %v965_v14 = vcombine.low %v283_v61, %v287_v62  ;;  %v258_v38 = vld [vmem:[%s1273_s3 + $0xf8] sm:$0xff]  ;;  %v265_v44 = vld [vmem:[%s1273_s3 + $0x130] sm:$0xff] }
  0x19   : > { %v938_v41 = vcombine.high %v253_v35, %v257_v36  ;;  %v940_v42 = vcombine.high %v254_v37, %v258_v38  ;;  %v937_v46 = vcombine.low %v253_v35, %v257_v36  ;;  %v269_v50 = vld [vmem:[%s1273_s3 + $0x150] sm:$0xff]  ;;  %v270_v52 = vld [vmem:[%s1273_s3 + $0x158] sm:$0xff] }
  0x1a   : > { %620 = vmatpush1.bf16.msra.mxu0 %v941_v43  ;;  %663 = vmatpush1.bf16.msra.mxu1 %v943_v47  ;;  %v1177_v20 = vpack.c.bf16 %v225_v11, %v224_v10  ;;  %v261_v43 = vld [vmem:[%s1273_s3 + $0x110] sm:$0xff]  ;;  %v939_v47 = vcombine.low %v254_v37, %v258_v38  ;;  %v274_v53 = vld [vmem:[%s1273_s3 + $0x178] sm:$0xff] }
  0x1b   : > { %621 = vmatprep.subr.bf16.mxu0 %v950_v48  ;;  %664 = vmatprep.subr.bf16.mxu1 %v952_v49  ;;  %v946_v48 = vcombine.high %v261_v43, %v265_v44  ;;  %v273_v51 = vld [vmem:[%s1273_s3 + $0x170] sm:$0xff]  ;;  %v945_v54 = vcombine.low %v261_v43, %v265_v44  ;;  %v956_v57 = vcombine.high %v270_v52, %v274_v53  ;;  %v282_v61 = vld [vmem:[%s1273_s3 + $0x1b8] sm:$0xff] }
  0x1c   : > { %v953_v62 = vcombine.low %v269_v50, %v273_v51  ;;  %v955_v63 = vcombine.low %v270_v52, %v274_v53  ;;  %v285_v2 = vld [vmem:[%s1273_s3 + $0x1d0] sm:$0xff] }
  0x1e   : > { %622 = vmatpush1.bf16.msra.mxu0 %v949_v56  ;;  %665 = vmatpush1.bf16.msra.mxu1 %v951_v58  ;;  %v954_v56 = vcombine.high %v269_v50, %v273_v51  ;;  %v277_v58 = vld [vmem:[%s1273_s3 + $0x190] sm:$0xff] }
  0x1f   : > { %623 = vmatprep.subr.bf16.mxu0 %v958_v59  ;;  %666 = vmatprep.subr.bf16.mxu1 %v960_v60  ;;  %v281_v59 = vld [vmem:[%s1273_s3 + $0x1b0] sm:$0xff]  ;;  %v278_v60 = vld [vmem:[%s1273_s3 + $0x198] sm:$0xff] }
  0x20   : > { %v962_v0 = vcombine.high %v277_v58, %v281_v59  ;;  %v964_v1 = vcombine.high %v278_v60, %v282_v61  ;;  %v963_v7 = vcombine.low %v278_v60, %v282_v61 }
  0x22   : > { %624 = vmatpush1.bf16.msra.mxu0 %v957_v3  ;;  %667 = vmatpush1.bf16.msra.mxu1 %v959_v4  ;;  %v289_v3 = vld [vmem:[%s1273_s3 + $0x1f0] sm:$0xff]  ;;  %v286_v4 = vld [vmem:[%s1273_s3 + $0x1d8] sm:$0xff] }
  0x23   : > { %625 = vmatprep.subr.bf16.mxu0 %v966_v5  ;;  %668 = vmatprep.subr.bf16.mxu1 %v968_v6  ;;  %v290_v5 = vld [vmem:[%s1273_s3 + $0x1f8] sm:$0xff]  ;;  %v961_v6 = vcombine.low %v277_v58, %v281_v59  ;;  %v970_v9 = vcombine.high %v285_v2, %v289_v3  ;;  %v969_v11 = vcombine.low %v285_v2, %v289_v3 }
  0x24   : > { %v972_v10 = vcombine.high %v286_v4, %v290_v5  ;;  %v971_v12 = vcombine.low %v286_v4, %v290_v5 }
  0x26   : > { %626 = vmatpush1.bf16.msra.mxu0 %v965_v14  ;;  %669 = vmatpush1.bf16.msra.mxu1 %v967_v15 }
  0x27   : > { %697 = vmatprep.subr.bf16.mxu0 %v914_v16  ;;  %740 = vmatprep.subr.bf16.mxu1 %v916_v17 }
  0x29   : > { %644 = vmatmul.mubr.bf16.vlgmr.msra.gmra.mrb[0].mxu0 %v1177_v20  ;;  %687 = vmatmul.mubr.bf16.vlgmr.msra.gmra.mrb[0].mxu1 %v1177_v20 }
  0x2a   : > { %698 = vmatpush1.bf16.msra.mxu0 %v913_v23  ;;  %741 = vmatpush1.bf16.msra.mxu1 %v915_v24 }
  0x2b   : > { %699 = vmatprep.subr.bf16.mxu0 %v922_v25  ;;  %742 = vmatprep.subr.bf16.mxu1 %v924_v26 }
  0x2c   : > { %729 = vmatprep.mubr.bf16.mxu0 %v1009_v8  ;;  %772 = vmatprep.mubr.bf16.mxu1 %v1009_v8  ;;  %v262_v8 = vld [vmem:[%s1273_s3 + $0x118] sm:$0xff] }
  0x2d   : > { %v948_v49 = vcombine.high %v262_v8, %v266_v45  ;;  %v947_v55 = vcombine.low %v262_v8, %v266_v45 }
  0x2e   : > { %700 = vmatpush1.bf16.msra.mxu0 %v921_v31  ;;  %743 = vmatpush1.bf16.msra.mxu1 %v923_v32 }
  0x2f   : > { %701 = vmatprep.subr.bf16.mxu0 %v930_v33  ;;  %744 = vmatprep.subr.bf16.mxu1 %v932_v34 }
  0x32   : > { %702 = vmatpush1.bf16.msra.mxu0 %v929_v39  ;;  %745 = vmatpush1.bf16.msra.mxu1 %v931_v40 }
  0x33   : > { %703 = vmatprep.subr.bf16.mxu0 %v938_v41  ;;  %746 = vmatprep.subr.bf16.mxu1 %v940_v42 }
  0x36   : > { %704 = vmatpush1.bf16.msra.mxu0 %v937_v46  ;;  %747 = vmatpush1.bf16.msra.mxu1 %v939_v47 }
  0x37   : > { %705 = vmatprep.subr.bf16.mxu0 %v946_v48  ;;  %748 = vmatprep.subr.bf16.mxu1 %v948_v49 }
  0x3a   : > { %706 = vmatpush1.bf16.msra.mxu0 %v945_v54  ;;  %749 = vmatpush1.bf16.msra.mxu1 %v947_v55 }
  0x3b   : > { %707 = vmatprep.subr.bf16.mxu0 %v954_v56  ;;  %750 = vmatprep.subr.bf16.mxu1 %v956_v57 }
  0x3e   : > { %708 = vmatpush1.bf16.msra.mxu0 %v953_v62  ;;  %751 = vmatpush1.bf16.msra.mxu1 %v955_v63 }
  0x3f   : > { %709 = vmatprep.subr.bf16.mxu0 %v962_v0  ;;  %752 = vmatprep.subr.bf16.mxu1 %v964_v1 }
  0x42   : > { %710 = vmatpush1.bf16.msra.mxu0 %v961_v6  ;;  %753 = vmatpush1.bf16.msra.mxu1 %v963_v7 }
  0x43   : > { %711 = vmatprep.subr.bf16.mxu0 %v970_v9  ;;  %754 = vmatprep.subr.bf16.mxu1 %v972_v10 }
  0x46   : > { %712 = vmatpush1.bf16.msra.mxu0 %v969_v11  ;;  %755 = vmatpush1.bf16.msra.mxu1 %v971_v12 }
  0x49   : > { %730 = vmatmul.mubr.bf16.vlgmr.msra.gmra.mrb[4].mxu0 %v1177_v20  ;;  %773 = vmatmul.mubr.bf16.vlgmr.msra.gmra.mrb[4].mxu1 %v1177_v20 }
  0xfc   : > { %v645_v13 = vpop.f32.mrb[0].mxu0  ;;  %v688_v14 = vpop.f32.mrb[0].mxu1 }
  0xfd   : > { %v647_v15 = vpop.f32.mrb[1].mxu0  ;;  %v690_v17 = vpop.f32.mrb[1].mxu1 }
  0xfe   : > { %v984_v16 = vpack.c.bf16 %v647_v15, %v645_v13  ;;  %v649_v18 = vpop.f32.mrb[2].mxu0  ;;  %v985_v19 = vpack.c.bf16 %v690_v17, %v688_v14  ;;  %v692_v21 = vpop.f32.mrb[2].mxu1 }
  0xff   : > { %v651_v22 = vpop.f32.mrb[3].mxu0  ;;  %v694_v24 = vpop.f32.mrb[3].mxu1 }
 0x100   : > { %831 = vst [vmem:[%s201_s11] sm:$0xff] %v984_v16  ;;  %v988_v23 = vpack.c.bf16 %v651_v22, %v649_v18  ;;  %832 = vst [vmem:[%s201_s11 + $0x8] sm:$0xff] %v985_v19  ;;  %v989_v25 = vpack.c.bf16 %v694_v24, %v692_v21 }
 0x102   : > { %835 = vst [vmem:[%s201_s11 + $0x20] sm:$0xff] %v988_v23  ;;  %836 = vst [vmem:[%s201_s11 + $0x28] sm:$0xff] %v989_v25 }
 0x11c   : > { %v731_v20 = vpop.f32.mrb[4].mxu0  ;;  %v774_v26 = vpop.f32.mrb[4].mxu1 }
 0x11d   : > { %v733_v27 = vpop.f32.mrb[5].mxu0  ;;  %v776_v29 = vpop.f32.mrb[5].mxu1 }
 0x11e   : > { %v986_v28 = vpack.c.bf16 %v733_v27, %v731_v20  ;;  %v735_v30 = vpop.f32.mrb[6].mxu0  ;;  %v987_v31 = vpack.c.bf16 %v776_v29, %v774_v26  ;;  %v778_v32 = vpop.f32.mrb[6].mxu1 }
 0x11f   : > { %v737_v33 = vpop.f32.mrb[7].mxu0  ;;  %v780_v35 = vpop.f32.mrb[7].mxu1 }
 0x120   : > { %833 = vst [vmem:[%s201_s11 + $0x10] sm:$0xff] %v986_v28  ;;  %v990_v34 = vpack.c.bf16 %v737_v33, %v735_v30  ;;  %834 = vst [vmem:[%s201_s11 + $0x18] sm:$0xff] %v987_v31  ;;  %v991_v36 = vpack.c.bf16 %v780_v35, %v778_v32 }
 0x122   : > { %837 = vst [vmem:[%s201_s11 + $0x30] sm:$0xff] %v990_v34  ;;  %838 = vst [vmem:[%s201_s11 + $0x38] sm:$0xff] %v991_v36 }
 0x123 PF: > { %s14_s15 = sadd.s32 1, %s1007_s15  }
 0x124   : > { %p11_p4 = scmp.ge.s32.totalorder %s14_s15, 4  }
 0x126   :  { %13 = sbr.rel (!%p11_p4) target bundleno = 1 (0x1), region = 66 }

// kernel: _lambda_.6
= control target key start
LH: loop header
LB: loop body
LE: loop exit
PB: predicated region body
PF: predicated region fallthrough
CT: control target
= control target key end

     0   :  { %s817_s15 = smov 0   ;;  %s936_s0 = inlined_call_operand.vmem [shape: f32[128,64], index: 0, kind: input, shape index: {}]   ;;  %s937_s1 = inlined_call_operand.vmem [shape: f32[1,64], index: 1, kind: input, shape index: {}]   ;;  %s938_s2 = inlined_call_operand.vmem [shape: f32[1,64], index: 2, kind: input, shape index: {}]   ;;  %s939_s3 = inlined_call_operand.vmem [shape: bf16[64,512], index: 3, kind: input, shape index: {}]   ;;  %s940_s4 = inlined_call_operand.vmem [shape: bf16[128,512], index: 4, kind: output, shape index: {}]  }
   0x1 LB: > { %s679_s16 = sadd.s32 4294967295, %s789_s15   ;;  %p683_p0 = scmp.ge.s32.totalorder %s789_s15, 1  ;;  %s789_s15 = sphi %s817_s15, %s14_s15  }
   0x2   : > { %p163_p1 = scmp.lt.s32.totalorder %s789_s15, 3 }
   0x4   : > { %p164_p2 = pnand %p683_p0, %p163_p1 }
   0x5   : > { %v759_v0 = vld [vmem:[%s939_s3 + $0x4] ss:$16 sps:$4 sm:$0xff] (!%p164_p2)   ;;  %s684_s19 = sshll.u32 (!%p164_p2), %s679_s16, 3  ;;  %v761_v1 = vld [vmem:[%s939_s3 + $0xc] ss:$16 sps:$4 sm:$0xff] (!%p164_p2)   ;;  %v791_v2 = vmov (!%p164_p2), 0  }
   0x6   : > { %167 = sbr.rel (%p164_p2) target bundleno = 267 (0x10b), region = 36  ;;  %395 = vmatprep.mubr.bf16.mxu0 (!%p164_p2), %v791_v2  ;;  %468 = vmatprep.mubr.bf16.mxu1 (!%p164_p2), %v791_v2  ;;  %p191_p3 = scmp.lt.s32.totalorder (!%p164_p2), %s684_s19, 15  ;;  %v763_v3 = vld [vmem:[%s939_s3] ss:$16 sps:$4 sm:$0xff] (!%p164_p2)   ;;  %v764_v4 = vld [vmem:[%s939_s3 + $0x8] ss:$16 sps:$4 sm:$0xff] (!%p164_p2)  }
   0x7   : > { %363 = vmatprep.subr.bf16.mxu0 (!%p164_p2), %v759_v0  ;;  %436 = vmatprep.subr.bf16.mxu1 (!%p164_p2), %v761_v1  ;;  %v765_v5 = vld [vmem:[%s939_s3 + $0x24] ss:$16 sps:$4 sm:$0xff] (!%p164_p2)   ;;  %v767_v6 = vld [vmem:[%s939_s3 + $0x2c] ss:$16 sps:$4 sm:$0xff] (!%p164_p2)   ;;  %v769_v7 = vld [vmem:[%s939_s3 + $0x20] ss:$16 sps:$4 sm:$0xff] (!%p164_p2)  }
   0x8   : > { %364 = vmatpush1.bf16.msra.mxu0 (!%p164_p2), %v763_v3  ;;  %437 = vmatpush1.bf16.msra.mxu1 (!%p164_p2), %v764_v4  ;;  %v770_v8 = vld [vmem:[%s939_s3 + $0x28] ss:$16 sps:$4 sm:$0xff] (!%p164_p2)   ;;  %v771_v9 = vld [vmem:[%s939_s3 + $0x44] ss:$16 sps:$4 sm:$0xff] (!%p164_p2)   ;;  %v773_v10 = vld [vmem:[%s939_s3 + $0x4c] ss:$16 sps:$4 sm:$0xff] (!%p164_p2)  }
   0x9   : > { %365 = vmatprep.subr.bf16.mxu0 (!%p164_p2), %v765_v5  ;;  %438 = vmatprep.subr.bf16.mxu1 (!%p164_p2), %v767_v6  ;;  %v775_v11 = vld [vmem:[%s939_s3 + $0x40] ss:$16 sps:$4 sm:$0xff] (!%p164_p2)   ;;  %v776_v12 = vld [vmem:[%s939_s3 + $0x48] ss:$16 sps:$4 sm:$0xff] (!%p164_p2)   ;;  %v777_v13 = vld [vmem:[%s939_s3 + $0x64] ss:$16 sps:$4 sm:$0xff] (!%p164_p2)  }
   0xa   : > { %v779_v14 = vld [vmem:[%s939_s3 + $0x6c] ss:$16 sps:$4 sm:$0xff] (!%p164_p2)   ;;  %v781_v15 = vld [vmem:[%s939_s3 + $0x60] ss:$16 sps:$4 sm:$0xff] (!%p164_p2)   ;;  %v782_v20 = vld [vmem:[%s939_s3 + $0x68] ss:$16 sps:$4 sm:$0xff] (!%p164_p2)  }
   0xb   : > { %v689_v18 = vld [vmem:[%s937_s1] ss:$0 sm:$0xff] (!%p164_p2)  ;;  %vm350_vm0 = vcmask (!%p164_p2), 523264  }
   0xc   : > { %366 = vmatpush1.bf16.msra.mxu0 (!%p164_p2), %v769_v7  ;;  %439 = vmatpush1.bf16.msra.mxu1 (!%p164_p2), %v770_v8  ;;  %v690_v19 = vld [vmem:[%s938_s2] ss:$0 sm:$0xff] (!%p164_p2) }
   0xd   : > { %s942_s19 = smov (!%p191_p3, %s684_s19), 15  ;;  %367 = vmatprep.subr.bf16.mxu0 %v771_v9  ;;  %440 = vmatprep.subr.bf16.mxu1 %v773_v10 }
   0xe   : > { %s685_s8 = sshll.u32 %s942_s19, 3 }
   0xf   : > { %s869_s21 = scalar_lea.vmem %s936_s0, %s685_s8  ;;  %s733_s8 = sshll.u32 %s942_s19, 4 }
  0x10   : > { %v204_v16 = vld [vmem:[%s869_s21] sm:$0xff]  ;;  %v205_v17 = vld [vmem:[%s869_s21 + $0x8] sm:$0xff]  ;;  %368 = vmatpush1.bf16.msra.mxu0 %v775_v11  ;;  %441 = vmatpush1.bf16.msra.mxu1 %v776_v12  ;;  %v206_v23 = vld [vmem:[%s869_s21 + $0x10] sm:$0xff]  ;;  %s915_s11 = scalar_lea.vmem %s940_s4, %s733_s8 }
  0x11   : > { %v219_v21 = vmul.f32 %v689_v18, %v204_v16  ;;  %v220_v22 = vmul.f32 %v689_v18, %v205_v17  ;;  %v207_v24 = vld [vmem:[%s869_s21 + $0x18] sm:$0xff]  ;;  %369 = vmatprep.subr.bf16.mxu0 %v777_v13  ;;  %442 = vmatprep.subr.bf16.mxu1 %v779_v14  ;;  %v221_v25 = vmul.f32 %v689_v18, %v206_v23  ;;  %v208_v33 = vld [vmem:[%s869_s21 + $0x20] sm:$0xff]  ;;  %v209_v34 = vld [vmem:[%s869_s21 + $0x28] sm:$0xff] }
  0x12   : > { %v222_v26 = vmul.f32 %v689_v18, %v207_v24  ;;  %v223_v38 = vmul.f32 %v689_v18, %v208_v33  ;;  %v224_v39 = vmul.f32 %v689_v18, %v209_v34  ;;  %v210_v43 = vld [vmem:[%s869_s21 + $0x30] sm:$0xff]  ;;  %v211_v44 = vld [vmem:[%s869_s21 + $0x38] sm:$0xff] }
  0x13   : > { %v234_v27 = vadd.f32 %v690_v19, %v219_v21  ;;  %v235_v28 = vadd.f32 %v690_v19, %v220_v22  ;;  %v236_v31 = vadd.f32 %v690_v19, %v221_v25  ;;  %v225_v47 = vmul.f32 %v689_v18, %v210_v43 }
  0x14   : > { %370 = vmatpush1.bf16.msra.mxu0 %v781_v15  ;;  %443 = vmatpush1.bf16.msra.mxu1 %v782_v20  ;;  %v237_v32 = vadd.f32 %v690_v19, %v222_v26  ;;  %v238_v41 = vadd.f32 %v690_v19, %v223_v38  ;;  %v239_v42 = vadd.f32 %v690_v19, %v224_v39 }
  0x15   : > { %v242_v29 = vmax.f32 %v234_v27, 0.0  ;;  %v243_v30 = vmax.f32 %v235_v28, 0.0  ;;  %v244_v36 = vmax.f32 %v236_v31, 0.0  ;;  %v226_v48 = vmul.f32 %v689_v18, %v211_v44 }
  0x16   : > { %v245_v37 = vmax.f32 %v237_v32, 0.0  ;;  %v246_v45 = vmax.f32 %v238_v41, 0.0  ;;  %v247_v46 = vmax.f32 %v239_v42, 0.0  ;;  %v240_v50 = vadd.f32 %v690_v19, %v225_v47 }
  0x17   : > { %v250_v35 = vpack.c.bf16 %v243_v30, %v242_v29  ;;  %v241_v51 = vadd.f32 %v690_v19, %v226_v48 }
  0x18   : > { %v251_v40 = vpack.c.bf16 %v245_v37, %v244_v36  ;;  %v252_v49 = vpack.c.bf16 %v247_v46, %v246_v45  ;;  %v248_v52 = vmax.f32 %v240_v50, 0.0 }
  0x19   : > { %707 = vmatmul.mubr.msk.bf16.vlgmr.msra.gmra.mrb[0].mxu0 %vm350_vm0, %v250_v35  ;;  %711 = vmatmul.mubr.msk.bf16.vlgmr.msra.gmra.mrb[0].mxu1 %vm350_vm0, %v250_v35  ;;  %v249_v53 = vmax.f32 %v241_v51, 0.0 }
  0x1a   : > { %405 = vmatprep.mubr.bf16.mxu0 %v791_v2  ;;  %478 = vmatprep.mubr.bf16.mxu1 %v791_v2 }
  0x1b   : > { %v253_v54 = vpack.c.bf16 %v249_v53, %v248_v52 }
  0x21   : > { %708 = vmatmul.mubr.msk.bf16.gmra.mrb[4].mxu0 %vm350_vm0, %v251_v40  ;;  %712 = vmatmul.mubr.msk.bf16.gmra.mrb[4].mxu1 %vm350_vm0, %v251_v40 }
  0x22   : > { %415 = vmatprep.mubr.bf16.mxu0 %v791_v2  ;;  %488 = vmatprep.mubr.bf16.mxu1 %v791_v2 }
  0x29   : > { %709 = vmatmul.mubr.msk.bf16.gmra.mrb[8].mxu0 %vm350_vm0, %v252_v49  ;;  %713 = vmatmul.mubr.msk.bf16.gmra.mrb[8].mxu1 %vm350_vm0, %v252_v49 }
  0x2a   : > { %425 = vmatprep.mubr.bf16.mxu0 %v791_v2  ;;  %498 = vmatprep.mubr.bf16.mxu1 %v791_v2 }
  0x31   : > { %710 = vmatmul.mubr.msk.bf16.gmra.mrb[12].mxu0 %vm350_vm0, %v253_v54  ;;  %714 = vmatmul.mubr.msk.bf16.gmra.mrb[12].mxu1 %vm350_vm0, %v253_v54 }
  0xec   : > { %v397_v55 = vpop.f32.mrb[0].mxu0  ;;  %v470_v56 = vpop.f32.mrb[0].mxu1 }
  0xed   : > { %v399_v57 = vpop.f32.mrb[1].mxu0  ;;  %v472_v58 = vpop.f32.mrb[1].mxu1 }
  0xee   : > { %v734_v59 = vpack.c.bf16 %v399_v57, %v397_v55  ;;  %v735_v60 = vpack.c.bf16 %v472_v58, %v470_v56  ;;  %v401_v61 = vpop.f32.mrb[2].mxu0  ;;  %v474_v62 = vpop.f32.mrb[2].mxu1 }
  0xef   : > { %v403_v63 = vpop.f32.mrb[3].mxu0  ;;  %v476_v0 = vpop.f32.mrb[3].mxu1 }
  0xf0   : > { %605 = vst [vmem:[%s915_s11] sm:$0xff] %v734_v59  ;;  %606 = vst [vmem:[%s915_s11 + $0x8] sm:$0xff] %v735_v60  ;;  %v736_v1 = vpack.c.bf16 %v403_v63, %v401_v61  ;;  %v737_v2 = vpack.c.bf16 %v476_v0, %v474_v62 }
  0xf2   : > { %607 = vst [vmem:[%s915_s11 + $0x10] sm:$0xff] %v736_v1  ;;  %608 = vst [vmem:[%s915_s11 + $0x18] sm:$0xff] %v737_v2 }
  0xf4   : > { %v407_v3 = vpop.f32.mrb[4].mxu0  ;;  %v480_v4 = vpop.f32.mrb[4].mxu1 }
  0xf5   : > { %v409_v5 = vpop.f32.mrb[5].mxu0  ;;  %v482_v6 = vpop.f32.mrb[5].mxu1 }
  0xf6   : > { %v738_v7 = vpack.c.bf16 %v409_v5, %v407_v3  ;;  %v739_v8 = vpack.c.bf16 %v482_v6, %v480_v4  ;;  %v411_v9 = vpop.f32.mrb[6].mxu0  ;;  %v484_v10 = vpop.f32.mrb[6].mxu1 }
  0xf7   : > { %v413_v11 = vpop.f32.mrb[7].mxu0  ;;  %v486_v12 = vpop.f32.mrb[7].mxu1 }
  0xf8   : > { %609 = vst [vmem:[%s915_s11 + $0x20] sm:$0xff] %v738_v7  ;;  %610 = vst [vmem:[%s915_s11 + $0x28] sm:$0xff] %v739_v8  ;;  %v740_v13 = vpack.c.bf16 %v413_v11, %v411_v9  ;;  %v741_v14 = vpack.c.bf16 %v486_v12, %v484_v10 }
  0xfa   : > { %611 = vst [vmem:[%s915_s11 + $0x30] sm:$0xff] %v740_v13  ;;  %612 = vst [vmem:[%s915_s11 + $0x38] sm:$0xff] %v741_v14 }
  0xfc   : > { %v417_v15 = vpop.f32.mrb[8].mxu0  ;;  %v490_v16 = vpop.f32.mrb[8].mxu1 }
  0xfd   : > { %v419_v17 = vpop.f32.mrb[9].mxu0  ;;  %v492_v18 = vpop.f32.mrb[9].mxu1 }
  0xfe   : > { %v742_v19 = vpack.c.bf16 %v419_v17, %v417_v15  ;;  %v743_v20 = vpack.c.bf16 %v492_v18, %v490_v16  ;;  %v421_v21 = vpop.f32.mrb[10].mxu0  ;;  %v494_v22 = vpop.f32.mrb[10].mxu1 }
  0xff   : > { %v423_v23 = vpop.f32.mrb[11].mxu0  ;;  %v496_v24 = vpop.f32.mrb[11].mxu1 }
 0x100   : > { %613 = vst [vmem:[%s915_s11 + $0x40] sm:$0xff] %v742_v19  ;;  %614 = vst [vmem:[%s915_s11 + $0x48] sm:$0xff] %v743_v20  ;;  %v744_v25 = vpack.c.bf16 %v423_v23, %v421_v21  ;;  %v745_v26 = vpack.c.bf16 %v496_v24, %v494_v22 }
 0x102   : > { %615 = vst [vmem:[%s915_s11 + $0x50] sm:$0xff] %v744_v25  ;;  %616 = vst [vmem:[%s915_s11 + $0x58] sm:$0xff] %v745_v26 }
 0x104   : > { %v427_v27 = vpop.f32.mrb[12].mxu0  ;;  %v500_v28 = vpop.f32.mrb[12].mxu1 }
 0x105   : > { %v429_v29 = vpop.f32.mrb[13].mxu0  ;;  %v502_v30 = vpop.f32.mrb[13].mxu1 }
 0x106   : > { %v746_v31 = vpack.c.bf16 %v429_v29, %v427_v27  ;;  %v747_v32 = vpack.c.bf16 %v502_v30, %v500_v28  ;;  %v431_v33 = vpop.f32.mrb[14].mxu0  ;;  %v504_v34 = vpop.f32.mrb[14].mxu1 }
 0x107   : > { %v433_v35 = vpop.f32.mrb[15].mxu0  ;;  %v506_v36 = vpop.f32.mrb[15].mxu1 }
 0x108   : > { %617 = vst [vmem:[%s915_s11 + $0x60] sm:$0xff] %v746_v31  ;;  %618 = vst [vmem:[%s915_s11 + $0x68] sm:$0xff] %v747_v32  ;;  %v748_v37 = vpack.c.bf16 %v433_v35, %v431_v33  ;;  %v749_v38 = vpack.c.bf16 %v506_v36, %v504_v34 }
 0x10a   : > { %619 = vst [vmem:[%s915_s11 + $0x70] sm:$0xff] %v748_v37  ;;  %620 = vst [vmem:[%s915_s11 + $0x78] sm:$0xff] %v749_v38 }
 0x10b PF: > { %s14_s15 = sadd.s32 1, %s789_s15  }
 0x10c   : > { %p11_p4 = scmp.ge.s32.totalorder %s14_s15, 4  }
 0x10e   :  { %13 = sbr.rel (!%p11_p4) target bundleno = 1 (0x1), region = 66 }

// kernel: _lambda_.7
= control target key start
LH: loop header
LB: loop body
LE: loop exit
PB: predicated region body
PF: predicated region fallthrough
CT: control target
= control target key end

     0   :  { %s1062_s15 = smov 0   ;;  %s1272_s0 = inlined_call_operand.vmem [shape: f32[512,32], index: 0, kind: input, shape index: {}]   ;;  %s1273_s1 = inlined_call_operand.vmem [shape: f32[1,32], index: 1, kind: input, shape index: {}]   ;;  %s1274_s2 = inlined_call_operand.vmem [shape: f32[1,32], index: 2, kind: input, shape index: {}]   ;;  %s1275_s3 = inlined_call_operand.vmem [shape: bf16[32,256], index: 3, kind: input, shape index: {}]   ;;  %s1276_s4 = inlined_call_operand.vmem [shape: bf16[512,256], index: 4, kind: output, shape index: {}]  }
   0x1 LB: > { %s910_s16 = sadd.s32 4294967295, %s1034_s15   ;;  %p914_p0 = scmp.ge.s32.totalorder %s1034_s15, 1  ;;  %s1034_s15 = sphi %s1062_s15, %s14_s15  }
   0x2   : > { %p163_p1 = scmp.lt.s32.totalorder %s1034_s15, 3 }
   0x4   : > { %p164_p2 = pnand %p914_p0, %p163_p1 }
   0x5   : > { %v1022_v0 = vld [vmem:[%s1275_s3 + $0x4] ss:$8 sps:$4 sm:$0xff] (!%p164_p2)   ;;  %s915_s19 = sshll.u32 (!%p164_p2), %s910_s16, 5  ;;  %v1024_v1 = vld [vmem:[%s1275_s3] ss:$8 sps:$4 sm:$0xff] (!%p164_p2)   ;;  %v1036_v2 = vmov (!%p164_p2), 0  }
   0x6   : > { %167 = sbr.rel (%p164_p2) target bundleno = 300 (0x12c), region = 36  ;;  %467 = vmatprep.mubr.bf16.mxu0 (!%p164_p2), %v1036_v2  ;;  %547 = vmatprep.mubr.bf16.mxu1 (!%p164_p2), %v1036_v2  ;;  %p191_p3 = scmp.lt.s32.totalorder (!%p164_p2), %s915_s19, 63  ;;  %v1025_v3 = vld [vmem:[%s1275_s3 + $0x14] ss:$8 sps:$4 sm:$0xff] (!%p164_p2)   ;;  %v1027_v4 = vld [vmem:[%s1275_s3 + $0x10] ss:$8 sps:$4 sm:$0xff] (!%p164_p2)  }
   0x7   : > { %435 = vmatprep.subr.bf16.mxu0 (!%p164_p2), %v1022_v0  ;;  %1009 = vmatprep.subr.bf16.mxu1 (!%p164_p2), %v1022_v0  ;;  %v1090_v5 = vld [vmem:[%s1273_s1] ss:$0 sm:$0xff] (!%p164_p2)  ;;  %vm386_vm0 = vcmask (!%p164_p2), 261120  }
   0x8   : > { %436 = vmatpush1.bf16.msra.mxu0 (!%p164_p2), %v1024_v1  ;;  %1011 = vmatpush1.bf16.msra.mxu1 (!%p164_p2), %v1024_v1  ;;  %v1102_v6 = vld [vmem:[%s1274_s2] ss:$0 sm:$0xff] (!%p164_p2) }
   0x9   : > { %437 = vmatprep.subr.bf16.mxu0 (!%p164_p2), %v1025_v3  ;;  %1010 = vmatprep.subr.bf16.mxu1 (!%p164_p2), %v1025_v3 }
   0xc   : > { %438 = vmatpush1.bf16.msra.mxu0 (!%p164_p2), %v1027_v4  ;;  %1012 = vmatpush1.bf16.msra.mxu1 (!%p164_p2), %v1027_v4 }
   0xd   : > { %s1278_s19 = smov (!%p191_p3, %s915_s19), 63 }
   0xe   : > { %s916_s26 = sshll.u32 %s1278_s19, 3 }
   0xf   : > { %s1097_s5 = scalar_lea.vmem %s1272_s0, %s916_s26  ;;  %s1235_s10 = scalar_lea.vmem %s1276_s4, %s916_s26 }
  0x10   : > { %v204_v7 = vld [vmem:[%s1097_s5] sm:$0xff]  ;;  %v205_v8 = vld [vmem:[%s1097_s5 + $0x8] sm:$0xff]  ;;  %v206_v14 = vld [vmem:[%s1097_s5 + $0x10] sm:$0xff] }
  0x11   : > { %v220_v9 = vld [vmem:[%s1097_s5 + $0x80] sm:$0xff]  ;;  %v243_v10 = vmul.f32 %v1090_v5, %v204_v7  ;;  %v244_v11 = vmul.f32 %v1090_v5, %v205_v8  ;;  %v221_v12 = vld [vmem:[%s1097_s5 + $0x88] sm:$0xff]  ;;  %v207_v15 = vld [vmem:[%s1097_s5 + $0x18] sm:$0xff]  ;;  %v245_v17 = vmul.f32 %v1090_v5, %v206_v14 }
  0x12   : > { %v259_v13 = vmul.f32 %v1090_v5, %v220_v9  ;;  %v260_v16 = vmul.f32 %v1090_v5, %v221_v12  ;;  %v246_v18 = vmul.f32 %v1090_v5, %v207_v15  ;;  %v222_v19 = vld [vmem:[%s1097_s5 + $0x90] sm:$0xff]  ;;  %v223_v20 = vld [vmem:[%s1097_s5 + $0x98] sm:$0xff]  ;;  %v208_v35 = vld [vmem:[%s1097_s5 + $0x20] sm:$0xff] }
  0x13   : > { %v282_v21 = vadd.f32 %v1102_v6, %v243_v10  ;;  %v283_v22 = vadd.f32 %v1102_v6, %v244_v11  ;;  %v261_v24 = vmul.f32 %v1090_v5, %v222_v19  ;;  %v284_v26 = vadd.f32 %v1102_v6, %v245_v17  ;;  %v209_v36 = vld [vmem:[%s1097_s5 + $0x28] sm:$0xff]  ;;  %v224_v38 = vld [vmem:[%s1097_s5 + $0xa0] sm:$0xff]  ;;  %v210_v55 = vld [vmem:[%s1097_s5 + $0x30] sm:$0xff] }
  0x14   : > { %v298_v23 = vadd.f32 %v1102_v6, %v259_v13  ;;  %v299_v25 = vadd.f32 %v1102_v6, %v260_v16  ;;  %v262_v27 = vmul.f32 %v1090_v5, %v223_v20  ;;  %v285_v31 = vadd.f32 %v1102_v6, %v246_v18  ;;  %v225_v39 = vld [vmem:[%s1097_s5 + $0xa8] sm:$0xff]  ;;  %v211_v56 = vld [vmem:[%s1097_s5 + $0x38] sm:$0xff]  ;;  %v226_v57 = vld [vmem:[%s1097_s5 + $0xb0] sm:$0xff] }
  0x15   : > { %v314_v28 = vmax.f32 %v282_v21, 0.0  ;;  %v315_v29 = vmax.f32 %v283_v22, 0.0  ;;  %v300_v33 = vadd.f32 %v1102_v6, %v261_v24  ;;  %v316_v41 = vmax.f32 %v284_v26, 0.0  ;;  %v227_v58 = vld [vmem:[%s1097_s5 + $0xb8] sm:$0xff]  ;;  %v212_v12 = vld [vmem:[%s1097_s5 + $0x40] sm:$0xff]  ;;  %v213_v13 = vld [vmem:[%s1097_s5 + $0x48] sm:$0xff] }
  0x16   : > { %v330_v30 = vmax.f32 %v298_v23, 0.0  ;;  %v331_v32 = vmax.f32 %v299_v25, 0.0  ;;  %v301_v34 = vadd.f32 %v1102_v6, %v262_v27  ;;  %v317_v42 = vmax.f32 %v285_v31, 0.0  ;;  %v228_v14 = vld [vmem:[%s1097_s5 + $0xc0] sm:$0xff]  ;;  %v229_v15 = vld [vmem:[%s1097_s5 + $0xc8] sm:$0xff]  ;;  %v215_v31 = vld [vmem:[%s1097_s5 + $0x58] sm:$0xff] }
  0x17   : > { %v346_v37 = vpack.c.bf16 %v315_v29, %v314_v28  ;;  %v247_v43 = vmul.f32 %v1090_v5, %v208_v35  ;;  %v248_v44 = vmul.f32 %v1090_v5, %v209_v36  ;;  %v332_v45 = vmax.f32 %v300_v33, 0.0  ;;  %v231_v33 = vld [vmem:[%s1097_s5 + $0xd8] sm:$0xff] }
  0x18   : > { %v354_v40 = vpack.c.bf16 %v331_v32, %v330_v30  ;;  %v333_v46 = vmax.f32 %v301_v34, 0.0  ;;  %v263_v47 = vmul.f32 %v1090_v5, %v224_v38  ;;  %v264_v48 = vmul.f32 %v1090_v5, %v225_v39  ;;  %v214_v30 = vld [vmem:[%s1097_s5 + $0x50] sm:$0xff] }
  0x19   : > { %926 = vmatmul.mubr.msk.bf16.vlgmr.msra.gmra.mrb[0].mxu0 %vm386_vm0, %v346_v37  ;;  %v347_v49 = vpack.c.bf16 %v317_v42, %v316_v41  ;;  %v286_v50 = vadd.f32 %v1102_v6, %v247_v43  ;;  %v287_v51 = vadd.f32 %v1102_v6, %v248_v44  ;;  %v249_v61 = vmul.f32 %v1090_v5, %v210_v55  ;;  %v230_v32 = vld [vmem:[%s1097_s5 + $0xd0] sm:$0xff] }
  0x1a   : > { %934 = vmatmul.mubr.msk.bf16.vlgmr.msra.gmra.mrb[0].mxu1 %vm386_vm0, %v354_v40  ;;  %477 = vmatprep.mubr.bf16.mxu0 %v1036_v2  ;;  %v355_v52 = vpack.c.bf16 %v333_v46, %v332_v45  ;;  %v302_v53 = vadd.f32 %v1102_v6, %v263_v47  ;;  %v303_v54 = vadd.f32 %v1102_v6, %v264_v48  ;;  %v216_v48 = vld [vmem:[%s1097_s5 + $0x60] sm:$0xff] }
  0x1b   : > { %557 = vmatprep.mubr.bf16.mxu1 %v1036_v2  ;;  %v318_v59 = vmax.f32 %v286_v50, 0.0  ;;  %v319_v60 = vmax.f32 %v287_v51, 0.0  ;;  %v250_v62 = vmul.f32 %v1090_v5, %v211_v56  ;;  %v265_v1 = vmul.f32 %v1090_v5, %v226_v57  ;;  %v232_v50 = vld [vmem:[%s1097_s5 + $0xe0] sm:$0xff]  ;;  %v233_v51 = vld [vmem:[%s1097_s5 + $0xe8] sm:$0xff] }
  0x1c   : > { %v334_v63 = vmax.f32 %v302_v53, 0.0  ;;  %v335_v0 = vmax.f32 %v303_v54, 0.0  ;;  %v266_v3 = vmul.f32 %v1090_v5, %v227_v58  ;;  %v288_v7 = vadd.f32 %v1102_v6, %v249_v61 }
  0x1d   : > { %v348_v4 = vpack.c.bf16 %v319_v60, %v318_v59  ;;  %v289_v8 = vadd.f32 %v1102_v6, %v250_v62  ;;  %v304_v10 = vadd.f32 %v1102_v6, %v265_v1  ;;  %v251_v18 = vmul.f32 %v1090_v5, %v212_v12 }
  0x1e   : > { %v356_v9 = vpack.c.bf16 %v335_v0, %v334_v63  ;;  %v305_v11 = vadd.f32 %v1102_v6, %v266_v3  ;;  %v320_v16 = vmax.f32 %v288_v7, 0.0  ;;  %v252_v19 = vmul.f32 %v1090_v5, %v213_v13  ;;  %v218_v3 = vld [vmem:[%s1097_s5 + $0x70] sm:$0xff] }
  0x1f   : > { %v321_v17 = vmax.f32 %v289_v8, 0.0  ;;  %v336_v20 = vmax.f32 %v304_v10, 0.0  ;;  %v267_v22 = vmul.f32 %v1090_v5, %v228_v14  ;;  %v268_v23 = vmul.f32 %v1090_v5, %v229_v15  ;;  %v234_v7 = vld [vmem:[%s1097_s5 + $0xf0] sm:$0xff]  ;;  %v235_v8 = vld [vmem:[%s1097_s5 + $0xf8] sm:$0xff] }
  0x20   : > { %v337_v21 = vmax.f32 %v305_v11, 0.0  ;;  %v290_v25 = vadd.f32 %v1102_v6, %v251_v18  ;;  %v291_v26 = vadd.f32 %v1102_v6, %v252_v19  ;;  %v253_v36 = vmul.f32 %v1090_v5, %v214_v30 }
  0x21   : > { %927 = vmatmul.mubr.msk.bf16.gmra.mrb[4].mxu0 %vm386_vm0, %v347_v49  ;;  %v349_v24 = vpack.c.bf16 %v321_v17, %v320_v16  ;;  %v306_v28 = vadd.f32 %v1102_v6, %v267_v22  ;;  %v307_v29 = vadd.f32 %v1102_v6, %v268_v23  ;;  %v254_v37 = vmul.f32 %v1090_v5, %v215_v31  ;;  %v217_v49 = vld [vmem:[%s1097_s5 + $0x68] sm:$0xff] }
  0x22   : > { %935 = vmatmul.mubr.msk.bf16.gmra.mrb[4].mxu1 %vm386_vm0, %v355_v52  ;;  %487 = vmatprep.mubr.bf16.mxu0 %v1036_v2  ;;  %v357_v27 = vpack.c.bf16 %v337_v21, %v336_v20  ;;  %v322_v34 = vmax.f32 %v290_v25, 0.0  ;;  %v323_v35 = vmax.f32 %v291_v26, 0.0  ;;  %v269_v40 = vmul.f32 %v1090_v5, %v230_v32 }
  0x23   : > { %567 = vmatprep.mubr.bf16.mxu1 %v1036_v2  ;;  %v338_v38 = vmax.f32 %v306_v28, 0.0  ;;  %v339_v39 = vmax.f32 %v307_v29, 0.0  ;;  %v270_v41 = vmul.f32 %v1090_v5, %v231_v33  ;;  %v292_v43 = vadd.f32 %v1102_v6, %v253_v36 }
  0x24   : > { %v350_v42 = vpack.c.bf16 %v323_v35, %v322_v34  ;;  %v293_v44 = vadd.f32 %v1102_v6, %v254_v37  ;;  %v308_v46 = vadd.f32 %v1102_v6, %v269_v40  ;;  %v255_v54 = vmul.f32 %v1090_v5, %v216_v48 }
  0x25   : > { %v358_v45 = vpack.c.bf16 %v339_v39, %v338_v38  ;;  %v309_v47 = vadd.f32 %v1102_v6, %v270_v41  ;;  %v324_v52 = vmax.f32 %v292_v43, 0.0  ;;  %v256_v55 = vmul.f32 %v1090_v5, %v217_v49 }
  0x26   : > { %v325_v53 = vmax.f32 %v293_v44, 0.0  ;;  %v340_v56 = vmax.f32 %v308_v46, 0.0  ;;  %v271_v58 = vmul.f32 %v1090_v5, %v232_v50  ;;  %v272_v59 = vmul.f32 %v1090_v5, %v233_v51 }
  0x27   : > { %v341_v57 = vmax.f32 %v309_v47, 0.0  ;;  %v294_v61 = vadd.f32 %v1102_v6, %v255_v54  ;;  %v295_v62 = vadd.f32 %v1102_v6, %v256_v55  ;;  %v257_v11 = vmul.f32 %v1090_v5, %v218_v3 }
  0x28   : > { %v351_v60 = vpack.c.bf16 %v325_v53, %v324_v52  ;;  %v310_v0 = vadd.f32 %v1102_v6, %v271_v58  ;;  %v311_v1 = vadd.f32 %v1102_v6, %v272_v59  ;;  %v273_v15 = vmul.f32 %v1090_v5, %v234_v7 }
  0x29   : > { %928 = vmatmul.mubr.msk.bf16.gmra.mrb[8].mxu0 %vm386_vm0, %v348_v4  ;;  %v359_v63 = vpack.c.bf16 %v341_v57, %v340_v56  ;;  %v219_v4 = vld [vmem:[%s1097_s5 + $0x78] sm:$0xff]  ;;  %v327_v10 = vmax.f32 %v295_v62, 0.0  ;;  %v274_v16 = vmul.f32 %v1090_v5, %v235_v8  ;;  %v296_v18 = vadd.f32 %v1102_v6, %v257_v11 }
  0x2a   : > { %936 = vmatmul.mubr.msk.bf16.gmra.mrb[8].mxu1 %vm386_vm0, %v356_v9  ;;  %497 = vmatprep.mubr.bf16.mxu0 %v1036_v2  ;;  %v326_v9 = vmax.f32 %v294_v61, 0.0  ;;  %v258_v12 = vmul.f32 %v1090_v5, %v219_v4  ;;  %v342_v13 = vmax.f32 %v310_v0, 0.0  ;;  %v343_v14 = vmax.f32 %v311_v1, 0.0 }
  0x2b   : > { %577 = vmatprep.mubr.bf16.mxu1 %v1036_v2  ;;  %v312_v21 = vadd.f32 %v1102_v6, %v273_v15  ;;  %v313_v22 = vadd.f32 %v1102_v6, %v274_v16  ;;  %v328_v23 = vmax.f32 %v296_v18, 0.0 }
  0x2c   : > { %v352_v17 = vpack.c.bf16 %v327_v10, %v326_v9  ;;  %v297_v19 = vadd.f32 %v1102_v6, %v258_v12  ;;  %v360_v20 = vpack.c.bf16 %v343_v14, %v342_v13 }
  0x2d   : > { %v344_v5 = vmax.f32 %v312_v21, 0.0  ;;  %v345_v25 = vmax.f32 %v313_v22, 0.0 }
  0x31   : > { %929 = vmatmul.mubr.msk.bf16.gmra.mrb[12].mxu0 %vm386_vm0, %v349_v24  ;;  %v329_v24 = vmax.f32 %v297_v19, 0.0 }
  0x32   : > { %937 = vmatmul.mubr.msk.bf16.gmra.mrb[12].mxu1 %vm386_vm0, %v357_v27  ;;  %507 = vmatprep.mubr.bf16.mxu0 %v1036_v2  ;;  %v361_v27 = vpack.c.bf16 %v345_v25, %v344_v5 }
  0x33   : > { %587 = vmatprep.mubr.bf16.mxu1 %v1036_v2  ;;  %v353_v26 = vpack.c.bf16 %v329_v24, %v328_v23 }
  0x39   : > { %930 = vmatmul.mubr.msk.bf16.gmra.mrb[16].mxu0 %vm386_vm0, %v350_v42 }
  0x3a   : > { %938 = vmatmul.mubr.msk.bf16.gmra.mrb[16].mxu1 %vm386_vm0, %v358_v45  ;;  %517 = vmatprep.mubr.bf16.mxu0 %v1036_v2 }
  0x3b   : > { %597 = vmatprep.mubr.bf16.mxu1 %v1036_v2 }
  0x41   : > { %931 = vmatmul.mubr.msk.bf16.gmra.mrb[20].mxu0 %vm386_vm0, %v351_v60 }
  0x42   : > { %939 = vmatmul.mubr.msk.bf16.gmra.mrb[20].mxu1 %vm386_vm0, %v359_v63  ;;  %527 = vmatprep.mubr.bf16.mxu0 %v1036_v2 }
  0x43   : > { %607 = vmatprep.mubr.bf16.mxu1 %v1036_v2 }
  0x49   : > { %932 = vmatmul.mubr.msk.bf16.gmra.mrb[24].mxu0 %vm386_vm0, %v352_v17 }
  0x4a   : > { %940 = vmatmul.mubr.msk.bf16.gmra.mrb[24].mxu1 %vm386_vm0, %v360_v20  ;;  %537 = vmatprep.mubr.bf16.mxu0 %v1036_v2 }
  0x4b   : > { %617 = vmatprep.mubr.bf16.mxu1 %v1036_v2 }
  0x51   : > { %933 = vmatmul.mubr.msk.bf16.gmra.mrb[28].mxu0 %vm386_vm0, %v353_v26 }
  0x52   : > { %941 = vmatmul.mubr.msk.bf16.gmra.mrb[28].mxu1 %vm386_vm0, %v361_v27 }
  0xec   : > { %v469_v28 = vpop.f32.mrb[0].mxu0 }
  0xed   : > { %v549_v6 = vpop.f32.mrb[0].mxu1  ;;  %v471_v29 = vpop.f32.mrb[1].mxu0 }
  0xee   : > { %v977_v2 = vpack.c.bf16 %v471_v29, %v469_v28  ;;  %v551_v30 = vpop.f32.mrb[1].mxu1  ;;  %v473_v31 = vpop.f32.mrb[2].mxu0 }
  0xef   : > { %v993_v32 = vpack.c.bf16 %v551_v30, %v549_v6  ;;  %v553_v33 = vpop.f32.mrb[2].mxu1  ;;  %v475_v34 = vpop.f32.mrb[3].mxu0 }
  0xf0   : > { %820 = vst [vmem:[%s1235_s10] sm:$0xff] %v977_v2  ;;  %v978_v35 = vpack.c.bf16 %v475_v34, %v473_v31  ;;  %v555_v36 = vpop.f32.mrb[3].mxu1 }
  0xf1   : > { %836 = vst [vmem:[%s1235_s10 + $0x80] sm:$0xff] %v993_v32  ;;  %v994_v37 = vpack.c.bf16 %v555_v36, %v553_v33 }
  0xf2   : > { %821 = vst [vmem:[%s1235_s10 + $0x8] sm:$0xff] %v978_v35 }
  0xf3   : > { %837 = vst [vmem:[%s1235_s10 + $0x88] sm:$0xff] %v994_v37 }
  0xf4   : > { %v479_v38 = vpop.f32.mrb[4].mxu0 }
  0xf5   : > { %v559_v39 = vpop.f32.mrb[4].mxu1  ;;  %v481_v40 = vpop.f32.mrb[5].mxu0 }
  0xf6   : > { %v979_v41 = vpack.c.bf16 %v481_v40, %v479_v38  ;;  %v561_v42 = vpop.f32.mrb[5].mxu1  ;;  %v483_v43 = vpop.f32.mrb[6].mxu0 }
  0xf7   : > { %v995_v44 = vpack.c.bf16 %v561_v42, %v559_v39  ;;  %v563_v45 = vpop.f32.mrb[6].mxu1  ;;  %v485_v46 = vpop.f32.mrb[7].mxu0 }
  0xf8   : > { %822 = vst [vmem:[%s1235_s10 + $0x10] sm:$0xff] %v979_v41  ;;  %v980_v47 = vpack.c.bf16 %v485_v46, %v483_v43  ;;  %v565_v48 = vpop.f32.mrb[7].mxu1 }
  0xf9   : > { %838 = vst [vmem:[%s1235_s10 + $0x90] sm:$0xff] %v995_v44  ;;  %v996_v49 = vpack.c.bf16 %v565_v48, %v563_v45 }
  0xfa   : > { %823 = vst [vmem:[%s1235_s10 + $0x18] sm:$0xff] %v980_v47 }
  0xfb   : > { %839 = vst [vmem:[%s1235_s10 + $0x98] sm:$0xff] %v996_v49 }
  0xfc   : > { %v489_v50 = vpop.f32.mrb[8].mxu0 }
  0xfd   : > { %v569_v51 = vpop.f32.mrb[8].mxu1  ;;  %v491_v52 = vpop.f32.mrb[9].mxu0 }
  0xfe   : > { %v981_v53 = vpack.c.bf16 %v491_v52, %v489_v50  ;;  %v571_v54 = vpop.f32.mrb[9].mxu1  ;;  %v493_v55 = vpop.f32.mrb[10].mxu0 }
  0xff   : > { %v997_v56 = vpack.c.bf16 %v571_v54, %v569_v51  ;;  %v573_v57 = vpop.f32.mrb[10].mxu1  ;;  %v495_v58 = vpop.f32.mrb[11].mxu0 }
 0x100   : > { %824 = vst [vmem:[%s1235_s10 + $0x20] sm:$0xff] %v981_v53  ;;  %v982_v59 = vpack.c.bf16 %v495_v58, %v493_v55  ;;  %v575_v60 = vpop.f32.mrb[11].mxu1 }
 0x101   : > { %840 = vst [vmem:[%s1235_s10 + $0xa0] sm:$0xff] %v997_v56  ;;  %v998_v61 = vpack.c.bf16 %v575_v60, %v573_v57 }
 0x102   : > { %825 = vst [vmem:[%s1235_s10 + $0x28] sm:$0xff] %v982_v59 }
 0x103   : > { %841 = vst [vmem:[%s1235_s10 + $0xa8] sm:$0xff] %v998_v61 }
 0x104   : > { %v499_v62 = vpop.f32.mrb[12].mxu0 }
 0x105   : > { %v579_v63 = vpop.f32.mrb[12].mxu1  ;;  %v501_v0 = vpop.f32.mrb[13].mxu0 }
 0x106   : > { %v983_v1 = vpack.c.bf16 %v501_v0, %v499_v62  ;;  %v581_v3 = vpop.f32.mrb[13].mxu1  ;;  %v503_v4 = vpop.f32.mrb[14].mxu0 }
 0x107   : > { %v999_v7 = vpack.c.bf16 %v581_v3, %v579_v63  ;;  %v583_v8 = vpop.f32.mrb[14].mxu1  ;;  %v505_v9 = vpop.f32.mrb[15].mxu0 }
 0x108   : > { %826 = vst [vmem:[%s1235_s10 + $0x30] sm:$0xff] %v983_v1  ;;  %v984_v10 = vpack.c.bf16 %v505_v9, %v503_v4  ;;  %v585_v11 = vpop.f32.mrb[15].mxu1 }
 0x109   : > { %842 = vst [vmem:[%s1235_s10 + $0xb0] sm:$0xff] %v999_v7  ;;  %v1000_v12 = vpack.c.bf16 %v585_v11, %v583_v8 }
 0x10a   : > { %827 = vst [vmem:[%s1235_s10 + $0x38] sm:$0xff] %v984_v10 }
 0x10b   : > { %843 = vst [vmem:[%s1235_s10 + $0xb8] sm:$0xff] %v1000_v12 }
 0x10c   : > { %v509_v13 = vpop.f32.mrb[16].mxu0 }
 0x10d   : > { %v589_v14 = vpop.f32.mrb[16].mxu1  ;;  %v511_v15 = vpop.f32.mrb[17].mxu0 }
 0x10e   : > { %v985_v16 = vpack.c.bf16 %v511_v15, %v509_v13  ;;  %v591_v17 = vpop.f32.mrb[17].mxu1  ;;  %v513_v18 = vpop.f32.mrb[18].mxu0 }
 0x10f   : > { %v1001_v19 = vpack.c.bf16 %v591_v17, %v589_v14  ;;  %v593_v20 = vpop.f32.mrb[18].mxu1  ;;  %v515_v21 = vpop.f32.mrb[19].mxu0 }
 0x110   : > { %828 = vst [vmem:[%s1235_s10 + $0x40] sm:$0xff] %v985_v16  ;;  %v986_v22 = vpack.c.bf16 %v515_v21, %v513_v18  ;;  %v595_v23 = vpop.f32.mrb[19].mxu1 }
 0x111   : > { %844 = vst [vmem:[%s1235_s10 + $0xc0] sm:$0xff] %v1001_v19  ;;  %v1002_v24 = vpack.c.bf16 %v595_v23, %v593_v20 }
 0x112   : > { %829 = vst [vmem:[%s1235_s10 + $0x48] sm:$0xff] %v986_v22 }
 0x113   : > { %845 = vst [vmem:[%s1235_s10 + $0xc8] sm:$0xff] %v1002_v24 }
 0x114   : > { %v519_v5 = vpop.f32.mrb[20].mxu0 }
 0x115   : > { %v599_v25 = vpop.f32.mrb[20].mxu1  ;;  %v521_v26 = vpop.f32.mrb[21].mxu0 }
 0x116   : > { %v987_v27 = vpack.c.bf16 %v521_v26, %v519_v5  ;;  %v601_v28 = vpop.f32.mrb[21].mxu1  ;;  %v523_v6 = vpop.f32.mrb[22].mxu0 }
 0x117   : > { %v1003_v29 = vpack.c.bf16 %v601_v28, %v599_v25  ;;  %v603_v2 = vpop.f32.mrb[22].mxu1  ;;  %v525_v30 = vpop.f32.mrb[23].mxu0 }
 0x118   : > { %830 = vst [vmem:[%s1235_s10 + $0x50] sm:$0xff] %v987_v27  ;;  %v988_v31 = vpack.c.bf16 %v525_v30, %v523_v6  ;;  %v605_v32 = vpop.f32.mrb[23].mxu1 }
 0x119   : > { %846 = vst [vmem:[%s1235_s10 + $0xd0] sm:$0xff] %v1003_v29  ;;  %v1004_v33 = vpack.c.bf16 %v605_v32, %v603_v2 }
 0x11a   : > { %831 = vst [vmem:[%s1235_s10 + $0x58] sm:$0xff] %v988_v31 }
 0x11b   : > { %847 = vst [vmem:[%s1235_s10 + $0xd8] sm:$0xff] %v1004_v33 }
 0x11c   : > { %v529_v34 = vpop.f32.mrb[24].mxu0 }
 0x11d   : > { %v609_v35 = vpop.f32.mrb[24].mxu1  ;;  %v531_v36 = vpop.f32.mrb[25].mxu0 }
 0x11e   : > { %v989_v37 = vpack.c.bf16 %v531_v36, %v529_v34  ;;  %v611_v38 = vpop.f32.mrb[25].mxu1  ;;  %v533_v39 = vpop.f32.mrb[26].mxu0 }
 0x11f   : > { %v1005_v40 = vpack.c.bf16 %v611_v38, %v609_v35  ;;  %v613_v41 = vpop.f32.mrb[26].mxu1  ;;  %v535_v42 = vpop.f32.mrb[27].mxu0 }
 0x120   : > { %832 = vst [vmem:[%s1235_s10 + $0x60] sm:$0xff] %v989_v37  ;;  %v990_v43 = vpack.c.bf16 %v535_v42, %v533_v39  ;;  %v615_v44 = vpop.f32.mrb[27].mxu1 }
 0x121   : > { %848 = vst [vmem:[%s1235_s10 + $0xe0] sm:$0xff] %v1005_v40  ;;  %v1006_v45 = vpack.c.bf16 %v615_v44, %v613_v41 }
 0x122   : > { %833 = vst [vmem:[%s1235_s10 + $0x68] sm:$0xff] %v990_v43 }
 0x123   : > { %849 = vst [vmem:[%s1235_s10 + $0xe8] sm:$0xff] %v1006_v45 }
 0x124   : > { %v539_v46 = vpop.f32.mrb[28].mxu0 }
 0x125   : > { %v619_v47 = vpop.f32.mrb[28].mxu1  ;;  %v541_v48 = vpop.f32.mrb[29].mxu0 }
 0x126   : > { %v991_v49 = vpack.c.bf16 %v541_v48, %v539_v46  ;;  %v621_v50 = vpop.f32.mrb[29].mxu1  ;;  %v543_v51 = vpop.f32.mrb[30].mxu0 }
 0x127   : > { %v1007_v52 = vpack.c.bf16 %v621_v50, %v619_v47  ;;  %v623_v53 = vpop.f32.mrb[30].mxu1  ;;  %v545_v54 = vpop.f32.mrb[31].mxu0 }
 0x128   : > { %834 = vst [vmem:[%s1235_s10 + $0x70] sm:$0xff] %v991_v49  ;;  %v992_v55 = vpack.c.bf16 %v545_v54, %v543_v51  ;;  %v625_v56 = vpop.f32.mrb[31].mxu1 }
 0x129   : > { %850 = vst [vmem:[%s1235_s10 + $0xf0] sm:$0xff] %v1007_v52  ;;  %v1008_v57 = vpack.c.bf16 %v625_v56, %v623_v53 }
 0x12a   : > { %835 = vst [vmem:[%s1235_s10 + $0x78] sm:$0xff] %v992_v55 }
 0x12b   : > { %851 = vst [vmem:[%s1235_s10 + $0xf8] sm:$0xff] %v1008_v57 }
 0x12c PF: > { %s14_s15 = sadd.s32 1, %s1034_s15  }
 0x12d   : > { %p11_p4 = scmp.ge.s32.totalorder %s14_s15, 4  }
 0x12f   :  { %13 = sbr.rel (!%p11_p4) target bundleno = 1 (0x1), region = 66 }

// kernel: _lambda_.8
= control target key start
LH: loop header
LB: loop body
LE: loop exit
PB: predicated region body
PF: predicated region fallthrough
CT: control target
= control target key end

     0   :  { %s3192_s15 = smov 0   ;;  %s3752_s0 = inlined_call_operand.vmem [shape: f32[2048,16], index: 0, kind: input, shape index: {}]   ;;  %s3753_s1 = inlined_call_operand.vmem [shape: f32[1,16], index: 1, kind: input, shape index: {}]   ;;  %s3754_s2 = inlined_call_operand.vmem [shape: f32[1,16], index: 2, kind: input, shape index: {}]   ;;  %s3755_s3 = inlined_call_operand.vmem [shape: bf16[16,128], index: 3, kind: input, shape index: {}]   ;;  %s3756_s4 = inlined_call_operand.vmem [shape: bf16[2048,128], index: 4, kind: output, shape index: {}]  }
   0x1 LB: > { %s2234_s16 = sadd.s32 4294967295, %s3165_s15   ;;  %p2238_p0 = scmp.ge.s32.totalorder %s3165_s15, 1  ;;  %s3165_s15 = sphi %s3192_s15, %s14_s15  }
   0x2   : > { %p163_p1 = scmp.lt.s32.totalorder %s3165_s15, 3 }
   0x4   : > { %p164_p2 = pnand %p2238_p0, %p163_p1 }
   0x5   : > { %v3156_v0 = vld [vmem:[%s3755_s3] sm:$0xff] (!%p164_p2)   ;;  %s2239_s19 = sshll.u32 (!%p164_p2), %s2234_s16, 7  ;;  %vm800_vm0 = vcmask (!%p164_p2), 130048  }
   0x6   : > { %167 = sbr.rel (%p164_p2) target bundleno = 366 (0x16e), region = 36  ;;  %p190_p3 = scmp.lt.s32.totalorder (!%p164_p2), %s2239_s19, 255  ;;  %3016 = vmatprep.subr.bf16.mxu0 (!%p164_p2), %v3156_v0  ;;  %3146 = vmatprep.subr.bf16.mxu1 (!%p164_p2), %v3156_v0  ;;  %v3209_v1 = vld [vmem:[%s3753_s1] ss:$0 sm:$0xff] (!%p164_p2) }
   0x7   : > { %3017 = vmatpush3.bf16.msra.mxu0 (!%p164_p2), %v3156_v0  ;;  %3147 = vmatpush3.bf16.msra.mxu1 (!%p164_p2), %v3156_v0  ;;  %v3219_v2 = vld [vmem:[%s3754_s2] ss:$0 sm:$0xff] (!%p164_p2) }
   0xd   : > { %s3758_s19 = smov (!%p190_p3, %s2239_s19), 255 }
   0xe   : > { %s2240_s20 = sshll.u32 %s3758_s19, 3  ;;  %s2242_s6 = sshll.u32 %s3758_s19, 2 }
   0xf   : > { %s3214_s25 = scalar_lea.vmem %s3752_s0, %s2240_s20  ;;  %s3683_s9 = scalar_lea.vmem %s3756_s4, %s2242_s6 }
  0x10   : > { %v202_v3 = vld [vmem:[%s3214_s25] sm:$0xff]  ;;  %v203_v4 = vld [vmem:[%s3214_s25 + $0x8] sm:$0xff]  ;;  %v204_v10 = vld [vmem:[%s3214_s25 + $0x10] sm:$0xff] }
  0x11   : > { %v266_v5 = vld [vmem:[%s3214_s25 + $0x200] sm:$0xff]  ;;  %v337_v6 = vmul.f32 %v3209_v1, %v202_v3  ;;  %v338_v7 = vmul.f32 %v3209_v1, %v203_v4  ;;  %v267_v8 = vld [vmem:[%s3214_s25 + $0x208] sm:$0xff]  ;;  %v205_v11 = vld [vmem:[%s3214_s25 + $0x18] sm:$0xff]  ;;  %v339_v13 = vmul.f32 %v3209_v1, %v204_v10 }
  0x12   : > { %v401_v9 = vmul.f32 %v3209_v1, %v266_v5  ;;  %v402_v12 = vmul.f32 %v3209_v1, %v267_v8  ;;  %v340_v14 = vmul.f32 %v3209_v1, %v205_v11  ;;  %v268_v15 = vld [vmem:[%s3214_s25 + $0x210] sm:$0xff]  ;;  %v269_v16 = vld [vmem:[%s3214_s25 + $0x218] sm:$0xff]  ;;  %v206_v25 = vld [vmem:[%s3214_s25 + $0x20] sm:$0xff] }
  0x13   : > { %v472_v17 = vadd.f32 %v3219_v2, %v337_v6  ;;  %v473_v18 = vadd.f32 %v3219_v2, %v338_v7  ;;  %v403_v20 = vmul.f32 %v3209_v1, %v268_v15  ;;  %v474_v22 = vadd.f32 %v3219_v2, %v339_v13  ;;  %v207_v26 = vld [vmem:[%s3214_s25 + $0x28] sm:$0xff]  ;;  %v270_v31 = vld [vmem:[%s3214_s25 + $0x220] sm:$0xff]  ;;  %v208_v37 = vld [vmem:[%s3214_s25 + $0x30] sm:$0xff] }
  0x14   : > { %v536_v19 = vadd.f32 %v3219_v2, %v401_v9  ;;  %v537_v21 = vadd.f32 %v3219_v2, %v402_v12  ;;  %v475_v23 = vadd.f32 %v3219_v2, %v340_v14  ;;  %v404_v24 = vmul.f32 %v3209_v1, %v269_v16  ;;  %v271_v36 = vld [vmem:[%s3214_s25 + $0x228] sm:$0xff]  ;;  %v209_v42 = vld [vmem:[%s3214_s25 + $0x38] sm:$0xff]  ;;  %v272_v51 = vld [vmem:[%s3214_s25 + $0x230] sm:$0xff] }
  0x15   : > { %v600_v27 = vmax.f32 %v472_v17, 0.0  ;;  %v601_v28 = vmax.f32 %v473_v18, 0.0  ;;  %v538_v30 = vadd.f32 %v3219_v2, %v403_v20  ;;  %v602_v33 = vmax.f32 %v474_v22, 0.0  ;;  %v273_v52 = vld [vmem:[%s3214_s25 + $0x238] sm:$0xff]  ;;  %v210_v56 = vld [vmem:[%s3214_s25 + $0x40] sm:$0xff]  ;;  %v211_v61 = vld [vmem:[%s3214_s25 + $0x48] sm:$0xff] }
  0x16   : > { %v664_v29 = vmax.f32 %v536_v19, 0.0  ;;  %v665_v32 = vmax.f32 %v537_v21, 0.0  ;;  %v603_v34 = vmax.f32 %v475_v23, 0.0  ;;  %v539_v35 = vadd.f32 %v3219_v2, %v404_v24  ;;  %v274_v4 = vld [vmem:[%s3214_s25 + $0x240] sm:$0xff]  ;;  %v275_v5 = vld [vmem:[%s3214_s25 + $0x248] sm:$0xff]  ;;  %v212_v14 = vld [vmem:[%s3214_s25 + $0x50] sm:$0xff] }
  0x17   : > { %v728_v38 = vpack.c.bf16 %v601_v28, %v600_v27  ;;  %v666_v39 = vmax.f32 %v538_v30, 0.0  ;;  %v341_v40 = vmul.f32 %v3209_v1, %v206_v25  ;;  %v342_v41 = vmul.f32 %v3209_v1, %v207_v26  ;;  %v213_v19 = vld [vmem:[%s3214_s25 + $0x58] sm:$0xff]  ;;  %v276_v20 = vld [vmem:[%s3214_s25 + $0x250] sm:$0xff]  ;;  %v214_v30 = vld [vmem:[%s3214_s25 + $0x60] sm:$0xff] }
  0x18   : > { %v760_v43 = vpack.c.bf16 %v665_v32, %v664_v29  ;;  %v729_v44 = vpack.c.bf16 %v603_v34, %v602_v33  ;;  %v667_v45 = vmax.f32 %v539_v35, 0.0  ;;  %v405_v46 = vmul.f32 %v3209_v1, %v270_v31  ;;  %v277_v25 = vld [vmem:[%s3214_s25 + $0x258] sm:$0xff]  ;;  %v215_v35 = vld [vmem:[%s3214_s25 + $0x68] sm:$0xff] }
  0x19   : > { %3018 = vmatprep.mubr.msk.bf16.mxu0 %vm800_vm0, %v728_v38  ;;  %v476_v47 = vadd.f32 %v3219_v2, %v341_v40  ;;  %v477_v48 = vadd.f32 %v3219_v2, %v342_v41  ;;  %v406_v49 = vmul.f32 %v3209_v1, %v271_v36  ;;  %v343_v50 = vmul.f32 %v3209_v1, %v208_v37  ;;  %v278_v40 = vld [vmem:[%s3214_s25 + $0x260] sm:$0xff] }
  0x1a   : > { %3082 = vmatprep.mubr.msk.bf16.mxu1 %vm800_vm0, %v760_v43  ;;  %3019 = vmatmul.mubr.msk.bf16.vlgmr.msra.gmra.mrb[0].mxu0 %vm800_vm0, %v729_v44  ;;  %v761_v53 = vpack.c.bf16 %v667_v45, %v666_v39  ;;  %v540_v54 = vadd.f32 %v3219_v2, %v405_v46  ;;  %v344_v55 = vmul.f32 %v3209_v1, %v209_v42  ;;  %v279_v45 = vld [vmem:[%s3214_s25 + $0x268] sm:$0xff]  ;;  %v216_v46 = vld [vmem:[%s3214_s25 + $0x70] sm:$0xff] }
  0x1b   : > { %v604_v57 = vmax.f32 %v476_v47, 0.0  ;;  %v605_v58 = vmax.f32 %v477_v48, 0.0  ;;  %v541_v59 = vadd.f32 %v3219_v2, %v406_v49  ;;  %v478_v60 = vadd.f32 %v3219_v2, %v343_v50 }
  0x1c   : > { %3083 = vmatmul.mubr.msk.bf16.vlgmr.msra.gmra.mrb[0].mxu1 %vm800_vm0, %v761_v53  ;;  %v668_v62 = vmax.f32 %v540_v54, 0.0  ;;  %v479_v63 = vadd.f32 %v3219_v2, %v344_v55  ;;  %v407_v0 = vmul.f32 %v3209_v1, %v272_v51  ;;  %v408_v3 = vmul.f32 %v3209_v1, %v273_v52  ;;  %v217_v51 = vld [vmem:[%s3214_s25 + $0x78] sm:$0xff] }
  0x1d   : > { %v730_v6 = vpack.c.bf16 %v605_v58, %v604_v57  ;;  %v669_v7 = vmax.f32 %v541_v59, 0.0  ;;  %v606_v8 = vmax.f32 %v478_v60, 0.0  ;;  %v345_v9 = vmul.f32 %v3209_v1, %v210_v56  ;;  %v280_v60 = vld [vmem:[%s3214_s25 + $0x270] sm:$0xff] }
  0x1e   : > { %v607_v10 = vmax.f32 %v479_v63, 0.0  ;;  %v542_v11 = vadd.f32 %v3219_v2, %v407_v0  ;;  %v543_v12 = vadd.f32 %v3219_v2, %v408_v3  ;;  %v346_v13 = vmul.f32 %v3209_v1, %v211_v61  ;;  %v281_v61 = vld [vmem:[%s3214_s25 + $0x278] sm:$0xff] }
  0x1f   : > { %3022 = vmatprep.mubr.msk.bf16.mxu0 %vm800_vm0, %v730_v6  ;;  %v762_v15 = vpack.c.bf16 %v669_v7, %v668_v62  ;;  %v480_v16 = vadd.f32 %v3219_v2, %v345_v9  ;;  %v409_v17 = vmul.f32 %v3209_v1, %v274_v4  ;;  %v410_v18 = vmul.f32 %v3209_v1, %v275_v5  ;;  %v218_v4 = vld [vmem:[%s3214_s25 + $0x80] sm:$0xff]  ;;  %v219_v9 = vld [vmem:[%s3214_s25 + $0x88] sm:$0xff] }
  0x20   : > { %v731_v21 = vpack.c.bf16 %v607_v10, %v606_v8  ;;  %v670_v22 = vmax.f32 %v542_v11, 0.0  ;;  %v671_v23 = vmax.f32 %v543_v12, 0.0  ;;  %v481_v24 = vadd.f32 %v3219_v2, %v346_v13 }
  0x21   : > { %3086 = vmatprep.mubr.msk.bf16.mxu1 %vm800_vm0, %v762_v15  ;;  %v608_v26 = vmax.f32 %v480_v16, 0.0  ;;  %v544_v27 = vadd.f32 %v3219_v2, %v409_v17  ;;  %v545_v28 = vadd.f32 %v3219_v2, %v410_v18  ;;  %v347_v29 = vmul.f32 %v3209_v1, %v212_v14  ;;  %v282_v14 = vld [vmem:[%s3214_s25 + $0x280] sm:$0xff]  ;;  %v283_v15 = vld [vmem:[%s3214_s25 + $0x288] sm:$0xff] }
  0x22   : > { %3023 = vmatmul.mubr.msk.bf16.gmra.mrb[4].mxu0 %vm800_vm0, %v731_v21  ;;  %v763_v31 = vpack.c.bf16 %v671_v23, %v670_v22  ;;  %v609_v32 = vmax.f32 %v481_v24, 0.0  ;;  %v348_v33 = vmul.f32 %v3209_v1, %v213_v19  ;;  %v411_v34 = vmul.f32 %v3209_v1, %v276_v20  ;;  %v220_v24 = vld [vmem:[%s3214_s25 + $0x90] sm:$0xff] }
  0x23   : > { %v672_v36 = vmax.f32 %v544_v27, 0.0  ;;  %v673_v37 = vmax.f32 %v545_v28, 0.0  ;;  %v482_v38 = vadd.f32 %v3219_v2, %v347_v29  ;;  %v412_v39 = vmul.f32 %v3209_v1, %v277_v25  ;;  %v221_v29 = vld [vmem:[%s3214_s25 + $0x98] sm:$0xff] }
  0x24   : > { %3087 = vmatmul.mubr.msk.bf16.gmra.mrb[4].mxu1 %vm800_vm0, %v763_v31  ;;  %v732_v41 = vpack.c.bf16 %v609_v32, %v608_v26  ;;  %v483_v42 = vadd.f32 %v3219_v2, %v348_v33  ;;  %v546_v43 = vadd.f32 %v3219_v2, %v411_v34  ;;  %v349_v44 = vmul.f32 %v3209_v1, %v214_v30  ;;  %v284_v30 = vld [vmem:[%s3214_s25 + $0x290] sm:$0xff] }
  0x25   : > { %v764_v47 = vpack.c.bf16 %v673_v37, %v672_v36  ;;  %v610_v48 = vmax.f32 %v482_v38, 0.0  ;;  %v547_v49 = vadd.f32 %v3219_v2, %v412_v39  ;;  %v350_v50 = vmul.f32 %v3209_v1, %v215_v35  ;;  %v285_v35 = vld [vmem:[%s3214_s25 + $0x298] sm:$0xff] }
  0x26   : > { %3026 = vmatprep.mubr.msk.bf16.mxu0 %vm800_vm0, %v732_v41  ;;  %v611_v52 = vmax.f32 %v483_v42, 0.0  ;;  %v674_v53 = vmax.f32 %v546_v43, 0.0  ;;  %v484_v54 = vadd.f32 %v3219_v2, %v349_v44  ;;  %v413_v55 = vmul.f32 %v3209_v1, %v278_v40  ;;  %v222_v40 = vld [vmem:[%s3214_s25 + $0xa0] sm:$0xff] }
  0x27   : > { %3090 = vmatprep.mubr.msk.bf16.mxu1 %vm800_vm0, %v764_v47  ;;  %v675_v56 = vmax.f32 %v547_v49, 0.0  ;;  %v485_v57 = vadd.f32 %v3219_v2, %v350_v50  ;;  %v414_v58 = vmul.f32 %v3209_v1, %v279_v45  ;;  %v351_v59 = vmul.f32 %v3209_v1, %v216_v46  ;;  %v223_v45 = vld [vmem:[%s3214_s25 + $0xa8] sm:$0xff]  ;;  %v286_v50 = vld [vmem:[%s3214_s25 + $0x2a0] sm:$0xff] }
  0x28   : > { %v733_v62 = vpack.c.bf16 %v611_v52, %v610_v48  ;;  %v612_v63 = vmax.f32 %v484_v54, 0.0  ;;  %v548_v0 = vadd.f32 %v3219_v2, %v413_v55  ;;  %v352_v3 = vmul.f32 %v3209_v1, %v217_v51  ;;  %v287_v55 = vld [vmem:[%s3214_s25 + $0x2a8] sm:$0xff] }
  0x29   : > { %v765_v5 = vpack.c.bf16 %v675_v56, %v674_v53  ;;  %v613_v6 = vmax.f32 %v485_v57, 0.0  ;;  %v549_v7 = vadd.f32 %v3219_v2, %v414_v58  ;;  %v486_v8 = vadd.f32 %v3219_v2, %v351_v59  ;;  %v224_v56 = vld [vmem:[%s3214_s25 + $0xb0] sm:$0xff] }
  0x2a   : > { %3027 = vmatmul.mubr.msk.bf16.gmra.mrb[8].mxu0 %vm800_vm0, %v733_v62  ;;  %v676_v10 = vmax.f32 %v548_v0, 0.0  ;;  %v487_v11 = vadd.f32 %v3219_v2, %v352_v3  ;;  %v415_v12 = vmul.f32 %v3209_v1, %v280_v60  ;;  %v416_v13 = vmul.f32 %v3209_v1, %v281_v61  ;;  %v225_v61 = vld [vmem:[%s3214_s25 + $0xb8] sm:$0xff] }
  0x2b   : > { %v734_v16 = vpack.c.bf16 %v613_v6, %v612_v63  ;;  %v677_v17 = vmax.f32 %v549_v7, 0.0  ;;  %v614_v18 = vmax.f32 %v486_v8, 0.0  ;;  %v353_v19 = vmul.f32 %v3209_v1, %v218_v4  ;;  %v288_v8 = vld [vmem:[%s3214_s25 + $0x2b0] sm:$0xff] }
  0x2c   : > { %3091 = vmatmul.mubr.msk.bf16.gmra.mrb[8].mxu1 %vm800_vm0, %v765_v5  ;;  %v615_v20 = vmax.f32 %v487_v11, 0.0  ;;  %v550_v21 = vadd.f32 %v3219_v2, %v415_v12  ;;  %v551_v22 = vadd.f32 %v3219_v2, %v416_v13  ;;  %v354_v23 = vmul.f32 %v3209_v1, %v219_v9  ;;  %v289_v9 = vld [vmem:[%s3214_s25 + $0x2b8] sm:$0xff] }
  0x2d   : > { %3030 = vmatprep.mubr.msk.bf16.mxu0 %vm800_vm0, %v734_v16  ;;  %v766_v25 = vpack.c.bf16 %v677_v17, %v676_v10  ;;  %v488_v26 = vadd.f32 %v3219_v2, %v353_v19  ;;  %v417_v27 = vmul.f32 %v3209_v1, %v282_v14  ;;  %v418_v28 = vmul.f32 %v3209_v1, %v283_v15  ;;  %v226_v14 = vld [vmem:[%s3214_s25 + $0xc0] sm:$0xff]  ;;  %v227_v19 = vld [vmem:[%s3214_s25 + $0xc8] sm:$0xff] }
  0x2e   : > { %v735_v31 = vpack.c.bf16 %v615_v20, %v614_v18  ;;  %v678_v32 = vmax.f32 %v550_v21, 0.0  ;;  %v679_v33 = vmax.f32 %v551_v22, 0.0  ;;  %v489_v34 = vadd.f32 %v3219_v2, %v354_v23 }
  0x2f   : > { %3094 = vmatprep.mubr.msk.bf16.mxu1 %vm800_vm0, %v766_v25  ;;  %v616_v36 = vmax.f32 %v488_v26, 0.0  ;;  %v552_v37 = vadd.f32 %v3219_v2, %v417_v27  ;;  %v553_v38 = vadd.f32 %v3219_v2, %v418_v28  ;;  %v355_v39 = vmul.f32 %v3209_v1, %v220_v24  ;;  %v290_v24 = vld [vmem:[%s3214_s25 + $0x2c0] sm:$0xff]  ;;  %v291_v25 = vld [vmem:[%s3214_s25 + $0x2c8] sm:$0xff] }
  0x30   : > { %v767_v41 = vpack.c.bf16 %v679_v33, %v678_v32  ;;  %v617_v42 = vmax.f32 %v489_v34, 0.0  ;;  %v356_v43 = vmul.f32 %v3209_v1, %v221_v29  ;;  %v419_v44 = vmul.f32 %v3209_v1, %v284_v30  ;;  %v228_v34 = vld [vmem:[%s3214_s25 + $0xd0] sm:$0xff] }
  0x31   : > { %v680_v46 = vmax.f32 %v552_v37, 0.0  ;;  %v681_v47 = vmax.f32 %v553_v38, 0.0  ;;  %v490_v48 = vadd.f32 %v3219_v2, %v355_v39  ;;  %v420_v49 = vmul.f32 %v3209_v1, %v285_v35  ;;  %v229_v39 = vld [vmem:[%s3214_s25 + $0xd8] sm:$0xff] }
  0x32   : > { %3031 = vmatmul.mubr.msk.bf16.gmra.mrb[12].mxu0 %vm800_vm0, %v735_v31  ;;  %v736_v51 = vpack.c.bf16 %v617_v42, %v616_v36  ;;  %v491_v52 = vadd.f32 %v3219_v2, %v356_v43  ;;  %v554_v53 = vadd.f32 %v3219_v2, %v419_v44  ;;  %v357_v54 = vmul.f32 %v3209_v1, %v222_v40  ;;  %v292_v40 = vld [vmem:[%s3214_s25 + $0x2d0] sm:$0xff] }
  0x33   : > { %v768_v57 = vpack.c.bf16 %v681_v47, %v680_v46  ;;  %v618_v58 = vmax.f32 %v490_v48, 0.0  ;;  %v555_v59 = vadd.f32 %v3219_v2, %v420_v49  ;;  %v358_v60 = vmul.f32 %v3209_v1, %v223_v45  ;;  %v293_v45 = vld [vmem:[%s3214_s25 + $0x2d8] sm:$0xff] }
  0x34   : > { %3095 = vmatmul.mubr.msk.bf16.gmra.mrb[12].mxu1 %vm800_vm0, %v767_v41  ;;  %3034 = vmatprep.mubr.msk.bf16.mxu0 %vm800_vm0, %v736_v51  ;;  %v619_v62 = vmax.f32 %v491_v52, 0.0  ;;  %v682_v63 = vmax.f32 %v554_v53, 0.0  ;;  %v492_v0 = vadd.f32 %v3219_v2, %v357_v54  ;;  %v421_v3 = vmul.f32 %v3209_v1, %v286_v50  ;;  %v230_v50 = vld [vmem:[%s3214_s25 + $0xe0] sm:$0xff] }
  0x35   : > { %3098 = vmatprep.mubr.msk.bf16.mxu1 %vm800_vm0, %v768_v57  ;;  %v683_v4 = vmax.f32 %v555_v59, 0.0  ;;  %v493_v5 = vadd.f32 %v3219_v2, %v358_v60  ;;  %v422_v6 = vmul.f32 %v3209_v1, %v287_v55  ;;  %v359_v7 = vmul.f32 %v3209_v1, %v224_v56  ;;  %v231_v55 = vld [vmem:[%s3214_s25 + $0xe8] sm:$0xff]  ;;  %v294_v60 = vld [vmem:[%s3214_s25 + $0x2e0] sm:$0xff] }
  0x36   : > { %v737_v10 = vpack.c.bf16 %v619_v62, %v618_v58  ;;  %v620_v11 = vmax.f32 %v492_v0, 0.0  ;;  %v556_v12 = vadd.f32 %v3219_v2, %v421_v3  ;;  %v360_v13 = vmul.f32 %v3209_v1, %v225_v61  ;;  %v295_v3 = vld [vmem:[%s3214_s25 + $0x2e8] sm:$0xff] }
  0x37   : > { %v769_v15 = vpack.c.bf16 %v683_v4, %v682_v63  ;;  %v621_v16 = vmax.f32 %v493_v5, 0.0  ;;  %v557_v17 = vadd.f32 %v3219_v2, %v422_v6  ;;  %v494_v18 = vadd.f32 %v3219_v2, %v359_v7  ;;  %v232_v4 = vld [vmem:[%s3214_s25 + $0xf0] sm:$0xff] }
  0x38   : > { %v684_v20 = vmax.f32 %v556_v12, 0.0  ;;  %v495_v21 = vadd.f32 %v3219_v2, %v360_v13  ;;  %v423_v22 = vmul.f32 %v3209_v1, %v288_v8  ;;  %v424_v23 = vmul.f32 %v3209_v1, %v289_v9  ;;  %v233_v9 = vld [vmem:[%s3214_s25 + $0xf8] sm:$0xff] }
  0x39   : > { %v738_v26 = vpack.c.bf16 %v621_v16, %v620_v11  ;;  %v685_v27 = vmax.f32 %v557_v17, 0.0  ;;  %v622_v28 = vmax.f32 %v494_v18, 0.0  ;;  %v361_v29 = vmul.f32 %v3209_v1, %v226_v14  ;;  %v296_v18 = vld [vmem:[%s3214_s25 + $0x2f0] sm:$0xff] }
  0x3a   : > { %3035 = vmatmul.mubr.msk.bf16.gmra.mrb[16].mxu0 %vm800_vm0, %v737_v10  ;;  %v623_v30 = vmax.f32 %v495_v21, 0.0  ;;  %v558_v31 = vadd.f32 %v3219_v2, %v423_v22  ;;  %v559_v32 = vadd.f32 %v3219_v2, %v424_v23  ;;  %v362_v33 = vmul.f32 %v3209_v1, %v227_v19  ;;  %v297_v19 = vld [vmem:[%s3214_s25 + $0x2f8] sm:$0xff]  ;;  %v234_v23 = vld [vmem:[%s3214_s25 + $0x100] sm:$0xff] }
  0x3b   : > { %3038 = vmatprep.mubr.msk.bf16.mxu0 %vm800_vm0, %v738_v26  ;;  %v770_v35 = vpack.c.bf16 %v685_v27, %v684_v20  ;;  %v496_v36 = vadd.f32 %v3219_v2, %v361_v29  ;;  %v425_v37 = vmul.f32 %v3209_v1, %v290_v24  ;;  %v426_v38 = vmul.f32 %v3209_v1, %v291_v25 }
  0x3c   : > { %3099 = vmatmul.mubr.msk.bf16.gmra.mrb[16].mxu1 %vm800_vm0, %v769_v15  ;;  %v739_v41 = vpack.c.bf16 %v623_v30, %v622_v28  ;;  %v686_v42 = vmax.f32 %v558_v31, 0.0  ;;  %v687_v43 = vmax.f32 %v559_v32, 0.0  ;;  %v497_v44 = vadd.f32 %v3219_v2, %v362_v33  ;;  %v235_v28 = vld [vmem:[%s3214_s25 + $0x108] sm:$0xff]  ;;  %v298_v33 = vld [vmem:[%s3214_s25 + $0x300] sm:$0xff] }
  0x3d   : > { %3102 = vmatprep.mubr.msk.bf16.mxu1 %vm800_vm0, %v770_v35  ;;  %v624_v46 = vmax.f32 %v496_v36, 0.0  ;;  %v560_v47 = vadd.f32 %v3219_v2, %v425_v37  ;;  %v561_v48 = vadd.f32 %v3219_v2, %v426_v38  ;;  %v363_v49 = vmul.f32 %v3209_v1, %v228_v34  ;;  %v299_v34 = vld [vmem:[%s3214_s25 + $0x308] sm:$0xff] }
  0x3e   : > { %v771_v51 = vpack.c.bf16 %v687_v43, %v686_v42  ;;  %v625_v52 = vmax.f32 %v497_v44, 0.0  ;;  %v364_v53 = vmul.f32 %v3209_v1, %v229_v39  ;;  %v427_v54 = vmul.f32 %v3209_v1, %v292_v40  ;;  %v236_v43 = vld [vmem:[%s3214_s25 + $0x110] sm:$0xff] }
  0x3f   : > { %v688_v56 = vmax.f32 %v560_v47, 0.0  ;;  %v689_v57 = vmax.f32 %v561_v48, 0.0  ;;  %v498_v58 = vadd.f32 %v3219_v2, %v363_v49  ;;  %v428_v59 = vmul.f32 %v3209_v1, %v293_v45  ;;  %v237_v48 = vld [vmem:[%s3214_s25 + $0x118] sm:$0xff]  ;;  %v300_v49 = vld [vmem:[%s3214_s25 + $0x310] sm:$0xff] }
  0x40   : > { %v740_v61 = vpack.c.bf16 %v625_v52, %v624_v46  ;;  %v499_v62 = vadd.f32 %v3219_v2, %v364_v53  ;;  %v562_v63 = vadd.f32 %v3219_v2, %v427_v54  ;;  %v365_v0 = vmul.f32 %v3209_v1, %v230_v50  ;;  %v301_v54 = vld [vmem:[%s3214_s25 + $0x318] sm:$0xff] }
  0x41   : > { %v772_v5 = vpack.c.bf16 %v689_v57, %v688_v56  ;;  %v626_v6 = vmax.f32 %v498_v58, 0.0  ;;  %v563_v7 = vadd.f32 %v3219_v2, %v428_v59  ;;  %v366_v8 = vmul.f32 %v3209_v1, %v231_v55  ;;  %v238_v59 = vld [vmem:[%s3214_s25 + $0x120] sm:$0xff] }
  0x42   : > { %3039 = vmatmul.mubr.msk.bf16.gmra.mrb[20].mxu0 %vm800_vm0, %v739_v41  ;;  %v627_v10 = vmax.f32 %v499_v62, 0.0  ;;  %v690_v11 = vmax.f32 %v562_v63, 0.0  ;;  %v500_v12 = vadd.f32 %v3219_v2, %v365_v0  ;;  %v429_v13 = vmul.f32 %v3209_v1, %v294_v60  ;;  %v239_v63 = vld [vmem:[%s3214_s25 + $0x128] sm:$0xff] }
  0x43   : > { %3042 = vmatprep.mubr.msk.bf16.mxu0 %vm800_vm0, %v740_v61  ;;  %v691_v14 = vmax.f32 %v563_v7, 0.0  ;;  %v501_v15 = vadd.f32 %v3219_v2, %v366_v8  ;;  %v430_v16 = vmul.f32 %v3209_v1, %v295_v3  ;;  %v367_v17 = vmul.f32 %v3209_v1, %v232_v4 }
  0x44   : > { %3103 = vmatmul.mubr.msk.bf16.gmra.mrb[20].mxu1 %vm800_vm0, %v771_v51  ;;  %v628_v20 = vmax.f32 %v500_v12, 0.0  ;;  %v564_v21 = vadd.f32 %v3219_v2, %v429_v13  ;;  %v368_v22 = vmul.f32 %v3209_v1, %v233_v9  ;;  %v741_v24 = vpack.c.bf16 %v627_v10, %v626_v6  ;;  %v302_v6 = vld [vmem:[%s3214_s25 + $0x320] sm:$0xff]  ;;  %v240_v12 = vld [vmem:[%s3214_s25 + $0x130] sm:$0xff] }
  0x45   : > { %3106 = vmatprep.mubr.msk.bf16.mxu1 %vm800_vm0, %v772_v5  ;;  %v629_v25 = vmax.f32 %v501_v15, 0.0  ;;  %v565_v26 = vadd.f32 %v3219_v2, %v430_v16  ;;  %v502_v27 = vadd.f32 %v3219_v2, %v367_v17  ;;  %v431_v31 = vmul.f32 %v3209_v1, %v296_v18  ;;  %v241_v17 = vld [vmem:[%s3214_s25 + $0x138] sm:$0xff] }
  0x46   : > { %v692_v29 = vmax.f32 %v564_v21, 0.0  ;;  %v503_v30 = vadd.f32 %v3219_v2, %v368_v22  ;;  %v432_v32 = vmul.f32 %v3209_v1, %v297_v19  ;;  %v773_v35 = vpack.c.bf16 %v691_v14, %v690_v11  ;;  %v303_v11 = vld [vmem:[%s3214_s25 + $0x328] sm:$0xff] }
  0x47   : > { %v742_v36 = vpack.c.bf16 %v629_v25, %v628_v20  ;;  %v693_v37 = vmax.f32 %v565_v26, 0.0  ;;  %v369_v38 = vmul.f32 %v3209_v1, %v234_v23  ;;  %v630_v39 = vmax.f32 %v502_v27, 0.0  ;;  %v304_v26 = vld [vmem:[%s3214_s25 + $0x330] sm:$0xff]  ;;  %v305_v27 = vld [vmem:[%s3214_s25 + $0x338] sm:$0xff] }
  0x48   : > { %v566_v40 = vadd.f32 %v3219_v2, %v431_v31  ;;  %v567_v41 = vadd.f32 %v3219_v2, %v432_v32  ;;  %v370_v42 = vmul.f32 %v3209_v1, %v235_v28  ;;  %v433_v46 = vmul.f32 %v3209_v1, %v298_v33  ;;  %v242_v32 = vld [vmem:[%s3214_s25 + $0x140] sm:$0xff] }
  0x49   : > { %v774_v44 = vpack.c.bf16 %v693_v37, %v692_v29  ;;  %v504_v45 = vadd.f32 %v3219_v2, %v369_v38  ;;  %v434_v47 = vmul.f32 %v3209_v1, %v299_v34  ;;  %v631_v50 = vmax.f32 %v503_v30, 0.0 }
  0x4a   : > { %3043 = vmatmul.mubr.msk.bf16.gmra.mrb[24].mxu0 %vm800_vm0, %v741_v24  ;;  %v694_v51 = vmax.f32 %v566_v40, 0.0  ;;  %v695_v52 = vmax.f32 %v567_v41, 0.0  ;;  %v505_v53 = vadd.f32 %v3219_v2, %v370_v42  ;;  %v568_v56 = vadd.f32 %v3219_v2, %v433_v46  ;;  %v306_v40 = vld [vmem:[%s3214_s25 + $0x340] sm:$0xff]  ;;  %v307_v41 = vld [vmem:[%s3214_s25 + $0x348] sm:$0xff] }
  0x4b   : > { %3046 = vmatprep.mubr.msk.bf16.mxu0 %vm800_vm0, %v742_v36  ;;  %v632_v55 = vmax.f32 %v504_v45, 0.0  ;;  %v569_v57 = vadd.f32 %v3219_v2, %v434_v47  ;;  %v371_v58 = vmul.f32 %v3209_v1, %v236_v43  ;;  %v372_v61 = vmul.f32 %v3209_v1, %v237_v48  ;;  %v243_v36 = vld [vmem:[%s3214_s25 + $0x148] sm:$0xff] }
  0x4c   : > { %3107 = vmatmul.mubr.msk.bf16.gmra.mrb[24].mxu1 %vm800_vm0, %v773_v35  ;;  %v633_v60 = vmax.f32 %v505_v53, 0.0  ;;  %v435_v62 = vmul.f32 %v3209_v1, %v300_v49  ;;  %v696_v0 = vmax.f32 %v568_v56, 0.0  ;;  %v436_v5 = vmul.f32 %v3209_v1, %v301_v54  ;;  %v244_v53 = vld [vmem:[%s3214_s25 + $0x150] sm:$0xff]  ;;  %v245_v54 = vld [vmem:[%s3214_s25 + $0x158] sm:$0xff] }
  0x4d   : > { %3110 = vmatprep.mubr.msk.bf16.mxu1 %vm800_vm0, %v774_v44  ;;  %v697_v3 = vmax.f32 %v569_v57, 0.0  ;;  %v506_v4 = vadd.f32 %v3219_v2, %v371_v58  ;;  %v743_v7 = vpack.c.bf16 %v631_v50, %v630_v39  ;;  %v507_v8 = vadd.f32 %v3219_v2, %v372_v61 }
  0x4e   : > { %v570_v9 = vadd.f32 %v3219_v2, %v435_v62  ;;  %v373_v10 = vmul.f32 %v3209_v1, %v238_v59  ;;  %v775_v13 = vpack.c.bf16 %v695_v52, %v694_v51  ;;  %v744_v14 = vpack.c.bf16 %v633_v60, %v632_v55  ;;  %v308_v59 = vld [vmem:[%s3214_s25 + $0x350] sm:$0xff] }
  0x4f   : > { %v571_v15 = vadd.f32 %v3219_v2, %v436_v5  ;;  %v374_v16 = vmul.f32 %v3209_v1, %v239_v63  ;;  %v776_v18 = vpack.c.bf16 %v697_v3, %v696_v0  ;;  %v634_v19 = vmax.f32 %v506_v4, 0.0  ;;  %v309_v0 = vld [vmem:[%s3214_s25 + $0x358] sm:$0xff]  ;;  %v246_v3 = vld [vmem:[%s3214_s25 + $0x160] sm:$0xff] }
  0x50   : > { %v508_v20 = vadd.f32 %v3219_v2, %v373_v10  ;;  %v437_v21 = vmul.f32 %v3209_v1, %v302_v6  ;;  %v635_v22 = vmax.f32 %v507_v8, 0.0  ;;  %v438_v24 = vmul.f32 %v3209_v1, %v303_v11  ;;  %v247_v8 = vld [vmem:[%s3214_s25 + $0x168] sm:$0xff]  ;;  %v310_v10 = vld [vmem:[%s3214_s25 + $0x360] sm:$0xff] }
  0x51   : > { %v509_v23 = vadd.f32 %v3219_v2, %v374_v16  ;;  %v375_v25 = vmul.f32 %v3209_v1, %v240_v12  ;;  %v698_v28 = vmax.f32 %v570_v9, 0.0  ;;  %v699_v29 = vmax.f32 %v571_v15, 0.0  ;;  %v311_v15 = vld [vmem:[%s3214_s25 + $0x368] sm:$0xff] }
  0x52   : > { %3047 = vmatmul.mubr.msk.bf16.gmra.mrb[28].mxu0 %vm800_vm0, %v743_v7  ;;  %v572_v30 = vadd.f32 %v3219_v2, %v437_v21  ;;  %v376_v31 = vmul.f32 %v3209_v1, %v241_v17  ;;  %v636_v33 = vmax.f32 %v508_v20, 0.0  ;;  %v573_v35 = vadd.f32 %v3219_v2, %v438_v24 }
  0x53   : > { %3050 = vmatprep.mubr.msk.bf16.mxu0 %vm800_vm0, %v744_v14  ;;  %v637_v34 = vmax.f32 %v509_v23, 0.0  ;;  %v510_v37 = vadd.f32 %v3219_v2, %v375_v25  ;;  %v439_v38 = vmul.f32 %v3209_v1, %v304_v26  ;;  %v440_v39 = vmul.f32 %v3209_v1, %v305_v27 }
  0x54   : > { %3111 = vmatmul.mubr.msk.bf16.gmra.mrb[28].mxu1 %vm800_vm0, %v775_v13  ;;  %v700_v42 = vmax.f32 %v572_v30, 0.0  ;;  %v701_v43 = vmax.f32 %v573_v35, 0.0  ;;  %v511_v44 = vadd.f32 %v3219_v2, %v376_v31  ;;  %v377_v45 = vmul.f32 %v3209_v1, %v242_v32  ;;  %v250_v32 = vld [vmem:[%s3214_s25 + $0x180] sm:$0xff] }
  0x55   : > { %3114 = vmatprep.mubr.msk.bf16.mxu1 %vm800_vm0, %v776_v18  ;;  %v745_v46 = vpack.c.bf16 %v635_v22, %v634_v19  ;;  %v777_v47 = vpack.c.bf16 %v699_v29, %v698_v28  ;;  %v378_v48 = vmul.f32 %v3209_v1, %v243_v36  ;;  %v746_v49 = vpack.c.bf16 %v637_v34, %v636_v33  ;;  %v248_v28 = vld [vmem:[%s3214_s25 + $0x170] sm:$0xff]  ;;  %v249_v29 = vld [vmem:[%s3214_s25 + $0x178] sm:$0xff] }
  0x56   : > { %v512_v50 = vadd.f32 %v3219_v2, %v377_v45  ;;  %v441_v51 = vmul.f32 %v3209_v1, %v306_v40  ;;  %v442_v52 = vmul.f32 %v3209_v1, %v307_v41  ;;  %v638_v55 = vmax.f32 %v510_v37, 0.0  ;;  %v312_v36 = vld [vmem:[%s3214_s25 + $0x370] sm:$0xff]  ;;  %v313_v37 = vld [vmem:[%s3214_s25 + $0x378] sm:$0xff] }
  0x57   : > { %v574_v56 = vadd.f32 %v3219_v2, %v439_v38  ;;  %v575_v57 = vadd.f32 %v3219_v2, %v440_v39  ;;  %v513_v58 = vadd.f32 %v3219_v2, %v378_v48  ;;  %v778_v60 = vpack.c.bf16 %v701_v43, %v700_v42  ;;  %v251_v38 = vld [vmem:[%s3214_s25 + $0x188] sm:$0xff]  ;;  %v314_v43 = vld [vmem:[%s3214_s25 + $0x380] sm:$0xff] }
  0x58   : > { %v639_v61 = vmax.f32 %v511_v44, 0.0  ;;  %v576_v62 = vadd.f32 %v3219_v2, %v441_v51  ;;  %v577_v63 = vadd.f32 %v3219_v2, %v442_v52  ;;  %v640_v4 = vmax.f32 %v512_v50, 0.0  ;;  %v315_v44 = vld [vmem:[%s3214_s25 + $0x388] sm:$0xff] }
  0x59   : > { %v641_v5 = vmax.f32 %v513_v58, 0.0  ;;  %v379_v6 = vmul.f32 %v3209_v1, %v244_v53  ;;  %v380_v7 = vmul.f32 %v3209_v1, %v245_v54  ;;  %v443_v9 = vmul.f32 %v3209_v1, %v308_v59 }
  0x5a   : > { %3051 = vmatmul.mubr.msk.bf16.gmra.mrb[32].mxu0 %vm800_vm0, %v745_v46  ;;  %v702_v11 = vmax.f32 %v574_v56, 0.0  ;;  %v703_v12 = vmax.f32 %v575_v57, 0.0  ;;  %v444_v13 = vmul.f32 %v3209_v1, %v309_v0  ;;  %v381_v14 = vmul.f32 %v3209_v1, %v246_v3  ;;  %v253_v0 = vld [vmem:[%s3214_s25 + $0x198] sm:$0xff] }
  0x5b   : > { %3054 = vmatprep.mubr.msk.bf16.mxu0 %vm800_vm0, %v746_v49  ;;  %v747_v16 = vpack.c.bf16 %v639_v61, %v638_v55  ;;  %v704_v17 = vmax.f32 %v576_v62, 0.0  ;;  %v705_v18 = vmax.f32 %v577_v63, 0.0  ;;  %v382_v19 = vmul.f32 %v3209_v1, %v247_v8  ;;  %v252_v63 = vld [vmem:[%s3214_s25 + $0x190] sm:$0xff] }
  0x5c   : > { %3115 = vmatmul.mubr.msk.bf16.gmra.mrb[32].mxu1 %vm800_vm0, %v777_v47  ;;  %v748_v20 = vpack.c.bf16 %v641_v5, %v640_v4  ;;  %v514_v21 = vadd.f32 %v3219_v2, %v379_v6  ;;  %v515_v22 = vadd.f32 %v3219_v2, %v380_v7  ;;  %v445_v23 = vmul.f32 %v3209_v1, %v310_v10  ;;  %v254_v6 = vld [vmem:[%s3214_s25 + $0x1a0] sm:$0xff]  ;;  %v255_v7 = vld [vmem:[%s3214_s25 + $0x1a8] sm:$0xff] }
  0x5d   : > { %3118 = vmatprep.mubr.msk.bf16.mxu1 %vm800_vm0, %v778_v60  ;;  %v578_v24 = vadd.f32 %v3219_v2, %v443_v9  ;;  %v516_v25 = vadd.f32 %v3219_v2, %v381_v14  ;;  %v517_v26 = vadd.f32 %v3219_v2, %v382_v19  ;;  %v446_v27 = vmul.f32 %v3209_v1, %v311_v15 }
  0x5e   : > { %v779_v30 = vpack.c.bf16 %v703_v12, %v702_v11  ;;  %v579_v31 = vadd.f32 %v3219_v2, %v444_v13  ;;  %v780_v33 = vpack.c.bf16 %v705_v18, %v704_v17  ;;  %v580_v34 = vadd.f32 %v3219_v2, %v445_v23  ;;  %v316_v11 = vld [vmem:[%s3214_s25 + $0x390] sm:$0xff]  ;;  %v317_v12 = vld [vmem:[%s3214_s25 + $0x398] sm:$0xff]  ;;  %v318_v17 = vld [vmem:[%s3214_s25 + $0x3a0] sm:$0xff] }
  0x5f   : > { %v581_v35 = vadd.f32 %v3219_v2, %v446_v27  ;;  %v642_v39 = vmax.f32 %v514_v21, 0.0  ;;  %v643_v40 = vmax.f32 %v515_v22, 0.0  ;;  %v383_v41 = vmul.f32 %v3209_v1, %v248_v28  ;;  %v319_v18 = vld [vmem:[%s3214_s25 + $0x3a8] sm:$0xff] }
  0x60   : > { %v384_v42 = vmul.f32 %v3209_v1, %v249_v29  ;;  %v706_v45 = vmax.f32 %v578_v24, 0.0  ;;  %v644_v46 = vmax.f32 %v516_v25, 0.0  ;;  %v645_v47 = vmax.f32 %v517_v26, 0.0 }
  0x61   : > { %v385_v48 = vmul.f32 %v3209_v1, %v250_v32  ;;  %v707_v49 = vmax.f32 %v579_v31, 0.0  ;;  %v447_v50 = vmul.f32 %v3209_v1, %v312_v36  ;;  %v448_v51 = vmul.f32 %v3209_v1, %v313_v37 }
  0x62   : > { %3055 = vmatmul.mubr.msk.bf16.gmra.mrb[36].mxu0 %vm800_vm0, %v747_v16  ;;  %v386_v52 = vmul.f32 %v3209_v1, %v251_v38  ;;  %v708_v53 = vmax.f32 %v580_v34, 0.0  ;;  %v709_v54 = vmax.f32 %v581_v35, 0.0  ;;  %v449_v55 = vmul.f32 %v3209_v1, %v314_v43  ;;  %v256_v38 = vld [vmem:[%s3214_s25 + $0x1b0] sm:$0xff] }
  0x63   : > { %3058 = vmatprep.mubr.msk.bf16.mxu0 %vm800_vm0, %v748_v20  ;;  %v450_v56 = vmul.f32 %v3209_v1, %v315_v44  ;;  %v749_v57 = vpack.c.bf16 %v643_v40, %v642_v39  ;;  %v518_v58 = vadd.f32 %v3219_v2, %v383_v41  ;;  %v519_v59 = vadd.f32 %v3219_v2, %v384_v42  ;;  %v257_v39 = vld [vmem:[%s3214_s25 + $0x1b8] sm:$0xff]  ;;  %v258_v41 = vld [vmem:[%s3214_s25 + $0x1c0] sm:$0xff]  ;;  %v259_v42 = vld [vmem:[%s3214_s25 + $0x1c8] sm:$0xff] }
  0x64   : > { %3119 = vmatmul.mubr.msk.bf16.gmra.mrb[36].mxu1 %vm800_vm0, %v779_v30  ;;  %v750_v60 = vpack.c.bf16 %v645_v47, %v644_v46  ;;  %v520_v61 = vadd.f32 %v3219_v2, %v385_v48  ;;  %v521_v62 = vadd.f32 %v3219_v2, %v386_v52  ;;  %v781_v3 = vpack.c.bf16 %v707_v49, %v706_v45  ;;  %v320_v46 = vld [vmem:[%s3214_s25 + $0x3b0] sm:$0xff]  ;;  %v321_v47 = vld [vmem:[%s3214_s25 + $0x3b8] sm:$0xff] }
  0x65   : > { %3122 = vmatprep.mubr.msk.bf16.mxu1 %vm800_vm0, %v780_v33  ;;  %v582_v4 = vadd.f32 %v3219_v2, %v447_v50  ;;  %v583_v5 = vadd.f32 %v3219_v2, %v448_v51  ;;  %v782_v8 = vpack.c.bf16 %v709_v54, %v708_v53  ;;  %v584_v9 = vadd.f32 %v3219_v2, %v449_v55  ;;  %v3587_v33 = vld [vmem:[%s3754_s2] ss:$0 sm:$0xff]  ;;  %v323_v54 = vld [vmem:[%s3214_s25 + $0x3c8] sm:$0xff] }
  0x66   : > { %v585_v10 = vadd.f32 %v3219_v2, %v450_v56  ;;  %v646_v13 = vmax.f32 %v518_v58, 0.0  ;;  %v647_v14 = vmax.f32 %v519_v59, 0.0  ;;  %v387_v15 = vmul.f32 %v3209_v1, %v252_v63  ;;  %v3606_v50 = vld [vmem:[%s3753_s1] ss:$0 sm:$0xff] }
  0x67   : > { %v388_v16 = vmul.f32 %v3209_v1, %v253_v0  ;;  %v648_v19 = vmax.f32 %v520_v61, 0.0  ;;  %v649_v20 = vmax.f32 %v521_v62, 0.0  ;;  %v389_v21 = vmul.f32 %v3209_v1, %v254_v6  ;;  %v322_v53 = vld [vmem:[%s3214_s25 + $0x3c0] sm:$0xff] }
  0x68   : > { %v390_v22 = vmul.f32 %v3209_v1, %v255_v7  ;;  %v710_v23 = vmax.f32 %v582_v4, 0.0  ;;  %v711_v24 = vmax.f32 %v583_v5, 0.0  ;;  %v451_v25 = vmul.f32 %v3209_v1, %v316_v11  ;;  %v260_v11 = vld [vmem:[%s3214_s25 + $0x1d0] sm:$0xff] }
  0x69   : > { %v452_v26 = vmul.f32 %v3209_v1, %v317_v12  ;;  %v712_v27 = vmax.f32 %v584_v9, 0.0  ;;  %v713_v28 = vmax.f32 %v585_v10, 0.0  ;;  %v453_v29 = vmul.f32 %v3209_v1, %v318_v17  ;;  %v261_v12 = vld [vmem:[%s3214_s25 + $0x1d8] sm:$0xff]  ;;  %v263_v17 = vld [vmem:[%s3214_s25 + $0x1e8] sm:$0xff] }
  0x6a   : > { %3059 = vmatmul.mubr.msk.bf16.gmra.mrb[40].mxu0 %vm800_vm0, %v749_v57  ;;  %v454_v30 = vmul.f32 %v3209_v1, %v319_v18  ;;  %v751_v31 = vpack.c.bf16 %v647_v14, %v646_v13  ;;  %v522_v32 = vadd.f32 %v3219_v2, %v387_v15  ;;  %v523_v34 = vadd.f32 %v3587_v33, %v388_v16  ;;  %v262_v16 = vld [vmem:[%s3214_s25 + $0x1e0] sm:$0xff] }
  0x6b   : > { %3062 = vmatprep.mubr.msk.bf16.mxu0 %vm800_vm0, %v750_v60  ;;  %v752_v35 = vpack.c.bf16 %v649_v20, %v648_v19  ;;  %v524_v36 = vadd.f32 %v3587_v33, %v389_v21  ;;  %v525_v37 = vadd.f32 %v3587_v33, %v390_v22  ;;  %v783_v1 = vpack.c.bf16 %v711_v24, %v710_v23  ;;  %v324_v21 = vld [vmem:[%s3214_s25 + $0x3d0] sm:$0xff]  ;;  %v325_v22 = vld [vmem:[%s3214_s25 + $0x3d8] sm:$0xff] }
  0x6c   : > { %3123 = vmatmul.mubr.msk.bf16.gmra.mrb[40].mxu1 %vm800_vm0, %v781_v3  ;;  %v586_v2 = vadd.f32 %v3587_v33, %v451_v25  ;;  %v587_v40 = vadd.f32 %v3587_v33, %v452_v26  ;;  %v784_v43 = vpack.c.bf16 %v713_v28, %v712_v27  ;;  %v588_v44 = vadd.f32 %v3587_v33, %v453_v29  ;;  %v326_v27 = vld [vmem:[%s3214_s25 + $0x3e0] sm:$0xff]  ;;  %v327_v28 = vld [vmem:[%s3214_s25 + $0x3e8] sm:$0xff] }
  0x6d   : > { %3126 = vmatprep.mubr.msk.bf16.mxu1 %vm800_vm0, %v782_v8  ;;  %v589_v45 = vadd.f32 %v3587_v33, %v454_v30  ;;  %v650_v48 = vmax.f32 %v522_v32, 0.0  ;;  %v651_v49 = vmax.f32 %v523_v34, 0.0  ;;  %v391_v51 = vmul.f32 %v3606_v50, %v256_v38 }
  0x6e   : > { %v392_v52 = vmul.f32 %v3606_v50, %v257_v39  ;;  %v652_v55 = vmax.f32 %v524_v36, 0.0  ;;  %v653_v56 = vmax.f32 %v525_v37, 0.0  ;;  %v393_v57 = vmul.f32 %v3606_v50, %v258_v41 }
  0x6f   : > { %v394_v58 = vmul.f32 %v3606_v50, %v259_v42  ;;  %v714_v59 = vmax.f32 %v586_v2, 0.0  ;;  %v715_v60 = vmax.f32 %v587_v40, 0.0  ;;  %v455_v61 = vmul.f32 %v3606_v50, %v320_v46  ;;  %v264_v46 = vld [vmem:[%s3214_s25 + $0x1f0] sm:$0xff] }
  0x70   : > { %v456_v62 = vmul.f32 %v3606_v50, %v321_v47  ;;  %v716_v63 = vmax.f32 %v588_v44, 0.0  ;;  %v717_v0 = vmax.f32 %v589_v45, 0.0  ;;  %v457_v3 = vmul.f32 %v3606_v50, %v322_v53  ;;  %v265_v47 = vld [vmem:[%s3214_s25 + $0x1f8] sm:$0xff] }
  0x71   : > { %v458_v4 = vmul.f32 %v3606_v50, %v323_v54  ;;  %v753_v5 = vpack.c.bf16 %v651_v49, %v650_v48  ;;  %v526_v6 = vadd.f32 %v3587_v33, %v391_v51  ;;  %v527_v7 = vadd.f32 %v3587_v33, %v392_v52 }
  0x72   : > { %3063 = vmatmul.mubr.msk.bf16.gmra.mrb[44].mxu0 %vm800_vm0, %v751_v31  ;;  %v754_v8 = vpack.c.bf16 %v653_v56, %v652_v55  ;;  %v528_v9 = vadd.f32 %v3587_v33, %v393_v57  ;;  %v529_v10 = vadd.f32 %v3587_v33, %v394_v58  ;;  %v785_v13 = vpack.c.bf16 %v715_v60, %v714_v59  ;;  %v328_v55 = vld [vmem:[%s3214_s25 + $0x3f0] sm:$0xff]  ;;  %v329_v56 = vld [vmem:[%s3214_s25 + $0x3f8] sm:$0xff] }
  0x73   : > { %3066 = vmatprep.mubr.msk.bf16.mxu0 %vm800_vm0, %v752_v35  ;;  %v590_v14 = vadd.f32 %v3587_v33, %v455_v61  ;;  %v591_v15 = vadd.f32 %v3587_v33, %v456_v62  ;;  %v786_v18 = vpack.c.bf16 %v717_v0, %v716_v63  ;;  %v592_v19 = vadd.f32 %v3587_v33, %v457_v3 }
  0x74   : > { %3127 = vmatmul.mubr.msk.bf16.gmra.mrb[44].mxu1 %vm800_vm0, %v783_v1  ;;  %v593_v20 = vadd.f32 %v3587_v33, %v458_v4  ;;  %v654_v23 = vmax.f32 %v526_v6, 0.0  ;;  %v655_v24 = vmax.f32 %v527_v7, 0.0  ;;  %v395_v25 = vmul.f32 %v3606_v50, %v260_v11 }
  0x75   : > { %3130 = vmatprep.mubr.msk.bf16.mxu1 %vm800_vm0, %v784_v43  ;;  %v396_v26 = vmul.f32 %v3606_v50, %v261_v12  ;;  %v656_v29 = vmax.f32 %v528_v9, 0.0  ;;  %v657_v30 = vmax.f32 %v529_v10, 0.0  ;;  %v397_v31 = vmul.f32 %v3606_v50, %v262_v16 }
  0x76   : > { %v398_v32 = vmul.f32 %v3606_v50, %v263_v17  ;;  %v718_v34 = vmax.f32 %v590_v14, 0.0  ;;  %v719_v35 = vmax.f32 %v591_v15, 0.0  ;;  %v459_v36 = vmul.f32 %v3606_v50, %v324_v21 }
  0x77   : > { %v460_v37 = vmul.f32 %v3606_v50, %v325_v22  ;;  %v720_v38 = vmax.f32 %v592_v19, 0.0  ;;  %v721_v39 = vmax.f32 %v593_v20, 0.0  ;;  %v461_v1 = vmul.f32 %v3606_v50, %v326_v27 }
  0x78   : > { %v462_v2 = vmul.f32 %v3606_v50, %v327_v28  ;;  %v755_v40 = vpack.c.bf16 %v655_v24, %v654_v23  ;;  %v530_v41 = vadd.f32 %v3587_v33, %v395_v25  ;;  %v531_v42 = vadd.f32 %v3587_v33, %v396_v26 }
  0x79   : > { %v756_v43 = vpack.c.bf16 %v657_v30, %v656_v29  ;;  %v532_v44 = vadd.f32 %v3587_v33, %v397_v31  ;;  %v533_v45 = vadd.f32 %v3587_v33, %v398_v32  ;;  %v787_v48 = vpack.c.bf16 %v719_v35, %v718_v34 }
  0x7a   : > { %3067 = vmatmul.mubr.msk.bf16.gmra.mrb[48].mxu0 %vm800_vm0, %v753_v5  ;;  %v594_v49 = vadd.f32 %v3587_v33, %v459_v36  ;;  %v595_v51 = vadd.f32 %v3587_v33, %v460_v37  ;;  %v788_v52 = vpack.c.bf16 %v721_v39, %v720_v38  ;;  %v596_v53 = vadd.f32 %v3587_v33, %v461_v1 }
  0x7b   : > { %3070 = vmatprep.mubr.msk.bf16.mxu0 %vm800_vm0, %v754_v8  ;;  %v597_v54 = vadd.f32 %v3587_v33, %v462_v2  ;;  %v658_v57 = vmax.f32 %v530_v41, 0.0  ;;  %v659_v58 = vmax.f32 %v531_v42, 0.0  ;;  %v399_v59 = vmul.f32 %v3606_v50, %v264_v46 }
  0x7c   : > { %3131 = vmatmul.mubr.msk.bf16.gmra.mrb[48].mxu1 %vm800_vm0, %v785_v13  ;;  %v400_v60 = vmul.f32 %v3606_v50, %v265_v47  ;;  %v660_v61 = vmax.f32 %v532_v44, 0.0  ;;  %v661_v62 = vmax.f32 %v533_v45, 0.0  ;;  %v722_v63 = vmax.f32 %v594_v49, 0.0 }
  0x7d   : > { %3134 = vmatprep.mubr.msk.bf16.mxu1 %vm800_vm0, %v786_v18  ;;  %v723_v0 = vmax.f32 %v595_v51, 0.0  ;;  %v463_v3 = vmul.f32 %v3606_v50, %v328_v55  ;;  %v464_v4 = vmul.f32 %v3606_v50, %v329_v56  ;;  %v724_v5 = vmax.f32 %v596_v53, 0.0 }
  0x7e   : > { %v725_v6 = vmax.f32 %v597_v54, 0.0  ;;  %v757_v7 = vpack.c.bf16 %v659_v58, %v658_v57  ;;  %v534_v8 = vadd.f32 %v3587_v33, %v399_v59  ;;  %v535_v9 = vadd.f32 %v3587_v33, %v400_v60 }
  0x7f   : > { %v758_v10 = vpack.c.bf16 %v661_v62, %v660_v61  ;;  %v789_v11 = vpack.c.bf16 %v723_v0, %v722_v63  ;;  %v598_v12 = vadd.f32 %v3587_v33, %v463_v3  ;;  %v599_v13 = vadd.f32 %v3587_v33, %v464_v4 }
  0x80   : > { %v790_v14 = vpack.c.bf16 %v725_v6, %v724_v5  ;;  %v662_v50 = vmax.f32 %v534_v8, 0.0  ;;  %v663_v15 = vmax.f32 %v535_v9, 0.0 }
  0x81   : > { %v726_v16 = vmax.f32 %v598_v12, 0.0  ;;  %v727_v17 = vmax.f32 %v599_v13, 0.0 }
  0x82   : > { %3071 = vmatmul.mubr.msk.bf16.gmra.mrb[52].mxu0 %vm800_vm0, %v755_v40  ;;  %v759_v18 = vpack.c.bf16 %v663_v15, %v662_v50 }
  0x83   : > { %3074 = vmatprep.mubr.msk.bf16.mxu0 %vm800_vm0, %v756_v43  ;;  %v791_v19 = vpack.c.bf16 %v727_v17, %v726_v16 }
  0x84   : > { %3135 = vmatmul.mubr.msk.bf16.gmra.mrb[52].mxu1 %vm800_vm0, %v787_v48 }
  0x85   : > { %3138 = vmatprep.mubr.msk.bf16.mxu1 %vm800_vm0, %v788_v52 }
  0x8a   : > { %3075 = vmatmul.mubr.msk.bf16.gmra.mrb[56].mxu0 %vm800_vm0, %v757_v7 }
  0x8b   : > { %3078 = vmatprep.mubr.msk.bf16.mxu0 %vm800_vm0, %v758_v10 }
  0x8c   : > { %3139 = vmatmul.mubr.msk.bf16.gmra.mrb[56].mxu1 %vm800_vm0, %v789_v11 }
  0x8d   : > { %3142 = vmatprep.mubr.msk.bf16.mxu1 %vm800_vm0, %v790_v14 }
  0x92   : > { %3079 = vmatmul.mubr.msk.bf16.gmra.mrb[60].mxu0 %vm800_vm0, %v759_v18 }
  0x94   : > { %3143 = vmatmul.mubr.msk.bf16.gmra.mrb[60].mxu1 %vm800_vm0, %v791_v19 }
  0xed   : > { %v3020_v33 = vpop.f32.mrb[0].mxu0 }
  0xee   : > { %v1027_v20 = vpop.f32.mrb[1].mxu0 }
  0xef   : > { %v3084_v21 = vpop.f32.mrb[0].mxu1  ;;  %v3021_v22 = vpop.f32.mrb[2].mxu0 }
  0xf0   : > { %v1283_v23 = vpop.f32.mrb[1].mxu1  ;;  %v2576_v24 = vpack.c.bf16 %v3021_v22, %v3020_v33  ;;  %v1030_v25 = vpop.f32.mrb[3].mxu0 }
  0xf1   : > { %v3085_v26 = vpop.f32.mrb[2].mxu1  ;;  %v2571_v27 = vpack.c.bf16 %v1030_v25, %v1027_v20 }
  0xf2   : > { %2888 = vst [vmem:[%s3683_s9 + $0x8] sm:$0xff] %v2576_v24   ;;  %v2736_v28 = vpack.c.bf16 %v3085_v26, %v3084_v21  ;;  %v1286_v29 = vpop.f32.mrb[3].mxu1 }
  0xf3   : > { %2572 = vst [vmem:[%s3683_s9] sm:$0xff] %v2571_v27   ;;  %v2731_v30 = vpack.c.bf16 %v1286_v29, %v1283_v23 }
  0xf4   : > { %2920 = vst [vmem:[%s3683_s9 + $0x108] sm:$0xff] %v2736_v28  }
  0xf5   : > { %2919 = vst [vmem:[%s3683_s9 + $0x100] sm:$0xff] %v2731_v30   ;;  %v3024_v31 = vpop.f32.mrb[4].mxu0 }
  0xf6   : > { %v1043_v32 = vpop.f32.mrb[5].mxu0 }
  0xf7   : > { %v3088_v34 = vpop.f32.mrb[4].mxu1  ;;  %v3025_v35 = vpop.f32.mrb[6].mxu0 }
  0xf8   : > { %v1299_v36 = vpop.f32.mrb[5].mxu1  ;;  %v2586_v37 = vpack.c.bf16 %v3025_v35, %v3024_v31  ;;  %v1046_v38 = vpop.f32.mrb[7].mxu0 }
  0xf9   : > { %v3089_v39 = vpop.f32.mrb[6].mxu1  ;;  %v2581_v1 = vpack.c.bf16 %v1046_v38, %v1043_v32 }
  0xfa   : > { %2890 = vst [vmem:[%s3683_s9 + $0x18] sm:$0xff] %v2586_v37   ;;  %v2746_v2 = vpack.c.bf16 %v3089_v39, %v3088_v34  ;;  %v1302_v40 = vpop.f32.mrb[7].mxu1 }
  0xfb   : > { %2889 = vst [vmem:[%s3683_s9 + $0x10] sm:$0xff] %v2581_v1   ;;  %v2741_v41 = vpack.c.bf16 %v1302_v40, %v1299_v36 }
  0xfc   : > { %2922 = vst [vmem:[%s3683_s9 + $0x118] sm:$0xff] %v2746_v2  }
  0xfd   : > { %2921 = vst [vmem:[%s3683_s9 + $0x110] sm:$0xff] %v2741_v41   ;;  %v3028_v42 = vpop.f32.mrb[8].mxu0 }
  0xfe   : > { %v1059_v43 = vpop.f32.mrb[9].mxu0 }
  0xff   : > { %v3092_v44 = vpop.f32.mrb[8].mxu1  ;;  %v3029_v45 = vpop.f32.mrb[10].mxu0 }
 0x100   : > { %v1315_v46 = vpop.f32.mrb[9].mxu1  ;;  %v2596_v47 = vpack.c.bf16 %v3029_v45, %v3028_v42  ;;  %v1062_v48 = vpop.f32.mrb[11].mxu0 }
 0x101   : > { %v3093_v49 = vpop.f32.mrb[10].mxu1  ;;  %v2591_v51 = vpack.c.bf16 %v1062_v48, %v1059_v43 }
 0x102   : > { %2892 = vst [vmem:[%s3683_s9 + $0x28] sm:$0xff] %v2596_v47   ;;  %v2756_v52 = vpack.c.bf16 %v3093_v49, %v3092_v44  ;;  %v1318_v53 = vpop.f32.mrb[11].mxu1 }
 0x103   : > { %2891 = vst [vmem:[%s3683_s9 + $0x20] sm:$0xff] %v2591_v51   ;;  %v2751_v54 = vpack.c.bf16 %v1318_v53, %v1315_v46 }
 0x104   : > { %2924 = vst [vmem:[%s3683_s9 + $0x128] sm:$0xff] %v2756_v52  }
 0x105   : > { %2923 = vst [vmem:[%s3683_s9 + $0x120] sm:$0xff] %v2751_v54   ;;  %v3032_v55 = vpop.f32.mrb[12].mxu0 }
 0x106   : > { %v1075_v56 = vpop.f32.mrb[13].mxu0 }
 0x107   : > { %v3096_v57 = vpop.f32.mrb[12].mxu1  ;;  %v3033_v58 = vpop.f32.mrb[14].mxu0 }
 0x108   : > { %v1331_v59 = vpop.f32.mrb[13].mxu1  ;;  %v2606_v60 = vpack.c.bf16 %v3033_v58, %v3032_v55  ;;  %v1078_v61 = vpop.f32.mrb[15].mxu0 }
 0x109   : > { %v3097_v62 = vpop.f32.mrb[14].mxu1  ;;  %v2601_v63 = vpack.c.bf16 %v1078_v61, %v1075_v56 }
 0x10a   : > { %2894 = vst [vmem:[%s3683_s9 + $0x38] sm:$0xff] %v2606_v60   ;;  %v2766_v0 = vpack.c.bf16 %v3097_v62, %v3096_v57  ;;  %v1334_v3 = vpop.f32.mrb[15].mxu1 }
 0x10b   : > { %2893 = vst [vmem:[%s3683_s9 + $0x30] sm:$0xff] %v2601_v63   ;;  %v2761_v4 = vpack.c.bf16 %v1334_v3, %v1331_v59 }
 0x10c   : > { %2926 = vst [vmem:[%s3683_s9 + $0x138] sm:$0xff] %v2766_v0  }
 0x10d   : > { %2925 = vst [vmem:[%s3683_s9 + $0x130] sm:$0xff] %v2761_v4   ;;  %v3036_v5 = vpop.f32.mrb[16].mxu0 }
 0x10e   : > { %v1091_v6 = vpop.f32.mrb[17].mxu0 }
 0x10f   : > { %v3100_v7 = vpop.f32.mrb[16].mxu1  ;;  %v3037_v8 = vpop.f32.mrb[18].mxu0 }
 0x110   : > { %v1347_v9 = vpop.f32.mrb[17].mxu1  ;;  %v2616_v10 = vpack.c.bf16 %v3037_v8, %v3036_v5  ;;  %v1094_v11 = vpop.f32.mrb[19].mxu0 }
 0x111   : > { %v3101_v12 = vpop.f32.mrb[18].mxu1  ;;  %v2611_v13 = vpack.c.bf16 %v1094_v11, %v1091_v6 }
 0x112   : > { %2896 = vst [vmem:[%s3683_s9 + $0x48] sm:$0xff] %v2616_v10   ;;  %v2776_v14 = vpack.c.bf16 %v3101_v12, %v3100_v7  ;;  %v1350_v50 = vpop.f32.mrb[19].mxu1 }
 0x113   : > { %2895 = vst [vmem:[%s3683_s9 + $0x40] sm:$0xff] %v2611_v13   ;;  %v2771_v15 = vpack.c.bf16 %v1350_v50, %v1347_v9 }
 0x114   : > { %2928 = vst [vmem:[%s3683_s9 + $0x148] sm:$0xff] %v2776_v14  }
 0x115   : > { %2927 = vst [vmem:[%s3683_s9 + $0x140] sm:$0xff] %v2771_v15   ;;  %v3040_v16 = vpop.f32.mrb[20].mxu0 }
 0x116   : > { %v1107_v17 = vpop.f32.mrb[21].mxu0 }
 0x117   : > { %v3104_v18 = vpop.f32.mrb[20].mxu1  ;;  %v3041_v19 = vpop.f32.mrb[22].mxu0 }
 0x118   : > { %v1363_v33 = vpop.f32.mrb[21].mxu1  ;;  %v2626_v20 = vpack.c.bf16 %v3041_v19, %v3040_v16  ;;  %v1110_v21 = vpop.f32.mrb[23].mxu0 }
 0x119   : > { %v3105_v22 = vpop.f32.mrb[22].mxu1  ;;  %v2621_v23 = vpack.c.bf16 %v1110_v21, %v1107_v17 }
 0x11a   : > { %2898 = vst [vmem:[%s3683_s9 + $0x58] sm:$0xff] %v2626_v20   ;;  %v2786_v24 = vpack.c.bf16 %v3105_v22, %v3104_v18  ;;  %v1366_v25 = vpop.f32.mrb[23].mxu1 }
 0x11b   : > { %2897 = vst [vmem:[%s3683_s9 + $0x50] sm:$0xff] %v2621_v23   ;;  %v2781_v26 = vpack.c.bf16 %v1366_v25, %v1363_v33 }
 0x11c   : > { %2930 = vst [vmem:[%s3683_s9 + $0x158] sm:$0xff] %v2786_v24  }
 0x11d   : > { %2929 = vst [vmem:[%s3683_s9 + $0x150] sm:$0xff] %v2781_v26   ;;  %v3044_v27 = vpop.f32.mrb[24].mxu0 }
 0x11e   : > { %v1123_v28 = vpop.f32.mrb[25].mxu0 }
 0x11f   : > { %v3108_v29 = vpop.f32.mrb[24].mxu1  ;;  %v3045_v30 = vpop.f32.mrb[26].mxu0 }
 0x120   : > { %v1379_v31 = vpop.f32.mrb[25].mxu1  ;;  %v2636_v32 = vpack.c.bf16 %v3045_v30, %v3044_v27  ;;  %v1126_v34 = vpop.f32.mrb[27].mxu0 }
 0x121   : > { %v3109_v35 = vpop.f32.mrb[26].mxu1  ;;  %v2631_v36 = vpack.c.bf16 %v1126_v34, %v1123_v28 }
 0x122   : > { %2900 = vst [vmem:[%s3683_s9 + $0x68] sm:$0xff] %v2636_v32   ;;  %v2796_v37 = vpack.c.bf16 %v3109_v35, %v3108_v29  ;;  %v1382_v38 = vpop.f32.mrb[27].mxu1 }
 0x123   : > { %2899 = vst [vmem:[%s3683_s9 + $0x60] sm:$0xff] %v2631_v36   ;;  %v2791_v39 = vpack.c.bf16 %v1382_v38, %v1379_v31 }
 0x124   : > { %2932 = vst [vmem:[%s3683_s9 + $0x168] sm:$0xff] %v2796_v37  }
 0x125   : > { %2931 = vst [vmem:[%s3683_s9 + $0x160] sm:$0xff] %v2791_v39   ;;  %v3048_v1 = vpop.f32.mrb[28].mxu0 }
 0x126   : > { %v1139_v2 = vpop.f32.mrb[29].mxu0 }
 0x127   : > { %v3112_v40 = vpop.f32.mrb[28].mxu1  ;;  %v3049_v41 = vpop.f32.mrb[30].mxu0 }
 0x128   : > { %v1395_v42 = vpop.f32.mrb[29].mxu1  ;;  %v2646_v43 = vpack.c.bf16 %v3049_v41, %v3048_v1  ;;  %v1142_v44 = vpop.f32.mrb[31].mxu0 }
 0x129   : > { %v3113_v45 = vpop.f32.mrb[30].mxu1  ;;  %v2641_v46 = vpack.c.bf16 %v1142_v44, %v1139_v2 }
 0x12a   : > { %2902 = vst [vmem:[%s3683_s9 + $0x78] sm:$0xff] %v2646_v43   ;;  %v2806_v47 = vpack.c.bf16 %v3113_v45, %v3112_v40  ;;  %v1398_v48 = vpop.f32.mrb[31].mxu1 }
 0x12b   : > { %2901 = vst [vmem:[%s3683_s9 + $0x70] sm:$0xff] %v2641_v46   ;;  %v2801_v49 = vpack.c.bf16 %v1398_v48, %v1395_v42 }
 0x12c   : > { %2934 = vst [vmem:[%s3683_s9 + $0x178] sm:$0xff] %v2806_v47  }
 0x12d   : > { %2933 = vst [vmem:[%s3683_s9 + $0x170] sm:$0xff] %v2801_v49   ;;  %v3052_v51 = vpop.f32.mrb[32].mxu0 }
 0x12e   : > { %v1155_v52 = vpop.f32.mrb[33].mxu0 }
 0x12f   : > { %v3116_v53 = vpop.f32.mrb[32].mxu1  ;;  %v3053_v54 = vpop.f32.mrb[34].mxu0 }
 0x130   : > { %v1411_v55 = vpop.f32.mrb[33].mxu1  ;;  %v2656_v56 = vpack.c.bf16 %v3053_v54, %v3052_v51  ;;  %v1158_v57 = vpop.f32.mrb[35].mxu0 }
 0x131   : > { %v3117_v58 = vpop.f32.mrb[34].mxu1  ;;  %v2651_v59 = vpack.c.bf16 %v1158_v57, %v1155_v52 }
 0x132   : > { %2904 = vst [vmem:[%s3683_s9 + $0x88] sm:$0xff] %v2656_v56   ;;  %v2816_v60 = vpack.c.bf16 %v3117_v58, %v3116_v53  ;;  %v1414_v61 = vpop.f32.mrb[35].mxu1 }
 0x133   : > { %2903 = vst [vmem:[%s3683_s9 + $0x80] sm:$0xff] %v2651_v59   ;;  %v2811_v62 = vpack.c.bf16 %v1414_v61, %v1411_v55 }
 0x134   : > { %2936 = vst [vmem:[%s3683_s9 + $0x188] sm:$0xff] %v2816_v60  }
 0x135   : > { %2935 = vst [vmem:[%s3683_s9 + $0x180] sm:$0xff] %v2811_v62   ;;  %v3056_v63 = vpop.f32.mrb[36].mxu0 }
 0x136   : > { %v1171_v0 = vpop.f32.mrb[37].mxu0 }
 0x137   : > { %v3120_v3 = vpop.f32.mrb[36].mxu1  ;;  %v3057_v4 = vpop.f32.mrb[38].mxu0 }
 0x138   : > { %v1427_v5 = vpop.f32.mrb[37].mxu1  ;;  %v2666_v6 = vpack.c.bf16 %v3057_v4, %v3056_v63  ;;  %v1174_v7 = vpop.f32.mrb[39].mxu0 }
 0x139   : > { %v3121_v8 = vpop.f32.mrb[38].mxu1  ;;  %v2661_v9 = vpack.c.bf16 %v1174_v7, %v1171_v0 }
 0x13a   : > { %2906 = vst [vmem:[%s3683_s9 + $0x98] sm:$0xff] %v2666_v6   ;;  %v2826_v10 = vpack.c.bf16 %v3121_v8, %v3120_v3  ;;  %v1430_v11 = vpop.f32.mrb[39].mxu1 }
 0x13b   : > { %2905 = vst [vmem:[%s3683_s9 + $0x90] sm:$0xff] %v2661_v9   ;;  %v2821_v12 = vpack.c.bf16 %v1430_v11, %v1427_v5 }
 0x13c   : > { %2938 = vst [vmem:[%s3683_s9 + $0x198] sm:$0xff] %v2826_v10  }
 0x13d   : > { %2937 = vst [vmem:[%s3683_s9 + $0x190] sm:$0xff] %v2821_v12   ;;  %v3060_v13 = vpop.f32.mrb[40].mxu0 }
 0x13e   : > { %v1187_v14 = vpop.f32.mrb[41].mxu0 }
 0x13f   : > { %v3124_v50 = vpop.f32.mrb[40].mxu1  ;;  %v3061_v15 = vpop.f32.mrb[42].mxu0 }
 0x140   : > { %v1443_v16 = vpop.f32.mrb[41].mxu1  ;;  %v2676_v17 = vpack.c.bf16 %v3061_v15, %v3060_v13  ;;  %v1190_v18 = vpop.f32.mrb[43].mxu0 }
 0x141   : > { %v3125_v19 = vpop.f32.mrb[42].mxu1  ;;  %v2671_v33 = vpack.c.bf16 %v1190_v18, %v1187_v14 }
 0x142   : > { %2908 = vst [vmem:[%s3683_s9 + $0xa8] sm:$0xff] %v2676_v17   ;;  %v2836_v20 = vpack.c.bf16 %v3125_v19, %v3124_v50  ;;  %v1446_v21 = vpop.f32.mrb[43].mxu1 }
 0x143   : > { %2907 = vst [vmem:[%s3683_s9 + $0xa0] sm:$0xff] %v2671_v33   ;;  %v2831_v22 = vpack.c.bf16 %v1446_v21, %v1443_v16 }
 0x144   : > { %2940 = vst [vmem:[%s3683_s9 + $0x1a8] sm:$0xff] %v2836_v20  }
 0x145   : > { %2939 = vst [vmem:[%s3683_s9 + $0x1a0] sm:$0xff] %v2831_v22   ;;  %v3064_v23 = vpop.f32.mrb[44].mxu0 }
 0x146   : > { %v1203_v24 = vpop.f32.mrb[45].mxu0 }
 0x147   : > { %v3128_v25 = vpop.f32.mrb[44].mxu1  ;;  %v3065_v26 = vpop.f32.mrb[46].mxu0 }
 0x148   : > { %v1459_v27 = vpop.f32.mrb[45].mxu1  ;;  %v2686_v28 = vpack.c.bf16 %v3065_v26, %v3064_v23  ;;  %v1206_v29 = vpop.f32.mrb[47].mxu0 }
 0x149   : > { %v3129_v30 = vpop.f32.mrb[46].mxu1  ;;  %v2681_v31 = vpack.c.bf16 %v1206_v29, %v1203_v24 }
 0x14a   : > { %2910 = vst [vmem:[%s3683_s9 + $0xb8] sm:$0xff] %v2686_v28   ;;  %v2846_v32 = vpack.c.bf16 %v3129_v30, %v3128_v25  ;;  %v1462_v34 = vpop.f32.mrb[47].mxu1 }
 0x14b   : > { %2909 = vst [vmem:[%s3683_s9 + $0xb0] sm:$0xff] %v2681_v31   ;;  %v2841_v35 = vpack.c.bf16 %v1462_v34, %v1459_v27 }
 0x14c   : > { %2942 = vst [vmem:[%s3683_s9 + $0x1b8] sm:$0xff] %v2846_v32  }
 0x14d   : > { %2941 = vst [vmem:[%s3683_s9 + $0x1b0] sm:$0xff] %v2841_v35   ;;  %v3068_v36 = vpop.f32.mrb[48].mxu0 }
 0x14e   : > { %v1219_v37 = vpop.f32.mrb[49].mxu0 }
 0x14f   : > { %v3132_v38 = vpop.f32.mrb[48].mxu1  ;;  %v3069_v39 = vpop.f32.mrb[50].mxu0 }
 0x150   : > { %v1475_v1 = vpop.f32.mrb[49].mxu1  ;;  %v2696_v2 = vpack.c.bf16 %v3069_v39, %v3068_v36  ;;  %v1222_v40 = vpop.f32.mrb[51].mxu0 }
 0x151   : > { %v3133_v41 = vpop.f32.mrb[50].mxu1  ;;  %v2691_v42 = vpack.c.bf16 %v1222_v40, %v1219_v37 }
 0x152   : > { %2912 = vst [vmem:[%s3683_s9 + $0xc8] sm:$0xff] %v2696_v2   ;;  %v2856_v43 = vpack.c.bf16 %v3133_v41, %v3132_v38  ;;  %v1478_v44 = vpop.f32.mrb[51].mxu1 }
 0x153   : > { %2911 = vst [vmem:[%s3683_s9 + $0xc0] sm:$0xff] %v2691_v42   ;;  %v2851_v45 = vpack.c.bf16 %v1478_v44, %v1475_v1 }
 0x154   : > { %2944 = vst [vmem:[%s3683_s9 + $0x1c8] sm:$0xff] %v2856_v43  }
 0x155   : > { %2943 = vst [vmem:[%s3683_s9 + $0x1c0] sm:$0xff] %v2851_v45   ;;  %v3072_v46 = vpop.f32.mrb[52].mxu0 }
 0x156   : > { %v1235_v47 = vpop.f32.mrb[53].mxu0 }
 0x157   : > { %v3136_v48 = vpop.f32.mrb[52].mxu1  ;;  %v3073_v49 = vpop.f32.mrb[54].mxu0 }
 0x158   : > { %v1491_v51 = vpop.f32.mrb[53].mxu1  ;;  %v2706_v52 = vpack.c.bf16 %v3073_v49, %v3072_v46  ;;  %v1238_v53 = vpop.f32.mrb[55].mxu0 }
 0x159   : > { %v3137_v54 = vpop.f32.mrb[54].mxu1  ;;  %v2701_v55 = vpack.c.bf16 %v1238_v53, %v1235_v47 }
 0x15a   : > { %2914 = vst [vmem:[%s3683_s9 + $0xd8] sm:$0xff] %v2706_v52   ;;  %v2866_v56 = vpack.c.bf16 %v3137_v54, %v3136_v48  ;;  %v1494_v57 = vpop.f32.mrb[55].mxu1 }
 0x15b   : > { %2913 = vst [vmem:[%s3683_s9 + $0xd0] sm:$0xff] %v2701_v55   ;;  %v2861_v58 = vpack.c.bf16 %v1494_v57, %v1491_v51 }
 0x15c   : > { %2946 = vst [vmem:[%s3683_s9 + $0x1d8] sm:$0xff] %v2866_v56  }
 0x15d   : > { %2945 = vst [vmem:[%s3683_s9 + $0x1d0] sm:$0xff] %v2861_v58   ;;  %v3076_v59 = vpop.f32.mrb[56].mxu0 }
 0x15e   : > { %v1251_v60 = vpop.f32.mrb[57].mxu0 }
 0x15f   : > { %v3140_v61 = vpop.f32.mrb[56].mxu1  ;;  %v3077_v62 = vpop.f32.mrb[58].mxu0 }
 0x160   : > { %v1507_v63 = vpop.f32.mrb[57].mxu1  ;;  %v2716_v0 = vpack.c.bf16 %v3077_v62, %v3076_v59  ;;  %v1254_v3 = vpop.f32.mrb[59].mxu0 }
 0x161   : > { %v3141_v4 = vpop.f32.mrb[58].mxu1  ;;  %v2711_v5 = vpack.c.bf16 %v1254_v3, %v1251_v60 }
 0x162   : > { %2916 = vst [vmem:[%s3683_s9 + $0xe8] sm:$0xff] %v2716_v0   ;;  %v2876_v6 = vpack.c.bf16 %v3141_v4, %v3140_v61  ;;  %v1510_v7 = vpop.f32.mrb[59].mxu1 }
 0x163   : > { %2915 = vst [vmem:[%s3683_s9 + $0xe0] sm:$0xff] %v2711_v5   ;;  %v2871_v8 = vpack.c.bf16 %v1510_v7, %v1507_v63 }
 0x164   : > { %2948 = vst [vmem:[%s3683_s9 + $0x1e8] sm:$0xff] %v2876_v6  }
 0x165   : > { %2947 = vst [vmem:[%s3683_s9 + $0x1e0] sm:$0xff] %v2871_v8   ;;  %v3080_v9 = vpop.f32.mrb[60].mxu0 }
 0x166   : > { %v1267_v10 = vpop.f32.mrb[61].mxu0 }
 0x167   : > { %v3144_v11 = vpop.f32.mrb[60].mxu1  ;;  %v3081_v12 = vpop.f32.mrb[62].mxu0 }
 0x168   : > { %v1523_v13 = vpop.f32.mrb[61].mxu1  ;;  %v2726_v14 = vpack.c.bf16 %v3081_v12, %v3080_v9  ;;  %v1270_v50 = vpop.f32.mrb[63].mxu0 }
 0x169   : > { %v3145_v15 = vpop.f32.mrb[62].mxu1  ;;  %v2721_v16 = vpack.c.bf16 %v1270_v50, %v1267_v10 }
 0x16a   : > { %2918 = vst [vmem:[%s3683_s9 + $0xf8] sm:$0xff] %v2726_v14   ;;  %v2886_v17 = vpack.c.bf16 %v3145_v15, %v3144_v11  ;;  %v1526_v18 = vpop.f32.mrb[63].mxu1 }
 0x16b   : > { %2917 = vst [vmem:[%s3683_s9 + $0xf0] sm:$0xff] %v2721_v16   ;;  %v2881_v19 = vpack.c.bf16 %v1526_v18, %v1523_v13 }
 0x16c   : > { %2950 = vst [vmem:[%s3683_s9 + $0x1f8] sm:$0xff] %v2886_v17  }
 0x16d   : > { %2949 = vst [vmem:[%s3683_s9 + $0x1f0] sm:$0xff] %v2881_v19  }
 0x16e PF: > { %s14_s15 = sadd.s32 1, %s3165_s15  }
 0x16f   : > { %p11_p4 = scmp.ge.s32.totalorder %s14_s15, 4  }
 0x171   :  { %13 = sbr.rel (!%p11_p4) target bundleno = 1 (0x1), region = 66 }

// kernel: _lambda_.9
= control target key start
LH: loop header
LB: loop body
LE: loop exit
PB: predicated region body
PF: predicated region fallthrough
CT: control target
= control target key end

     0   :  { %s11646_s15 = smov 0   ;;  %s14220_s0 = inlined_call_operand.vmem [shape: f32[8192,8], index: 0, kind: input, shape index: {}]   ;;  %s14221_s1 = inlined_call_operand.vmem [shape: f32[1,8], index: 1, kind: input, shape index: {}]   ;;  %s14222_s2 = inlined_call_operand.vmem [shape: f32[1,8], index: 2, kind: input, shape index: {}]   ;;  %s14223_s3 = inlined_call_operand.vmem [shape: bf16[8,128], index: 3, kind: input, shape index: {}]   ;;  %s14224_s4 = inlined_call_operand.vmem [shape: bf16[8192,128], index: 4, kind: output, shape index: {}]  }
   0x1 LB: > { %s7991_s16 = sadd.s32 4294967295, %s11619_s15   ;;  %p7995_p0 = scmp.ge.s32.totalorder %s11619_s15, 1  ;;  %s11619_s15 = sphi %s11646_s15, %s14_s15  }
   0x2   : > { %p163_p1 = scmp.lt.s32.totalorder %s11619_s15, 3 }
   0x4   : > { %p164_p2 = pnand %p7995_p0, %p163_p1 }
   0x5   : > { %v2520_v0 = vld [vmem:[%s14223_s3] sm:$0xf] (!%p164_p2)  ;;  %vm3290_vm0 = vcmask (!%p164_p2), 1043456   ;;  %s7996_s19 = sshll.u32 (!%p164_p2), %s7991_s16, 9  ;;  %vm2521_vm1 = vcmask (!%p164_p2), 64512  }
   0x6   : > { %167 = sbr.rel (%p164_p2) target bundleno = 750 (0x2ee), region = 36  ;;  %11592 = vmatprep.subr.msk.bf16.mxu0 (!%p164_p2), %vm3290_vm0, %v2520_v0  ;;  %11593 = vmatprep.subr.msk.bf16.mxu1 (!%p164_p2), %vm3290_vm0, %v2520_v0  ;;  %v3292_v1 = vsel (!%p164_p2), %vm3290_vm0, %v2520_v0, 0  ;;  %p190_p3 = scmp.lt.s32.totalorder (!%p164_p2), %s7996_s19, 1023  ;;  %v11663_v2 = vld [vmem:[%s14221_s1] ss:$0 sm:$0xff] (!%p164_p2) }
   0x7   : > { %11077 = vmatpush3.bf16.msra.mxu0 (!%p164_p2), %v3292_v1  ;;  %11591 = vmatpush3.bf16.msra.mxu1 (!%p164_p2), %v3292_v1  ;;  %v11673_v3 = vld [vmem:[%s14222_s2] ss:$0 sm:$0xff] (!%p164_p2) }
   0xd   : > { %s14226_s19 = smov (!%p190_p3, %s7996_s19), 1023 }
   0xe   : > { %s7997_s20 = sshll.u32 %s14226_s19, 3  ;;  %s7999_s10 = sshll.u32 %s14226_s19, 2 }
   0xf   : > { %s11668_s25 = scalar_lea.vmem %s14220_s0, %s7997_s20  ;;  %s12554_s13 = scalar_lea.vmem %s14224_s4, %s7999_s10 }
  0x10   : > { %v202_v4 = vld [vmem:[%s11668_s25] sm:$0xff]  ;;  %v203_v5 = vld [vmem:[%s11668_s25 + $0x8] sm:$0xff]  ;;  %v204_v11 = vld [vmem:[%s11668_s25 + $0x10] sm:$0xff] }
  0x11   : > { %v458_v6 = vld [vmem:[%s11668_s25 + $0x800] sm:$0xff]  ;;  %v721_v7 = vmul.f32 %v11663_v2, %v202_v4  ;;  %v722_v8 = vmul.f32 %v11663_v2, %v203_v5  ;;  %v459_v9 = vld [vmem:[%s11668_s25 + $0x808] sm:$0xff]  ;;  %v205_v12 = vld [vmem:[%s11668_s25 + $0x18] sm:$0xff]  ;;  %v723_v14 = vmul.f32 %v11663_v2, %v204_v11 }
  0x12   : > { %v977_v10 = vmul.f32 %v11663_v2, %v458_v6  ;;  %v978_v13 = vmul.f32 %v11663_v2, %v459_v9  ;;  %v724_v15 = vmul.f32 %v11663_v2, %v205_v12  ;;  %v460_v16 = vld [vmem:[%s11668_s25 + $0x810] sm:$0xff]  ;;  %v461_v17 = vld [vmem:[%s11668_s25 + $0x818] sm:$0xff]  ;;  %v206_v26 = vld [vmem:[%s11668_s25 + $0x20] sm:$0xff] }
  0x13   : > { %v1240_v18 = vadd.f32 %v11673_v3, %v721_v7  ;;  %v1241_v19 = vadd.f32 %v11673_v3, %v722_v8  ;;  %v979_v21 = vmul.f32 %v11663_v2, %v460_v16  ;;  %v1242_v23 = vadd.f32 %v11673_v3, %v723_v14  ;;  %v207_v27 = vld [vmem:[%s11668_s25 + $0x28] sm:$0xff]  ;;  %v462_v32 = vld [vmem:[%s11668_s25 + $0x820] sm:$0xff]  ;;  %v208_v38 = vld [vmem:[%s11668_s25 + $0x30] sm:$0xff] }
  0x14   : > { %v1496_v20 = vadd.f32 %v11673_v3, %v977_v10  ;;  %v1497_v22 = vadd.f32 %v11673_v3, %v978_v13  ;;  %v1243_v24 = vadd.f32 %v11673_v3, %v724_v15  ;;  %v980_v25 = vmul.f32 %v11663_v2, %v461_v17  ;;  %v463_v37 = vld [vmem:[%s11668_s25 + $0x828] sm:$0xff]  ;;  %v209_v43 = vld [vmem:[%s11668_s25 + $0x38] sm:$0xff]  ;;  %v464_v52 = vld [vmem:[%s11668_s25 + $0x830] sm:$0xff] }
  0x15   : > { %v1752_v28 = vmax.f32 %v1240_v18, 0.0  ;;  %v1753_v29 = vmax.f32 %v1241_v19, 0.0  ;;  %v1498_v31 = vadd.f32 %v11673_v3, %v979_v21  ;;  %v1754_v34 = vmax.f32 %v1242_v23, 0.0  ;;  %v465_v53 = vld [vmem:[%s11668_s25 + $0x838] sm:$0xff]  ;;  %v210_v57 = vld [vmem:[%s11668_s25 + $0x40] sm:$0xff]  ;;  %v211_v62 = vld [vmem:[%s11668_s25 + $0x48] sm:$0xff] }
  0x16   : > { %v2008_v30 = vmax.f32 %v1496_v20, 0.0  ;;  %v2009_v33 = vmax.f32 %v1497_v22, 0.0  ;;  %v1755_v35 = vmax.f32 %v1243_v24, 0.0  ;;  %v1499_v36 = vadd.f32 %v11673_v3, %v980_v25  ;;  %v466_v5 = vld [vmem:[%s11668_s25 + $0x840] sm:$0xff]  ;;  %v467_v6 = vld [vmem:[%s11668_s25 + $0x848] sm:$0xff]  ;;  %v212_v15 = vld [vmem:[%s11668_s25 + $0x50] sm:$0xff] }
  0x17   : > { %v2264_v39 = vpack.c.bf16 %v1753_v29, %v1752_v28  ;;  %v2010_v40 = vmax.f32 %v1498_v31, 0.0  ;;  %v725_v41 = vmul.f32 %v11663_v2, %v206_v26  ;;  %v726_v42 = vmul.f32 %v11663_v2, %v207_v27  ;;  %v213_v20 = vld [vmem:[%s11668_s25 + $0x58] sm:$0xff]  ;;  %v468_v21 = vld [vmem:[%s11668_s25 + $0x850] sm:$0xff]  ;;  %v214_v31 = vld [vmem:[%s11668_s25 + $0x60] sm:$0xff] }
  0x18   : > { %v2392_v44 = vpack.c.bf16 %v2009_v33, %v2008_v30  ;;  %v2265_v45 = vpack.c.bf16 %v1755_v35, %v1754_v34  ;;  %v2011_v46 = vmax.f32 %v1499_v36, 0.0  ;;  %v981_v47 = vmul.f32 %v11663_v2, %v462_v32  ;;  %v469_v26 = vld [vmem:[%s11668_s25 + $0x858] sm:$0xff]  ;;  %v215_v36 = vld [vmem:[%s11668_s25 + $0x68] sm:$0xff] }
  0x19   : > { %11078 = vmatprep.mubr.msk.bf16.mxu0 %vm2521_vm1, %v2264_v39  ;;  %v1244_v48 = vadd.f32 %v11673_v3, %v725_v41  ;;  %v1245_v49 = vadd.f32 %v11673_v3, %v726_v42  ;;  %v982_v50 = vmul.f32 %v11663_v2, %v463_v37  ;;  %v727_v51 = vmul.f32 %v11663_v2, %v208_v38  ;;  %v470_v41 = vld [vmem:[%s11668_s25 + $0x860] sm:$0xff] }
  0x1a   : > { %11334 = vmatprep.mubr.msk.bf16.mxu1 %vm2521_vm1, %v2392_v44  ;;  %11079 = vmatmul.mubr.msk.bf16.vlgmr.msra.gmra.mrb[0].mxu0 %vm2521_vm1, %v2265_v45  ;;  %v2393_v54 = vpack.c.bf16 %v2011_v46, %v2010_v40  ;;  %v1500_v55 = vadd.f32 %v11673_v3, %v981_v47  ;;  %v728_v56 = vmul.f32 %v11663_v2, %v209_v43  ;;  %v471_v46 = vld [vmem:[%s11668_s25 + $0x868] sm:$0xff]  ;;  %v216_v47 = vld [vmem:[%s11668_s25 + $0x70] sm:$0xff] }
  0x1b   : > { %v1756_v58 = vmax.f32 %v1244_v48, 0.0  ;;  %v1757_v59 = vmax.f32 %v1245_v49, 0.0  ;;  %v1501_v60 = vadd.f32 %v11673_v3, %v982_v50  ;;  %v1246_v61 = vadd.f32 %v11673_v3, %v727_v51 }
  0x1c   : > { %11335 = vmatmul.mubr.msk.bf16.vlgmr.msra.gmra.mrb[0].mxu1 %vm2521_vm1, %v2393_v54  ;;  %v2012_v63 = vmax.f32 %v1500_v55, 0.0  ;;  %v1247_v0 = vadd.f32 %v11673_v3, %v728_v56  ;;  %v983_v1 = vmul.f32 %v11663_v2, %v464_v52  ;;  %v984_v4 = vmul.f32 %v11663_v2, %v465_v53  ;;  %v217_v52 = vld [vmem:[%s11668_s25 + $0x78] sm:$0xff] }
  0x1d   : > { %v2266_v7 = vpack.c.bf16 %v1757_v59, %v1756_v58  ;;  %v2013_v8 = vmax.f32 %v1501_v60, 0.0  ;;  %v1758_v9 = vmax.f32 %v1246_v61, 0.0  ;;  %v729_v10 = vmul.f32 %v11663_v2, %v210_v57  ;;  %v472_v61 = vld [vmem:[%s11668_s25 + $0x870] sm:$0xff] }
  0x1e   : > { %v1759_v11 = vmax.f32 %v1247_v0, 0.0  ;;  %v1502_v12 = vadd.f32 %v11673_v3, %v983_v1  ;;  %v1503_v13 = vadd.f32 %v11673_v3, %v984_v4  ;;  %v730_v14 = vmul.f32 %v11663_v2, %v211_v62  ;;  %v473_v62 = vld [vmem:[%s11668_s25 + $0x878] sm:$0xff] }
  0x1f   : > { %11082 = vmatprep.mubr.msk.bf16.mxu0 %vm2521_vm1, %v2266_v7  ;;  %v2394_v16 = vpack.c.bf16 %v2013_v8, %v2012_v63  ;;  %v1248_v17 = vadd.f32 %v11673_v3, %v729_v10  ;;  %v985_v18 = vmul.f32 %v11663_v2, %v466_v5  ;;  %v986_v19 = vmul.f32 %v11663_v2, %v467_v6  ;;  %v218_v5 = vld [vmem:[%s11668_s25 + $0x80] sm:$0xff]  ;;  %v219_v10 = vld [vmem:[%s11668_s25 + $0x88] sm:$0xff] }
  0x20   : > { %v2267_v22 = vpack.c.bf16 %v1759_v11, %v1758_v9  ;;  %v2014_v23 = vmax.f32 %v1502_v12, 0.0  ;;  %v2015_v24 = vmax.f32 %v1503_v13, 0.0  ;;  %v1249_v25 = vadd.f32 %v11673_v3, %v730_v14 }
  0x21   : > { %11338 = vmatprep.mubr.msk.bf16.mxu1 %vm2521_vm1, %v2394_v16  ;;  %v1760_v27 = vmax.f32 %v1248_v17, 0.0  ;;  %v1504_v28 = vadd.f32 %v11673_v3, %v985_v18  ;;  %v1505_v29 = vadd.f32 %v11673_v3, %v986_v19  ;;  %v731_v30 = vmul.f32 %v11663_v2, %v212_v15  ;;  %v474_v15 = vld [vmem:[%s11668_s25 + $0x880] sm:$0xff]  ;;  %v475_v16 = vld [vmem:[%s11668_s25 + $0x888] sm:$0xff] }
  0x22   : > { %11083 = vmatmul.mubr.msk.bf16.gmra.mrb[4].mxu0 %vm2521_vm1, %v2267_v22  ;;  %v2395_v32 = vpack.c.bf16 %v2015_v24, %v2014_v23  ;;  %v1761_v33 = vmax.f32 %v1249_v25, 0.0  ;;  %v732_v34 = vmul.f32 %v11663_v2, %v213_v20  ;;  %v987_v35 = vmul.f32 %v11663_v2, %v468_v21  ;;  %v220_v25 = vld [vmem:[%s11668_s25 + $0x90] sm:$0xff] }
  0x23   : > { %v2016_v37 = vmax.f32 %v1504_v28, 0.0  ;;  %v2017_v38 = vmax.f32 %v1505_v29, 0.0  ;;  %v1250_v39 = vadd.f32 %v11673_v3, %v731_v30  ;;  %v988_v40 = vmul.f32 %v11663_v2, %v469_v26  ;;  %v221_v30 = vld [vmem:[%s11668_s25 + $0x98] sm:$0xff] }
  0x24   : > { %11339 = vmatmul.mubr.msk.bf16.gmra.mrb[4].mxu1 %vm2521_vm1, %v2395_v32  ;;  %v2268_v42 = vpack.c.bf16 %v1761_v33, %v1760_v27  ;;  %v1251_v43 = vadd.f32 %v11673_v3, %v732_v34  ;;  %v1506_v44 = vadd.f32 %v11673_v3, %v987_v35  ;;  %v733_v45 = vmul.f32 %v11663_v2, %v214_v31  ;;  %v476_v31 = vld [vmem:[%s11668_s25 + $0x890] sm:$0xff] }
  0x25   : > { %v2396_v48 = vpack.c.bf16 %v2017_v38, %v2016_v37  ;;  %v1762_v49 = vmax.f32 %v1250_v39, 0.0  ;;  %v1507_v50 = vadd.f32 %v11673_v3, %v988_v40  ;;  %v734_v51 = vmul.f32 %v11663_v2, %v215_v36  ;;  %v477_v36 = vld [vmem:[%s11668_s25 + $0x898] sm:$0xff] }
  0x26   : > { %11086 = vmatprep.mubr.msk.bf16.mxu0 %vm2521_vm1, %v2268_v42  ;;  %v1763_v53 = vmax.f32 %v1251_v43, 0.0  ;;  %v2018_v54 = vmax.f32 %v1506_v44, 0.0  ;;  %v1252_v55 = vadd.f32 %v11673_v3, %v733_v45  ;;  %v989_v56 = vmul.f32 %v11663_v2, %v470_v41  ;;  %v222_v41 = vld [vmem:[%s11668_s25 + $0xa0] sm:$0xff] }
  0x27   : > { %11342 = vmatprep.mubr.msk.bf16.mxu1 %vm2521_vm1, %v2396_v48  ;;  %v2019_v57 = vmax.f32 %v1507_v50, 0.0  ;;  %v1253_v58 = vadd.f32 %v11673_v3, %v734_v51  ;;  %v990_v59 = vmul.f32 %v11663_v2, %v471_v46  ;;  %v735_v60 = vmul.f32 %v11663_v2, %v216_v47  ;;  %v223_v46 = vld [vmem:[%s11668_s25 + $0xa8] sm:$0xff]  ;;  %v478_v51 = vld [vmem:[%s11668_s25 + $0x8a0] sm:$0xff] }
  0x28   : > { %v2269_v63 = vpack.c.bf16 %v1763_v53, %v1762_v49  ;;  %v1764_v0 = vmax.f32 %v1252_v55, 0.0  ;;  %v1508_v1 = vadd.f32 %v11673_v3, %v989_v56  ;;  %v736_v4 = vmul.f32 %v11663_v2, %v217_v52  ;;  %v479_v56 = vld [vmem:[%s11668_s25 + $0x8a8] sm:$0xff] }
  0x29   : > { %v2397_v6 = vpack.c.bf16 %v2019_v57, %v2018_v54  ;;  %v1765_v7 = vmax.f32 %v1253_v58, 0.0  ;;  %v1509_v8 = vadd.f32 %v11673_v3, %v990_v59  ;;  %v1254_v9 = vadd.f32 %v11673_v3, %v735_v60  ;;  %v224_v57 = vld [vmem:[%s11668_s25 + $0xb0] sm:$0xff] }
  0x2a   : > { %11087 = vmatmul.mubr.msk.bf16.gmra.mrb[8].mxu0 %vm2521_vm1, %v2269_v63  ;;  %v2020_v11 = vmax.f32 %v1508_v1, 0.0  ;;  %v1255_v12 = vadd.f32 %v11673_v3, %v736_v4  ;;  %v991_v13 = vmul.f32 %v11663_v2, %v472_v61  ;;  %v992_v14 = vmul.f32 %v11663_v2, %v473_v62  ;;  %v225_v62 = vld [vmem:[%s11668_s25 + $0xb8] sm:$0xff] }
  0x2b   : > { %v2270_v17 = vpack.c.bf16 %v1765_v7, %v1764_v0  ;;  %v2021_v18 = vmax.f32 %v1509_v8, 0.0  ;;  %v1766_v19 = vmax.f32 %v1254_v9, 0.0  ;;  %v737_v20 = vmul.f32 %v11663_v2, %v218_v5  ;;  %v480_v9 = vld [vmem:[%s11668_s25 + $0x8b0] sm:$0xff] }
  0x2c   : > { %11343 = vmatmul.mubr.msk.bf16.gmra.mrb[8].mxu1 %vm2521_vm1, %v2397_v6  ;;  %v1767_v21 = vmax.f32 %v1255_v12, 0.0  ;;  %v1510_v22 = vadd.f32 %v11673_v3, %v991_v13  ;;  %v1511_v23 = vadd.f32 %v11673_v3, %v992_v14  ;;  %v738_v24 = vmul.f32 %v11663_v2, %v219_v10  ;;  %v481_v10 = vld [vmem:[%s11668_s25 + $0x8b8] sm:$0xff] }
  0x2d   : > { %11090 = vmatprep.mubr.msk.bf16.mxu0 %vm2521_vm1, %v2270_v17  ;;  %v2398_v26 = vpack.c.bf16 %v2021_v18, %v2020_v11  ;;  %v1256_v27 = vadd.f32 %v11673_v3, %v737_v20  ;;  %v993_v28 = vmul.f32 %v11663_v2, %v474_v15  ;;  %v994_v29 = vmul.f32 %v11663_v2, %v475_v16  ;;  %v226_v15 = vld [vmem:[%s11668_s25 + $0xc0] sm:$0xff]  ;;  %v227_v20 = vld [vmem:[%s11668_s25 + $0xc8] sm:$0xff] }
  0x2e   : > { %v2271_v32 = vpack.c.bf16 %v1767_v21, %v1766_v19  ;;  %v2022_v33 = vmax.f32 %v1510_v22, 0.0  ;;  %v2023_v34 = vmax.f32 %v1511_v23, 0.0  ;;  %v1257_v35 = vadd.f32 %v11673_v3, %v738_v24 }
  0x2f   : > { %11346 = vmatprep.mubr.msk.bf16.mxu1 %vm2521_vm1, %v2398_v26  ;;  %v1768_v37 = vmax.f32 %v1256_v27, 0.0  ;;  %v1512_v38 = vadd.f32 %v11673_v3, %v993_v28  ;;  %v1513_v39 = vadd.f32 %v11673_v3, %v994_v29  ;;  %v739_v40 = vmul.f32 %v11663_v2, %v220_v25  ;;  %v482_v25 = vld [vmem:[%s11668_s25 + $0x8c0] sm:$0xff]  ;;  %v483_v26 = vld [vmem:[%s11668_s25 + $0x8c8] sm:$0xff] }
  0x30   : > { %v2399_v42 = vpack.c.bf16 %v2023_v34, %v2022_v33  ;;  %v1769_v43 = vmax.f32 %v1257_v35, 0.0  ;;  %v740_v44 = vmul.f32 %v11663_v2, %v221_v30  ;;  %v995_v45 = vmul.f32 %v11663_v2, %v476_v31  ;;  %v228_v35 = vld [vmem:[%s11668_s25 + $0xd0] sm:$0xff] }
  0x31   : > { %v2024_v47 = vmax.f32 %v1512_v38, 0.0  ;;  %v2025_v48 = vmax.f32 %v1513_v39, 0.0  ;;  %v1258_v49 = vadd.f32 %v11673_v3, %v739_v40  ;;  %v996_v50 = vmul.f32 %v11663_v2, %v477_v36  ;;  %v229_v40 = vld [vmem:[%s11668_s25 + $0xd8] sm:$0xff] }
  0x32   : > { %11091 = vmatmul.mubr.msk.bf16.gmra.mrb[12].mxu0 %vm2521_vm1, %v2271_v32  ;;  %v2272_v52 = vpack.c.bf16 %v1769_v43, %v1768_v37  ;;  %v1259_v53 = vadd.f32 %v11673_v3, %v740_v44  ;;  %v1514_v54 = vadd.f32 %v11673_v3, %v995_v45  ;;  %v741_v55 = vmul.f32 %v11663_v2, %v222_v41  ;;  %v484_v41 = vld [vmem:[%s11668_s25 + $0x8d0] sm:$0xff] }
  0x33   : > { %v2400_v58 = vpack.c.bf16 %v2025_v48, %v2024_v47  ;;  %v1770_v59 = vmax.f32 %v1258_v49, 0.0  ;;  %v1515_v60 = vadd.f32 %v11673_v3, %v996_v50  ;;  %v742_v61 = vmul.f32 %v11663_v2, %v223_v46  ;;  %v485_v46 = vld [vmem:[%s11668_s25 + $0x8d8] sm:$0xff] }
  0x34   : > { %11347 = vmatmul.mubr.msk.bf16.gmra.mrb[12].mxu1 %vm2521_vm1, %v2399_v42  ;;  %11094 = vmatprep.mubr.msk.bf16.mxu0 %vm2521_vm1, %v2272_v52  ;;  %v1771_v63 = vmax.f32 %v1259_v53, 0.0  ;;  %v2026_v0 = vmax.f32 %v1514_v54, 0.0  ;;  %v1260_v1 = vadd.f32 %v11673_v3, %v741_v55  ;;  %v997_v4 = vmul.f32 %v11663_v2, %v478_v51  ;;  %v230_v51 = vld [vmem:[%s11668_s25 + $0xe0] sm:$0xff] }
  0x35   : > { %11350 = vmatprep.mubr.msk.bf16.mxu1 %vm2521_vm1, %v2400_v58  ;;  %v2027_v5 = vmax.f32 %v1515_v60, 0.0  ;;  %v1261_v6 = vadd.f32 %v11673_v3, %v742_v61  ;;  %v998_v7 = vmul.f32 %v11663_v2, %v479_v56  ;;  %v743_v8 = vmul.f32 %v11663_v2, %v224_v57  ;;  %v231_v56 = vld [vmem:[%s11668_s25 + $0xe8] sm:$0xff]  ;;  %v486_v61 = vld [vmem:[%s11668_s25 + $0x8e0] sm:$0xff] }
  0x36   : > { %v2273_v11 = vpack.c.bf16 %v1771_v63, %v1770_v59  ;;  %v1772_v12 = vmax.f32 %v1260_v1, 0.0  ;;  %v1516_v13 = vadd.f32 %v11673_v3, %v997_v4  ;;  %v744_v14 = vmul.f32 %v11663_v2, %v225_v62  ;;  %v487_v4 = vld [vmem:[%s11668_s25 + $0x8e8] sm:$0xff] }
  0x37   : > { %v2401_v16 = vpack.c.bf16 %v2027_v5, %v2026_v0  ;;  %v1773_v17 = vmax.f32 %v1261_v6, 0.0  ;;  %v1517_v18 = vadd.f32 %v11673_v3, %v998_v7  ;;  %v1262_v19 = vadd.f32 %v11673_v3, %v743_v8  ;;  %v232_v5 = vld [vmem:[%s11668_s25 + $0xf0] sm:$0xff] }
  0x38   : > { %v2028_v21 = vmax.f32 %v1516_v13, 0.0  ;;  %v1263_v22 = vadd.f32 %v11673_v3, %v744_v14  ;;  %v999_v23 = vmul.f32 %v11663_v2, %v480_v9  ;;  %v1000_v24 = vmul.f32 %v11663_v2, %v481_v10  ;;  %v233_v10 = vld [vmem:[%s11668_s25 + $0xf8] sm:$0xff] }
  0x39   : > { %v2274_v27 = vpack.c.bf16 %v1773_v17, %v1772_v12  ;;  %v2029_v28 = vmax.f32 %v1517_v18, 0.0  ;;  %v1774_v29 = vmax.f32 %v1262_v19, 0.0  ;;  %v745_v30 = vmul.f32 %v11663_v2, %v226_v15  ;;  %v488_v19 = vld [vmem:[%s11668_s25 + $0x8f0] sm:$0xff] }
  0x3a   : > { %11095 = vmatmul.mubr.msk.bf16.gmra.mrb[16].mxu0 %vm2521_vm1, %v2273_v11  ;;  %v1775_v31 = vmax.f32 %v1263_v22, 0.0  ;;  %v1518_v32 = vadd.f32 %v11673_v3, %v999_v23  ;;  %v1519_v33 = vadd.f32 %v11673_v3, %v1000_v24  ;;  %v746_v34 = vmul.f32 %v11663_v2, %v227_v20  ;;  %v489_v20 = vld [vmem:[%s11668_s25 + $0x8f8] sm:$0xff]  ;;  %v234_v24 = vld [vmem:[%s11668_s25 + $0x100] sm:$0xff] }
  0x3b   : > { %11098 = vmatprep.mubr.msk.bf16.mxu0 %vm2521_vm1, %v2274_v27  ;;  %v2402_v36 = vpack.c.bf16 %v2029_v28, %v2028_v21  ;;  %v1264_v37 = vadd.f32 %v11673_v3, %v745_v30  ;;  %v1001_v38 = vmul.f32 %v11663_v2, %v482_v25  ;;  %v1002_v39 = vmul.f32 %v11663_v2, %v483_v26 }
  0x3c   : > { %11351 = vmatmul.mubr.msk.bf16.gmra.mrb[16].mxu1 %vm2521_vm1, %v2401_v16  ;;  %v2275_v42 = vpack.c.bf16 %v1775_v31, %v1774_v29  ;;  %v2030_v43 = vmax.f32 %v1518_v32, 0.0  ;;  %v2031_v44 = vmax.f32 %v1519_v33, 0.0  ;;  %v1265_v45 = vadd.f32 %v11673_v3, %v746_v34  ;;  %v235_v29 = vld [vmem:[%s11668_s25 + $0x108] sm:$0xff]  ;;  %v490_v34 = vld [vmem:[%s11668_s25 + $0x900] sm:$0xff] }
  0x3d   : > { %11354 = vmatprep.mubr.msk.bf16.mxu1 %vm2521_vm1, %v2402_v36  ;;  %v1776_v47 = vmax.f32 %v1264_v37, 0.0  ;;  %v1520_v48 = vadd.f32 %v11673_v3, %v1001_v38  ;;  %v1521_v49 = vadd.f32 %v11673_v3, %v1002_v39  ;;  %v747_v50 = vmul.f32 %v11663_v2, %v228_v35  ;;  %v491_v35 = vld [vmem:[%s11668_s25 + $0x908] sm:$0xff] }
  0x3e   : > { %v2403_v52 = vpack.c.bf16 %v2031_v44, %v2030_v43  ;;  %v1777_v53 = vmax.f32 %v1265_v45, 0.0  ;;  %v748_v54 = vmul.f32 %v11663_v2, %v229_v40  ;;  %v1003_v55 = vmul.f32 %v11663_v2, %v484_v41  ;;  %v236_v44 = vld [vmem:[%s11668_s25 + $0x110] sm:$0xff] }
  0x3f   : > { %v2032_v57 = vmax.f32 %v1520_v48, 0.0  ;;  %v2033_v58 = vmax.f32 %v1521_v49, 0.0  ;;  %v1266_v59 = vadd.f32 %v11673_v3, %v747_v50  ;;  %v1004_v60 = vmul.f32 %v11663_v2, %v485_v46  ;;  %v237_v49 = vld [vmem:[%s11668_s25 + $0x118] sm:$0xff]  ;;  %v492_v50 = vld [vmem:[%s11668_s25 + $0x910] sm:$0xff] }
  0x40   : > { %v2276_v62 = vpack.c.bf16 %v1777_v53, %v1776_v47  ;;  %v1267_v63 = vadd.f32 %v11673_v3, %v748_v54  ;;  %v1522_v0 = vadd.f32 %v11673_v3, %v1003_v55  ;;  %v749_v1 = vmul.f32 %v11663_v2, %v230_v51  ;;  %v493_v55 = vld [vmem:[%s11668_s25 + $0x918] sm:$0xff] }
  0x41   : > { %v2404_v6 = vpack.c.bf16 %v2033_v58, %v2032_v57  ;;  %v1778_v7 = vmax.f32 %v1266_v59, 0.0  ;;  %v1523_v8 = vadd.f32 %v11673_v3, %v1004_v60  ;;  %v750_v9 = vmul.f32 %v11663_v2, %v231_v56  ;;  %v238_v60 = vld [vmem:[%s11668_s25 + $0x120] sm:$0xff] }
  0x42   : > { %11099 = vmatmul.mubr.msk.bf16.gmra.mrb[20].mxu0 %vm2521_vm1, %v2275_v42  ;;  %v1779_v11 = vmax.f32 %v1267_v63, 0.0  ;;  %v2034_v12 = vmax.f32 %v1522_v0, 0.0  ;;  %v1268_v13 = vadd.f32 %v11673_v3, %v749_v1  ;;  %v1005_v14 = vmul.f32 %v11663_v2, %v486_v61  ;;  %v239_v0 = vld [vmem:[%s11668_s25 + $0x128] sm:$0xff] }
  0x43   : > { %11102 = vmatprep.mubr.msk.bf16.mxu0 %vm2521_vm1, %v2276_v62  ;;  %v2035_v15 = vmax.f32 %v1523_v8, 0.0  ;;  %v1269_v16 = vadd.f32 %v11673_v3, %v750_v9  ;;  %v1006_v17 = vmul.f32 %v11663_v2, %v487_v4  ;;  %v751_v18 = vmul.f32 %v11663_v2, %v232_v5 }
  0x44   : > { %11355 = vmatmul.mubr.msk.bf16.gmra.mrb[20].mxu1 %vm2521_vm1, %v2403_v52  ;;  %v1780_v21 = vmax.f32 %v1268_v13, 0.0  ;;  %v1524_v22 = vadd.f32 %v11673_v3, %v1005_v14  ;;  %v752_v23 = vmul.f32 %v11663_v2, %v233_v10  ;;  %v2277_v25 = vpack.c.bf16 %v1779_v11, %v1778_v7  ;;  %v494_v7 = vld [vmem:[%s11668_s25 + $0x920] sm:$0xff]  ;;  %v495_v11 = vld [vmem:[%s11668_s25 + $0x928] sm:$0xff] }
  0x45   : > { %11358 = vmatprep.mubr.msk.bf16.mxu1 %vm2521_vm1, %v2404_v6  ;;  %v1781_v26 = vmax.f32 %v1269_v16, 0.0  ;;  %v1525_v27 = vadd.f32 %v11673_v3, %v1006_v17  ;;  %v1270_v28 = vadd.f32 %v11673_v3, %v751_v18  ;;  %v1007_v32 = vmul.f32 %v11663_v2, %v488_v19  ;;  %v240_v16 = vld [vmem:[%s11668_s25 + $0x130] sm:$0xff]  ;;  %v241_v17 = vld [vmem:[%s11668_s25 + $0x138] sm:$0xff] }
  0x46   : > { %v2036_v30 = vmax.f32 %v1524_v22, 0.0  ;;  %v1271_v31 = vadd.f32 %v11673_v3, %v752_v23  ;;  %v1008_v33 = vmul.f32 %v11663_v2, %v489_v20  ;;  %v2405_v36 = vpack.c.bf16 %v2035_v15, %v2034_v12 }
  0x47   : > { %v2278_v37 = vpack.c.bf16 %v1781_v26, %v1780_v21  ;;  %v2037_v38 = vmax.f32 %v1525_v27, 0.0  ;;  %v753_v39 = vmul.f32 %v11663_v2, %v234_v24  ;;  %v1782_v40 = vmax.f32 %v1270_v28, 0.0  ;;  %v496_v26 = vld [vmem:[%s11668_s25 + $0x930] sm:$0xff]  ;;  %v497_v27 = vld [vmem:[%s11668_s25 + $0x938] sm:$0xff] }
  0x48   : > { %v1526_v41 = vadd.f32 %v11673_v3, %v1007_v32  ;;  %v1527_v42 = vadd.f32 %v11673_v3, %v1008_v33  ;;  %v754_v43 = vmul.f32 %v11663_v2, %v235_v29  ;;  %v1009_v47 = vmul.f32 %v11663_v2, %v490_v34  ;;  %v242_v32 = vld [vmem:[%s11668_s25 + $0x140] sm:$0xff] }
  0x49   : > { %v2406_v45 = vpack.c.bf16 %v2037_v38, %v2036_v30  ;;  %v1272_v46 = vadd.f32 %v11673_v3, %v753_v39  ;;  %v1010_v48 = vmul.f32 %v11663_v2, %v491_v35  ;;  %v1783_v51 = vmax.f32 %v1271_v31, 0.0  ;;  %v243_v35 = vld [vmem:[%s11668_s25 + $0x148] sm:$0xff] }
  0x4a   : > { %11103 = vmatmul.mubr.msk.bf16.gmra.mrb[24].mxu0 %vm2521_vm1, %v2277_v25  ;;  %v2038_v52 = vmax.f32 %v1526_v41, 0.0  ;;  %v2039_v53 = vmax.f32 %v1527_v42, 0.0  ;;  %v1273_v54 = vadd.f32 %v11673_v3, %v754_v43  ;;  %v1528_v57 = vadd.f32 %v11673_v3, %v1009_v47  ;;  %v499_v41 = vld [vmem:[%s11668_s25 + $0x948] sm:$0xff] }
  0x4b   : > { %11106 = vmatprep.mubr.msk.bf16.mxu0 %vm2521_vm1, %v2278_v37  ;;  %v1784_v56 = vmax.f32 %v1272_v46, 0.0  ;;  %v1529_v58 = vadd.f32 %v11673_v3, %v1010_v48  ;;  %v755_v59 = vmul.f32 %v11663_v2, %v236_v44  ;;  %v756_v62 = vmul.f32 %v11663_v2, %v237_v49 }
  0x4c   : > { %11359 = vmatmul.mubr.msk.bf16.gmra.mrb[24].mxu1 %vm2521_vm1, %v2405_v36  ;;  %v1785_v61 = vmax.f32 %v1273_v54, 0.0  ;;  %v1011_v63 = vmul.f32 %v11663_v2, %v492_v50  ;;  %v2040_v1 = vmax.f32 %v1528_v57, 0.0  ;;  %v1012_v6 = vmul.f32 %v11663_v2, %v493_v55  ;;  %v244_v50 = vld [vmem:[%s11668_s25 + $0x150] sm:$0xff]  ;;  %v245_v55 = vld [vmem:[%s11668_s25 + $0x158] sm:$0xff] }
  0x4d   : > { %11362 = vmatprep.mubr.msk.bf16.mxu1 %vm2521_vm1, %v2406_v45  ;;  %v2041_v4 = vmax.f32 %v1529_v58, 0.0  ;;  %v1274_v5 = vadd.f32 %v11673_v3, %v755_v59  ;;  %v2279_v8 = vpack.c.bf16 %v1783_v51, %v1782_v40  ;;  %v1275_v9 = vadd.f32 %v11673_v3, %v756_v62  ;;  %v498_v40 = vld [vmem:[%s11668_s25 + $0x940] sm:$0xff] }
  0x4e   : > { %v757_v10 = vmul.f32 %v11663_v2, %v238_v60  ;;  %v2407_v12 = vpack.c.bf16 %v2039_v53, %v2038_v52  ;;  %v2280_v13 = vpack.c.bf16 %v1785_v61, %v1784_v56  ;;  %v1530_v14 = vadd.f32 %v11673_v3, %v1011_v63  ;;  %v500_v56 = vld [vmem:[%s11668_s25 + $0x950] sm:$0xff]  ;;  %v501_v60 = vld [vmem:[%s11668_s25 + $0x958] sm:$0xff] }
  0x4f   : > { %v758_v15 = vmul.f32 %v11663_v2, %v239_v0  ;;  %v2408_v18 = vpack.c.bf16 %v2041_v4, %v2040_v1  ;;  %v1531_v19 = vadd.f32 %v11673_v3, %v1012_v6  ;;  %v1013_v21 = vmul.f32 %v11663_v2, %v494_v7  ;;  %v246_v1 = vld [vmem:[%s11668_s25 + $0x160] sm:$0xff] }
  0x50   : > { %v1276_v20 = vadd.f32 %v11673_v3, %v757_v10  ;;  %v1786_v22 = vmax.f32 %v1274_v5, 0.0  ;;  %v1787_v23 = vmax.f32 %v1275_v9, 0.0  ;;  %v1014_v25 = vmul.f32 %v11663_v2, %v495_v11 }
  0x51   : > { %v1277_v24 = vadd.f32 %v11673_v3, %v758_v15  ;;  %v1532_v29 = vadd.f32 %v11673_v3, %v1013_v21  ;;  %v759_v30 = vmul.f32 %v11663_v2, %v240_v16  ;;  %v760_v31 = vmul.f32 %v11663_v2, %v241_v17 }
  0x52   : > { %11107 = vmatmul.mubr.msk.bf16.gmra.mrb[28].mxu0 %vm2521_vm1, %v2279_v8  ;;  %v1788_v28 = vmax.f32 %v1276_v20, 0.0  ;;  %v1533_v34 = vadd.f32 %v11673_v3, %v1014_v25  ;;  %v2042_v36 = vmax.f32 %v1530_v14, 0.0  ;;  %v2043_v37 = vmax.f32 %v1531_v19, 0.0  ;;  %v247_v8 = vld [vmem:[%s11668_s25 + $0x168] sm:$0xff]  ;;  %v248_v19 = vld [vmem:[%s11668_s25 + $0x170] sm:$0xff] }
  0x53   : > { %11110 = vmatprep.mubr.msk.bf16.mxu0 %vm2521_vm1, %v2280_v13  ;;  %v1789_v33 = vmax.f32 %v1277_v24, 0.0  ;;  %v1015_v38 = vmul.f32 %v11663_v2, %v496_v26  ;;  %v1016_v39 = vmul.f32 %v11663_v2, %v497_v27  ;;  %v2281_v42 = vpack.c.bf16 %v1787_v23, %v1786_v22  ;;  %v502_v13 = vld [vmem:[%s11668_s25 + $0x960] sm:$0xff]  ;;  %v249_v24 = vld [vmem:[%s11668_s25 + $0x178] sm:$0xff] }
  0x54   : > { %11363 = vmatmul.mubr.msk.bf16.gmra.mrb[28].mxu1 %vm2521_vm1, %v2407_v12  ;;  %v2044_v43 = vmax.f32 %v1532_v29, 0.0  ;;  %v2045_v44 = vmax.f32 %v1533_v34, 0.0  ;;  %v761_v45 = vmul.f32 %v11663_v2, %v242_v32  ;;  %v1278_v47 = vadd.f32 %v11673_v3, %v759_v30  ;;  %v505_v34 = vld [vmem:[%s11668_s25 + $0x978] sm:$0xff] }
  0x55   : > { %11366 = vmatprep.mubr.msk.bf16.mxu1 %vm2521_vm1, %v2408_v18  ;;  %v2282_v46 = vpack.c.bf16 %v1789_v33, %v1788_v28  ;;  %v1279_v48 = vadd.f32 %v11673_v3, %v760_v31  ;;  %v762_v49 = vmul.f32 %v11663_v2, %v243_v35  ;;  %v1534_v51 = vadd.f32 %v11673_v3, %v1015_v38  ;;  %v503_v18 = vld [vmem:[%s11668_s25 + $0x968] sm:$0xff]  ;;  %v504_v33 = vld [vmem:[%s11668_s25 + $0x970] sm:$0xff] }
  0x56   : > { %v1280_v52 = vadd.f32 %v11673_v3, %v761_v45  ;;  %v1017_v53 = vmul.f32 %v11663_v2, %v498_v40  ;;  %v1018_v54 = vmul.f32 %v11663_v2, %v499_v41  ;;  %v2409_v57 = vpack.c.bf16 %v2043_v37, %v2042_v36 }
  0x57   : > { %v1535_v58 = vadd.f32 %v11673_v3, %v1016_v39  ;;  %v1281_v59 = vadd.f32 %v11673_v3, %v762_v49  ;;  %v2410_v61 = vpack.c.bf16 %v2045_v44, %v2044_v43  ;;  %v763_v0 = vmul.f32 %v11663_v2, %v244_v50  ;;  %v250_v39 = vld [vmem:[%s11668_s25 + $0x180] sm:$0xff]  ;;  %v251_v44 = vld [vmem:[%s11668_s25 + $0x188] sm:$0xff] }
  0x58   : > { %v1536_v62 = vadd.f32 %v11673_v3, %v1017_v53  ;;  %v1537_v63 = vadd.f32 %v11673_v3, %v1018_v54  ;;  %v1790_v4 = vmax.f32 %v1278_v47, 0.0  ;;  %v1791_v5 = vmax.f32 %v1279_v48, 0.0  ;;  %v506_v49 = vld [vmem:[%s11668_s25 + $0x980] sm:$0xff]  ;;  %v507_v50 = vld [vmem:[%s11668_s25 + $0x988] sm:$0xff] }
  0x59   : > { %v764_v6 = vmul.f32 %v11663_v2, %v245_v55  ;;  %v1019_v7 = vmul.f32 %v11663_v2, %v500_v56  ;;  %v2046_v9 = vmax.f32 %v1534_v51, 0.0  ;;  %v1792_v10 = vmax.f32 %v1280_v52, 0.0 }
  0x5a   : > { %11111 = vmatmul.mubr.msk.bf16.gmra.mrb[32].mxu0 %vm2521_vm1, %v2281_v42  ;;  %v1793_v11 = vmax.f32 %v1281_v59, 0.0  ;;  %v1020_v12 = vmul.f32 %v11663_v2, %v501_v60  ;;  %v2047_v14 = vmax.f32 %v1535_v58, 0.0  ;;  %v2048_v15 = vmax.f32 %v1536_v62, 0.0 }
  0x5b   : > { %11114 = vmatprep.mubr.msk.bf16.mxu0 %vm2521_vm1, %v2282_v46  ;;  %v2049_v16 = vmax.f32 %v1537_v63, 0.0  ;;  %v765_v17 = vmul.f32 %v11663_v2, %v246_v1  ;;  %v1282_v20 = vadd.f32 %v11673_v3, %v763_v0  ;;  %v1283_v21 = vadd.f32 %v11673_v3, %v764_v6  ;;  %v252_v1 = vld [vmem:[%s11668_s25 + $0x190] sm:$0xff] }
  0x5c   : > { %11367 = vmatmul.mubr.msk.bf16.gmra.mrb[32].mxu1 %vm2521_vm1, %v2409_v57  ;;  %v1538_v22 = vadd.f32 %v11673_v3, %v1019_v7  ;;  %v766_v23 = vmul.f32 %v11663_v2, %v247_v8  ;;  %v2283_v25 = vpack.c.bf16 %v1791_v5, %v1790_v4  ;;  %v1539_v26 = vadd.f32 %v11673_v3, %v1020_v12  ;;  %v253_v7 = vld [vmem:[%s11668_s25 + $0x198] sm:$0xff]  ;;  %v508_v8 = vld [vmem:[%s11668_s25 + $0x990] sm:$0xff] }
  0x5d   : > { %11370 = vmatprep.mubr.msk.bf16.mxu1 %vm2521_vm1, %v2410_v61  ;;  %v1284_v27 = vadd.f32 %v11673_v3, %v765_v17  ;;  %v1021_v28 = vmul.f32 %v11663_v2, %v502_v13  ;;  %v2284_v29 = vpack.c.bf16 %v1793_v11, %v1792_v10  ;;  %v1022_v31 = vmul.f32 %v11663_v2, %v503_v18 }
  0x5e   : > { %v1285_v30 = vadd.f32 %v11673_v3, %v766_v23  ;;  %v767_v32 = vmul.f32 %v11663_v2, %v248_v19  ;;  %v2411_v35 = vpack.c.bf16 %v2047_v14, %v2046_v9  ;;  %v2412_v36 = vpack.c.bf16 %v2049_v16, %v2048_v15  ;;  %v509_v9 = vld [vmem:[%s11668_s25 + $0x998] sm:$0xff]  ;;  %v254_v14 = vld [vmem:[%s11668_s25 + $0x1a0] sm:$0xff]  ;;  %v255_v15 = vld [vmem:[%s11668_s25 + $0x1a8] sm:$0xff] }
  0x5f   : > { %v1540_v37 = vadd.f32 %v11673_v3, %v1021_v28  ;;  %v768_v38 = vmul.f32 %v11663_v2, %v249_v24  ;;  %v1794_v40 = vmax.f32 %v1282_v20, 0.0  ;;  %v1795_v41 = vmax.f32 %v1283_v21, 0.0  ;;  %v510_v20 = vld [vmem:[%s11668_s25 + $0x9a0] sm:$0xff] }
  0x60   : > { %v2050_v42 = vmax.f32 %v1538_v22, 0.0  ;;  %v1541_v43 = vadd.f32 %v11673_v3, %v1022_v31  ;;  %v2051_v45 = vmax.f32 %v1539_v26, 0.0  ;;  %v1796_v46 = vmax.f32 %v1284_v27, 0.0 }
  0x61   : > { %v1023_v47 = vmul.f32 %v11663_v2, %v504_v33  ;;  %v1024_v48 = vmul.f32 %v11663_v2, %v505_v34  ;;  %v1797_v51 = vmax.f32 %v1285_v30, 0.0  ;;  %v2052_v52 = vmax.f32 %v1540_v37, 0.0  ;;  %v12040_v33 = vld [vmem:[%s14221_s1] ss:$0 sm:$0xff] }
  0x62   : > { %11115 = vmatmul.mubr.msk.bf16.gmra.mrb[36].mxu0 %vm2521_vm1, %v2283_v25  ;;  %v1286_v53 = vadd.f32 %v11673_v3, %v767_v32  ;;  %v769_v54 = vmul.f32 %v11663_v2, %v250_v39  ;;  %v2053_v55 = vmax.f32 %v1541_v43, 0.0  ;;  %v1287_v56 = vadd.f32 %v11673_v3, %v768_v38  ;;  %v511_v25 = vld [vmem:[%s11668_s25 + $0x9a8] sm:$0xff] }
  0x63   : > { %11118 = vmatprep.mubr.msk.bf16.mxu0 %vm2521_vm1, %v2284_v29  ;;  %v1542_v57 = vadd.f32 %v11673_v3, %v1023_v47  ;;  %v770_v58 = vmul.f32 %v11663_v2, %v251_v44  ;;  %v1543_v59 = vadd.f32 %v11673_v3, %v1024_v48  ;;  %v1025_v61 = vmul.f32 %v11663_v2, %v506_v49  ;;  %v259_v47 = vld [vmem:[%s11668_s25 + $0x1c8] sm:$0xff] }
  0x64   : > { %11371 = vmatmul.mubr.msk.bf16.gmra.mrb[36].mxu1 %vm2521_vm1, %v2411_v35  ;;  %v1288_v60 = vadd.f32 %v11673_v3, %v769_v54  ;;  %v1026_v62 = vmul.f32 %v11663_v2, %v507_v50  ;;  %v2285_v63 = vpack.c.bf16 %v1795_v41, %v1794_v40  ;;  %v2286_v4 = vpack.c.bf16 %v1797_v51, %v1796_v46  ;;  %v256_v35 = vld [vmem:[%s11668_s25 + $0x1b0] sm:$0xff]  ;;  %v513_v41 = vld [vmem:[%s11668_s25 + $0x9b8] sm:$0xff] }
  0x65   : > { %11374 = vmatprep.mubr.msk.bf16.mxu1 %vm2521_vm1, %v2412_v36  ;;  %v1289_v0 = vadd.f32 %v11673_v3, %v770_v58  ;;  %v1544_v5 = vadd.f32 %v11673_v3, %v1025_v61  ;;  %v2413_v10 = vpack.c.bf16 %v2051_v45, %v2050_v42  ;;  %v2414_v11 = vpack.c.bf16 %v2053_v55, %v2052_v52  ;;  %v257_v36 = vld [vmem:[%s11668_s25 + $0x1b8] sm:$0xff]  ;;  %v512_v40 = vld [vmem:[%s11668_s25 + $0x9b0] sm:$0xff]  ;;  %v258_v42 = vld [vmem:[%s11668_s25 + $0x1c0] sm:$0xff] }
  0x66   : > { %v1545_v6 = vadd.f32 %v11673_v3, %v1026_v62  ;;  %v1798_v12 = vmax.f32 %v1286_v53, 0.0  ;;  %v1799_v13 = vmax.f32 %v1287_v56, 0.0  ;;  %v2054_v16 = vmax.f32 %v1542_v57, 0.0  ;;  %v514_v52 = vld [vmem:[%s11668_s25 + $0x9c0] sm:$0xff]  ;;  %v515_v53 = vld [vmem:[%s11668_s25 + $0x9c8] sm:$0xff] }
  0x67   : > { %v2055_v17 = vmax.f32 %v1543_v59, 0.0  ;;  %v1800_v18 = vmax.f32 %v1288_v60, 0.0  ;;  %v771_v19 = vmul.f32 %v11663_v2, %v252_v1  ;;  %v1801_v21 = vmax.f32 %v1289_v0, 0.0 }
  0x68   : > { %v772_v22 = vmul.f32 %v11663_v2, %v253_v7  ;;  %v1027_v23 = vmul.f32 %v11663_v2, %v508_v8  ;;  %v1028_v24 = vmul.f32 %v11663_v2, %v509_v9  ;;  %v2056_v26 = vmax.f32 %v1544_v5, 0.0 }
  0x69   : > { %v2057_v27 = vmax.f32 %v1545_v6, 0.0  ;;  %v773_v28 = vmul.f32 %v11663_v2, %v254_v14  ;;  %v774_v29 = vmul.f32 %v11663_v2, %v255_v15  ;;  %v1029_v30 = vmul.f32 %v11663_v2, %v510_v20  ;;  %v12048_v2 = vld [vmem:[%s14222_s2] ss:$0 sm:$0xff]  ;;  %v260_v14 = vld [vmem:[%s11668_s25 + $0x1d0] sm:$0xff] }
  0x6a   : > { %11119 = vmatmul.mubr.msk.bf16.gmra.mrb[40].mxu0 %vm2521_vm1, %v2285_v63  ;;  %v2287_v31 = vpack.c.bf16 %v1799_v13, %v1798_v12  ;;  %v1290_v32 = vadd.f32 %v11673_v3, %v771_v19  ;;  %v1030_v34 = vmul.f32 %v12040_v33, %v511_v25  ;;  %v2415_v37 = vpack.c.bf16 %v2055_v17, %v2054_v16  ;;  %v261_v17 = vld [vmem:[%s11668_s25 + $0x1d8] sm:$0xff]  ;;  %v263_v25 = vld [vmem:[%s11668_s25 + $0x1e8] sm:$0xff] }
  0x6b   : > { %11122 = vmatprep.mubr.msk.bf16.mxu0 %vm2521_vm1, %v2286_v4  ;;  %v1291_v38 = vadd.f32 %v12048_v2, %v772_v22  ;;  %v1546_v3 = vadd.f32 %v12048_v2, %v1027_v23  ;;  %v1547_v39 = vadd.f32 %v12048_v2, %v1028_v24  ;;  %v2288_v43 = vpack.c.bf16 %v1801_v21, %v1800_v18  ;;  %v516_v18 = vld [vmem:[%s11668_s25 + $0x9d0] sm:$0xff]  ;;  %v517_v23 = vld [vmem:[%s11668_s25 + $0x9d8] sm:$0xff]  ;;  %v262_v24 = vld [vmem:[%s11668_s25 + $0x1e0] sm:$0xff] }
  0x6c   : > { %11375 = vmatmul.mubr.msk.bf16.gmra.mrb[40].mxu1 %vm2521_vm1, %v2413_v10  ;;  %v2416_v44 = vpack.c.bf16 %v2057_v27, %v2056_v26  ;;  %v1292_v45 = vadd.f32 %v12048_v2, %v773_v28  ;;  %v1293_v46 = vadd.f32 %v12048_v2, %v774_v29  ;;  %v1548_v48 = vadd.f32 %v12048_v2, %v1029_v30  ;;  %v518_v30 = vld [vmem:[%s11668_s25 + $0x9e0] sm:$0xff] }
  0x6d   : > { %11378 = vmatprep.mubr.msk.bf16.mxu1 %vm2521_vm1, %v2414_v11  ;;  %v1549_v49 = vadd.f32 %v12048_v2, %v1030_v34  ;;  %v775_v50 = vmul.f32 %v12040_v33, %v256_v35  ;;  %v776_v51 = vmul.f32 %v12040_v33, %v257_v36  ;;  %v1802_v54 = vmax.f32 %v1290_v32, 0.0 }
  0x6e   : > { %v1031_v55 = vmul.f32 %v12040_v33, %v512_v40  ;;  %v1032_v56 = vmul.f32 %v12040_v33, %v513_v41  ;;  %v777_v57 = vmul.f32 %v12040_v33, %v258_v42  ;;  %v1803_v58 = vmax.f32 %v1291_v38, 0.0 }
  0x6f   : > { %v2058_v59 = vmax.f32 %v1546_v3, 0.0  ;;  %v2059_v60 = vmax.f32 %v1547_v39, 0.0  ;;  %v778_v61 = vmul.f32 %v12040_v33, %v259_v47  ;;  %v1804_v62 = vmax.f32 %v1292_v45, 0.0  ;;  %v265_v45 = vld [vmem:[%s11668_s25 + $0x1f8] sm:$0xff] }
  0x70   : > { %v1805_v63 = vmax.f32 %v1293_v46, 0.0  ;;  %v1033_v0 = vmul.f32 %v12040_v33, %v514_v52  ;;  %v1034_v1 = vmul.f32 %v12040_v33, %v515_v53  ;;  %v2060_v4 = vmax.f32 %v1548_v48, 0.0  ;;  %v520_v46 = vld [vmem:[%s11668_s25 + $0x9f0] sm:$0xff]  ;;  %v266_v52 = vld [vmem:[%s11668_s25 + $0x200] sm:$0xff]  ;;  %v267_v53 = vld [vmem:[%s11668_s25 + $0x208] sm:$0xff] }
  0x71   : > { %v2061_v5 = vmax.f32 %v1549_v49, 0.0  ;;  %v1294_v6 = vadd.f32 %v12048_v2, %v775_v50  ;;  %v1295_v7 = vadd.f32 %v12048_v2, %v776_v51  ;;  %v1550_v8 = vadd.f32 %v12048_v2, %v1031_v55  ;;  %v521_v51 = vld [vmem:[%s11668_s25 + $0x9f8] sm:$0xff] }
  0x72   : > { %11123 = vmatmul.mubr.msk.bf16.gmra.mrb[44].mxu0 %vm2521_vm1, %v2287_v31  ;;  %v1551_v9 = vadd.f32 %v12048_v2, %v1032_v56  ;;  %v1296_v10 = vadd.f32 %v12048_v2, %v777_v57  ;;  %v2289_v11 = vpack.c.bf16 %v1803_v58, %v1802_v54  ;;  %v1297_v12 = vadd.f32 %v12048_v2, %v778_v61  ;;  %v519_v31 = vld [vmem:[%s11668_s25 + $0x9e8] sm:$0xff]  ;;  %v522_v58 = vld [vmem:[%s11668_s25 + $0xa00] sm:$0xff] }
  0x73   : > { %11126 = vmatprep.mubr.msk.bf16.mxu0 %vm2521_vm1, %v2288_v43  ;;  %v1552_v13 = vadd.f32 %v12048_v2, %v1033_v0  ;;  %v2290_v15 = vpack.c.bf16 %v1805_v63, %v1804_v62  ;;  %v1553_v16 = vadd.f32 %v12048_v2, %v1034_v1  ;;  %v2417_v19 = vpack.c.bf16 %v2059_v60, %v2058_v59  ;;  %v523_v59 = vld [vmem:[%s11668_s25 + $0xa08] sm:$0xff] }
  0x74   : > { %11379 = vmatmul.mubr.msk.bf16.gmra.mrb[44].mxu1 %vm2521_vm1, %v2415_v37  ;;  %v2418_v20 = vpack.c.bf16 %v2061_v5, %v2060_v4  ;;  %v1806_v21 = vmax.f32 %v1294_v6, 0.0  ;;  %v1807_v22 = vmax.f32 %v1295_v7, 0.0  ;;  %v2062_v26 = vmax.f32 %v1550_v8, 0.0 }
  0x75   : > { %11382 = vmatprep.mubr.msk.bf16.mxu1 %vm2521_vm1, %v2416_v44  ;;  %v2063_v27 = vmax.f32 %v1551_v9, 0.0  ;;  %v1808_v28 = vmax.f32 %v1296_v10, 0.0  ;;  %v779_v29 = vmul.f32 %v12040_v33, %v260_v14  ;;  %v1809_v32 = vmax.f32 %v1297_v12, 0.0  ;;  %v264_v44 = vld [vmem:[%s11668_s25 + $0x1f0] sm:$0xff] }
  0x76   : > { %v2064_v34 = vmax.f32 %v1552_v13, 0.0  ;;  %v780_v35 = vmul.f32 %v12040_v33, %v261_v17  ;;  %v1035_v36 = vmul.f32 %v12040_v33, %v516_v18  ;;  %v2065_v37 = vmax.f32 %v1553_v16, 0.0  ;;  %v268_v14 = vld [vmem:[%s11668_s25 + $0x210] sm:$0xff] }
  0x77   : > { %v1036_v38 = vmul.f32 %v12040_v33, %v517_v23  ;;  %v781_v3 = vmul.f32 %v12040_v33, %v262_v24  ;;  %v782_v39 = vmul.f32 %v12040_v33, %v263_v25  ;;  %v1037_v40 = vmul.f32 %v12040_v33, %v518_v30  ;;  %v524_v30 = vld [vmem:[%s11668_s25 + $0xa10] sm:$0xff] }
  0x78   : > { %v1038_v41 = vmul.f32 %v12040_v33, %v519_v31  ;;  %v2291_v42 = vpack.c.bf16 %v1807_v22, %v1806_v21  ;;  %v2419_v43 = vpack.c.bf16 %v2063_v27, %v2062_v26  ;;  %v2292_v47 = vpack.c.bf16 %v1809_v32, %v1808_v28 }
  0x79   : > { %v1298_v48 = vadd.f32 %v12048_v2, %v779_v29  ;;  %v1299_v49 = vadd.f32 %v12048_v2, %v780_v35  ;;  %v1554_v50 = vadd.f32 %v12048_v2, %v1035_v36  ;;  %v2420_v54 = vpack.c.bf16 %v2065_v37, %v2064_v34  ;;  %v525_v36 = vld [vmem:[%s11668_s25 + $0xa18] sm:$0xff]  ;;  %v270_v37 = vld [vmem:[%s11668_s25 + $0x220] sm:$0xff] }
  0x7a   : > { %11127 = vmatmul.mubr.msk.bf16.gmra.mrb[48].mxu0 %vm2521_vm1, %v2289_v11  ;;  %v1555_v55 = vadd.f32 %v12048_v2, %v1036_v38  ;;  %v1300_v56 = vadd.f32 %v12048_v2, %v781_v3  ;;  %v1301_v57 = vadd.f32 %v12048_v2, %v782_v39  ;;  %v1556_v60 = vadd.f32 %v12048_v2, %v1037_v40  ;;  %v271_v38 = vld [vmem:[%s11668_s25 + $0x228] sm:$0xff] }
  0x7b   : > { %11130 = vmatprep.mubr.msk.bf16.mxu0 %vm2521_vm1, %v2290_v15  ;;  %v1557_v61 = vadd.f32 %v12048_v2, %v1038_v41  ;;  %v783_v62 = vmul.f32 %v12040_v33, %v264_v44  ;;  %v784_v63 = vmul.f32 %v12040_v33, %v265_v45  ;;  %v1039_v0 = vmul.f32 %v12040_v33, %v520_v46 }
  0x7c   : > { %11383 = vmatmul.mubr.msk.bf16.gmra.mrb[48].mxu1 %vm2521_vm1, %v2417_v19  ;;  %v1040_v1 = vmul.f32 %v12040_v33, %v521_v51  ;;  %v785_v4 = vmul.f32 %v12040_v33, %v266_v52  ;;  %v786_v5 = vmul.f32 %v12040_v33, %v267_v53  ;;  %v1810_v6 = vmax.f32 %v1298_v48, 0.0  ;;  %v269_v19 = vld [vmem:[%s11668_s25 + $0x218] sm:$0xff] }
  0x7d   : > { %11386 = vmatprep.mubr.msk.bf16.mxu1 %vm2521_vm1, %v2418_v20  ;;  %v1811_v7 = vmax.f32 %v1299_v49, 0.0  ;;  %v1041_v8 = vmul.f32 %v12040_v33, %v522_v58  ;;  %v1042_v9 = vmul.f32 %v12040_v33, %v523_v59  ;;  %v2066_v10 = vmax.f32 %v1554_v50, 0.0  ;;  %v528_v58 = vld [vmem:[%s11668_s25 + $0xa30] sm:$0xff] }
  0x7e   : > { %v2067_v11 = vmax.f32 %v1555_v55, 0.0  ;;  %v1812_v12 = vmax.f32 %v1300_v56, 0.0  ;;  %v1813_v13 = vmax.f32 %v1301_v57, 0.0  ;;  %v2068_v15 = vmax.f32 %v1556_v60, 0.0  ;;  %v272_v56 = vld [vmem:[%s11668_s25 + $0x230] sm:$0xff]  ;;  %v273_v57 = vld [vmem:[%s11668_s25 + $0x238] sm:$0xff] }
  0x7f   : > { %v2069_v16 = vmax.f32 %v1557_v61, 0.0  ;;  %v1302_v17 = vadd.f32 %v12048_v2, %v783_v62  ;;  %v1303_v18 = vadd.f32 %v12048_v2, %v784_v63  ;;  %v1558_v20 = vadd.f32 %v12048_v2, %v1039_v0  ;;  %v529_v63 = vld [vmem:[%s11668_s25 + $0xa38] sm:$0xff]  ;;  %v274_v0 = vld [vmem:[%s11668_s25 + $0x240] sm:$0xff] }
  0x80   : > { %v1559_v21 = vadd.f32 %v12048_v2, %v1040_v1  ;;  %v1304_v22 = vadd.f32 %v12048_v2, %v785_v4  ;;  %v1305_v23 = vadd.f32 %v12048_v2, %v786_v5  ;;  %v2293_v24 = vpack.c.bf16 %v1811_v7, %v1810_v6  ;;  %v275_v1 = vld [vmem:[%s11668_s25 + $0x248] sm:$0xff] }
  0x81   : > { %v1560_v25 = vadd.f32 %v12048_v2, %v1041_v8  ;;  %v1561_v26 = vadd.f32 %v12048_v2, %v1042_v9  ;;  %v787_v27 = vmul.f32 %v12040_v33, %v268_v14  ;;  %v2294_v28 = vpack.c.bf16 %v1813_v13, %v1812_v12  ;;  %v530_v8 = vld [vmem:[%s11668_s25 + $0xa40] sm:$0xff]  ;;  %v531_v9 = vld [vmem:[%s11668_s25 + $0xa48] sm:$0xff] }
  0x82   : > { %11131 = vmatmul.mubr.msk.bf16.gmra.mrb[52].mxu0 %vm2521_vm1, %v2291_v42  ;;  %v788_v29 = vmul.f32 %v12040_v33, %v269_v19  ;;  %v2421_v31 = vpack.c.bf16 %v2067_v11, %v2066_v10  ;;  %v2422_v32 = vpack.c.bf16 %v2069_v16, %v2068_v15  ;;  %v1814_v34 = vmax.f32 %v1302_v17, 0.0  ;;  %v526_v42 = vld [vmem:[%s11668_s25 + $0xa20] sm:$0xff] }
  0x83   : > { %11134 = vmatprep.mubr.msk.bf16.mxu0 %vm2521_vm1, %v2292_v47  ;;  %v1815_v35 = vmax.f32 %v1303_v18, 0.0  ;;  %v2070_v3 = vmax.f32 %v1558_v20, 0.0  ;;  %v2071_v39 = vmax.f32 %v1559_v21, 0.0  ;;  %v1816_v40 = vmax.f32 %v1304_v22, 0.0 }
  0x84   : > { %11387 = vmatmul.mubr.msk.bf16.gmra.mrb[52].mxu1 %vm2521_vm1, %v2419_v43  ;;  %v1817_v41 = vmax.f32 %v1305_v23, 0.0  ;;  %v527_v43 = vld [vmem:[%s11668_s25 + $0xa28] sm:$0xff]  ;;  %v2072_v44 = vmax.f32 %v1560_v25, 0.0  ;;  %v2073_v45 = vmax.f32 %v1561_v26, 0.0  ;;  %v1306_v46 = vadd.f32 %v12048_v2, %v787_v27  ;;  %v276_v25 = vld [vmem:[%s11668_s25 + $0x250] sm:$0xff]  ;;  %v277_v26 = vld [vmem:[%s11668_s25 + $0x258] sm:$0xff] }
  0x85   : > { %11390 = vmatprep.mubr.msk.bf16.mxu1 %vm2521_vm1, %v2420_v54  ;;  %v1043_v47 = vmul.f32 %v12040_v33, %v524_v30  ;;  %v1307_v48 = vadd.f32 %v12048_v2, %v788_v29  ;;  %v1044_v49 = vmul.f32 %v12040_v33, %v525_v36  ;;  %v789_v50 = vmul.f32 %v12040_v33, %v270_v37 }
  0x86   : > { %v790_v51 = vmul.f32 %v12040_v33, %v271_v38  ;;  %v1045_v52 = vmul.f32 %v12040_v33, %v526_v42  ;;  %v1046_v53 = vmul.f32 %v12040_v33, %v527_v43  ;;  %v2295_v54 = vpack.c.bf16 %v1815_v35, %v1814_v34 }
  0x87   : > { %v2423_v55 = vpack.c.bf16 %v2071_v39, %v2070_v3  ;;  %v2296_v59 = vpack.c.bf16 %v1817_v41, %v1816_v40  ;;  %v2424_v60 = vpack.c.bf16 %v2073_v45, %v2072_v44  ;;  %v1818_v61 = vmax.f32 %v1306_v46, 0.0 }
  0x88   : > { %v1562_v62 = vadd.f32 %v12048_v2, %v1043_v47  ;;  %v1819_v4 = vmax.f32 %v1307_v48, 0.0  ;;  %v1563_v5 = vadd.f32 %v12048_v2, %v1044_v49  ;;  %v1308_v6 = vadd.f32 %v12048_v2, %v789_v50  ;;  %v278_v48 = vld [vmem:[%s11668_s25 + $0x260] sm:$0xff]  ;;  %v279_v49 = vld [vmem:[%s11668_s25 + $0x268] sm:$0xff] }
  0x89   : > { %v1309_v7 = vadd.f32 %v12048_v2, %v790_v51  ;;  %v1564_v10 = vadd.f32 %v12048_v2, %v1045_v52  ;;  %v1565_v11 = vadd.f32 %v12048_v2, %v1046_v53  ;;  %v791_v12 = vmul.f32 %v12040_v33, %v272_v56 }
  0x8a   : > { %11135 = vmatmul.mubr.msk.bf16.gmra.mrb[56].mxu0 %vm2521_vm1, %v2293_v24  ;;  %v792_v13 = vmul.f32 %v12040_v33, %v273_v57  ;;  %v1047_v14 = vmul.f32 %v12040_v33, %v528_v58  ;;  %v1048_v15 = vmul.f32 %v12040_v33, %v529_v63  ;;  %v793_v16 = vmul.f32 %v12040_v33, %v274_v0 }
  0x8b   : > { %11138 = vmatprep.mubr.msk.bf16.mxu0 %vm2521_vm1, %v2294_v28  ;;  %v794_v17 = vmul.f32 %v12040_v33, %v275_v1  ;;  %v2074_v18 = vmax.f32 %v1562_v62, 0.0  ;;  %v1049_v19 = vmul.f32 %v12040_v33, %v530_v8  ;;  %v1050_v20 = vmul.f32 %v12040_v33, %v531_v9  ;;  %v536_v8 = vld [vmem:[%s11668_s25 + $0xa70] sm:$0xff] }
  0x8c   : > { %11391 = vmatmul.mubr.msk.bf16.gmra.mrb[56].mxu1 %vm2521_vm1, %v2421_v31  ;;  %v2297_v21 = vpack.c.bf16 %v1819_v4, %v1818_v61  ;;  %v2075_v22 = vmax.f32 %v1563_v5, 0.0  ;;  %v1820_v23 = vmax.f32 %v1308_v6, 0.0  ;;  %v1821_v24 = vmax.f32 %v1309_v7, 0.0  ;;  %v532_v31 = vld [vmem:[%s11668_s25 + $0xa50] sm:$0xff]  ;;  %v281_v7 = vld [vmem:[%s11668_s25 + $0x278] sm:$0xff] }
  0x8d   : > { %11394 = vmatprep.mubr.msk.bf16.mxu1 %vm2521_vm1, %v2422_v32  ;;  %v2076_v27 = vmax.f32 %v1564_v10, 0.0  ;;  %v2077_v28 = vmax.f32 %v1565_v11, 0.0  ;;  %v1310_v29 = vadd.f32 %v12048_v2, %v791_v12  ;;  %v1311_v30 = vadd.f32 %v12048_v2, %v792_v13  ;;  %v533_v32 = vld [vmem:[%s11668_s25 + $0xa58] sm:$0xff]  ;;  %v280_v6 = vld [vmem:[%s11668_s25 + $0x270] sm:$0xff] }
  0x8e   : > { %v1566_v34 = vadd.f32 %v12048_v2, %v1047_v14  ;;  %v1567_v35 = vadd.f32 %v12048_v2, %v1048_v15  ;;  %v1312_v36 = vadd.f32 %v12048_v2, %v793_v16  ;;  %v1313_v37 = vadd.f32 %v12048_v2, %v794_v17  ;;  %v537_v13 = vld [vmem:[%s11668_s25 + $0xa78] sm:$0xff]  ;;  %v282_v14 = vld [vmem:[%s11668_s25 + $0x280] sm:$0xff]  ;;  %v283_v15 = vld [vmem:[%s11668_s25 + $0x288] sm:$0xff] }
  0x8f   : > { %v1568_v38 = vadd.f32 %v12048_v2, %v1049_v19  ;;  %v1569_v3 = vadd.f32 %v12048_v2, %v1050_v20  ;;  %v795_v39 = vmul.f32 %v12040_v33, %v276_v25  ;;  %v796_v40 = vmul.f32 %v12040_v33, %v277_v26  ;;  %v538_v20 = vld [vmem:[%s11668_s25 + $0xa80] sm:$0xff] }
  0x90   : > { %v2298_v41 = vpack.c.bf16 %v1821_v24, %v1820_v23  ;;  %v1051_v42 = vmul.f32 %v12040_v33, %v532_v31  ;;  %v1052_v43 = vmul.f32 %v12040_v33, %v533_v32  ;;  %v2425_v44 = vpack.c.bf16 %v2075_v22, %v2074_v18 }
  0x91   : > { %v2426_v45 = vpack.c.bf16 %v2077_v28, %v2076_v27  ;;  %v1822_v46 = vmax.f32 %v1310_v29, 0.0  ;;  %v1823_v47 = vmax.f32 %v1311_v30, 0.0  ;;  %v2078_v50 = vmax.f32 %v1566_v34, 0.0 }
  0x92   : > { %11139 = vmatmul.mubr.msk.bf16.gmra.mrb[60].mxu0 %vm2521_vm1, %v2295_v54  ;;  %v2079_v51 = vmax.f32 %v1567_v35, 0.0  ;;  %v1824_v52 = vmax.f32 %v1312_v36, 0.0  ;;  %v1825_v53 = vmax.f32 %v1313_v37, 0.0  ;;  %v534_v54 = vld [vmem:[%s11668_s25 + $0xa60] sm:$0xff]  ;;  %v2080_v56 = vmax.f32 %v1568_v38, 0.0  ;;  %v284_v37 = vld [vmem:[%s11668_s25 + $0x290] sm:$0xff] }
  0x93   : > { %11142 = vmatprep.mubr.msk.bf16.mxu0 %vm2521_vm1, %v2296_v59  ;;  %v2081_v57 = vmax.f32 %v1569_v3, 0.0  ;;  %v1314_v58 = vadd.f32 %v12048_v2, %v795_v39  ;;  %v1315_v59 = vadd.f32 %v12048_v2, %v796_v40  ;;  %v1571_v61 = vadd.f32 %v12048_v2, %v1052_v43  ;;  %v285_v38 = vld [vmem:[%s11668_s25 + $0x298] sm:$0xff] }
  0x94   : > { %11395 = vmatmul.mubr.msk.bf16.gmra.mrb[60].mxu1 %vm2521_vm1, %v2423_v55  ;;  %v535_v55 = vld [vmem:[%s11668_s25 + $0xa68] sm:$0xff]  ;;  %v797_v62 = vmul.f32 %v12040_v33, %v278_v48  ;;  %v798_v63 = vmul.f32 %v12040_v33, %v279_v49  ;;  %v1053_v0 = vmul.f32 %v12040_v33, %v534_v54  ;;  %v2299_v4 = vpack.c.bf16 %v1823_v47, %v1822_v46  ;;  %v541_v43 = vld [vmem:[%s11668_s25 + $0xa98] sm:$0xff] }
  0x95   : > { %11398 = vmatprep.mubr.msk.bf16.mxu1 %vm2521_vm1, %v2424_v60  ;;  %v1570_v60 = vadd.f32 %v12048_v2, %v1051_v42  ;;  %v1054_v1 = vmul.f32 %v12040_v33, %v535_v55  ;;  %v2427_v5 = vpack.c.bf16 %v2079_v51, %v2078_v50  ;;  %v2300_v9 = vpack.c.bf16 %v1825_v53, %v1824_v52  ;;  %v540_v42 = vld [vmem:[%s11668_s25 + $0xa90] sm:$0xff]  ;;  %v287_v49 = vld [vmem:[%s11668_s25 + $0x2a8] sm:$0xff] }
  0x96   : > { %v2428_v10 = vpack.c.bf16 %v2081_v57, %v2080_v56  ;;  %v1826_v11 = vmax.f32 %v1314_v58, 0.0  ;;  %v1827_v12 = vmax.f32 %v1315_v59, 0.0  ;;  %v2083_v17 = vmax.f32 %v1571_v61, 0.0 }
  0x97   : > { %v2082_v16 = vmax.f32 %v1570_v60, 0.0  ;;  %v1316_v18 = vadd.f32 %v12048_v2, %v797_v62  ;;  %v1317_v19 = vadd.f32 %v12048_v2, %v798_v63  ;;  %v1572_v22 = vadd.f32 %v12048_v2, %v1053_v0  ;;  %v542_v62 = vld [vmem:[%s11668_s25 + $0xaa0] sm:$0xff] }
  0x98   : > { %v1573_v23 = vadd.f32 %v12048_v2, %v1054_v1  ;;  %v799_v24 = vmul.f32 %v12040_v33, %v280_v6  ;;  %v800_v25 = vmul.f32 %v12040_v33, %v281_v7  ;;  %v1055_v26 = vmul.f32 %v12040_v33, %v536_v8 }
  0x99   : > { %v1056_v27 = vmul.f32 %v12040_v33, %v537_v13  ;;  %v801_v28 = vmul.f32 %v12040_v33, %v282_v14  ;;  %v802_v29 = vmul.f32 %v12040_v33, %v283_v15  ;;  %v1057_v30 = vmul.f32 %v12040_v33, %v538_v20 }
  0x9a   : > { %11143 = vmatmul.mubr.msk.bf16.gmra.mrb[64].mxu0 %vm2521_vm1, %v2297_v21  ;;  %v539_v21 = vld [vmem:[%s11668_s25 + $0xa88] sm:$0xff]  ;;  %v2301_v32 = vpack.c.bf16 %v1827_v12, %v1826_v11  ;;  %v2429_v34 = vpack.c.bf16 %v2083_v17, %v2082_v16  ;;  %v1828_v35 = vmax.f32 %v1316_v18, 0.0  ;;  %v1829_v36 = vmax.f32 %v1317_v19, 0.0  ;;  %v289_v19 = vld [vmem:[%s11668_s25 + $0x2b8] sm:$0xff] }
  0x9b   : > { %11146 = vmatprep.mubr.msk.bf16.mxu0 %vm2521_vm1, %v2298_v41  ;;  %v1058_v31 = vmul.f32 %v12040_v33, %v539_v21  ;;  %v2084_v3 = vmax.f32 %v1572_v22, 0.0  ;;  %v2085_v39 = vmax.f32 %v1573_v23, 0.0  ;;  %v1318_v40 = vadd.f32 %v12048_v2, %v799_v24  ;;  %v544_v21 = vld [vmem:[%s11668_s25 + $0xab0] sm:$0xff] }
  0x9c   : > { %11399 = vmatmul.mubr.msk.bf16.gmra.mrb[64].mxu1 %vm2521_vm1, %v2425_v44  ;;  %v1319_v41 = vadd.f32 %v12048_v2, %v800_v25  ;;  %v286_v44 = vld [vmem:[%s11668_s25 + $0x2a0] sm:$0xff]  ;;  %v1575_v46 = vadd.f32 %v12048_v2, %v1056_v27  ;;  %v1320_v47 = vadd.f32 %v12048_v2, %v801_v28  ;;  %v1321_v48 = vadd.f32 %v12048_v2, %v802_v29  ;;  %v291_v28 = vld [vmem:[%s11668_s25 + $0x2c8] sm:$0xff] }
  0x9d   : > { %11402 = vmatprep.mubr.msk.bf16.mxu1 %vm2521_vm1, %v2426_v45  ;;  %v1574_v45 = vadd.f32 %v12048_v2, %v1055_v26  ;;  %v1576_v50 = vadd.f32 %v12048_v2, %v1057_v30  ;;  %v1577_v51 = vadd.f32 %v12048_v2, %v1058_v31  ;;  %v803_v52 = vmul.f32 %v12040_v33, %v284_v37  ;;  %v545_v26 = vld [vmem:[%s11668_s25 + $0xab8] sm:$0xff]  ;;  %v290_v27 = vld [vmem:[%s11668_s25 + $0x2c0] sm:$0xff] }
  0x9e   : > { %v804_v53 = vmul.f32 %v12040_v33, %v285_v38  ;;  %v2302_v54 = vpack.c.bf16 %v1829_v36, %v1828_v35  ;;  %v1059_v55 = vmul.f32 %v12040_v33, %v540_v42  ;;  %v1060_v56 = vmul.f32 %v12040_v33, %v541_v43  ;;  %v547_v35 = vld [vmem:[%s11668_s25 + $0xac8] sm:$0xff] }
  0x9f   : > { %v805_v57 = vmul.f32 %v12040_v33, %v286_v44  ;;  %v2430_v58 = vpack.c.bf16 %v2085_v39, %v2084_v3  ;;  %v1830_v59 = vmax.f32 %v1318_v40, 0.0  ;;  %v1831_v60 = vmax.f32 %v1319_v41, 0.0 }
  0xa0   : > { %v806_v61 = vmul.f32 %v12040_v33, %v287_v49  ;;  %v2086_v63 = vmax.f32 %v1574_v45, 0.0  ;;  %v2087_v0 = vmax.f32 %v1575_v46, 0.0  ;;  %v1832_v1 = vmax.f32 %v1320_v47, 0.0  ;;  %v293_v49 = vld [vmem:[%s11668_s25 + $0x2d8] sm:$0xff] }
  0xa1   : > { %v2088_v6 = vmax.f32 %v1576_v50, 0.0  ;;  %v2089_v7 = vmax.f32 %v1577_v51, 0.0  ;;  %v1322_v8 = vadd.f32 %v12048_v2, %v803_v52  ;;  %v1578_v11 = vadd.f32 %v12048_v2, %v1059_v55  ;;  %v548_v50 = vld [vmem:[%s11668_s25 + $0xad0] sm:$0xff]  ;;  %v549_v55 = vld [vmem:[%s11668_s25 + $0xad8] sm:$0xff] }
  0xa2   : > { %11147 = vmatmul.mubr.msk.bf16.gmra.mrb[68].mxu0 %vm2521_vm1, %v2299_v4  ;;  %v1833_v4 = vmax.f32 %v1321_v48, 0.0  ;;  %v1579_v12 = vadd.f32 %v12048_v2, %v1060_v56  ;;  %v1324_v13 = vadd.f32 %v12048_v2, %v805_v57  ;;  %v1061_v14 = vmul.f32 %v12040_v33, %v542_v62  ;;  %v292_v48 = vld [vmem:[%s11668_s25 + $0x2d0] sm:$0xff]  ;;  %v294_v56 = vld [vmem:[%s11668_s25 + $0x2e0] sm:$0xff]  ;;  %v295_v57 = vld [vmem:[%s11668_s25 + $0x2e8] sm:$0xff] }
  0xa3   : > { %11150 = vmatprep.mubr.msk.bf16.mxu0 %vm2521_vm1, %v2300_v9  ;;  %v1323_v9 = vadd.f32 %v12048_v2, %v804_v53  ;;  %v1325_v15 = vadd.f32 %v12048_v2, %v806_v61  ;;  %v2303_v17 = vpack.c.bf16 %v1831_v60, %v1830_v59  ;;  %v2431_v18 = vpack.c.bf16 %v2087_v0, %v2086_v63  ;;  %v550_v62 = vld [vmem:[%s11668_s25 + $0xae0] sm:$0xff] }
  0xa4   : > { %11403 = vmatmul.mubr.msk.bf16.gmra.mrb[68].mxu1 %vm2521_vm1, %v2427_v5  ;;  %v543_v5 = vld [vmem:[%s11668_s25 + $0xaa8] sm:$0xff]  ;;  %v2304_v22 = vpack.c.bf16 %v1833_v4, %v1832_v1  ;;  %v2432_v23 = vpack.c.bf16 %v2089_v7, %v2088_v6  ;;  %v1834_v24 = vmax.f32 %v1322_v8, 0.0  ;;  %v2090_v29 = vmax.f32 %v1578_v11, 0.0 }
  0xa5   : > { %11406 = vmatprep.mubr.msk.bf16.mxu1 %vm2521_vm1, %v2428_v10  ;;  %v288_v10 = vld [vmem:[%s11668_s25 + $0x2b0] sm:$0xff]  ;;  %v1062_v16 = vmul.f32 %v12040_v33, %v543_v5  ;;  %v1835_v25 = vmax.f32 %v1323_v9, 0.0  ;;  %v2091_v30 = vmax.f32 %v1579_v12, 0.0  ;;  %v1836_v31 = vmax.f32 %v1324_v13, 0.0  ;;  %v551_v5 = vld [vmem:[%s11668_s25 + $0xae8] sm:$0xff] }
  0xa6   : > { %v807_v20 = vmul.f32 %v12040_v33, %v288_v10  ;;  %v1837_v36 = vmax.f32 %v1325_v15, 0.0  ;;  %v808_v38 = vmul.f32 %v12040_v33, %v289_v19  ;;  %v1063_v3 = vmul.f32 %v12040_v33, %v544_v21 }
  0xa7   : > { %v1581_v37 = vadd.f32 %v12048_v2, %v1062_v16  ;;  %v1064_v40 = vmul.f32 %v12040_v33, %v545_v26  ;;  %v809_v41 = vmul.f32 %v12040_v33, %v290_v27  ;;  %v810_v42 = vmul.f32 %v12040_v33, %v291_v28 }
  0xa8   : > { %v1326_v39 = vadd.f32 %v12048_v2, %v807_v20  ;;  %v1066_v44 = vmul.f32 %v12040_v33, %v547_v35  ;;  %v2305_v45 = vpack.c.bf16 %v1835_v25, %v1834_v24  ;;  %v2433_v46 = vpack.c.bf16 %v2091_v30, %v2090_v29  ;;  %v552_v35 = vld [vmem:[%s11668_s25 + $0xaf0] sm:$0xff] }
  0xa9   : > { %v2306_v51 = vpack.c.bf16 %v1837_v36, %v1836_v31  ;;  %v2093_v52 = vmax.f32 %v1581_v37, 0.0  ;;  %v1327_v53 = vadd.f32 %v12048_v2, %v808_v38  ;;  %v1583_v59 = vadd.f32 %v12048_v2, %v1064_v40  ;;  %v553_v36 = vld [vmem:[%s11668_s25 + $0xaf8] sm:$0xff]  ;;  %v298_v40 = vld [vmem:[%s11668_s25 + $0x300] sm:$0xff] }
  0xaa   : > { %11151 = vmatmul.mubr.msk.bf16.gmra.mrb[72].mxu0 %vm2521_vm1, %v2301_v32  ;;  %v1580_v32 = vadd.f32 %v12048_v2, %v1061_v14  ;;  %v1328_v60 = vadd.f32 %v12048_v2, %v809_v41  ;;  %v1329_v61 = vadd.f32 %v12048_v2, %v810_v42  ;;  %v1585_v0 = vadd.f32 %v12048_v2, %v1066_v44  ;;  %v299_v41 = vld [vmem:[%s11668_s25 + $0x308] sm:$0xff] }
  0xab   : > { %11154 = vmatprep.mubr.msk.bf16.mxu0 %vm2521_vm1, %v2302_v54  ;;  %v1582_v54 = vadd.f32 %v12048_v2, %v1063_v3  ;;  %v811_v1 = vmul.f32 %v12040_v33, %v292_v48  ;;  %v812_v4 = vmul.f32 %v12040_v33, %v293_v49  ;;  %v1067_v6 = vmul.f32 %v12040_v33, %v548_v50 }
  0xac   : > { %11407 = vmatmul.mubr.msk.bf16.gmra.mrb[72].mxu1 %vm2521_vm1, %v2429_v34  ;;  %v546_v34 = vld [vmem:[%s11668_s25 + $0xac0] sm:$0xff]  ;;  %v2092_v47 = vmax.f32 %v1580_v32, 0.0  ;;  %v1068_v7 = vmul.f32 %v12040_v33, %v549_v55  ;;  %v813_v8 = vmul.f32 %v12040_v33, %v294_v56  ;;  %v814_v9 = vmul.f32 %v12040_v33, %v295_v57 }
  0xad   : > { %11410 = vmatprep.mubr.msk.bf16.mxu1 %vm2521_vm1, %v2430_v58  ;;  %v1065_v43 = vmul.f32 %v12040_v33, %v546_v34  ;;  %v1838_v58 = vmax.f32 %v1326_v39, 0.0  ;;  %v1839_v11 = vmax.f32 %v1327_v53, 0.0  ;;  %v2094_v12 = vmax.f32 %v1582_v54, 0.0 }
  0xae   : > { %v2434_v10 = vpack.c.bf16 %v2093_v52, %v2092_v47  ;;  %v1069_v13 = vmul.f32 %v12040_v33, %v550_v62  ;;  %v2095_v14 = vmax.f32 %v1583_v59, 0.0  ;;  %v1840_v15 = vmax.f32 %v1328_v60, 0.0  ;;  %v555_v47 = vld [vmem:[%s11668_s25 + $0xb08] sm:$0xff]  ;;  %v300_v60 = vld [vmem:[%s11668_s25 + $0x310] sm:$0xff] }
  0xaf   : > { %v1584_v63 = vadd.f32 %v12048_v2, %v1065_v43  ;;  %v1841_v16 = vmax.f32 %v1329_v61, 0.0  ;;  %v2097_v20 = vmax.f32 %v1585_v0, 0.0  ;;  %v1330_v21 = vadd.f32 %v12048_v2, %v811_v1  ;;  %v301_v61 = vld [vmem:[%s11668_s25 + $0x318] sm:$0xff]  ;;  %v556_v62 = vld [vmem:[%s11668_s25 + $0xb10] sm:$0xff] }
  0xb0   : > { %v1586_v24 = vadd.f32 %v12048_v2, %v1067_v6  ;;  %v1587_v25 = vadd.f32 %v12048_v2, %v1068_v7  ;;  %v1332_v26 = vadd.f32 %v12048_v2, %v813_v8  ;;  %v1333_v27 = vadd.f32 %v12048_v2, %v814_v9  ;;  %v302_v6 = vld [vmem:[%s11668_s25 + $0x320] sm:$0xff]  ;;  %v303_v7 = vld [vmem:[%s11668_s25 + $0x328] sm:$0xff] }
  0xb1   : > { %v2096_v19 = vmax.f32 %v1584_v63, 0.0  ;;  %v1588_v28 = vadd.f32 %v12048_v2, %v1069_v13  ;;  %v2307_v30 = vpack.c.bf16 %v1839_v11, %v1838_v58  ;;  %v2435_v31 = vpack.c.bf16 %v2095_v14, %v2094_v12  ;;  %v558_v12 = vld [vmem:[%s11668_s25 + $0xb20] sm:$0xff]  ;;  %v559_v13 = vld [vmem:[%s11668_s25 + $0xb28] sm:$0xff] }
  0xb2   : > { %11155 = vmatmul.mubr.msk.bf16.gmra.mrb[76].mxu0 %vm2521_vm1, %v2303_v17  ;;  %v1070_v17 = vmul.f32 %v12040_v33, %v551_v5  ;;  %v2308_v37 = vpack.c.bf16 %v1841_v16, %v1840_v15  ;;  %v1842_v3 = vmax.f32 %v1330_v21, 0.0  ;;  %v2098_v42 = vmax.f32 %v1586_v24, 0.0  ;;  %v557_v5 = vld [vmem:[%s11668_s25 + $0xb18] sm:$0xff] }
  0xb3   : > { %11158 = vmatprep.mubr.msk.bf16.mxu0 %vm2521_vm1, %v2304_v22  ;;  %v1331_v22 = vadd.f32 %v12048_v2, %v812_v4  ;;  %v2436_v38 = vpack.c.bf16 %v2097_v20, %v2096_v19  ;;  %v2099_v43 = vmax.f32 %v1587_v25, 0.0  ;;  %v1844_v44 = vmax.f32 %v1332_v26, 0.0  ;;  %v305_v19 = vld [vmem:[%s11668_s25 + $0x338] sm:$0xff] }
  0xb4   : > { %11411 = vmatmul.mubr.msk.bf16.gmra.mrb[76].mxu1 %vm2521_vm1, %v2431_v18  ;;  %v296_v18 = vld [vmem:[%s11668_s25 + $0x2f0] sm:$0xff]  ;;  %v1589_v32 = vadd.f32 %v12048_v2, %v1070_v17  ;;  %v2100_v48 = vmax.f32 %v1588_v28, 0.0  ;;  %v1071_v50 = vmul.f32 %v12040_v33, %v552_v35  ;;  %v817_v54 = vmul.f32 %v12040_v33, %v298_v40 }
  0xb5   : > { %11414 = vmatprep.mubr.msk.bf16.mxu1 %vm2521_vm1, %v2432_v23  ;;  %v297_v23 = vld [vmem:[%s11668_s25 + $0x2f8] sm:$0xff]  ;;  %v815_v29 = vmul.f32 %v12040_v33, %v296_v18  ;;  %v1843_v39 = vmax.f32 %v1331_v22, 0.0  ;;  %v818_v55 = vmul.f32 %v12040_v33, %v299_v41  ;;  %v1074_v57 = vmul.f32 %v12040_v33, %v555_v47  ;;  %v304_v18 = vld [vmem:[%s11668_s25 + $0x330] sm:$0xff] }
  0xb6   : > { %v816_v34 = vmul.f32 %v12040_v33, %v297_v23  ;;  %v2101_v52 = vmax.f32 %v1589_v32, 0.0  ;;  %v2437_v59 = vpack.c.bf16 %v2099_v43, %v2098_v42  ;;  %v1590_v1 = vadd.f32 %v12048_v2, %v1071_v50  ;;  %v561_v47 = vld [vmem:[%s11668_s25 + $0xb38] sm:$0xff] }
  0xb7   : > { %v12346_v49 = vadd.f32 %v12048_v2, %v815_v29  ;;  %v2309_v58 = vpack.c.bf16 %v1843_v39, %v1842_v3  ;;  %v1337_v11 = vadd.f32 %v12048_v2, %v818_v55  ;;  %v1593_v15 = vadd.f32 %v12048_v2, %v1074_v57 }
  0xb8   : > { %v1335_v53 = vadd.f32 %v12048_v2, %v816_v34  ;;  %v2438_v8 = vpack.c.bf16 %v2101_v52, %v2100_v48  ;;  %v819_v16 = vmul.f32 %v12040_v33, %v300_v60  ;;  %v820_v17 = vmul.f32 %v12040_v33, %v301_v61  ;;  %v306_v52 = vld [vmem:[%s11668_s25 + $0x340] sm:$0xff] }
  0xb9   : > { %v1846_v0 = vmax.f32 %v12346_v49, 0.0  ;;  %v1075_v20 = vmul.f32 %v12040_v33, %v556_v62  ;;  %v1076_v21 = vmul.f32 %v12040_v33, %v557_v5  ;;  %v821_v22 = vmul.f32 %v12040_v33, %v302_v6  ;;  %v563_v5 = vld [vmem:[%s11668_s25 + $0xb48] sm:$0xff]  ;;  %v308_v6 = vld [vmem:[%s11668_s25 + $0x350] sm:$0xff] }
  0xba   : > { %11159 = vmatmul.mubr.msk.bf16.gmra.mrb[80].mxu0 %vm2521_vm1, %v2305_v45  ;;  %v1845_v45 = vmax.f32 %v1333_v27, 0.0  ;;  %v1847_v9 = vmax.f32 %v1335_v53, 0.0  ;;  %v822_v23 = vmul.f32 %v12040_v33, %v303_v7  ;;  %v2102_v24 = vmax.f32 %v1590_v1, 0.0  ;;  %v307_v53 = vld [vmem:[%s11668_s25 + $0x348] sm:$0xff] }
  0xbb   : > { %11162 = vmatprep.mubr.msk.bf16.mxu0 %vm2521_vm1, %v2306_v51  ;;  %v1072_v51 = vmul.f32 %v12040_v33, %v553_v36  ;;  %v1077_v26 = vmul.f32 %v12040_v33, %v558_v12  ;;  %v1078_v27 = vmul.f32 %v12040_v33, %v559_v13  ;;  %v1849_v29 = vmax.f32 %v1337_v11, 0.0  ;;  %v565_v11 = vld [vmem:[%s11668_s25 + $0xb58] sm:$0xff]  ;;  %v310_v12 = vld [vmem:[%s11668_s25 + $0x360] sm:$0xff] }
  0xbc   : > { %11415 = vmatmul.mubr.msk.bf16.gmra.mrb[80].mxu1 %vm2521_vm1, %v2433_v46  ;;  %v554_v46 = vld [vmem:[%s11668_s25 + $0xb00] sm:$0xff]  ;;  %v2310_v63 = vpack.c.bf16 %v1845_v45, %v1844_v44  ;;  %v2105_v34 = vmax.f32 %v1593_v15, 0.0  ;;  %v1338_v35 = vadd.f32 %v12048_v2, %v819_v16  ;;  %v1339_v36 = vadd.f32 %v12048_v2, %v820_v17 }
  0xbd   : > { %11418 = vmatprep.mubr.msk.bf16.mxu1 %vm2521_vm1, %v2434_v10  ;;  %v1073_v56 = vmul.f32 %v12040_v33, %v554_v46  ;;  %v1591_v4 = vadd.f32 %v12048_v2, %v1072_v51  ;;  %v1336_v10 = vadd.f32 %v12048_v2, %v817_v54  ;;  %v1340_v3 = vadd.f32 %v12048_v2, %v821_v22  ;;  %v560_v46 = vld [vmem:[%s11668_s25 + $0xb30] sm:$0xff]  ;;  %v12426_v13 = vld [vmem:[%s14222_s2] ss:$0 sm:$0xff] }
  0xbe   : > { %v1341_v39 = vadd.f32 %v12048_v2, %v822_v23  ;;  %v1596_v40 = vadd.f32 %v12048_v2, %v1077_v26  ;;  %v1597_v41 = vadd.f32 %v12048_v2, %v1078_v27  ;;  %v2311_v42 = vpack.c.bf16 %v1847_v9, %v1846_v0 }
  0xbf   : > { %v1592_v14 = vadd.f32 %v12048_v2, %v1073_v56  ;;  %v2103_v25 = vmax.f32 %v1591_v4, 0.0  ;;  %v1848_v28 = vmax.f32 %v1336_v10, 0.0  ;;  %v1850_v50 = vmax.f32 %v1338_v35, 0.0  ;;  %v562_v4 = vld [vmem:[%s11668_s25 + $0xb40] sm:$0xff]  ;;  %v564_v10 = vld [vmem:[%s11668_s25 + $0xb50] sm:$0xff] }
  0xc0   : > { %v1851_v51 = vmax.f32 %v1339_v36, 0.0  ;;  %v1852_v56 = vmax.f32 %v1340_v3, 0.0  ;;  %v1853_v57 = vmax.f32 %v1341_v39, 0.0  ;;  %v1080_v60 = vmul.f32 %v12040_v33, %v561_v47 }
  0xc1   : > { %v2104_v32 = vmax.f32 %v1592_v14, 0.0  ;;  %v2439_v43 = vpack.c.bf16 %v2103_v25, %v2102_v24  ;;  %v2312_v48 = vpack.c.bf16 %v1849_v29, %v1848_v28  ;;  %v312_v29 = vld [vmem:[%s11668_s25 + $0x370] sm:$0xff] }
  0xc2   : > { %11163 = vmatmul.mubr.msk.bf16.gmra.mrb[84].mxu0 %vm2521_vm1, %v2307_v30  ;;  %v823_v30 = vmul.f32 %v12040_v33, %v304_v18  ;;  %v2313_v7 = vpack.c.bf16 %v1851_v51, %v1850_v50  ;;  %v2314_v9 = vpack.c.bf16 %v1853_v57, %v1852_v56  ;;  %v12432_v15 = vadd.f32 %v12426_v13, %v1080_v60  ;;  %v311_v18 = vld [vmem:[%s11668_s25 + $0x368] sm:$0xff] }
  0xc3   : > { %11166 = vmatprep.mubr.msk.bf16.mxu0 %vm2521_vm1, %v2308_v37  ;;  %v1594_v37 = vadd.f32 %v12048_v2, %v1075_v20  ;;  %v2440_v49 = vpack.c.bf16 %v2105_v34, %v2104_v32  ;;  %v567_v20 = vld [vmem:[%s11668_s25 + $0xb68] sm:$0xff] }
  0xc4   : > { %11419 = vmatmul.mubr.msk.bf16.gmra.mrb[84].mxu1 %vm2521_vm1, %v2435_v31  ;;  %v824_v31 = vmul.f32 %v12040_v33, %v305_v19  ;;  %v1342_v44 = vadd.f32 %v12048_v2, %v823_v30  ;;  %v566_v19 = vld [vmem:[%s11668_s25 + $0xb60] sm:$0xff]  ;;  %v313_v30 = vld [vmem:[%s11668_s25 + $0x378] sm:$0xff]  ;;  %v315_v60 = vld [vmem:[%s11668_s25 + $0x388] sm:$0xff] }
  0xc5   : > { %11422 = vmatprep.mubr.msk.bf16.mxu1 %vm2521_vm1, %v2436_v38  ;;  %v1595_v38 = vadd.f32 %v12048_v2, %v1076_v21  ;;  %v2106_v54 = vmax.f32 %v1594_v37, 0.0  ;;  %v2111_v37 = vmax.f32 %v12432_v15, 0.0 }
  0xc6   : > { %v1343_v45 = vadd.f32 %v12048_v2, %v824_v31  ;;  %v1079_v2 = vmul.f32 %v12040_v33, %v560_v46  ;;  %v1854_v61 = vmax.f32 %v1342_v44, 0.0  ;;  %v309_v33 = vld [vmem:[%s11668_s25 + $0x358] sm:$0xff] }
  0xc7   : > { %v2107_v55 = vmax.f32 %v1595_v38, 0.0  ;;  %v569_v44 = vld [vmem:[%s11668_s25 + $0xb78] sm:$0xff] }
  0xc8   : > { %v1855_v62 = vmax.f32 %v1343_v45, 0.0  ;;  %v12429_v14 = vadd.f32 %v12426_v13, %v1079_v2 }
  0xca   : > { %11167 = vmatmul.mubr.msk.bf16.gmra.mrb[88].mxu0 %vm2521_vm1, %v2309_v58  ;;  %v2108_v58 = vmax.f32 %v1596_v40, 0.0  ;;  %v12440_v22 = vpack.c.bf16 %v1855_v62, %v1854_v61  ;;  %v2110_v36 = vmax.f32 %v12429_v14, 0.0  ;;  %v571_v14 = vld [vmem:[%s11668_s25 + $0xb88] sm:$0xff] }
  0xcb   : > { %11170 = vmatprep.mubr.msk.bf16.mxu0 %vm2521_vm1, %v2310_v63  ;;  %v12409_v63 = vld [vmem:[%s14221_s1] ss:$0 sm:$0xff] }
  0xcc   : > { %11423 = vmatmul.mubr.msk.bf16.gmra.mrb[88].mxu1 %vm2521_vm1, %v2437_v59  ;;  %v2109_v59 = vmax.f32 %v1597_v41, 0.0  ;;  %v825_v0 = vmul.f32 %v12409_v63, %v306_v52  ;;  %v826_v1 = vmul.f32 %v12409_v63, %v307_v53  ;;  %v1081_v16 = vmul.f32 %v12409_v63, %v562_v4 }
  0xcd   : > { %11426 = vmatprep.mubr.msk.bf16.mxu1 %vm2521_vm1, %v2438_v8  ;;  %v2441_v8 = vpack.c.bf16 %v2107_v55, %v2106_v54  ;;  %v1082_v17 = vmul.f32 %v12409_v63, %v563_v5  ;;  %v827_v25 = vmul.f32 %v12409_v63, %v308_v6  ;;  %v828_v26 = vmul.f32 %v12409_v63, %v309_v33 }
  0xce   : > { %v2442_v21 = vpack.c.bf16 %v2109_v59, %v2108_v58  ;;  %v1344_v23 = vadd.f32 %v12426_v13, %v825_v0  ;;  %v1345_v24 = vadd.f32 %v12426_v13, %v826_v1  ;;  %v1083_v27 = vmul.f32 %v12409_v63, %v564_v10 }
  0xcf   : > { %v1084_v28 = vmul.f32 %v12409_v63, %v565_v11  ;;  %v829_v31 = vmul.f32 %v12409_v63, %v310_v12  ;;  %v830_v32 = vmul.f32 %v12409_v63, %v311_v18  ;;  %v1085_v34 = vmul.f32 %v12409_v63, %v566_v19  ;;  %v316_v19 = vld [vmem:[%s11668_s25 + $0x390] sm:$0xff] }
  0xd0   : > { %v1086_v35 = vmul.f32 %v12409_v63, %v567_v20  ;;  %v1600_v38 = vadd.f32 %v12426_v13, %v1081_v16  ;;  %v1601_v3 = vadd.f32 %v12426_v13, %v1082_v17  ;;  %v1856_v39 = vmax.f32 %v1344_v23, 0.0  ;;  %v317_v23 = vld [vmem:[%s11668_s25 + $0x398] sm:$0xff] }
  0xd1   : > { %v1857_v40 = vmax.f32 %v1345_v24, 0.0  ;;  %v831_v41 = vmul.f32 %v12409_v63, %v312_v29  ;;  %v1346_v45 = vadd.f32 %v12426_v13, %v827_v25  ;;  %v1347_v46 = vadd.f32 %v12426_v13, %v828_v26  ;;  %v572_v24 = vld [vmem:[%s11668_s25 + $0xb90] sm:$0xff]  ;;  %v573_v29 = vld [vmem:[%s11668_s25 + $0xb98] sm:$0xff] }
  0xd2   : > { %11171 = vmatmul.mubr.msk.bf16.gmra.mrb[92].mxu0 %vm2521_vm1, %v2311_v42  ;;  %v832_v42 = vmul.f32 %v12409_v63, %v313_v30  ;;  %v1602_v47 = vadd.f32 %v12426_v13, %v1083_v27  ;;  %v1348_v50 = vadd.f32 %v12426_v13, %v829_v31  ;;  %v1349_v51 = vadd.f32 %v12426_v13, %v830_v32  ;;  %v318_v30 = vld [vmem:[%s11668_s25 + $0x3a0] sm:$0xff]  ;;  %v319_v31 = vld [vmem:[%s11668_s25 + $0x3a8] sm:$0xff] }
  0xd3   : > { %11174 = vmatprep.mubr.msk.bf16.mxu0 %vm2521_vm1, %v2312_v48  ;;  %v1603_v48 = vadd.f32 %v12426_v13, %v1084_v28  ;;  %v1604_v52 = vadd.f32 %v12426_v13, %v1085_v34  ;;  %v1605_v53 = vadd.f32 %v12426_v13, %v1086_v35  ;;  %v2112_v54 = vmax.f32 %v1600_v38, 0.0  ;;  %v320_v38 = vld [vmem:[%s11668_s25 + $0x3b0] sm:$0xff] }
  0xd4   : > { %11427 = vmatmul.mubr.msk.bf16.gmra.mrb[92].mxu1 %vm2521_vm1, %v2439_v43  ;;  %v568_v43 = vld [vmem:[%s11668_s25 + $0xb70] sm:$0xff]  ;;  %v2113_v55 = vmax.f32 %v1601_v3, 0.0  ;;  %v1088_v57 = vmul.f32 %v12409_v63, %v569_v44  ;;  %v2316_v58 = vpack.c.bf16 %v1857_v40, %v1856_v39  ;;  %v1350_v59 = vadd.f32 %v12426_v13, %v831_v41 }
  0xd5   : > { %11430 = vmatprep.mubr.msk.bf16.mxu1 %vm2521_vm1, %v2440_v49  ;;  %v314_v49 = vld [vmem:[%s11668_s25 + $0x380] sm:$0xff]  ;;  %v1087_v56 = vmul.f32 %v12409_v63, %v568_v43  ;;  %v1351_v2 = vadd.f32 %v12426_v13, %v832_v42  ;;  %v1858_v62 = vmax.f32 %v1346_v45, 0.0  ;;  %v1859_v0 = vmax.f32 %v1347_v46, 0.0  ;;  %v321_v42 = vld [vmem:[%s11668_s25 + $0x3b8] sm:$0xff] }
  0xd6   : > { %v833_v61 = vmul.f32 %v12409_v63, %v314_v49  ;;  %v2114_v1 = vmax.f32 %v1602_v47, 0.0  ;;  %v2115_v4 = vmax.f32 %v1603_v48, 0.0  ;;  %v1860_v5 = vmax.f32 %v1348_v50, 0.0  ;;  %v576_v47 = vld [vmem:[%s11668_s25 + $0xbb0] sm:$0xff]  ;;  %v577_v48 = vld [vmem:[%s11668_s25 + $0xbb8] sm:$0xff] }
  0xd7   : > { %v1861_v6 = vmax.f32 %v1349_v51, 0.0  ;;  %v2116_v33 = vmax.f32 %v1604_v52, 0.0  ;;  %v1606_v10 = vadd.f32 %v12426_v13, %v1087_v56  ;;  %v1607_v11 = vadd.f32 %v12426_v13, %v1088_v57 }
  0xd8   : > { %v834_v12 = vmul.f32 %v12409_v63, %v315_v60  ;;  %v2444_v15 = vpack.c.bf16 %v2113_v55, %v2112_v54  ;;  %v1862_v16 = vmax.f32 %v1350_v59, 0.0  ;;  %v1863_v17 = vmax.f32 %v1351_v2, 0.0  ;;  %v322_v60 = vld [vmem:[%s11668_s25 + $0x3c0] sm:$0xff] }
  0xd9   : > { %v1352_v18 = vadd.f32 %v12426_v13, %v833_v61  ;;  %v2317_v20 = vpack.c.bf16 %v1859_v0, %v1858_v62  ;;  %v2445_v25 = vpack.c.bf16 %v2115_v4, %v2114_v1  ;;  %v2318_v26 = vpack.c.bf16 %v1861_v6, %v1860_v5 }
  0xda   : > { %11175 = vmatmul.mubr.msk.bf16.gmra.mrb[96].mxu0 %vm2521_vm1, %v2313_v7  ;;  %v2117_v7 = vmax.f32 %v1605_v53, 0.0  ;;  %v1090_v28 = vmul.f32 %v12409_v63, %v571_v14  ;;  %v2119_v32 = vmax.f32 %v1607_v11, 0.0  ;;  %v1353_v34 = vadd.f32 %v12426_v13, %v834_v12  ;;  %v578_v12 = vld [vmem:[%s11668_s25 + $0xbc0] sm:$0xff] }
  0xdb   : > { %11178 = vmatprep.mubr.msk.bf16.mxu0 %vm2521_vm1, %v2314_v9  ;;  %v2443_v9 = vpack.c.bf16 %v2111_v37, %v2110_v36  ;;  %v835_v35 = vmul.f32 %v12409_v63, %v316_v19  ;;  %v574_v36 = vld [vmem:[%s11668_s25 + $0xba0] sm:$0xff]  ;;  %v575_v37 = vld [vmem:[%s11668_s25 + $0xba8] sm:$0xff]  ;;  %v12505_v3 = vpack.c.bf16 %v1863_v17, %v1862_v16  ;;  %v1864_v39 = vmax.f32 %v1352_v18, 0.0 }
  0xdc   : > { %11431 = vmatmul.mubr.msk.bf16.gmra.mrb[96].mxu1 %vm2521_vm1, %v2441_v8  ;;  %v570_v8 = vld [vmem:[%s11668_s25 + $0xb80] sm:$0xff]  ;;  %v2446_v27 = vpack.c.bf16 %v2117_v7, %v2116_v33  ;;  %v836_v40 = vmul.f32 %v12409_v63, %v317_v23  ;;  %v1091_v41 = vmul.f32 %v12409_v63, %v572_v24  ;;  %v1092_v44 = vmul.f32 %v12409_v63, %v573_v29  ;;  %v323_v7 = vld [vmem:[%s11668_s25 + $0x3c8] sm:$0xff] }
  0xdd   : > { %11434 = vmatprep.mubr.msk.bf16.mxu1 %vm2521_vm1, %v2442_v21  ;;  %v1089_v21 = vmul.f32 %v12409_v63, %v570_v8  ;;  %v837_v45 = vmul.f32 %v12409_v63, %v318_v30  ;;  %v838_v46 = vmul.f32 %v12409_v63, %v319_v31  ;;  %v1609_v49 = vadd.f32 %v12426_v13, %v1090_v28  ;;  %v579_v19 = vld [vmem:[%s11668_s25 + $0xbc8] sm:$0xff] }
  0xde   : > { %v1093_v50 = vmul.f32 %v12409_v63, %v574_v36  ;;  %v1094_v51 = vmul.f32 %v12409_v63, %v575_v37  ;;  %v839_v52 = vmul.f32 %v12409_v63, %v320_v38  ;;  %v1865_v54 = vmax.f32 %v1353_v34, 0.0 }
  0xdf   : > { %v12511_v43 = vadd.f32 %v12426_v13, %v1089_v21  ;;  %v1354_v55 = vadd.f32 %v12426_v13, %v835_v35  ;;  %v840_v56 = vmul.f32 %v12409_v63, %v321_v42  ;;  %v1355_v57 = vadd.f32 %v12426_v13, %v836_v40 }
  0xe0   : > { %v1095_v59 = vmul.f32 %v12409_v63, %v576_v47  ;;  %v1096_v2 = vmul.f32 %v12409_v63, %v577_v48  ;;  %v1611_v62 = vadd.f32 %v12426_v13, %v1092_v44  ;;  %v1356_v0 = vadd.f32 %v12426_v13, %v837_v45 }
  0xe1   : > { %v2120_v61 = vmax.f32 %v12511_v43, 0.0  ;;  %v1357_v1 = vadd.f32 %v12426_v13, %v838_v46  ;;  %v2121_v4 = vmax.f32 %v1609_v49, 0.0  ;;  %v1612_v5 = vadd.f32 %v12426_v13, %v1093_v50  ;;  %v324_v43 = vld [vmem:[%s11668_s25 + $0x3d0] sm:$0xff]  ;;  %v325_v49 = vld [vmem:[%s11668_s25 + $0x3d8] sm:$0xff] }
  0xe2   : > { %11179 = vmatmul.mubr.msk.bf16.gmra.mrb[100].mxu0 %vm2521_vm1, %v12440_v22  ;;  %v2118_v22 = vmax.f32 %v1606_v10, 0.0  ;;  %v1613_v6 = vadd.f32 %v12426_v13, %v1094_v51  ;;  %v1358_v33 = vadd.f32 %v12426_v13, %v839_v52  ;;  %v2320_v8 = vpack.c.bf16 %v1865_v54, %v1864_v39  ;;  %v580_v50 = vld [vmem:[%s11668_s25 + $0xbd0] sm:$0xff]  ;;  %v581_v51 = vld [vmem:[%s11668_s25 + $0xbd8] sm:$0xff] }
  0xe3   : > { %11182 = vmatprep.mubr.msk.bf16.mxu0 %vm2521_vm1, %v2316_v58  ;;  %v1610_v58 = vadd.f32 %v12426_v13, %v1091_v41  ;;  %v1359_v10 = vadd.f32 %v12426_v13, %v840_v56  ;;  %v841_v11 = vmul.f32 %v12409_v63, %v322_v60  ;;  %v1614_v17 = vadd.f32 %v12426_v13, %v1095_v59  ;;  %v326_v56 = vld [vmem:[%s11668_s25 + $0x3e0] sm:$0xff] }
  0xe4   : > { %11435 = vmatmul.mubr.msk.bf16.gmra.mrb[100].mxu1 %vm2521_vm1, %v2443_v9  ;;  %v12522_v53 = vpack.c.bf16 %v2119_v32, %v2118_v22  ;;  %v1866_v9 = vmax.f32 %v1354_v55, 0.0  ;;  %v1615_v18 = vadd.f32 %v12426_v13, %v1096_v2  ;;  %v2123_v21 = vmax.f32 %v1611_v62, 0.0  ;;  %v583_v62 = vld [vmem:[%s11668_s25 + $0xbe8] sm:$0xff] }
  0xe5   : > { %11438 = vmatprep.mubr.msk.bf16.mxu1 %vm2521_vm1, %v2444_v15  ;;  %v1867_v15 = vmax.f32 %v1355_v57, 0.0  ;;  %v2122_v16 = vmax.f32 %v1610_v58, 0.0  ;;  %v1868_v23 = vmax.f32 %v1356_v0, 0.0  ;;  %v1869_v24 = vmax.f32 %v1357_v1, 0.0  ;;  %v327_v57 = vld [vmem:[%s11668_s25 + $0x3e8] sm:$0xff]  ;;  %v582_v58 = vld [vmem:[%s11668_s25 + $0xbe0] sm:$0xff] }
  0xe6   : > { %v2124_v28 = vmax.f32 %v1612_v5, 0.0  ;;  %v2125_v29 = vmax.f32 %v1613_v6, 0.0  ;;  %v1870_v30 = vmax.f32 %v1358_v33, 0.0  ;;  %v1097_v31 = vmul.f32 %v12409_v63, %v578_v12  ;;  %v328_v0 = vld [vmem:[%s11668_s25 + $0x3f0] sm:$0xff]  ;;  %v329_v1 = vld [vmem:[%s11668_s25 + $0x3f8] sm:$0xff] }
  0xe7   : > { %v1871_v35 = vmax.f32 %v1359_v10, 0.0  ;;  %v12558_v36 = vadd.f32 %v12426_v13, %v841_v11  ;;  %v1098_v37 = vmul.f32 %v12409_v63, %v579_v19  ;;  %v2448_v40 = vpack.c.bf16 %v2121_v4, %v2120_v61 }
  0xe8   : > { %v2126_v41 = vmax.f32 %v1614_v17, 0.0  ;;  %v2127_v42 = vmax.f32 %v1615_v18, 0.0  ;;  %v2321_v46 = vpack.c.bf16 %v1867_v15, %v1866_v9  ;;  %v12565_v47 = vpack.c.bf16 %v2123_v21, %v2122_v16 }
  0xe9   : > { %v2322_v54 = vpack.c.bf16 %v1869_v24, %v1868_v23  ;;  %v12578_v55 = vadd.f32 %v12426_v13, %v1097_v31  ;;  %v12586_v59 = vpack.c.bf16 %v1871_v35, %v1870_v30  ;;  %v1872_v2 = vmax.f32 %v12558_v36, 0.0 }
  0xea   : > { %11183 = vmatmul.mubr.msk.bf16.gmra.mrb[104].mxu0 %vm2521_vm1, %v2317_v20  ;;  %v12590_v60 = vadd.f32 %v12426_v13, %v1098_v37  ;;  %v843_v61 = vmul.f32 %v12409_v63, %v324_v43  ;;  %v12598_v5 = vpack.c.bf16 %v2127_v42, %v2126_v41  ;;  %v1099_v6 = vmul.f32 %v12409_v63, %v580_v50 }
  0xeb   : > { %11186 = vmatprep.mubr.msk.bf16.mxu0 %vm2521_vm1, %v2318_v26  ;;  %v1100_v33 = vmul.f32 %v12409_v63, %v581_v51  ;;  %v845_v11 = vmul.f32 %v12409_v63, %v326_v56  ;;  %v846_v12 = vmul.f32 %v12409_v63, %v327_v57  ;;  %v2128_v17 = vmax.f32 %v12578_v55, 0.0 }
  0xec   : > { %11439 = vmatmul.mubr.msk.bf16.gmra.mrb[104].mxu1 %vm2521_vm1, %v2445_v25  ;;  %v842_v25 = vmul.f32 %v12409_v63, %v323_v7  ;;  %v584_v7 = vld [vmem:[%s11668_s25 + $0xbf0] sm:$0xff]  ;;  %v1102_v18 = vmul.f32 %v12409_v63, %v583_v62  ;;  %v847_v19 = vmul.f32 %v12409_v63, %v328_v0  ;;  %v1618_v31 = vadd.f32 %v12426_v13, %v1099_v6  ;;  %v587_v62 = vld [vmem:[%s11668_s25 + $0xc08] sm:$0xff] }
  0xed   : > { %v11080_v14 = vpop.f32.mrb[0].mxu0  ;;  %11442 = vmatprep.mubr.msk.bf16.mxu1 %vm2521_vm1, %v2446_v27  ;;  %v1364_v36 = vadd.f32 %v12426_v13, %v845_v11  ;;  %v1365_v37 = vadd.f32 %v12426_v13, %v846_v12  ;;  %v332_v11 = vld [vmem:[%s11668_s25 + $0x410] sm:$0xff]  ;;  %v1106_v55 = vmul.f32 %v12409_v63, %v587_v62 }
  0xee   : > { %v3328_v20 = vpop.f32.mrb[1].mxu0  ;;  %v12568_v48 = vadd.f32 %v12426_v13, %v842_v25  ;;  %v12614_v25 = vadd.f32 %v12426_v13, %v843_v61  ;;  %v1621_v41 = vadd.f32 %v12426_v13, %v1102_v18  ;;  %v1366_v42 = vadd.f32 %v12426_v13, %v847_v19  ;;  %v333_v19 = vld [vmem:[%s11668_s25 + $0x418] sm:$0xff] }
  0xef   : > { %v11336_v26 = vpop.f32.mrb[0].mxu1  ;;  %v11081_v27 = vpop.f32.mrb[2].mxu0  ;;  %v2130_v57 = vmax.f32 %v1618_v31, 0.0  ;;  %v1877_v61 = vmax.f32 %v1365_v37, 0.0  ;;  %v590_v31 = vld [vmem:[%s11668_s25 + $0xc20] sm:$0xff]  ;;  %v336_v37 = vld [vmem:[%s11668_s25 + $0x430] sm:$0xff] }
  0xf0   : > { %v4352_v22 = vpop.f32.mrb[1].mxu1  ;;  %v9292_v32 = vpack.c.bf16 %v11081_v27, %v11080_v14  ;;  %v3331_v34 = vpop.f32.mrb[3].mxu0  ;;  %v1873_v10 = vmax.f32 %v12568_v48, 0.0  ;;  %v1101_v14 = vmul.f32 %v12409_v63, %v582_v58  ;;  %v1874_v51 = vmax.f32 %v12614_v25, 0.0  ;;  %v589_v25 = vld [vmem:[%s11668_s25 + $0xc18] sm:$0xff] }
  0xf1   : > { %v11337_v38 = vpop.f32.mrb[2].mxu1  ;;  %v9287_v39 = vpack.c.bf16 %v3331_v34, %v3328_v20  ;;  %v848_v20 = vmul.f32 %v12409_v63, %v329_v1 }
  0xf2   : > { %10564 = vst [vmem:[%s12554_s13 + $0x8] sm:$0xff] %v9292_v32   ;;  %v9932_v44 = vpack.c.bf16 %v11337_v38, %v11336_v26  ;;  %v4355_v45 = vpop.f32.mrb[3].mxu1  ;;  %11187 = vmatmul.mubr.msk.bf16.gmra.mrb[108].mxu0 %vm2521_vm1, %v12505_v3  ;;  %v12575_v3 = vpack.c.bf16 %v2125_v29, %v2124_v28  ;;  %v1103_v26 = vmul.f32 %v12409_v63, %v584_v7  ;;  %v330_v32 = vld [vmem:[%s11668_s25 + $0x400] sm:$0xff] }
  0xf3   : > { %9288 = vst [vmem:[%s12554_s13] sm:$0xff] %v9287_v39   ;;  %v9927_v52 = vpack.c.bf16 %v4355_v45, %v4352_v22  ;;  %11190 = vmatprep.mubr.msk.bf16.mxu0 %vm2521_vm1, %v2320_v8  ;;  %v585_v8 = vld [vmem:[%s11668_s25 + $0xbf8] sm:$0xff]  ;;  %v1619_v22 = vadd.f32 %v12426_v13, %v1100_v33  ;;  %v1620_v38 = vadd.f32 %v12426_v13, %v1101_v14  ;;  %v331_v39 = vld [vmem:[%s11668_s25 + $0x408] sm:$0xff] }
  0xf4   : > { %10692 = vst [vmem:[%s12554_s13 + $0x408] sm:$0xff] %v9932_v44   ;;  %11443 = vmatmul.mubr.msk.bf16.gmra.mrb[108].mxu1 %vm2521_vm1, %v12522_v53  ;;  %v844_v53 = vmul.f32 %v12409_v63, %v325_v49  ;;  %v1104_v27 = vmul.f32 %v12409_v63, %v585_v8  ;;  %v1367_v43 = vadd.f32 %v12426_v13, %v848_v20  ;;  %v2129_v44 = vmax.f32 %v12590_v60, 0.0 }
  0xf5   : > { %10691 = vst [vmem:[%s12554_s13 + $0x400] sm:$0xff] %v9927_v52   ;;  %v11084_v4 = vpop.f32.mrb[4].mxu0  ;;  %11446 = vmatprep.mubr.msk.bf16.mxu1 %vm2521_vm1, %v2448_v40  ;;  %v1622_v45 = vadd.f32 %v12426_v13, %v1103_v26  ;;  %v849_v48 = vmul.f32 %v12409_v63, %v330_v32  ;;  %v2324_v50 = vpack.c.bf16 %v1873_v10, %v1872_v2  ;;  %v2131_v58 = vmax.f32 %v1619_v22, 0.0 }
  0xf6   : > { %v3344_v9 = vpop.f32.mrb[5].mxu0  ;;  %v1363_v30 = vadd.f32 %v12426_v13, %v844_v53  ;;  %v1876_v60 = vmax.f32 %v1364_v36, 0.0  ;;  %v2133_v53 = vmax.f32 %v1621_v41, 0.0  ;;  %v1879_v2 = vmax.f32 %v1367_v43, 0.0  ;;  %v591_v36 = vld [vmem:[%s11668_s25 + $0xc28] sm:$0xff]  ;;  %v592_v43 = vld [vmem:[%s11668_s25 + $0xc30] sm:$0xff] }
  0xf7   : > { %v11340_v15 = vpop.f32.mrb[4].mxu1  ;;  %v11085_v16 = vpop.f32.mrb[6].mxu0  ;;  %v2134_v8 = vmax.f32 %v1622_v45, 0.0  ;;  %v12648_v10 = vadd.f32 %v12426_v13, %v849_v48 }
  0xf8   : > { %v4368_v21 = vpop.f32.mrb[5].mxu1  ;;  %v9302_v23 = vpack.c.bf16 %v11085_v16, %v11084_v4  ;;  %v3347_v24 = vpop.f32.mrb[7].mxu0  ;;  %v1875_v52 = vmax.f32 %v1363_v30, 0.0  ;;  %v2132_v4 = vmax.f32 %v1620_v38, 0.0  ;;  %v335_v30 = vld [vmem:[%s11668_s25 + $0x428] sm:$0xff]  ;;  %v337_v38 = vld [vmem:[%s11668_s25 + $0x438] sm:$0xff] }
  0xf9   : > { %v11341_v28 = vpop.f32.mrb[6].mxu1  ;;  %v9297_v29 = vpack.c.bf16 %v3347_v24, %v3344_v9  ;;  %v12659_v24 = vpack.c.bf16 %v2131_v58, %v2130_v57  ;;  %v856_v57 = vmul.f32 %v12409_v63, %v337_v38 }
  0xfa   : > { %10566 = vst [vmem:[%s12554_s13 + $0x18] sm:$0xff] %v9302_v23   ;;  %v9942_v34 = vpack.c.bf16 %v11341_v28, %v11340_v15  ;;  %v4371_v35 = vpop.f32.mrb[7].mxu1  ;;  %11191 = vmatmul.mubr.msk.bf16.gmra.mrb[112].mxu0 %vm2521_vm1, %v2321_v46  ;;  %v1623_v46 = vadd.f32 %v12426_v13, %v1104_v27  ;;  %v2452_v15 = vpack.c.bf16 %v2129_v44, %v2128_v17  ;;  %v588_v17 = vld [vmem:[%s11668_s25 + $0xc10] sm:$0xff]  ;;  %v593_v44 = vld [vmem:[%s11668_s25 + $0xc38] sm:$0xff] }
  0xfb   : > { %10565 = vst [vmem:[%s12554_s13 + $0x10] sm:$0xff] %v9297_v29   ;;  %v9937_v40 = vpack.c.bf16 %v4371_v35, %v4368_v21  ;;  %11194 = vmatprep.mubr.msk.bf16.mxu0 %vm2521_vm1, %v2322_v54  ;;  %v586_v54 = vld [vmem:[%s11668_s25 + $0xc00] sm:$0xff]  ;;  %v2325_v23 = vpack.c.bf16 %v1875_v52, %v1874_v51  ;;  %v2326_v27 = vpack.c.bf16 %v1877_v61, %v1876_v60 }
  0xfc   : > { %10694 = vst [vmem:[%s12554_s13 + $0x418] sm:$0xff] %v9942_v34   ;;  %11447 = vmatmul.mubr.msk.bf16.gmra.mrb[112].mxu1 %vm2521_vm1, %v12565_v47  ;;  %v850_v47 = vmul.f32 %v12409_v63, %v331_v39  ;;  %v2135_v9 = vmax.f32 %v1623_v46, 0.0  ;;  %v1105_v18 = vmul.f32 %v12409_v63, %v586_v54  ;;  %v12666_v28 = vpack.c.bf16 %v2133_v53, %v2132_v4  ;;  %v334_v29 = vld [vmem:[%s11668_s25 + $0x420] sm:$0xff] }
  0xfd   : > { %10693 = vst [vmem:[%s12554_s13 + $0x410] sm:$0xff] %v9937_v40   ;;  %v11088_v49 = vpop.f32.mrb[8].mxu0  ;;  %11450 = vmatprep.mubr.msk.bf16.mxu1 %vm2521_vm1, %v12575_v3  ;;  %v1878_v3 = vmax.f32 %v1366_v42, 0.0  ;;  %v1880_v34 = vmax.f32 %v12648_v10, 0.0  ;;  %v852_v35 = vmul.f32 %v12409_v63, %v333_v19  ;;  %v1108_v42 = vmul.f32 %v12409_v63, %v589_v25 }
  0xfe   : > { %v3360_v56 = vpop.f32.mrb[9].mxu0  ;;  %v1369_v16 = vadd.f32 %v12426_v13, %v850_v47  ;;  %v12677_v32 = vpack.c.bf16 %v2135_v9, %v2134_v8  ;;  %v12687_v41 = vadd.f32 %v12426_v13, %v1105_v18  ;;  %v12694_v46 = vadd.f32 %v12426_v13, %v1106_v55 }
  0xff   : > { %v11344_v0 = vpop.f32.mrb[8].mxu1  ;;  %v11089_v1 = vpop.f32.mrb[10].mxu0  ;;  %v12675_v22 = vpack.c.bf16 %v1879_v2, %v1878_v3  ;;  %v853_v48 = vmul.f32 %v12409_v63, %v334_v29  ;;  %v1110_v54 = vmul.f32 %v12409_v63, %v591_v36  ;;  %v12706_v62 = vadd.f32 %v12426_v13, %v852_v35  ;;  %v595_v35 = vld [vmem:[%s11668_s25 + $0xc48] sm:$0xff] }
 0x100   : > { %v4384_v6 = vpop.f32.mrb[9].mxu1  ;;  %v9312_v33 = vpack.c.bf16 %v11089_v1, %v11088_v49  ;;  %v3363_v7 = vpop.f32.mrb[11].mxu0  ;;  %v1881_v40 = vmax.f32 %v1369_v16, 0.0  ;;  %v854_v49 = vmul.f32 %v12409_v63, %v335_v30  ;;  %v1112_v1 = vmul.f32 %v12409_v63, %v593_v44 }
 0x101   : > { %v11345_v12 = vpop.f32.mrb[10].mxu1  ;;  %v9307_v14 = vpack.c.bf16 %v3363_v7, %v3360_v56  ;;  %v855_v56 = vmul.f32 %v12409_v63, %v336_v37  ;;  %v1372_v9 = vadd.f32 %v12426_v13, %v853_v48  ;;  %v1375_v18 = vadd.f32 %v12426_v13, %v856_v57 }
 0x102   : > { %10568 = vst [vmem:[%s12554_s13 + $0x28] sm:$0xff] %v9312_v33   ;;  %v9952_v20 = vpack.c.bf16 %v11345_v12, %v11344_v0  ;;  %v4387_v21 = vpop.f32.mrb[11].mxu1  ;;  %11195 = vmatmul.mubr.msk.bf16.gmra.mrb[116].mxu0 %vm2521_vm1, %v12586_v59  ;;  %v851_v59 = vmul.f32 %v12409_v63, %v332_v11  ;;  %v1111_v0 = vmul.f32 %v12409_v63, %v592_v43  ;;  %v338_v33 = vld [vmem:[%s11668_s25 + $0x440] sm:$0xff]  ;;  %v339_v12 = vld [vmem:[%s11668_s25 + $0x448] sm:$0xff]  ;;  %v2136_v19 = vmax.f32 %v12687_v41, 0.0 }
 0x103   : > { %10567 = vst [vmem:[%s12554_s13 + $0x20] sm:$0xff] %v9307_v14   ;;  %v9947_v26 = vpack.c.bf16 %v4387_v21, %v4384_v6  ;;  %11198 = vmatprep.mubr.msk.bf16.mxu0 %vm2521_vm1, %v2324_v50  ;;  %v1109_v50 = vmul.f32 %v12409_v63, %v590_v31  ;;  %v12710_v3 = vpack.c.bf16 %v1881_v40, %v1880_v34  ;;  %v1884_v31 = vmax.f32 %v1372_v9, 0.0  ;;  %v599_v9 = vld [vmem:[%s11668_s25 + $0xc68] sm:$0xff] }
 0x104   : > { %10696 = vst [vmem:[%s12554_s13 + $0x428] sm:$0xff] %v9952_v20   ;;  %11451 = vmatmul.mubr.msk.bf16.gmra.mrb[116].mxu1 %vm2521_vm1, %v12598_v5  ;;  %v1107_v5 = vmul.f32 %v12409_v63, %v588_v17  ;;  %v12700_v47 = vadd.f32 %v12426_v13, %v851_v59  ;;  %v1627_v6 = vadd.f32 %v12426_v13, %v1108_v42  ;;  %v2137_v17 = vmax.f32 %v12694_v46, 0.0  ;;  %v340_v46 = vld [vmem:[%s11668_s25 + $0x450] sm:$0xff] }
 0x105   : > { %10695 = vst [vmem:[%s12554_s13 + $0x420] sm:$0xff] %v9947_v26   ;;  %v11092_v39 = vpop.f32.mrb[12].mxu0  ;;  %11454 = vmatprep.mubr.msk.bf16.mxu1 %vm2521_vm1, %v2452_v15  ;;  %v1373_v10 = vadd.f32 %v12426_v13, %v854_v49  ;;  %v1628_v11 = vadd.f32 %v12426_v13, %v1109_v50  ;;  %v1629_v15 = vadd.f32 %v12426_v13, %v1110_v54  ;;  %v1887_v40 = vmax.f32 %v1375_v18, 0.0  ;;  %v600_v18 = vld [vmem:[%s11668_s25 + $0xc70] sm:$0xff] }
 0x106   : > { %v3376_v45 = vpop.f32.mrb[13].mxu0  ;;  %v1626_v2 = vadd.f32 %v12426_v13, %v1107_v5  ;;  %v1374_v16 = vadd.f32 %v12426_v13, %v855_v56  ;;  %v1630_v20 = vadd.f32 %v12426_v13, %v1111_v0  ;;  %v1631_v21 = vadd.f32 %v12426_v13, %v1112_v1 }
 0x107   : > { %v11348_v51 = vpop.f32.mrb[12].mxu1  ;;  %v11093_v52 = vpop.f32.mrb[14].mxu0  ;;  %v1882_v25 = vmax.f32 %v12700_v47, 0.0  ;;  %v858_v26 = vmul.f32 %v12409_v63, %v339_v12  ;;  %v2139_v30 = vmax.f32 %v1627_v6, 0.0  ;;  %v1885_v34 = vmax.f32 %v1373_v10, 0.0  ;;  %v341_v47 = vld [vmem:[%s11668_s25 + $0x458] sm:$0xff] }
 0x108   : > { %v4400_v58 = vpop.f32.mrb[13].mxu1  ;;  %v9322_v60 = vpack.c.bf16 %v11093_v52, %v11092_v39  ;;  %v3379_v61 = vpop.f32.mrb[15].mxu0  ;;  %v2138_v29 = vmax.f32 %v1626_v2, 0.0  ;;  %v2140_v38 = vmax.f32 %v1628_v11, 0.0  ;;  %v1886_v39 = vmax.f32 %v1374_v16, 0.0  ;;  %v343_v2 = vld [vmem:[%s11668_s25 + $0x468] sm:$0xff] }
 0x109   : > { %v11349_v4 = vpop.f32.mrb[14].mxu1  ;;  %v9317_v53 = vpack.c.bf16 %v3379_v61, %v3376_v45  ;;  %v2142_v43 = vmax.f32 %v1630_v20, 0.0  ;;  %v2143_v44 = vmax.f32 %v1631_v21, 0.0  ;;  %v2456_v50 = vpack.c.bf16 %v2137_v17, %v2136_v19  ;;  %v596_v61 = vld [vmem:[%s11668_s25 + $0xc50] sm:$0xff]  ;;  %v598_v6 = vld [vmem:[%s11668_s25 + $0xc60] sm:$0xff]  ;;  %v345_v11 = vld [vmem:[%s11668_s25 + $0x478] sm:$0xff] }
 0x10a   : > { %10570 = vst [vmem:[%s12554_s13 + $0x38] sm:$0xff] %v9322_v60   ;;  %v9962_v7 = vpack.c.bf16 %v11349_v4, %v11348_v51  ;;  %v4403_v8 = vpop.f32.mrb[15].mxu1  ;;  %11199 = vmatmul.mubr.msk.bf16.gmra.mrb[120].mxu0 %vm2521_vm1, %v2325_v23  ;;  %v857_v23 = vmul.f32 %v12409_v63, %v338_v33  ;;  %v1377_v51 = vadd.f32 %v12426_v13, %v858_v26  ;;  %v344_v10 = vld [vmem:[%s11668_s25 + $0x470] sm:$0xff]  ;;  %v601_v19 = vld [vmem:[%s11668_s25 + $0xc78] sm:$0xff] }
 0x10b   : > { %10569 = vst [vmem:[%s12554_s13 + $0x30] sm:$0xff] %v9317_v53   ;;  %v9957_v14 = vpack.c.bf16 %v4403_v8, %v4400_v58  ;;  %11202 = vmatprep.mubr.msk.bf16.mxu0 %vm2521_vm1, %v2326_v27  ;;  %v594_v27 = vld [vmem:[%s11668_s25 + $0xc40] sm:$0xff]  ;;  %v12752_v58 = vpack.c.bf16 %v2139_v30, %v2138_v29  ;;  %v1114_v60 = vmul.f32 %v12409_v63, %v595_v35 }
 0x10c   : > { %10698 = vst [vmem:[%s12554_s13 + $0x438] sm:$0xff] %v9962_v7   ;;  %11455 = vmatmul.mubr.msk.bf16.gmra.mrb[120].mxu1 %vm2521_vm1, %v12659_v24  ;;  %v1883_v24 = vmax.f32 %v12706_v62, 0.0  ;;  %v12743_v45 = vadd.f32 %v12426_v13, %v857_v23  ;;  %v1113_v52 = vmul.f32 %v12409_v63, %v594_v27  ;;  %v597_v62 = vld [vmem:[%s11668_s25 + $0xc58] sm:$0xff]  ;;  %v2330_v1 = vpack.c.bf16 %v1885_v34, %v1884_v31  ;;  %v342_v53 = vld [vmem:[%s11668_s25 + $0x460] sm:$0xff] }
 0x10d   : > { %10697 = vst [vmem:[%s12554_s13 + $0x430] sm:$0xff] %v9957_v14   ;;  %v11096_v55 = vpop.f32.mrb[16].mxu0  ;;  %11458 = vmatprep.mubr.msk.bf16.mxu1 %vm2521_vm1, %v12666_v28  ;;  %v2141_v28 = vmax.f32 %v1629_v15, 0.0  ;;  %v12769_v33 = vpack.c.bf16 %v1887_v40, %v1886_v39  ;;  %v12771_v7 = vpack.c.bf16 %v2143_v44, %v2142_v43  ;;  %v860_v8 = vmul.f32 %v12409_v63, %v341_v47 }
 0x10e   : > { %v3392_v59 = vpop.f32.mrb[17].mxu0  ;;  %v2329_v57 = vpack.c.bf16 %v1883_v24, %v1882_v25  ;;  %v1889_v14 = vmax.f32 %v1377_v51, 0.0  ;;  %v12781_v15 = vadd.f32 %v12426_v13, %v1113_v52  ;;  %v1116_v16 = vmul.f32 %v12409_v63, %v597_v62 }
 0x10f   : > { %v11352_v36 = vpop.f32.mrb[16].mxu1  ;;  %v11097_v37 = vpop.f32.mrb[18].mxu0  ;;  %v12760_v4 = vpack.c.bf16 %v2141_v28, %v2140_v38  ;;  %v12788_v21 = vadd.f32 %v12426_v13, %v1114_v60  ;;  %v861_v23 = vmul.f32 %v12409_v63, %v342_v53  ;;  %v1117_v17 = vmul.f32 %v12409_v63, %v598_v6 }
 0x110   : > { %v4416_v41 = vpop.f32.mrb[17].mxu1  ;;  %v9332_v5 = vpack.c.bf16 %v11097_v37, %v11096_v55  ;;  %v3395_v42 = vpop.f32.mrb[19].mxu0  ;;  %v862_v55 = vmul.f32 %v12409_v63, %v343_v2  ;;  %v1118_v27 = vmul.f32 %v12409_v63, %v599_v9  ;;  %v864_v29 = vmul.f32 %v12409_v63, %v345_v11 }
 0x111   : > { %v11353_v48 = vpop.f32.mrb[18].mxu1  ;;  %v9327_v49 = vpack.c.bf16 %v3395_v42, %v3392_v59  ;;  %v863_v59 = vmul.f32 %v12409_v63, %v344_v10  ;;  %v12800_v35 = vadd.f32 %v12426_v13, %v860_v8  ;;  %v1120_v37 = vmul.f32 %v12409_v63, %v601_v19  ;;  %v603_v8 = vld [vmem:[%s11668_s25 + $0xc88] sm:$0xff] }
 0x112   : > { %10572 = vst [vmem:[%s12554_s13 + $0x48] sm:$0xff] %v9332_v5   ;;  %v9972_v54 = vpack.c.bf16 %v11353_v48, %v11352_v36  ;;  %v4419_v56 = vpop.f32.mrb[19].mxu1  ;;  %11203 = vmatmul.mubr.msk.bf16.gmra.mrb[124].mxu0 %vm2521_vm1, %v12675_v22  ;;  %v859_v22 = vmul.f32 %v12409_v63, %v340_v46  ;;  %v1119_v36 = vmul.f32 %v12409_v63, %v600_v18  ;;  %v346_v5 = vld [vmem:[%s11668_s25 + $0x480] sm:$0xff]  ;;  %v347_v48 = vld [vmem:[%s11668_s25 + $0x488] sm:$0xff]  ;;  %v2144_v47 = vmax.f32 %v12781_v15, 0.0 }
 0x113   : > { %10571 = vst [vmem:[%s12554_s13 + $0x40] sm:$0xff] %v9327_v49   ;;  %v9967_v0 = vpack.c.bf16 %v4419_v56, %v4416_v41  ;;  %11206 = vmatprep.mubr.msk.bf16.mxu0 %vm2521_vm1, %v12710_v3  ;;  %v1888_v3 = vmax.f32 %v12743_v45, 0.0  ;;  %v1635_v41 = vadd.f32 %v12426_v13, %v1116_v16  ;;  %v12814_v44 = vadd.f32 %v12426_v13, %v861_v23 }
 0x114   : > { %10700 = vst [vmem:[%s12554_s13 + $0x448] sm:$0xff] %v9972_v54   ;;  %11459 = vmatmul.mubr.msk.bf16.gmra.mrb[124].mxu1 %vm2521_vm1, %v12677_v32  ;;  %v1115_v32 = vmul.f32 %v12409_v63, %v596_v61  ;;  %v12794_v26 = vadd.f32 %v12426_v13, %v859_v22  ;;  %v1381_v45 = vadd.f32 %v12426_v13, %v862_v55  ;;  %v2145_v61 = vmax.f32 %v12788_v21, 0.0 }
 0x115   : > { %10699 = vst [vmem:[%s12554_s13 + $0x440] sm:$0xff] %v9967_v0   ;;  %v11100_v12 = vpop.f32.mrb[20].mxu0  ;;  %11462 = vmatprep.mubr.msk.bf16.mxu1 %vm2521_vm1, %v2456_v50  ;;  %v12804_v39 = vpack.c.bf16 %v1889_v14, %v1888_v3  ;;  %v1636_v46 = vadd.f32 %v12426_v13, %v1117_v17  ;;  %v1637_v50 = vadd.f32 %v12426_v13, %v1118_v27  ;;  %v2147_v2 = vmax.f32 %v1635_v41, 0.0 }
 0x116   : > { %v3408_v20 = vpop.f32.mrb[21].mxu0  ;;  %v12807_v40 = vadd.f32 %v12426_v13, %v1115_v32  ;;  %v12823_v51 = vadd.f32 %v12426_v13, %v863_v59  ;;  %v1383_v52 = vadd.f32 %v12426_v13, %v864_v29  ;;  %v1638_v54 = vadd.f32 %v12426_v13, %v1119_v36 }
 0x117   : > { %v11356_v25 = vpop.f32.mrb[20].mxu1  ;;  %v11101_v24 = vpop.f32.mrb[22].mxu0  ;;  %v1639_v56 = vadd.f32 %v12426_v13, %v1120_v37  ;;  %v1890_v62 = vmax.f32 %v12794_v26, 0.0  ;;  %v866_v0 = vmul.f32 %v12409_v63, %v347_v48  ;;  %v1892_v6 = vmax.f32 %v12814_v44, 0.0  ;;  %v349_v26 = vld [vmem:[%s11668_s25 + $0x498] sm:$0xff]  ;;  %v352_v44 = vld [vmem:[%s11668_s25 + $0x4b0] sm:$0xff] }
 0x118   : > { %v4432_v30 = vpop.f32.mrb[21].mxu1  ;;  %v9342_v31 = vpack.c.bf16 %v11101_v24, %v11100_v12  ;;  %v3411_v34 = vpop.f32.mrb[23].mxu0  ;;  %v2146_v53 = vmax.f32 %v12807_v40, 0.0  ;;  %v1893_v3 = vmax.f32 %v1381_v45, 0.0  ;;  %v2148_v10 = vmax.f32 %v1636_v46, 0.0  ;;  %v606_v40 = vld [vmem:[%s11668_s25 + $0xca0] sm:$0xff] }
 0x119   : > { %v11357_v38 = vpop.f32.mrb[22].mxu1  ;;  %v9337_v28 = vpack.c.bf16 %v3411_v34, %v3408_v20  ;;  %v2149_v11 = vmax.f32 %v1637_v50, 0.0  ;;  %v1894_v12 = vmax.f32 %v12823_v51, 0.0  ;;  %v1895_v14 = vmax.f32 %v1383_v52, 0.0  ;;  %v348_v20 = vld [vmem:[%s11668_s25 + $0x490] sm:$0xff]  ;;  %v605_v34 = vld [vmem:[%s11668_s25 + $0xc98] sm:$0xff] }
 0x11a   : > { %10574 = vst [vmem:[%s12554_s13 + $0x58] sm:$0xff] %v9342_v31   ;;  %v9982_v42 = vpack.c.bf16 %v11357_v38, %v11356_v25  ;;  %v4435_v43 = vpop.f32.mrb[23].mxu1  ;;  %11207 = vmatmul.mubr.msk.bf16.gmra.mrb[128].mxu0 %vm2521_vm1, %v2329_v57  ;;  %v865_v57 = vmul.f32 %v12409_v63, %v346_v5  ;;  %v2150_v16 = vmax.f32 %v1638_v54, 0.0  ;;  %v2151_v18 = vmax.f32 %v1639_v56, 0.0  ;;  %v12853_v25 = vld [vmem:[%s14221_s1] ss:$0 sm:$0xff] }
 0x11b   : > { %10573 = vst [vmem:[%s12554_s13 + $0x50] sm:$0xff] %v9337_v28   ;;  %v9977_v49 = vpack.c.bf16 %v4435_v43, %v4432_v30  ;;  %11210 = vmatprep.mubr.msk.bf16.mxu0 %vm2521_vm1, %v2330_v1  ;;  %v602_v1 = vld [vmem:[%s11668_s25 + $0xc80] sm:$0xff]  ;;  %v2460_v55 = vpack.c.bf16 %v2145_v61, %v2144_v47  ;;  %v1385_v17 = vadd.f32 %v12426_v13, %v866_v0  ;;  %v604_v31 = vld [vmem:[%s11668_s25 + $0xc90] sm:$0xff]  ;;  %v351_v28 = vld [vmem:[%s11668_s25 + $0x4a8] sm:$0xff] }
 0x11c   : > { %10702 = vst [vmem:[%s12554_s13 + $0x458] sm:$0xff] %v9982_v42   ;;  %11463 = vmatmul.mubr.msk.bf16.gmra.mrb[128].mxu1 %vm2521_vm1, %v12752_v58  ;;  %v1891_v58 = vmax.f32 %v12800_v35, 0.0  ;;  %v12846_v19 = vadd.f32 %v12426_v13, %v865_v57  ;;  %v1121_v24 = vmul.f32 %v12853_v25, %v602_v1  ;;  %v12860_v13 = vpack.c.bf16 %v2147_v2, %v2146_v53  ;;  %v350_v38 = vld [vmem:[%s11668_s25 + $0x4a0] sm:$0xff]  ;;  %v607_v43 = vld [vmem:[%s11668_s25 + $0xca8] sm:$0xff]  ;;  %v353_v45 = vld [vmem:[%s11668_s25 + $0x4b8] sm:$0xff] }
 0x11d   : > { %10701 = vst [vmem:[%s12554_s13 + $0x450] sm:$0xff] %v9977_v49   ;;  %v11104_v60 = vpop.f32.mrb[24].mxu0  ;;  %11466 = vmatprep.mubr.msk.bf16.mxu1 %vm2521_vm1, %v12760_v4  ;;  %v1122_v30 = vmul.f32 %v12853_v25, %v603_v8  ;;  %v2334_v36 = vpack.c.bf16 %v1893_v3, %v1892_v6  ;;  %v12868_v37 = vpack.c.bf16 %v2149_v11, %v2148_v10  ;;  %v1897_v48 = vmax.f32 %v1385_v17, 0.0  ;;  %v608_v52 = vld [vmem:[%s11668_s25 + $0xcb0] sm:$0xff]  ;;  %v609_v47 = vld [vmem:[%s11668_s25 + $0xcb8] sm:$0xff] }
 0x11e   : > { %v3424_v22 = vpop.f32.mrb[25].mxu0  ;;  %v2333_v29 = vpack.c.bf16 %v1891_v58, %v1890_v62  ;;  %v12877_v41 = vpack.c.bf16 %v1895_v14, %v1894_v12  ;;  %v12879_v5 = vpack.c.bf16 %v2151_v18, %v2150_v16  ;;  %v868_v42 = vmul.f32 %v12853_v25, %v349_v26 }
 0x11f   : > { %v11360_v9 = vpop.f32.mrb[24].mxu1  ;;  %v11105_v4 = vpop.f32.mrb[26].mxu0  ;;  %v1123_v50 = vmul.f32 %v12853_v25, %v604_v31  ;;  %v1124_v51 = vmul.f32 %v12853_v25, %v605_v34  ;;  %v869_v57 = vmul.f32 %v12853_v25, %v350_v38  ;;  %v1125_v61 = vmul.f32 %v12853_v25, %v606_v40 }
 0x120   : > { %v4448_v63 = vpop.f32.mrb[25].mxu1  ;;  %v9352_v15 = vpack.c.bf16 %v11105_v4, %v11104_v60  ;;  %v3427_v32 = vpop.f32.mrb[27].mxu0  ;;  %v870_v60 = vmul.f32 %v12853_v25, %v351_v28  ;;  %v1126_v1 = vmul.f32 %v12853_v25, %v607_v43  ;;  %v872_v53 = vmul.f32 %v12853_v25, %v353_v45 }
 0x121   : > { %v11361_v21 = vpop.f32.mrb[26].mxu1  ;;  %v9347_v23 = vpack.c.bf16 %v3427_v32, %v3424_v22  ;;  %v871_v22 = vmul.f32 %v12853_v25, %v352_v44  ;;  %v1128_v4 = vmul.f32 %v12853_v25, %v609_v47 }
 0x122   : > { %10576 = vst [vmem:[%s12554_s13 + $0x68] sm:$0xff] %v9352_v15   ;;  %v9992_v27 = vpack.c.bf16 %v11361_v21, %v11360_v9  ;;  %v4451_v59 = vpop.f32.mrb[27].mxu1  ;;  %11211 = vmatmul.mubr.msk.bf16.gmra.mrb[132].mxu0 %vm2521_vm1, %v12769_v33  ;;  %v867_v33 = vmul.f32 %v12853_v25, %v348_v20  ;;  %v1127_v9 = vmul.f32 %v12853_v25, %v608_v52  ;;  %v354_v15 = vld [vmem:[%s11668_s25 + $0x4c0] sm:$0xff]  ;;  %v355_v21 = vld [vmem:[%s11668_s25 + $0x4c8] sm:$0xff] }
 0x123   : > { %10575 = vst [vmem:[%s12554_s13 + $0x60] sm:$0xff] %v9347_v23   ;;  %v9987_v35 = vpack.c.bf16 %v4451_v59, %v4448_v63  ;;  %11214 = vmatprep.mubr.msk.bf16.mxu0 %vm2521_vm1, %v12804_v39  ;;  %v1896_v39 = vmax.f32 %v12846_v19, 0.0 }
 0x124   : > { %10704 = vst [vmem:[%s12554_s13 + $0x468] sm:$0xff] %v9992_v27   ;;  %11467 = vmatmul.mubr.msk.bf16.gmra.mrb[132].mxu1 %vm2521_vm1, %v12771_v7  ;;  %v12891_v7 = vld [vmem:[%s14222_s2] ss:$0 sm:$0xff] }
 0x125   : > { %10703 = vst [vmem:[%s12554_s13 + $0x460] sm:$0xff] %v9987_v35   ;;  %v11108_v46 = vpop.f32.mrb[28].mxu0  ;;  %11470 = vmatprep.mubr.msk.bf16.mxu1 %vm2521_vm1, %v2460_v55  ;;  %v12894_v49 = vadd.f32 %v12891_v7, %v1121_v24  ;;  %v12901_v56 = vadd.f32 %v12891_v7, %v1122_v30  ;;  %v12907_v0 = vadd.f32 %v12891_v7, %v867_v33  ;;  %v611_v33 = vld [vmem:[%s11668_s25 + $0xcc8] sm:$0xff] }
 0x126   : > { %v3440_v54 = vpop.f32.mrb[29].mxu0  ;;  %v12913_v8 = vadd.f32 %v12891_v7, %v868_v42  ;;  %v12917_v12 = vpack.c.bf16 %v1897_v48, %v1896_v39  ;;  %v12920_v14 = vadd.f32 %v12891_v7, %v1123_v50  ;;  %v12923_v63 = vadd.f32 %v12891_v7, %v1124_v51 }
 0x127   : > { %v11364_v62 = vpop.f32.mrb[28].mxu1  ;;  %v11109_v58 = vpop.f32.mrb[30].mxu0  ;;  %v12929_v18 = vadd.f32 %v12891_v7, %v869_v57  ;;  %v1389_v19 = vadd.f32 %v12891_v7, %v870_v60  ;;  %v12933_v20 = vadd.f32 %v12891_v7, %v1125_v61  ;;  %v1645_v55 = vadd.f32 %v12891_v7, %v1126_v1  ;;  %v357_v57 = vld [vmem:[%s11668_s25 + $0x4d8] sm:$0xff] }
 0x128   : > { %v4464_v2 = vpop.f32.mrb[29].mxu1  ;;  %v9362_v6 = vpack.c.bf16 %v11109_v58, %v11108_v46  ;;  %v3443_v3 = vpop.f32.mrb[31].mxu0  ;;  %v1390_v17 = vadd.f32 %v12891_v7, %v871_v22  ;;  %v1391_v24 = vadd.f32 %v12891_v7, %v872_v53  ;;  %v2152_v26 = vmax.f32 %v12894_v49, 0.0 }
 0x129   : > { %v11365_v10 = vpop.f32.mrb[30].mxu1  ;;  %v9357_v11 = vpack.c.bf16 %v3443_v3, %v3440_v54  ;;  %v1646_v27 = vadd.f32 %v12891_v7, %v1127_v9  ;;  %v1647_v59 = vadd.f32 %v12891_v7, %v1128_v4  ;;  %v2153_v31 = vmax.f32 %v12901_v56, 0.0  ;;  %v612_v3 = vld [vmem:[%s11668_s25 + $0xcd0] sm:$0xff] }
 0x12a   : > { %10578 = vst [vmem:[%s12554_s13 + $0x78] sm:$0xff] %v9362_v6   ;;  %v10002_v32 = vpack.c.bf16 %v11365_v10, %v11364_v62  ;;  %v4467_v16 = vpop.f32.mrb[31].mxu1  ;;  %11215 = vmatmul.mubr.msk.bf16.gmra.mrb[136].mxu0 %vm2521_vm1, %v2333_v29  ;;  %v873_v29 = vmul.f32 %v12853_v25, %v354_v15  ;;  %v1898_v34 = vmax.f32 %v12907_v0, 0.0  ;;  %v874_v35 = vmul.f32 %v12853_v25, %v355_v21 }
 0x12b   : > { %10577 = vst [vmem:[%s12554_s13 + $0x70] sm:$0xff] %v9357_v11   ;;  %v9997_v23 = vpack.c.bf16 %v4467_v16, %v4464_v2  ;;  %11218 = vmatprep.mubr.msk.bf16.mxu0 %vm2521_vm1, %v2334_v36  ;;  %v610_v36 = vld [vmem:[%s11668_s25 + $0xcc0] sm:$0xff]  ;;  %v2154_v28 = vmax.f32 %v12920_v14, 0.0  ;;  %v2155_v40 = vmax.f32 %v12923_v63, 0.0  ;;  %v1900_v39 = vmax.f32 %v12929_v18, 0.0  ;;  %v359_v14 = vld [vmem:[%s11668_s25 + $0x4e8] sm:$0xff] }
 0x12c   : > { %10706 = vst [vmem:[%s12554_s13 + $0x478] sm:$0xff] %v10002_v32   ;;  %11471 = vmatmul.mubr.msk.bf16.gmra.mrb[136].mxu1 %vm2521_vm1, %v12860_v13  ;;  %v1899_v13 = vmax.f32 %v12913_v8, 0.0  ;;  %v1901_v42 = vmax.f32 %v1389_v19, 0.0  ;;  %v2156_v45 = vmax.f32 %v12933_v20, 0.0  ;;  %v2157_v46 = vmax.f32 %v1645_v55, 0.0  ;;  %v613_v8 = vld [vmem:[%s11668_s25 + $0xcd8] sm:$0xff] }
 0x12d   : > { %10705 = vst [vmem:[%s12554_s13 + $0x470] sm:$0xff] %v9997_v23   ;;  %v11112_v30 = vpop.f32.mrb[32].mxu0  ;;  %11474 = vmatprep.mubr.msk.bf16.mxu1 %vm2521_vm1, %v12868_v37  ;;  %v356_v37 = vld [vmem:[%s11668_s25 + $0x4d0] sm:$0xff]  ;;  %v1902_v48 = vmax.f32 %v1390_v17, 0.0  ;;  %v1903_v49 = vmax.f32 %v1391_v24, 0.0  ;;  %v2158_v47 = vmax.f32 %v1646_v27, 0.0  ;;  %v12963_v56 = vadd.f32 %v12891_v7, %v873_v29 }
 0x12e   : > { %v3456_v38 = vpop.f32.mrb[33].mxu0  ;;  %v2159_v54 = vmax.f32 %v1647_v59, 0.0  ;;  %v2464_v62 = vpack.c.bf16 %v2153_v31, %v2152_v26  ;;  %v12967_v58 = vadd.f32 %v12891_v7, %v874_v35  ;;  %v1129_v0 = vmul.f32 %v12853_v25, %v610_v36  ;;  %v358_v11 = vld [vmem:[%s11668_s25 + $0x4e0] sm:$0xff]  ;;  %v615_v18 = vld [vmem:[%s11668_s25 + $0xce8] sm:$0xff]  ;;  %v360_v19 = vld [vmem:[%s11668_s25 + $0x4f0] sm:$0xff] }
 0x12f   : > { %v11368_v43 = vpop.f32.mrb[32].mxu1  ;;  %v11113_v44 = vpop.f32.mrb[34].mxu0  ;;  %v2337_v53 = vpack.c.bf16 %v1899_v13, %v1898_v34  ;;  %v1130_v2 = vmul.f32 %v12853_v25, %v611_v33  ;;  %v875_v6 = vmul.f32 %v12853_v25, %v356_v37  ;;  %v2465_v4 = vpack.c.bf16 %v2155_v40, %v2154_v28  ;;  %v614_v16 = vld [vmem:[%s11668_s25 + $0xce0] sm:$0xff]  ;;  %v361_v17 = vld [vmem:[%s11668_s25 + $0x4f8] sm:$0xff]  ;;  %v616_v24 = vld [vmem:[%s11668_s25 + $0xcf0] sm:$0xff] }
 0x130   : > { %v4480_v50 = vpop.f32.mrb[33].mxu1  ;;  %v9372_v51 = vpack.c.bf16 %v11113_v44, %v11112_v30  ;;  %v3459_v52 = vpop.f32.mrb[35].mxu0  ;;  %v2338_v10 = vpack.c.bf16 %v1901_v42, %v1900_v39  ;;  %v2466_v63 = vpack.c.bf16 %v2157_v46, %v2156_v45  ;;  %v12986_v15 = vpack.c.bf16 %v1903_v49, %v1902_v48  ;;  %v617_v26 = vld [vmem:[%s11668_s25 + $0xcf8] sm:$0xff] }
 0x131   : > { %v11369_v60 = vpop.f32.mrb[34].mxu1  ;;  %v9367_v61 = vpack.c.bf16 %v3459_v52, %v3456_v38  ;;  %v12988_v32 = vpack.c.bf16 %v2159_v54, %v2158_v47  ;;  %v1905_v21 = vmax.f32 %v12967_v58, 0.0  ;;  %v1131_v23 = vmul.f32 %v12853_v25, %v612_v3 }
 0x132   : > { %10580 = vst [vmem:[%s12554_s13 + $0x88] sm:$0xff] %v9372_v51   ;;  %v10012_v1 = vpack.c.bf16 %v11369_v60, %v11368_v43  ;;  %v4483_v22 = vpop.f32.mrb[35].mxu1  ;;  %11219 = vmatmul.mubr.msk.bf16.gmra.mrb[140].mxu0 %vm2521_vm1, %v12877_v41  ;;  %v876_v41 = vmul.f32 %v12853_v25, %v357_v57  ;;  %v1132_v55 = vmul.f32 %v12853_v25, %v613_v8  ;;  %v363_v57 = vld [vmem:[%s11668_s25 + $0x508] sm:$0xff] }
 0x133   : > { %10579 = vst [vmem:[%s12554_s13 + $0x80] sm:$0xff] %v9367_v61   ;;  %v10007_v9 = vpack.c.bf16 %v4483_v22, %v4480_v50  ;;  %11222 = vmatprep.mubr.msk.bf16.mxu0 %vm2521_vm1, %v12917_v12  ;;  %v1904_v12 = vmax.f32 %v12963_v56, 0.0  ;;  %v1649_v59 = vadd.f32 %v12891_v7, %v1130_v2  ;;  %v13005_v29 = vadd.f32 %v12891_v7, %v875_v6  ;;  %v362_v56 = vld [vmem:[%s11668_s25 + $0x500] sm:$0xff] }
 0x134   : > { %10708 = vst [vmem:[%s12554_s13 + $0x488] sm:$0xff] %v10012_v1   ;;  %11475 = vmatmul.mubr.msk.bf16.gmra.mrb[140].mxu1 %vm2521_vm1, %v12879_v5  ;;  %v1648_v5 = vadd.f32 %v12891_v7, %v1129_v0  ;;  %v877_v30 = vmul.f32 %v12853_v25, %v358_v11  ;;  %v878_v31 = vmul.f32 %v12853_v25, %v359_v14 }
 0x135   : > { %10707 = vst [vmem:[%s12554_s13 + $0x480] sm:$0xff] %v10007_v9   ;;  %v11116_v20 = vpop.f32.mrb[36].mxu0  ;;  %11478 = vmatprep.mubr.msk.bf16.mxu1 %vm2521_vm1, %v2464_v62  ;;  %v13010_v35 = vadd.f32 %v12891_v7, %v876_v41  ;;  %v1133_v36 = vmul.f32 %v12853_v25, %v614_v16  ;;  %v1134_v33 = vmul.f32 %v12853_v25, %v615_v18  ;;  %v2161_v52 = vmax.f32 %v1649_v59, 0.0  ;;  %v619_v16 = vld [vmem:[%s11668_s25 + $0xd08] sm:$0xff] }
 0x136   : > { %v3472_v27 = vpop.f32.mrb[37].mxu0  ;;  %v879_v38 = vmul.f32 %v12853_v25, %v360_v19  ;;  %v880_v42 = vmul.f32 %v12853_v25, %v361_v17  ;;  %v1135_v37 = vmul.f32 %v12853_v25, %v616_v24  ;;  %v1136_v43 = vmul.f32 %v12853_v25, %v617_v26 }
 0x137   : > { %v11372_v34 = vpop.f32.mrb[36].mxu1  ;;  %v11117_v13 = vpop.f32.mrb[38].mxu0  ;;  %v2160_v46 = vmax.f32 %v1648_v5, 0.0  ;;  %v13019_v48 = vadd.f32 %v12891_v7, %v1131_v23  ;;  %v13022_v49 = vadd.f32 %v12891_v7, %v1132_v55  ;;  %v13027_v47 = vadd.f32 %v12891_v7, %v877_v30 }
 0x138   : > { %v4496_v28 = vpop.f32.mrb[37].mxu1  ;;  %v9382_v40 = vpack.c.bf16 %v11117_v13, %v11116_v20  ;;  %v3475_v39 = vpop.f32.mrb[39].mxu0  ;;  %v13030_v54 = vadd.f32 %v12891_v7, %v878_v31  ;;  %v1652_v61 = vadd.f32 %v12891_v7, %v1133_v36  ;;  %v1653_v62 = vadd.f32 %v12891_v7, %v1134_v33 }
 0x139   : > { %v11373_v44 = vpop.f32.mrb[38].mxu1  ;;  %v9377_v45 = vpack.c.bf16 %v3475_v39, %v3472_v27  ;;  %v1398_v58 = vadd.f32 %v12891_v7, %v879_v38  ;;  %v2340_v0 = vpack.c.bf16 %v1905_v21, %v1904_v12  ;;  %v1399_v1 = vadd.f32 %v12891_v7, %v880_v42 }
 0x13a   : > { %10582 = vst [vmem:[%s12554_s13 + $0x98] sm:$0xff] %v9382_v40   ;;  %v10022_v50 = vpack.c.bf16 %v11373_v44, %v11372_v34  ;;  %v4499_v51 = vpop.f32.mrb[39].mxu1  ;;  %11223 = vmatmul.mubr.msk.bf16.gmra.mrb[144].mxu0 %vm2521_vm1, %v2337_v53  ;;  %v1654_v22 = vadd.f32 %v12891_v7, %v1135_v37  ;;  %v1655_v53 = vadd.f32 %v12891_v7, %v1136_v43  ;;  %v1906_v6 = vmax.f32 %v13005_v29, 0.0  ;;  %v365_v29 = vld [vmem:[%s11668_s25 + $0x518] sm:$0xff]  ;;  %v620_v37 = vld [vmem:[%s11668_s25 + $0xd10] sm:$0xff] }
 0x13b   : > { %10581 = vst [vmem:[%s12554_s13 + $0x90] sm:$0xff] %v9377_v45   ;;  %v10017_v60 = vpack.c.bf16 %v4499_v51, %v4496_v28  ;;  %11226 = vmatprep.mubr.msk.bf16.mxu0 %vm2521_vm1, %v2338_v10  ;;  %v1907_v3 = vmax.f32 %v13010_v35, 0.0  ;;  %v881_v8 = vmul.f32 %v12853_v25, %v362_v56  ;;  %v882_v9 = vmul.f32 %v12853_v25, %v363_v57  ;;  %v621_v43 = vld [vmem:[%s11668_s25 + $0xd18] sm:$0xff]  ;;  %v623_v56 = vld [vmem:[%s11668_s25 + $0xd28] sm:$0xff]  ;;  %v368_v57 = vld [vmem:[%s11668_s25 + $0x530] sm:$0xff] }
 0x13c   : > { %10710 = vst [vmem:[%s12554_s13 + $0x498] sm:$0xff] %v10022_v50   ;;  %11479 = vmatmul.mubr.msk.bf16.gmra.mrb[144].mxu1 %vm2521_vm1, %v2465_v4  ;;  %v618_v4 = vld [vmem:[%s11668_s25 + $0xd00] sm:$0xff]  ;;  %v2468_v41 = vpack.c.bf16 %v2161_v52, %v2160_v46  ;;  %v2162_v11 = vmax.f32 %v13019_v48, 0.0  ;;  %v2163_v14 = vmax.f32 %v13022_v49, 0.0  ;;  %v1908_v12 = vmax.f32 %v13027_v47, 0.0  ;;  %v367_v49 = vld [vmem:[%s11668_s25 + $0x528] sm:$0xff] }
 0x13d   : > { %10709 = vst [vmem:[%s12554_s13 + $0x490] sm:$0xff] %v10017_v60   ;;  %v11120_v2 = vpop.f32.mrb[40].mxu0  ;;  %11482 = vmatprep.mubr.msk.bf16.mxu1 %vm2521_vm1, %v2466_v63  ;;  %v364_v63 = vld [vmem:[%s11668_s25 + $0x510] sm:$0xff]  ;;  %v1909_v20 = vmax.f32 %v13030_v54, 0.0  ;;  %v2164_v21 = vmax.f32 %v1652_v61, 0.0  ;;  %v2165_v5 = vmax.f32 %v1653_v62, 0.0  ;;  %v13059_v34 = vadd.f32 %v12891_v7, %v881_v8 }
 0x13e   : > { %v3488_v10 = vpop.f32.mrb[41].mxu0  ;;  %v1910_v23 = vmax.f32 %v1398_v58, 0.0  ;;  %v1911_v26 = vmax.f32 %v1399_v1, 0.0  ;;  %v2166_v27 = vmax.f32 %v1654_v22, 0.0  ;;  %v2167_v59 = vmax.f32 %v1655_v53, 0.0  ;;  %v366_v48 = vld [vmem:[%s11668_s25 + $0x520] sm:$0xff] }
 0x13f   : > { %v11376_v18 = vpop.f32.mrb[40].mxu1  ;;  %v11121_v19 = vpop.f32.mrb[42].mxu0  ;;  %v13062_v13 = vadd.f32 %v12891_v7, %v882_v9  ;;  %v1137_v35 = vmul.f32 %v12853_v25, %v618_v4  ;;  %v1138_v38 = vmul.f32 %v12853_v25, %v619_v16  ;;  %v883_v28 = vmul.f32 %v12853_v25, %v364_v63  ;;  %v622_v50 = vld [vmem:[%s11668_s25 + $0xd20] sm:$0xff]  ;;  %v369_v60 = vld [vmem:[%s11668_s25 + $0x538] sm:$0xff]  ;;  %v624_v22 = vld [vmem:[%s11668_s25 + $0xd30] sm:$0xff] }
 0x140   : > { %v4512_v55 = vpop.f32.mrb[41].mxu1  ;;  %v9392_v17 = vpack.c.bf16 %v11121_v19, %v11120_v2  ;;  %v3491_v24 = vpop.f32.mrb[43].mxu0  ;;  %v2341_v39 = vpack.c.bf16 %v1907_v3, %v1906_v6  ;;  %v884_v42 = vmul.f32 %v12853_v25, %v365_v29  ;;  %v2342_v44 = vpack.c.bf16 %v1909_v20, %v1908_v12  ;;  %v625_v53 = vld [vmem:[%s11668_s25 + $0xd38] sm:$0xff] }
 0x141   : > { %v11377_v30 = vpop.f32.mrb[42].mxu1  ;;  %v9387_v31 = vpack.c.bf16 %v3491_v24, %v3488_v10  ;;  %v2470_v45 = vpack.c.bf16 %v2165_v5, %v2164_v21  ;;  %v13078_v46 = vpack.c.bf16 %v1911_v26, %v1910_v23  ;;  %v13085_v52 = vpack.c.bf16 %v2167_v59, %v2166_v27 }
 0x142   : > { %10584 = vst [vmem:[%s12554_s13 + $0xa8] sm:$0xff] %v9392_v17   ;;  %v10032_v36 = vpack.c.bf16 %v11377_v30, %v11376_v18  ;;  %v4515_v33 = vpop.f32.mrb[43].mxu1  ;;  %11227 = vmatmul.mubr.msk.bf16.gmra.mrb[148].mxu0 %vm2521_vm1, %v12986_v15  ;;  %v2469_v15 = vpack.c.bf16 %v2163_v14, %v2162_v11  ;;  %v1913_v47 = vmax.f32 %v13062_v13, 0.0  ;;  %v13090_v54 = vadd.f32 %v12891_v7, %v1137_v35  ;;  %v370_v30 = vld [vmem:[%s11668_s25 + $0x540] sm:$0xff] }
 0x143   : > { %10583 = vst [vmem:[%s12554_s13 + $0xa0] sm:$0xff] %v9387_v31   ;;  %v10027_v40 = vpack.c.bf16 %v4515_v33, %v4512_v55  ;;  %11230 = vmatprep.mubr.msk.bf16.mxu0 %vm2521_vm1, %v2340_v0  ;;  %v1657_v62 = vadd.f32 %v12891_v7, %v1138_v38  ;;  %v13097_v58 = vadd.f32 %v12891_v7, %v883_v28  ;;  %v371_v31 = vld [vmem:[%s11668_s25 + $0x548] sm:$0xff] }
 0x144   : > { %10712 = vst [vmem:[%s12554_s13 + $0x4a8] sm:$0xff] %v10032_v36   ;;  %11483 = vmatmul.mubr.msk.bf16.gmra.mrb[148].mxu1 %vm2521_vm1, %v12988_v32  ;;  %v1912_v32 = vmax.f32 %v13059_v34, 0.0  ;;  %v1139_v0 = vmul.f32 %v12853_v25, %v620_v37  ;;  %v1140_v1 = vmul.f32 %v12853_v25, %v621_v43  ;;  %v13104_v3 = vadd.f32 %v12891_v7, %v884_v42 }
 0x145   : > { %10711 = vst [vmem:[%s12554_s13 + $0x4a0] sm:$0xff] %v10027_v40   ;;  %v11124_v51 = vpop.f32.mrb[44].mxu0  ;;  %11486 = vmatprep.mubr.msk.bf16.mxu1 %vm2521_vm1, %v2468_v41  ;;  %v885_v8 = vmul.f32 %v12853_v25, %v366_v48  ;;  %v886_v9 = vmul.f32 %v12853_v25, %v367_v49  ;;  %v1141_v4 = vmul.f32 %v12853_v25, %v622_v50  ;;  %v2168_v19 = vmax.f32 %v13090_v54, 0.0  ;;  %v627_v48 = vld [vmem:[%s11668_s25 + $0xd48] sm:$0xff] }
 0x146   : > { %v3504_v61 = vpop.f32.mrb[45].mxu0  ;;  %v1142_v14 = vmul.f32 %v12853_v25, %v623_v56  ;;  %v887_v12 = vmul.f32 %v12853_v25, %v368_v57  ;;  %v888_v16 = vmul.f32 %v12853_v25, %v369_v60  ;;  %v1143_v20 = vmul.f32 %v12853_v25, %v624_v22  ;;  %v372_v56 = vld [vmem:[%s11668_s25 + $0x550] sm:$0xff] }
 0x147   : > { %v11380_v2 = vpop.f32.mrb[44].mxu1  ;;  %v11125_v6 = vpop.f32.mrb[46].mxu0  ;;  %v1144_v21 = vmul.f32 %v12853_v25, %v625_v53  ;;  %v2169_v55 = vmax.f32 %v1657_v62, 0.0  ;;  %v13118_v17 = vadd.f32 %v12891_v7, %v1139_v0  ;;  %v13121_v24 = vadd.f32 %v12891_v7, %v1140_v1  ;;  %v373_v1 = vld [vmem:[%s11668_s25 + $0x558] sm:$0xff] }
 0x148   : > { %v4528_v10 = vpop.f32.mrb[45].mxu1  ;;  %v9402_v41 = vpack.c.bf16 %v11125_v6, %v11124_v51  ;;  %v3507_v11 = vpop.f32.mrb[47].mxu0  ;;  %v13126_v27 = vadd.f32 %v12891_v7, %v885_v8  ;;  %v1405_v59 = vadd.f32 %v12891_v7, %v886_v9  ;;  %v13130_v29 = vadd.f32 %v12891_v7, %v1141_v4 }
 0x149   : > { %v11381_v63 = vpop.f32.mrb[46].mxu1  ;;  %v9397_v18 = vpack.c.bf16 %v3507_v11, %v3504_v61  ;;  %v2344_v34 = vpack.c.bf16 %v1913_v47, %v1912_v32  ;;  %v1661_v13 = vadd.f32 %v12891_v7, %v1142_v14  ;;  %v1406_v35 = vadd.f32 %v12891_v7, %v887_v12 }
 0x14a   : > { %10586 = vst [vmem:[%s12554_s13 + $0xb8] sm:$0xff] %v9402_v41   ;;  %v10042_v5 = vpack.c.bf16 %v11381_v63, %v11380_v2  ;;  %v4531_v23 = vpop.f32.mrb[47].mxu1  ;;  %11231 = vmatmul.mubr.msk.bf16.gmra.mrb[152].mxu0 %vm2521_vm1, %v2341_v39  ;;  %v1407_v36 = vadd.f32 %v12891_v7, %v888_v16  ;;  %v1914_v38 = vmax.f32 %v13097_v58, 0.0  ;;  %v1915_v28 = vmax.f32 %v13104_v3, 0.0  ;;  %v629_v16 = vld [vmem:[%s11668_s25 + $0xd58] sm:$0xff] }
 0x14b   : > { %10585 = vst [vmem:[%s12554_s13 + $0xb0] sm:$0xff] %v9397_v18   ;;  %v10037_v26 = vpack.c.bf16 %v4531_v23, %v4528_v10  ;;  %11234 = vmatprep.mubr.msk.bf16.mxu0 %vm2521_vm1, %v2342_v44  ;;  %v1662_v40 = vadd.f32 %v12891_v7, %v1143_v20  ;;  %v1663_v39 = vadd.f32 %v12891_v7, %v1144_v21  ;;  %v2170_v37 = vmax.f32 %v13118_v17, 0.0  ;;  %v374_v20 = vld [vmem:[%s11668_s25 + $0x560] sm:$0xff] }
 0x14c   : > { %10714 = vst [vmem:[%s12554_s13 + $0x4b8] sm:$0xff] %v10042_v5   ;;  %11487 = vmatmul.mubr.msk.bf16.gmra.mrb[152].mxu1 %vm2521_vm1, %v2469_v15  ;;  %v2171_v43 = vmax.f32 %v13121_v24, 0.0  ;;  %v889_v15 = vmul.f32 %v12853_v25, %v370_v30  ;;  %v890_v44 = vmul.f32 %v12853_v25, %v371_v31  ;;  %v2472_v51 = vpack.c.bf16 %v2169_v55, %v2168_v19  ;;  %v375_v24 = vld [vmem:[%s11668_s25 + $0x568] sm:$0xff] }
 0x14d   : > { %10713 = vst [vmem:[%s12554_s13 + $0x4b0] sm:$0xff] %v10037_v26   ;;  %v11128_v33 = vpop.f32.mrb[48].mxu0  ;;  %11490 = vmatprep.mubr.msk.bf16.mxu1 %vm2521_vm1, %v2470_v45  ;;  %v626_v45 = vld [vmem:[%s11668_s25 + $0xd40] sm:$0xff]  ;;  %v1916_v32 = vmax.f32 %v13126_v27, 0.0  ;;  %v1917_v47 = vmax.f32 %v1405_v59, 0.0  ;;  %v2172_v54 = vmax.f32 %v13130_v29, 0.0  ;;  %v1146_v11 = vmul.f32 %v12853_v25, %v627_v48 }
 0x14e   : > { %v3520_v42 = vpop.f32.mrb[49].mxu0  ;;  %v2173_v62 = vmax.f32 %v1661_v13, 0.0  ;;  %v1918_v58 = vmax.f32 %v1406_v35, 0.0  ;;  %v1919_v0 = vmax.f32 %v1407_v36, 0.0  ;;  %v2174_v2 = vmax.f32 %v1662_v40, 0.0  ;;  %v631_v26 = vld [vmem:[%s11668_s25 + $0xd68] sm:$0xff] }
 0x14f   : > { %v11384_v49 = vpop.f32.mrb[48].mxu1  ;;  %v11129_v50 = vpop.f32.mrb[50].mxu0  ;;  %v2175_v6 = vmax.f32 %v1663_v39, 0.0  ;;  %v1145_v3 = vmul.f32 %v12853_v25, %v626_v45  ;;  %v13160_v4 = vadd.f32 %v12891_v7, %v889_v15  ;;  %v13163_v10 = vadd.f32 %v12891_v7, %v890_v44  ;;  %v377_v13 = vld [vmem:[%s11668_s25 + $0x578] sm:$0xff]  ;;  %v632_v39 = vld [vmem:[%s11668_s25 + $0xd70] sm:$0xff] }
 0x150   : > { %v4544_v57 = vpop.f32.mrb[49].mxu1  ;;  %v9412_v60 = vpack.c.bf16 %v11129_v50, %v11128_v33  ;;  %v3523_v61 = vpop.f32.mrb[51].mxu0  ;;  %v891_v14 = vmul.f32 %v12853_v25, %v372_v56  ;;  %v892_v12 = vmul.f32 %v12853_v25, %v373_v1  ;;  %v2345_v63 = vpack.c.bf16 %v1915_v28, %v1914_v38 }
 0x151   : > { %v11385_v22 = vpop.f32.mrb[50].mxu1  ;;  %v9407_v53 = vpack.c.bf16 %v3523_v61, %v3520_v42  ;;  %v2473_v18 = vpack.c.bf16 %v2171_v43, %v2170_v37  ;;  %v2346_v19 = vpack.c.bf16 %v1917_v47, %v1916_v32  ;;  %v2474_v5 = vpack.c.bf16 %v2173_v62, %v2172_v54  ;;  %v633_v42 = vld [vmem:[%s11668_s25 + $0xd78] sm:$0xff] }
 0x152   : > { %10588 = vst [vmem:[%s12554_s13 + $0xc8] sm:$0xff] %v9412_v60   ;;  %v10052_v8 = vpack.c.bf16 %v11385_v22, %v11384_v49  ;;  %v4547_v9 = vpop.f32.mrb[51].mxu1  ;;  %11235 = vmatmul.mubr.msk.bf16.gmra.mrb[156].mxu0 %vm2521_vm1, %v13078_v46  ;;  %v628_v46 = vld [vmem:[%s11668_s25 + $0xd50] sm:$0xff]  ;;  %v13178_v23 = vpack.c.bf16 %v1919_v0, %v1918_v58  ;;  %v13180_v55 = vpack.c.bf16 %v2175_v6, %v2174_v2  ;;  %v1920_v59 = vmax.f32 %v13160_v4, 0.0  ;;  %v378_v22 = vld [vmem:[%s11668_s25 + $0x580] sm:$0xff] }
 0x153   : > { %10587 = vst [vmem:[%s12554_s13 + $0xc0] sm:$0xff] %v9407_v53   ;;  %v10047_v41 = vpack.c.bf16 %v4547_v9, %v4544_v57  ;;  %11238 = vmatprep.mubr.msk.bf16.mxu0 %vm2521_vm1, %v2344_v34  ;;  %v13183_v17 = vadd.f32 %v12891_v7, %v1145_v3  ;;  %v1921_v29 = vmax.f32 %v13163_v10, 0.0  ;;  %v1147_v30 = vmul.f32 %v12853_v25, %v628_v46  ;;  %v376_v34 = vld [vmem:[%s11668_s25 + $0x570] sm:$0xff] }
 0x154   : > { %10716 = vst [vmem:[%s12554_s13 + $0x4c8] sm:$0xff] %v10052_v8   ;;  %11491 = vmatmul.mubr.msk.bf16.gmra.mrb[156].mxu1 %vm2521_vm1, %v13085_v52  ;;  %v630_v52 = vld [vmem:[%s11668_s25 + $0xd60] sm:$0xff]  ;;  %v1148_v31 = vmul.f32 %v12853_v25, %v629_v16  ;;  %v1665_v33 = vadd.f32 %v12891_v7, %v1146_v11  ;;  %v13196_v38 = vadd.f32 %v12891_v7, %v891_v14  ;;  %v379_v8 = vld [vmem:[%s11668_s25 + $0x588] sm:$0xff] }
 0x155   : > { %10715 = vst [vmem:[%s12554_s13 + $0x4c0] sm:$0xff] %v10047_v41   ;;  %v11132_v21 = vpop.f32.mrb[52].mxu0  ;;  %11494 = vmatprep.mubr.msk.bf16.mxu1 %vm2521_vm1, %v2472_v51  ;;  %v13199_v28 = vadd.f32 %v12891_v7, %v892_v12  ;;  %v893_v40 = vmul.f32 %v12853_v25, %v374_v20  ;;  %v894_v44 = vmul.f32 %v12853_v25, %v375_v24  ;;  %v2176_v51 = vmax.f32 %v13183_v17, 0.0 }
 0x156   : > { %v3536_v27 = vpop.f32.mrb[53].mxu0  ;;  %v1149_v45 = vmul.f32 %v12853_v25, %v630_v52  ;;  %v1150_v48 = vmul.f32 %v12853_v25, %v631_v26  ;;  %v895_v32 = vmul.f32 %v12853_v25, %v376_v34  ;;  %v896_v47 = vmul.f32 %v12853_v25, %v377_v13 }
 0x157   : > { %v11388_v35 = vpop.f32.mrb[52].mxu1  ;;  %v11133_v36 = vpop.f32.mrb[54].mxu0  ;;  %v13213_v57 = vadd.f32 %v12891_v7, %v1147_v30  ;;  %v1151_v60 = vmul.f32 %v12853_v25, %v632_v39  ;;  %v1152_v61 = vmul.f32 %v12853_v25, %v633_v42  ;;  %v2177_v58 = vmax.f32 %v1665_v33, 0.0 }
 0x158   : > { %v4560_v37 = vpop.f32.mrb[53].mxu1  ;;  %v9422_v43 = vpack.c.bf16 %v11133_v36, %v11132_v21  ;;  %v3539_v15 = vpop.f32.mrb[55].mxu0  ;;  %v1667_v0 = vadd.f32 %v12891_v7, %v1148_v31  ;;  %v13221_v1 = vadd.f32 %v12891_v7, %v893_v40  ;;  %v2348_v53 = vpack.c.bf16 %v1921_v29, %v1920_v59  ;;  %v635_v31 = vld [vmem:[%s11668_s25 + $0xd88] sm:$0xff] }
 0x159   : > { %v11389_v49 = vpop.f32.mrb[54].mxu1  ;;  %v9417_v50 = vpack.c.bf16 %v3539_v15, %v3536_v27  ;;  %v1413_v2 = vadd.f32 %v12891_v7, %v894_v44  ;;  %v1668_v6 = vadd.f32 %v12891_v7, %v1149_v45  ;;  %v1669_v3 = vadd.f32 %v12891_v7, %v1150_v48 }
 0x15a   : > { %10590 = vst [vmem:[%s12554_s13 + $0xd8] sm:$0xff] %v9422_v43   ;;  %v10062_v54 = vpack.c.bf16 %v11389_v49, %v11388_v35  ;;  %v4563_v56 = vpop.f32.mrb[55].mxu1  ;;  %11239 = vmatmul.mubr.msk.bf16.gmra.mrb[160].mxu0 %vm2521_vm1, %v2345_v63  ;;  %v1922_v4 = vmax.f32 %v13196_v38, 0.0  ;;  %v1923_v10 = vmax.f32 %v13199_v28, 0.0  ;;  %v1414_v41 = vadd.f32 %v12891_v7, %v895_v32  ;;  %v380_v38 = vld [vmem:[%s11668_s25 + $0x590] sm:$0xff]  ;;  %v381_v43 = vld [vmem:[%s11668_s25 + $0x598] sm:$0xff] }
 0x15b   : > { %10589 = vst [vmem:[%s12554_s13 + $0xd0] sm:$0xff] %v9417_v50   ;;  %v10057_v62 = vpack.c.bf16 %v4563_v56, %v4560_v37  ;;  %11242 = vmatprep.mubr.msk.bf16.mxu0 %vm2521_vm1, %v2346_v19  ;;  %v1415_v11 = vadd.f32 %v12891_v7, %v896_v47  ;;  %v2178_v12 = vmax.f32 %v13213_v57, 0.0  ;;  %v1670_v46 = vadd.f32 %v12891_v7, %v1151_v60  ;;  %v382_v32 = vld [vmem:[%s11668_s25 + $0x5a0] sm:$0xff] }
 0x15c   : > { %10718 = vst [vmem:[%s12554_s13 + $0x4d8] sm:$0xff] %v10062_v54   ;;  %11495 = vmatmul.mubr.msk.bf16.gmra.mrb[160].mxu1 %vm2521_vm1, %v2473_v18  ;;  %v1671_v16 = vadd.f32 %v12891_v7, %v1152_v61  ;;  %v897_v63 = vmul.f32 %v12853_v25, %v378_v22  ;;  %v634_v18 = vld [vmem:[%s11668_s25 + $0xd80] sm:$0xff]  ;;  %v2476_v21 = vpack.c.bf16 %v2177_v58, %v2176_v51  ;;  %v1924_v17 = vmax.f32 %v13221_v1, 0.0  ;;  %v637_v51 = vld [vmem:[%s11668_s25 + $0xd98] sm:$0xff] }
 0x15d   : > { %10717 = vst [vmem:[%s12554_s13 + $0x4d0] sm:$0xff] %v10057_v62   ;;  %v11136_v9 = vpop.f32.mrb[56].mxu0  ;;  %11498 = vmatprep.mubr.msk.bf16.mxu1 %vm2521_vm1, %v2474_v5  ;;  %v2179_v5 = vmax.f32 %v1667_v0, 0.0  ;;  %v898_v24 = vmul.f32 %v12853_v25, %v379_v8  ;;  %v1925_v59 = vmax.f32 %v1413_v2, 0.0  ;;  %v2180_v29 = vmax.f32 %v1668_v6, 0.0  ;;  %v638_v61 = vld [vmem:[%s11668_s25 + $0xda0] sm:$0xff] }
 0x15e   : > { %v3552_v14 = vpop.f32.mrb[57].mxu0  ;;  %v2181_v30 = vmax.f32 %v1669_v3, 0.0  ;;  %v1926_v35 = vmax.f32 %v1414_v41, 0.0  ;;  %v1927_v36 = vmax.f32 %v1415_v11, 0.0  ;;  %v1153_v33 = vmul.f32 %v12853_v25, %v634_v18  ;;  %v385_v41 = vld [vmem:[%s11668_s25 + $0x5b8] sm:$0xff] }
 0x15f   : > { %v11392_v19 = vpop.f32.mrb[56].mxu1  ;;  %v11137_v20 = vpop.f32.mrb[58].mxu0  ;;  %v2182_v39 = vmax.f32 %v1670_v46, 0.0  ;;  %v2183_v42 = vmax.f32 %v1671_v16, 0.0  ;;  %v13250_v37 = vadd.f32 %v12891_v7, %v897_v63  ;;  %v13256_v44 = vadd.f32 %v12891_v7, %v898_v24 }
 0x160   : > { %v4576_v52 = vpop.f32.mrb[57].mxu1  ;;  %v9432_v26 = vpack.c.bf16 %v11137_v20, %v11136_v9  ;;  %v3555_v27 = vpop.f32.mrb[59].mxu0  ;;  %v1154_v45 = vmul.f32 %v12853_v25, %v635_v31  ;;  %v2349_v48 = vpack.c.bf16 %v1923_v10, %v1922_v4  ;;  %v2477_v49 = vpack.c.bf16 %v2179_v5, %v2178_v12  ;;  %v384_v10 = vld [vmem:[%s11668_s25 + $0x5b0] sm:$0xff] }
 0x161   : > { %v11393_v34 = vpop.f32.mrb[58].mxu1  ;;  %v9427_v13 = vpack.c.bf16 %v3555_v27, %v3552_v14  ;;  %v899_v50 = vmul.f32 %v12853_v25, %v380_v38  ;;  %v2350_v54 = vpack.c.bf16 %v1925_v59, %v1924_v17  ;;  %v2478_v56 = vpack.c.bf16 %v2181_v30, %v2180_v29  ;;  %v640_v17 = vld [vmem:[%s11668_s25 + $0xdb0] sm:$0xff]  ;;  %v641_v29 = vld [vmem:[%s11668_s25 + $0xdb8] sm:$0xff]  ;;  %v13320_v38 = vld [vmem:[%s14221_s1] ss:$0 sm:$0xff] }
 0x162   : > { %10592 = vst [vmem:[%s12554_s13 + $0xe8] sm:$0xff] %v9432_v26   ;;  %v10072_v28 = vpack.c.bf16 %v11393_v34, %v11392_v19  ;;  %v4579_v40 = vpop.f32.mrb[59].mxu1  ;;  %11243 = vmatmul.mubr.msk.bf16.gmra.mrb[164].mxu0 %vm2521_vm1, %v13178_v23  ;;  %v636_v23 = vld [vmem:[%s11668_s25 + $0xd90] sm:$0xff]  ;;  %v13269_v57 = vadd.f32 %v12891_v7, %v1153_v33  ;;  %v900_v60 = vmul.f32 %v12853_v25, %v381_v43  ;;  %v1928_v1 = vmax.f32 %v13250_v37, 0.0 }
 0x163   : > { %10591 = vst [vmem:[%s12554_s13 + $0xe0] sm:$0xff] %v9427_v13   ;;  %v10067_v15 = vpack.c.bf16 %v4579_v40, %v4576_v52  ;;  %11246 = vmatprep.mubr.msk.bf16.mxu0 %vm2521_vm1, %v2348_v53  ;;  %v13274_v58 = vpack.c.bf16 %v1927_v36, %v1926_v35  ;;  %v13276_v0 = vpack.c.bf16 %v2183_v42, %v2182_v39  ;;  %v639_v53 = vld [vmem:[%s11668_s25 + $0xda8] sm:$0xff]  ;;  %v1929_v3 = vmax.f32 %v13256_v44, 0.0  ;;  %v386_v35 = vld [vmem:[%s11668_s25 + $0x5c0] sm:$0xff] }
 0x164   : > { %10720 = vst [vmem:[%s12554_s13 + $0x4e8] sm:$0xff] %v10072_v28   ;;  %11499 = vmatmul.mubr.msk.bf16.gmra.mrb[164].mxu1 %vm2521_vm1, %v13180_v55  ;;  %v383_v55 = vld [vmem:[%s11668_s25 + $0x5a8] sm:$0xff]  ;;  %v1155_v22 = vmul.f32 %v12853_v25, %v636_v23  ;;  %v1673_v8 = vadd.f32 %v12891_v7, %v1154_v45  ;;  %v1156_v9 = vmul.f32 %v12853_v25, %v637_v51  ;;  %v2184_v20 = vmax.f32 %v13269_v57, 0.0 }
 0x165   : > { %10719 = vst [vmem:[%s12554_s13 + $0x4e0] sm:$0xff] %v10067_v15   ;;  %v11140_v47 = vpop.f32.mrb[60].mxu0  ;;  %11502 = vmatprep.mubr.msk.bf16.mxu1 %vm2521_vm1, %v2476_v21  ;;  %v901_v4 = vmul.f32 %v12853_v25, %v382_v32  ;;  %v13288_v46 = vadd.f32 %v12891_v7, %v899_v50  ;;  %v902_v16 = vmul.f32 %v12853_v25, %v383_v55  ;;  %v387_v40 = vld [vmem:[%s11668_s25 + $0x5c8] sm:$0xff]  ;;  %v642_v50 = vld [vmem:[%s11668_s25 + $0xdc0] sm:$0xff] }
 0x166   : > { %v3568_v62 = vpop.f32.mrb[61].mxu0  ;;  %v1157_v63 = vmul.f32 %v12853_v25, %v638_v61  ;;  %v13294_v21 = vadd.f32 %v12891_v7, %v900_v60  ;;  %v1158_v5 = vmul.f32 %v12853_v25, %v639_v53  ;;  %v13301_v26 = vadd.f32 %v12891_v7, %v1155_v22  ;;  %v643_v53 = vld [vmem:[%s11668_s25 + $0xdc8] sm:$0xff] }
 0x167   : > { %v11396_v2 = vpop.f32.mrb[60].mxu1  ;;  %v11141_v6 = vpop.f32.mrb[62].mxu0  ;;  %v903_v27 = vmul.f32 %v12853_v25, %v384_v10  ;;  %v904_v59 = vmul.f32 %v12853_v25, %v385_v41  ;;  %v2185_v31 = vmax.f32 %v1673_v8, 0.0  ;;  %v1675_v34 = vadd.f32 %v12891_v7, %v1156_v9 }
 0x168   : > { %v4592_v11 = vpop.f32.mrb[61].mxu1  ;;  %v9442_v14 = vpack.c.bf16 %v11141_v6, %v11140_v47  ;;  %v3571_v12 = vpop.f32.mrb[63].mxu0  ;;  %v1420_v13 = vadd.f32 %v12891_v7, %v901_v4  ;;  %v2352_v36 = vpack.c.bf16 %v1929_v3, %v1928_v1  ;;  %v1421_v33 = vadd.f32 %v12891_v7, %v902_v16  ;;  %v388_v4 = vld [vmem:[%s11668_s25 + $0x5d0] sm:$0xff] }
 0x169   : > { %v11397_v18 = vpop.f32.mrb[62].mxu1  ;;  %v9437_v19 = vpack.c.bf16 %v3571_v12, %v3568_v62  ;;  %v13315_v25 = vadd.f32 %v12891_v7, %v1157_v63  ;;  %v1159_v28 = vmul.f32 %v13320_v38, %v640_v17  ;;  %v1930_v42 = vmax.f32 %v13288_v46, 0.0  ;;  %v389_v46 = vld [vmem:[%s11668_s25 + $0x5d8] sm:$0xff] }
 0x16a   : > { %10594 = vst [vmem:[%s12554_s13 + $0xf8] sm:$0xff] %v9442_v14   ;;  %v10082_v24 = vpack.c.bf16 %v11397_v18, %v11396_v2  ;;  %v4595_v52 = vpop.f32.mrb[63].mxu1  ;;  %11247 = vmatmul.mubr.msk.bf16.gmra.mrb[168].mxu0 %vm2521_vm1, %v2349_v48  ;;  %v1931_v37 = vmax.f32 %v13294_v21, 0.0  ;;  %v1677_v43 = vadd.f32 %v12891_v7, %v1158_v5  ;;  %v1160_v15 = vmul.f32 %v13320_v38, %v641_v29  ;;  %v645_v17 = vld [vmem:[%s11668_s25 + $0xdd8] sm:$0xff]  ;;  %v391_v29 = vld [vmem:[%s11668_s25 + $0x5e8] sm:$0xff] }
 0x16b   : > { %10593 = vst [vmem:[%s12554_s13 + $0xf0] sm:$0xff] %v9437_v19   ;;  %v10077_v30 = vpack.c.bf16 %v4595_v52, %v4592_v11  ;;  %11250 = vmatprep.mubr.msk.bf16.mxu0 %vm2521_vm1, %v2350_v54  ;;  %v2186_v45 = vmax.f32 %v13301_v26, 0.0  ;;  %v1422_v23 = vadd.f32 %v12891_v7, %v903_v27  ;;  %v1423_v48 = vadd.f32 %v12891_v7, %v904_v59  ;;  %v13340_v7 = vld [vmem:[%s14222_s2] ss:$0 sm:$0xff]  ;;  %v644_v19 = vld [vmem:[%s11668_s25 + $0xdd0] sm:$0xff] }
 0x16c   : > { %10722 = vst [vmem:[%s12554_s13 + $0x4f8] sm:$0xff] %v10082_v24   ;;  %11503 = vmatmul.mubr.msk.bf16.gmra.mrb[168].mxu1 %vm2521_vm1, %v2477_v49  ;;  %v905_v49 = vmul.f32 %v13320_v38, %v386_v35  ;;  %v2480_v47 = vpack.c.bf16 %v2185_v31, %v2184_v20  ;;  %v2187_v54 = vmax.f32 %v1675_v34, 0.0  ;;  %v906_v57 = vmul.f32 %v13320_v38, %v387_v40  ;;  %v390_v24 = vld [vmem:[%s11668_s25 + $0x5e0] sm:$0xff] }
 0x16d   : > { %10721 = vst [vmem:[%s12554_s13 + $0x4f0] sm:$0xff] %v10077_v30   ;;  %v11144_v39 = vpop.f32.mrb[64].mxu0  ;;  %11506 = vmatprep.mubr.msk.bf16.mxu1 %vm2521_vm1, %v2478_v56  ;;  %v1932_v56 = vmax.f32 %v1420_v13, 0.0  ;;  %v1933_v62 = vmax.f32 %v1421_v33, 0.0  ;;  %v2188_v1 = vmax.f32 %v13315_v25, 0.0  ;;  %v13343_v22 = vadd.f32 %v13340_v7, %v1159_v28  ;;  %v646_v30 = vld [vmem:[%s11668_s25 + $0xde0] sm:$0xff] }
 0x16e   : > { %v3584_v44 = vpop.f32.mrb[65].mxu0  ;;  %v2189_v3 = vmax.f32 %v1677_v43, 0.0  ;;  %v13347_v8 = vadd.f32 %v13340_v7, %v1160_v15  ;;  %v1161_v9 = vmul.f32 %v13320_v38, %v642_v50  ;;  %v1934_v11 = vmax.f32 %v1422_v23, 0.0  ;;  %v647_v33 = vld [vmem:[%s11668_s25 + $0xde8] sm:$0xff]  ;;  %v392_v43 = vld [vmem:[%s11668_s25 + $0x5f0] sm:$0xff]  ;;  %v393_v15 = vld [vmem:[%s11668_s25 + $0x5f8] sm:$0xff] }
 0x16f   : > { %v11400_v51 = vpop.f32.mrb[64].mxu1  ;;  %v11145_v32 = vpop.f32.mrb[66].mxu0  ;;  %v1935_v14 = vmax.f32 %v1423_v48, 0.0  ;;  %v13355_v12 = vadd.f32 %v13340_v7, %v905_v49  ;;  %v13361_v63 = vadd.f32 %v13340_v7, %v906_v57  ;;  %v1162_v18 = vmul.f32 %v13320_v38, %v643_v53 }
 0x170   : > { %v4608_v60 = vpop.f32.mrb[65].mxu1  ;;  %v9452_v55 = vpack.c.bf16 %v11145_v32, %v11144_v39  ;;  %v3587_v61 = vpop.f32.mrb[67].mxu0  ;;  %v2481_v20 = vpack.c.bf16 %v2187_v54, %v2186_v45  ;;  %v2354_v21 = vpack.c.bf16 %v1933_v62, %v1932_v56  ;;  %v907_v5 = vmul.f32 %v13320_v38, %v388_v4 }
 0x171   : > { %v11401_v2 = vpop.f32.mrb[66].mxu1  ;;  %v9447_v6 = vpack.c.bf16 %v3587_v61, %v3584_v44  ;;  %v2190_v26 = vmax.f32 %v13343_v22, 0.0  ;;  %v2191_v27 = vmax.f32 %v13347_v8, 0.0  ;;  %v13376_v59 = vadd.f32 %v13340_v7, %v1161_v9  ;;  %v649_v22 = vld [vmem:[%s11668_s25 + $0xdf8] sm:$0xff] }
 0x172   : > { %10596 = vst [vmem:[%s12554_s13 + $0x108] sm:$0xff] %v9452_v55   ;;  %v10092_v10 = vpack.c.bf16 %v11401_v2, %v11400_v51  ;;  %v4611_v41 = vpop.f32.mrb[67].mxu1  ;;  %11251 = vmatmul.mubr.msk.bf16.gmra.mrb[172].mxu0 %vm2521_vm1, %v13274_v58  ;;  %v2353_v58 = vpack.c.bf16 %v1931_v37, %v1930_v42  ;;  %v2482_v34 = vpack.c.bf16 %v2189_v3, %v2188_v1  ;;  %v1936_v35 = vmax.f32 %v13355_v12, 0.0  ;;  %v648_v1 = vld [vmem:[%s11668_s25 + $0xdf0] sm:$0xff] }
 0x173   : > { %10595 = vst [vmem:[%s12554_s13 + $0x100] sm:$0xff] %v9447_v6   ;;  %v10087_v16 = vpack.c.bf16 %v4611_v41, %v4608_v60  ;;  %11254 = vmatprep.mubr.msk.bf16.mxu0 %vm2521_vm1, %v2352_v36  ;;  %v13381_v13 = vpack.c.bf16 %v1935_v14, %v1934_v11  ;;  %v1163_v36 = vmul.f32 %v13320_v38, %v644_v19  ;;  %v1937_v40 = vmax.f32 %v13361_v63, 0.0  ;;  %v394_v41 = vld [vmem:[%s11668_s25 + $0x600] sm:$0xff]  ;;  %v395_v63 = vld [vmem:[%s11668_s25 + $0x608] sm:$0xff] }
 0x174   : > { %10724 = vst [vmem:[%s12554_s13 + $0x508] sm:$0xff] %v10092_v10   ;;  %11507 = vmatmul.mubr.msk.bf16.gmra.mrb[172].mxu1 %vm2521_vm1, %v13276_v0  ;;  %v908_v0 = vmul.f32 %v13320_v38, %v389_v46  ;;  %v1681_v39 = vadd.f32 %v13340_v7, %v1162_v18  ;;  %v1164_v42 = vmul.f32 %v13320_v38, %v645_v17 }
 0x175   : > { %10723 = vst [vmem:[%s12554_s13 + $0x500] sm:$0xff] %v10087_v16   ;;  %v11148_v52 = vpop.f32.mrb[68].mxu0  ;;  %11510 = vmatprep.mubr.msk.bf16.mxu1 %vm2521_vm1, %v2480_v47  ;;  %v909_v37 = vmul.f32 %v13320_v38, %v390_v24  ;;  %v13393_v48 = vadd.f32 %v13340_v7, %v907_v5  ;;  %v910_v49 = vmul.f32 %v13320_v38, %v391_v29  ;;  %v2192_v47 = vmax.f32 %v13376_v59, 0.0  ;;  %v650_v59 = vld [vmem:[%s11668_s25 + $0xe00] sm:$0xff] }
 0x176   : > { %v3600_v31 = vpop.f32.mrb[69].mxu0  ;;  %v1165_v50 = vmul.f32 %v13320_v38, %v646_v30  ;;  %v13399_v54 = vadd.f32 %v13340_v7, %v908_v0  ;;  %v1166_v56 = vmul.f32 %v13320_v38, %v647_v33  ;;  %v13405_v55 = vadd.f32 %v13340_v7, %v1163_v36  ;;  %v651_v36 = vld [vmem:[%s11668_s25 + $0xe08] sm:$0xff] }
 0x177   : > { %v11404_v25 = vpop.f32.mrb[68].mxu1  ;;  %v11149_v28 = vpop.f32.mrb[70].mxu0  ;;  %v911_v61 = vmul.f32 %v13320_v38, %v392_v43  ;;  %v912_v62 = vmul.f32 %v13320_v38, %v393_v15  ;;  %v2193_v2 = vmax.f32 %v1681_v39, 0.0  ;;  %v1683_v6 = vadd.f32 %v13340_v7, %v1164_v42 }
 0x178   : > { %v4624_v44 = vpop.f32.mrb[69].mxu1  ;;  %v9462_v45 = vpack.c.bf16 %v11149_v28, %v11148_v52  ;;  %v3603_v23 = vpop.f32.mrb[71].mxu0  ;;  %v13415_v3 = vadd.f32 %v13340_v7, %v909_v37  ;;  %v2483_v8 = vpack.c.bf16 %v2191_v27, %v2190_v26  ;;  %v2356_v9 = vpack.c.bf16 %v1937_v40, %v1936_v35 }
 0x179   : > { %v11405_v51 = vpop.f32.mrb[70].mxu1  ;;  %v9457_v32 = vpack.c.bf16 %v3603_v23, %v3600_v31  ;;  %v1429_v4 = vadd.f32 %v13340_v7, %v910_v49  ;;  %v13421_v10 = vadd.f32 %v13340_v7, %v1165_v50  ;;  %v1938_v14 = vmax.f32 %v13393_v48, 0.0  ;;  %v397_v50 = vld [vmem:[%s11668_s25 + $0x618] sm:$0xff] }
 0x17a   : > { %10598 = vst [vmem:[%s12554_s13 + $0x118] sm:$0xff] %v9462_v45   ;;  %v10102_v57 = vpack.c.bf16 %v11405_v51, %v11404_v25  ;;  %v4627_v60 = vpop.f32.mrb[71].mxu1  ;;  %11255 = vmatmul.mubr.msk.bf16.gmra.mrb[176].mxu0 %vm2521_vm1, %v2353_v58  ;;  %v1685_v12 = vadd.f32 %v13340_v7, %v1166_v56  ;;  %v1167_v46 = vmul.f32 %v13320_v38, %v648_v1  ;;  %v1939_v19 = vmax.f32 %v13399_v54, 0.0  ;;  %v396_v45 = vld [vmem:[%s11668_s25 + $0x610] sm:$0xff]  ;;  %v653_v54 = vld [vmem:[%s11668_s25 + $0xe18] sm:$0xff]  ;;  %v399_v1 = vld [vmem:[%s11668_s25 + $0x628] sm:$0xff] }
 0x17b   : > { %10597 = vst [vmem:[%s12554_s13 + $0x110] sm:$0xff] %v9457_v32   ;;  %v10097_v53 = vpack.c.bf16 %v4627_v60, %v4624_v44  ;;  %11258 = vmatprep.mubr.msk.bf16.mxu0 %vm2521_vm1, %v2354_v21  ;;  %v1168_v16 = vmul.f32 %v13320_v38, %v649_v22  ;;  %v2194_v58 = vmax.f32 %v13405_v55, 0.0  ;;  %v1431_v21 = vadd.f32 %v13340_v7, %v912_v62  ;;  %v398_v62 = vld [vmem:[%s11668_s25 + $0x620] sm:$0xff] }
 0x17c   : > { %10726 = vst [vmem:[%s12554_s13 + $0x518] sm:$0xff] %v10102_v57   ;;  %11511 = vmatmul.mubr.msk.bf16.gmra.mrb[176].mxu1 %vm2521_vm1, %v2481_v20  ;;  %v1430_v20 = vadd.f32 %v13340_v7, %v911_v61  ;;  %v2484_v24 = vpack.c.bf16 %v2193_v2, %v2192_v47  ;;  %v2195_v52 = vmax.f32 %v1683_v6, 0.0  ;;  %v1940_v26 = vmax.f32 %v13415_v3, 0.0  ;;  %v652_v47 = vld [vmem:[%s11668_s25 + $0xe10] sm:$0xff] }
 0x17d   : > { %10725 = vst [vmem:[%s12554_s13 + $0x510] sm:$0xff] %v10097_v53   ;;  %v11152_v11 = vpop.f32.mrb[72].mxu0  ;;  %11514 = vmatprep.mubr.msk.bf16.mxu1 %vm2521_vm1, %v2482_v34  ;;  %v913_v27 = vmul.f32 %v13320_v38, %v394_v41  ;;  %v1941_v31 = vmax.f32 %v1429_v4, 0.0  ;;  %v2196_v34 = vmax.f32 %v13421_v10, 0.0  ;;  %v914_v35 = vmul.f32 %v13320_v38, %v395_v63 }
 0x17e   : > { %v3616_v18 = vpop.f32.mrb[73].mxu0  ;;  %v2197_v28 = vmax.f32 %v1685_v12, 0.0  ;;  %v1686_v40 = vadd.f32 %v13340_v7, %v1167_v46  ;;  %v1687_v39 = vadd.f32 %v13340_v7, %v1168_v16  ;;  %v1942_v43 = vmax.f32 %v1430_v20, 0.0  ;;  %v655_v12 = vld [vmem:[%s11668_s25 + $0xe28] sm:$0xff] }
 0x17f   : > { %v11408_v5 = vpop.f32.mrb[72].mxu1  ;;  %v11153_v17 = vpop.f32.mrb[74].mxu0  ;;  %v1943_v15 = vmax.f32 %v1431_v21, 0.0  ;;  %v1169_v44 = vmul.f32 %v13320_v38, %v650_v59  ;;  %v13451_v48 = vadd.f32 %v13340_v7, %v913_v27  ;;  %v1170_v49 = vmul.f32 %v13320_v38, %v651_v36 }
 0x180   : > { %v4640_v0 = vpop.f32.mrb[73].mxu1  ;;  %v9472_v29 = vpack.c.bf16 %v11153_v17, %v11152_v11  ;;  %v3619_v30 = vpop.f32.mrb[75].mxu0  ;;  %v2485_v51 = vpack.c.bf16 %v2195_v52, %v2194_v58  ;;  %v1433_v32 = vadd.f32 %v13340_v7, %v914_v35  ;;  %v2358_v57 = vpack.c.bf16 %v1941_v31, %v1940_v26  ;;  %v400_v52 = vld [vmem:[%s11668_s25 + $0x630] sm:$0xff] }
 0x181   : > { %v11409_v33 = vpop.f32.mrb[74].mxu1  ;;  %v9467_v25 = vpack.c.bf16 %v3619_v30, %v3616_v18  ;;  %v2198_v60 = vmax.f32 %v1686_v40, 0.0  ;;  %v2199_v55 = vmax.f32 %v1687_v39, 0.0  ;;  %v915_v61 = vmul.f32 %v13320_v38, %v396_v45  ;;  %v401_v30 = vld [vmem:[%s11668_s25 + $0x638] sm:$0xff]  ;;  %v656_v31 = vld [vmem:[%s11668_s25 + $0xe30] sm:$0xff] }
 0x182   : > { %10600 = vst [vmem:[%s12554_s13 + $0x128] sm:$0xff] %v9472_v29   ;;  %v10112_v42 = vpack.c.bf16 %v11409_v33, %v11408_v5  ;;  %v4643_v37 = vpop.f32.mrb[75].mxu1  ;;  %11259 = vmatmul.mubr.msk.bf16.gmra.mrb[180].mxu0 %vm2521_vm1, %v13381_v13  ;;  %v2357_v13 = vpack.c.bf16 %v1939_v19, %v1938_v14  ;;  %v2486_v53 = vpack.c.bf16 %v2197_v28, %v2196_v34  ;;  %v1944_v10 = vmax.f32 %v13451_v48, 0.0  ;;  %v402_v28 = vld [vmem:[%s11668_s25 + $0x640] sm:$0xff] }
 0x183   : > { %10599 = vst [vmem:[%s12554_s13 + $0x120] sm:$0xff] %v9467_v25   ;;  %v10107_v23 = vpack.c.bf16 %v4643_v37, %v4640_v0  ;;  %11262 = vmatprep.mubr.msk.bf16.mxu0 %vm2521_vm1, %v2356_v9  ;;  %v13465_v2 = vpack.c.bf16 %v1943_v15, %v1942_v43  ;;  %v1688_v6 = vadd.f32 %v13340_v7, %v1169_v44  ;;  %v1945_v18 = vmax.f32 %v1433_v32, 0.0  ;;  %v657_v25 = vld [vmem:[%s11668_s25 + $0xe38] sm:$0xff]  ;;  %v403_v43 = vld [vmem:[%s11668_s25 + $0x648] sm:$0xff] }
 0x184   : > { %10728 = vst [vmem:[%s12554_s13 + $0x528] sm:$0xff] %v10112_v42   ;;  %11515 = vmatmul.mubr.msk.bf16.gmra.mrb[180].mxu1 %vm2521_vm1, %v2483_v8  ;;  %v916_v3 = vmul.f32 %v13320_v38, %v397_v50  ;;  %v654_v8 = vld [vmem:[%s11668_s25 + $0xe20] sm:$0xff]  ;;  %v1689_v41 = vadd.f32 %v13340_v7, %v1170_v49  ;;  %v1171_v11 = vmul.f32 %v13320_v38, %v652_v47 }
 0x185   : > { %10727 = vst [vmem:[%s12554_s13 + $0x520] sm:$0xff] %v10107_v23   ;;  %v11156_v56 = vpop.f32.mrb[76].mxu0  ;;  %11518 = vmatprep.mubr.msk.bf16.mxu1 %vm2521_vm1, %v2484_v24  ;;  %v1172_v14 = vmul.f32 %v13320_v38, %v653_v54  ;;  %v917_v19 = vmul.f32 %v13320_v38, %v398_v62  ;;  %v918_v58 = vmul.f32 %v13320_v38, %v399_v1  ;;  %v2200_v59 = vmax.f32 %v1688_v6, 0.0 }
 0x186   : > { %v3632_v22 = vpop.f32.mrb[77].mxu0  ;;  %v13477_v5 = vpack.c.bf16 %v2199_v55, %v2198_v60  ;;  %v13480_v17 = vadd.f32 %v13340_v7, %v915_v61  ;;  %v1173_v24 = vmul.f32 %v13320_v38, %v654_v8  ;;  %v13487_v0 = vadd.f32 %v13340_v7, %v916_v3  ;;  %v658_v3 = vld [vmem:[%s11668_s25 + $0xe40] sm:$0xff] }
 0x187   : > { %v11412_v9 = vpop.f32.mrb[76].mxu1  ;;  %v11157_v4 = vpop.f32.mrb[78].mxu0  ;;  %v1174_v29 = vmul.f32 %v13320_v38, %v655_v12  ;;  %v2201_v35 = vmax.f32 %v1689_v41, 0.0  ;;  %v1690_v36 = vadd.f32 %v13340_v7, %v1171_v11  ;;  %v1691_v33 = vadd.f32 %v13340_v7, %v1172_v14  ;;  %v659_v11 = vld [vmem:[%s11668_s25 + $0xe48] sm:$0xff] }
 0x188   : > { %v4656_v46 = vpop.f32.mrb[77].mxu1  ;;  %v9482_v16 = vpack.c.bf16 %v11157_v4, %v11156_v56  ;;  %v3635_v63 = vpop.f32.mrb[79].mxu0  ;;  %v2360_v40 = vpack.c.bf16 %v1945_v18, %v1944_v10  ;;  %v1436_v39 = vadd.f32 %v13340_v7, %v917_v19  ;;  %v1437_v42 = vadd.f32 %v13340_v7, %v918_v58  ;;  %v404_v18 = vld [vmem:[%s11668_s25 + $0x650] sm:$0xff] }
 0x189   : > { %v11413_v20 = vpop.f32.mrb[78].mxu1  ;;  %v9477_v21 = vpack.c.bf16 %v3635_v63, %v3632_v22  ;;  %v919_v37 = vmul.f32 %v13320_v38, %v400_v52  ;;  %v1946_v44 = vmax.f32 %v13480_v17, 0.0  ;;  %v1692_v45 = vadd.f32 %v13340_v7, %v1173_v24 }
 0x18a   : > { %10602 = vst [vmem:[%s12554_s13 + $0x138] sm:$0xff] %v9482_v16   ;;  %v10122_v26 = vpack.c.bf16 %v11413_v20, %v11412_v9  ;;  %v4659_v27 = vpop.f32.mrb[79].mxu1  ;;  %11263 = vmatmul.mubr.msk.bf16.gmra.mrb[184].mxu0 %vm2521_vm1, %v2357_v13  ;;  %v920_v23 = vmul.f32 %v13320_v38, %v401_v30  ;;  %v1175_v48 = vmul.f32 %v13320_v38, %v656_v31  ;;  %v1947_v50 = vmax.f32 %v13487_v0, 0.0 }
 0x18b   : > { %10601 = vst [vmem:[%s12554_s13 + $0x130] sm:$0xff] %v9477_v21   ;;  %v10117_v34 = vpack.c.bf16 %v4659_v27, %v4656_v46  ;;  %11266 = vmatprep.mubr.msk.bf16.mxu0 %vm2521_vm1, %v2358_v57  ;;  %v1693_v13 = vadd.f32 %v13340_v7, %v1174_v29  ;;  %v921_v32 = vmul.f32 %v13320_v38, %v402_v28  ;;  %v2202_v57 = vmax.f32 %v1690_v36, 0.0  ;;  %v405_v21 = vld [vmem:[%s11668_s25 + $0x658] sm:$0xff] }
 0x18c   : > { %10730 = vst [vmem:[%s12554_s13 + $0x538] sm:$0xff] %v10122_v26   ;;  %11519 = vmatmul.mubr.msk.bf16.gmra.mrb[184].mxu1 %vm2521_vm1, %v2485_v51  ;;  %v1176_v51 = vmul.f32 %v13320_v38, %v657_v25  ;;  %v2488_v56 = vpack.c.bf16 %v2201_v35, %v2200_v59  ;;  %v2203_v60 = vmax.f32 %v1691_v33, 0.0  ;;  %v922_v55 = vmul.f32 %v13320_v38, %v403_v43  ;;  %v660_v26 = vld [vmem:[%s11668_s25 + $0xe50] sm:$0xff]  ;;  %v661_v27 = vld [vmem:[%s11668_s25 + $0xe58] sm:$0xff] }
 0x18d   : > { %10729 = vst [vmem:[%s12554_s13 + $0x530] sm:$0xff] %v10117_v34   ;;  %v11160_v15 = vpop.f32.mrb[80].mxu0  ;;  %11522 = vmatprep.mubr.msk.bf16.mxu1 %vm2521_vm1, %v2486_v53  ;;  %v1948_v22 = vmax.f32 %v1436_v39, 0.0  ;;  %v1949_v53 = vmax.f32 %v1437_v42, 0.0  ;;  %v1438_v6 = vadd.f32 %v13340_v7, %v919_v37  ;;  %v2204_v4 = vmax.f32 %v1692_v45, 0.0  ;;  %v406_v34 = vld [vmem:[%s11668_s25 + $0x660] sm:$0xff] }
 0x18e   : > { %v3648_v49 = vpop.f32.mrb[81].mxu0  ;;  %v1439_v10 = vadd.f32 %v13340_v7, %v920_v23  ;;  %v1694_v41 = vadd.f32 %v13340_v7, %v1175_v48  ;;  %v2205_v46 = vmax.f32 %v1693_v13, 0.0  ;;  %v1695_v16 = vadd.f32 %v13340_v7, %v1176_v51  ;;  %v663_v45 = vld [vmem:[%s11668_s25 + $0xe68] sm:$0xff] }
 0x18f   : > { %v11416_v47 = vpop.f32.mrb[80].mxu1  ;;  %v11161_v54 = vpop.f32.mrb[82].mxu0  ;;  %v1440_v63 = vadd.f32 %v13340_v7, %v921_v32  ;;  %v1441_v58 = vadd.f32 %v13340_v7, %v922_v55  ;;  %v1177_v20 = vmul.f32 %v13320_v38, %v658_v3  ;;  %v2489_v17 = vpack.c.bf16 %v2203_v60, %v2202_v57 }
 0x190   : > { %v4672_v61 = vpop.f32.mrb[81].mxu1  ;;  %v9492_v62 = vpack.c.bf16 %v11161_v54, %v11160_v15  ;;  %v3651_v1 = vpop.f32.mrb[83].mxu0  ;;  %v2362_v24 = vpack.c.bf16 %v1949_v53, %v1948_v22  ;;  %v1178_v52 = vmul.f32 %v13320_v38, %v659_v11  ;;  %v1950_v0 = vmax.f32 %v1438_v6, 0.0  ;;  %v408_v22 = vld [vmem:[%s11668_s25 + $0x670] sm:$0xff]  ;;  %v409_v53 = vld [vmem:[%s11668_s25 + $0x678] sm:$0xff] }
 0x191   : > { %v11417_v8 = vpop.f32.mrb[82].mxu1  ;;  %v9487_v9 = vpack.c.bf16 %v3651_v1, %v3648_v49  ;;  %v1951_v29 = vmax.f32 %v1439_v10, 0.0  ;;  %v2206_v30 = vmax.f32 %v1694_v41, 0.0  ;;  %v923_v31 = vmul.f32 %v13320_v38, %v404_v18  ;;  %v665_v10 = vld [vmem:[%s11668_s25 + $0xe78] sm:$0xff] }
 0x192   : > { %10604 = vst [vmem:[%s12554_s13 + $0x148] sm:$0xff] %v9492_v62   ;;  %v10132_v14 = vpack.c.bf16 %v11417_v8, %v11416_v47  ;;  %v4675_v12 = vpop.f32.mrb[83].mxu1  ;;  %11267 = vmatmul.mubr.msk.bf16.gmra.mrb[188].mxu0 %vm2521_vm1, %v13465_v2  ;;  %v2361_v2 = vpack.c.bf16 %v1947_v50, %v1946_v44  ;;  %v2490_v36 = vpack.c.bf16 %v2205_v46, %v2204_v4  ;;  %v2207_v33 = vmax.f32 %v1695_v16, 0.0  ;;  %v664_v4 = vld [vmem:[%s11668_s25 + $0xe70] sm:$0xff]  ;;  %v410_v46 = vld [vmem:[%s11668_s25 + $0x680] sm:$0xff]  ;;  %v411_v16 = vld [vmem:[%s11668_s25 + $0x688] sm:$0xff] }
 0x193   : > { %10603 = vst [vmem:[%s12554_s13 + $0x140] sm:$0xff] %v9487_v9   ;;  %v10127_v19 = vpack.c.bf16 %v4675_v12, %v4672_v61  ;;  %11270 = vmatprep.mubr.msk.bf16.mxu0 %vm2521_vm1, %v2360_v40  ;;  %v1952_v25 = vmax.f32 %v1440_v63, 0.0  ;;  %v924_v28 = vmul.f32 %v13320_v38, %v405_v21  ;;  %v662_v40 = vld [vmem:[%s11668_s25 + $0xe60] sm:$0xff]  ;;  %v1953_v37 = vmax.f32 %v1441_v58, 0.0 }
 0x194   : > { %10732 = vst [vmem:[%s12554_s13 + $0x548] sm:$0xff] %v10132_v14   ;;  %11523 = vmatmul.mubr.msk.bf16.gmra.mrb[188].mxu1 %vm2521_vm1, %v13477_v5  ;;  %v407_v5 = vld [vmem:[%s11668_s25 + $0x668] sm:$0xff]  ;;  %v1696_v43 = vadd.f32 %v13340_v7, %v1177_v20  ;;  %v1179_v15 = vmul.f32 %v13320_v38, %v660_v26  ;;  %v1180_v44 = vmul.f32 %v13320_v38, %v661_v27 }
 0x195   : > { %10731 = vst [vmem:[%s12554_s13 + $0x540] sm:$0xff] %v10127_v19   ;;  %v11164_v59 = vpop.f32.mrb[84].mxu0  ;;  %11526 = vmatprep.mubr.msk.bf16.mxu1 %vm2521_vm1, %v2488_v56  ;;  %v1697_v50 = vadd.f32 %v13340_v7, %v1178_v52  ;;  %v925_v13 = vmul.f32 %v13320_v38, %v406_v34  ;;  %v926_v51 = vmul.f32 %v13320_v38, %v407_v5 }
 0x196   : > { %v3664_v35 = vpop.f32.mrb[85].mxu0  ;;  %v2363_v54 = vpack.c.bf16 %v1951_v29, %v1950_v0  ;;  %v13552_v56 = vadd.f32 %v13340_v7, %v923_v31  ;;  %v1181_v57 = vmul.f32 %v13320_v38, %v662_v40  ;;  %v13557_v61 = vpack.c.bf16 %v2207_v33, %v2206_v30 }
 0x197   : > { %v11420_v39 = vpop.f32.mrb[84].mxu1  ;;  %v11165_v42 = vpop.f32.mrb[86].mxu0  ;;  %v13560_v62 = vadd.f32 %v13340_v7, %v924_v28  ;;  %v1182_v1 = vmul.f32 %v13320_v38, %v663_v45  ;;  %v2364_v3 = vpack.c.bf16 %v1953_v37, %v1952_v25  ;;  %v1698_v8 = vadd.f32 %v13340_v7, %v1179_v15  ;;  %v666_v25 = vld [vmem:[%s11668_s25 + $0xe80] sm:$0xff] }
 0x198   : > { %v4688_v23 = vpop.f32.mrb[85].mxu1  ;;  %v9502_v48 = vpack.c.bf16 %v11165_v42, %v11164_v59  ;;  %v3667_v49 = vpop.f32.mrb[87].mxu0  ;;  %v1699_v9 = vadd.f32 %v13340_v7, %v1180_v44  ;;  %v2208_v41 = vmax.f32 %v1696_v43, 0.0  ;;  %v2209_v11 = vmax.f32 %v1697_v50, 0.0  ;;  %v667_v43 = vld [vmem:[%s11668_s25 + $0xe88] sm:$0xff] }
 0x199   : > { %v11421_v32 = vpop.f32.mrb[86].mxu1  ;;  %v9497_v47 = vpack.c.bf16 %v3667_v49, %v3664_v35  ;;  %v1444_v14 = vadd.f32 %v13340_v7, %v925_v13  ;;  %v1445_v12 = vadd.f32 %v13340_v7, %v926_v51  ;;  %v1954_v18 = vmax.f32 %v13552_v56, 0.0  ;;  %v412_v49 = vld [vmem:[%s11668_s25 + $0x690] sm:$0xff] }
 0x19a   : > { %10606 = vst [vmem:[%s12554_s13 + $0x158] sm:$0xff] %v9502_v48   ;;  %v10142_v60 = vpack.c.bf16 %v11421_v32, %v11420_v39  ;;  %v4691_v55 = vpop.f32.mrb[87].mxu1  ;;  %11271 = vmatmul.mubr.msk.bf16.gmra.mrb[192].mxu0 %vm2521_vm1, %v2361_v2  ;;  %v1700_v19 = vadd.f32 %v13340_v7, %v1181_v57  ;;  %v927_v58 = vmul.f32 %v13320_v38, %v408_v22  ;;  %v1955_v2 = vmax.f32 %v13560_v62, 0.0 }
 0x19b   : > { %10605 = vst [vmem:[%s12554_s13 + $0x150] sm:$0xff] %v9497_v47   ;;  %v10137_v6 = vpack.c.bf16 %v4691_v55, %v4688_v23  ;;  %11274 = vmatprep.mubr.msk.bf16.mxu0 %vm2521_vm1, %v2362_v24  ;;  %v928_v20 = vmul.f32 %v13320_v38, %v409_v53  ;;  %v1183_v24 = vmul.f32 %v13320_v38, %v664_v4  ;;  %v2210_v59 = vmax.f32 %v1698_v8, 0.0  ;;  %v413_v47 = vld [vmem:[%s11668_s25 + $0x698] sm:$0xff] }
 0x19c   : > { %10734 = vst [vmem:[%s12554_s13 + $0x558] sm:$0xff] %v10142_v60   ;;  %11527 = vmatmul.mubr.msk.bf16.gmra.mrb[192].mxu1 %vm2521_vm1, %v2489_v17  ;;  %v1701_v17 = vadd.f32 %v13340_v7, %v1182_v1  ;;  %v1184_v52 = vmul.f32 %v13320_v38, %v665_v10  ;;  %v2211_v0 = vmax.f32 %v1699_v9, 0.0  ;;  %v929_v29 = vmul.f32 %v13320_v38, %v410_v46  ;;  %v668_v60 = vld [vmem:[%s11668_s25 + $0xe90] sm:$0xff] }
 0x19d   : > { %10733 = vst [vmem:[%s12554_s13 + $0x550] sm:$0xff] %v10137_v6   ;;  %v11168_v63 = vpop.f32.mrb[88].mxu0  ;;  %11530 = vmatprep.mubr.msk.bf16.mxu1 %vm2521_vm1, %v2490_v36  ;;  %v930_v30 = vmul.f32 %v13320_v38, %v411_v16  ;;  %v2492_v35 = vpack.c.bf16 %v2209_v11, %v2208_v41  ;;  %v1956_v36 = vmax.f32 %v1444_v14, 0.0  ;;  %v1957_v33 = vmax.f32 %v1445_v12, 0.0  ;;  %v669_v6 = vld [vmem:[%s11668_s25 + $0xe98] sm:$0xff]  ;;  %v415_v41 = vld [vmem:[%s11668_s25 + $0x6a8] sm:$0xff] }
 0x19e   : > { %v3680_v21 = vpop.f32.mrb[89].mxu0  ;;  %v2212_v39 = vmax.f32 %v1700_v19, 0.0  ;;  %v1446_v42 = vadd.f32 %v13340_v7, %v927_v58  ;;  %v1447_v37 = vadd.f32 %v13340_v7, %v928_v20  ;;  %v2213_v45 = vmax.f32 %v1701_v17, 0.0 }
 0x19f   : > { %v11424_v26 = vpop.f32.mrb[88].mxu1  ;;  %v11169_v27 = vpop.f32.mrb[90].mxu0  ;;  %v1702_v23 = vadd.f32 %v13340_v7, %v1183_v24  ;;  %v1703_v48 = vadd.f32 %v13340_v7, %v1184_v52  ;;  %v1448_v13 = vadd.f32 %v13340_v7, %v929_v29  ;;  %v1449_v51 = vadd.f32 %v13340_v7, %v930_v30  ;;  %v671_v24 = vld [vmem:[%s11668_s25 + $0xea8] sm:$0xff] }
 0x1a0   : > { %v4704_v31 = vpop.f32.mrb[89].mxu1  ;;  %v9512_v34 = vpack.c.bf16 %v11169_v27, %v11168_v63  ;;  %v3683_v5 = vpop.f32.mrb[91].mxu0  ;;  %v1185_v32 = vmul.f32 %v13320_v38, %v666_v25  ;;  %v2493_v56 = vpack.c.bf16 %v2211_v0, %v2210_v59  ;;  %v1186_v57 = vmul.f32 %v13320_v38, %v667_v43 }
 0x1a1   : > { %v11425_v28 = vpop.f32.mrb[90].mxu1  ;;  %v9507_v40 = vpack.c.bf16 %v3683_v5, %v3680_v21  ;;  %v2366_v62 = vpack.c.bf16 %v1957_v33, %v1956_v36  ;;  %v1958_v1 = vmax.f32 %v1446_v42, 0.0  ;;  %v1959_v22 = vmax.f32 %v1447_v37, 0.0  ;;  %v417_v36 = vld [vmem:[%s11668_s25 + $0x6b8] sm:$0xff] }
 0x1a2   : > { %10608 = vst [vmem:[%s12554_s13 + $0x168] sm:$0xff] %v9512_v34   ;;  %v10152_v15 = vpack.c.bf16 %v11425_v28, %v11424_v26  ;;  %v4707_v44 = vpop.f32.mrb[91].mxu1  ;;  %11275 = vmatmul.mubr.msk.bf16.gmra.mrb[196].mxu0 %vm2521_vm1, %v2363_v54  ;;  %v2365_v54 = vpack.c.bf16 %v1955_v2, %v1954_v18  ;;  %v931_v53 = vmul.f32 %v13320_v38, %v412_v49  ;;  %v2214_v9 = vmax.f32 %v1702_v23, 0.0  ;;  %v670_v18 = vld [vmem:[%s11668_s25 + $0xea0] sm:$0xff]  ;;  %v673_v42 = vld [vmem:[%s11668_s25 + $0xeb8] sm:$0xff]  ;;  %v419_v23 = vld [vmem:[%s11668_s25 + $0x6c8] sm:$0xff] }
 0x1a3   : > { %10607 = vst [vmem:[%s12554_s13 + $0x160] sm:$0xff] %v9507_v40   ;;  %v10147_v50 = vpack.c.bf16 %v4707_v44, %v4704_v31  ;;  %11278 = vmatprep.mubr.msk.bf16.mxu0 %vm2521_vm1, %v2364_v3  ;;  %v414_v3 = vld [vmem:[%s11668_s25 + $0x6a0] sm:$0xff]  ;;  %v2215_v4 = vmax.f32 %v1703_v48, 0.0  ;;  %v932_v10 = vmul.f32 %v13320_v38, %v413_v47  ;;  %v1960_v12 = vmax.f32 %v1448_v13, 0.0 }
 0x1a4   : > { %10736 = vst [vmem:[%s12554_s13 + $0x568] sm:$0xff] %v10152_v15   ;;  %11531 = vmatmul.mubr.msk.bf16.gmra.mrb[196].mxu1 %vm2521_vm1, %v13557_v61  ;;  %v2494_v61 = vpack.c.bf16 %v2213_v45, %v2212_v39  ;;  %v1961_v46 = vmax.f32 %v1449_v51, 0.0  ;;  %v1704_v16 = vadd.f32 %v13340_v7, %v1185_v32  ;;  %v1187_v63 = vmul.f32 %v13320_v38, %v668_v60  ;;  %v672_v39 = vld [vmem:[%s11668_s25 + $0xeb0] sm:$0xff]  ;;  %v418_v45 = vld [vmem:[%s11668_s25 + $0x6c0] sm:$0xff] }
 0x1a5   : > { %10735 = vst [vmem:[%s12554_s13 + $0x560] sm:$0xff] %v10147_v50   ;;  %v11172_v55 = vpop.f32.mrb[92].mxu0  ;;  %11534 = vmatprep.mubr.msk.bf16.mxu1 %vm2521_vm1, %v2492_v35  ;;  %v1705_v21 = vadd.f32 %v13340_v7, %v1186_v57  ;;  %v1188_v2 = vmul.f32 %v13320_v38, %v669_v6  ;;  %v933_v17 = vmul.f32 %v13320_v38, %v414_v3  ;;  %v416_v35 = vld [vmem:[%s11668_s25 + $0x6b0] sm:$0xff] }
 0x1a6   : > { %v3696_v8 = vpop.f32.mrb[93].mxu0  ;;  %v2367_v27 = vpack.c.bf16 %v1959_v22, %v1958_v1  ;;  %v13624_v59 = vadd.f32 %v13340_v7, %v931_v53  ;;  %v934_v0 = vmul.f32 %v13320_v38, %v415_v41  ;;  %v13629_v31 = vpack.c.bf16 %v2215_v4, %v2214_v9 }
 0x1a7   : > { %v11428_v11 = vpop.f32.mrb[92].mxu1  ;;  %v11173_v14 = vpop.f32.mrb[94].mxu0  ;;  %v13632_v34 = vadd.f32 %v13340_v7, %v932_v10  ;;  %v1189_v5 = vmul.f32 %v13320_v38, %v670_v18  ;;  %v2368_v25 = vpack.c.bf16 %v1961_v46, %v1960_v12  ;;  %v13640_v28 = vadd.f32 %v13340_v7, %v1187_v63  ;;  %v674_v46 = vld [vmem:[%s11668_s25 + $0xec0] sm:$0xff] }
 0x1a8   : > { %v4720_v19 = vpop.f32.mrb[93].mxu1  ;;  %v9522_v58 = vpack.c.bf16 %v11173_v14, %v11172_v55  ;;  %v3699_v20 = vpop.f32.mrb[95].mxu0  ;;  %v1190_v40 = vmul.f32 %v13320_v38, %v671_v24  ;;  %v2216_v37 = vmax.f32 %v1704_v16, 0.0  ;;  %v2217_v43 = vmax.f32 %v1705_v21, 0.0  ;;  %v675_v16 = vld [vmem:[%s11668_s25 + $0xec8] sm:$0xff]  ;;  %v420_v21 = vld [vmem:[%s11668_s25 + $0x6d0] sm:$0xff] }
 0x1a9   : > { %v11429_v52 = vpop.f32.mrb[94].mxu1  ;;  %v9517_v26 = vpack.c.bf16 %v3699_v20, %v3696_v8  ;;  %v1707_v15 = vadd.f32 %v13340_v7, %v1188_v2  ;;  %v1452_v44 = vadd.f32 %v13340_v7, %v933_v17  ;;  %v1962_v49 = vmax.f32 %v13624_v59, 0.0 }
 0x1aa   : > { %10610 = vst [vmem:[%s12554_s13 + $0x178] sm:$0xff] %v9522_v58   ;;  %v10162_v29 = vpack.c.bf16 %v11429_v52, %v11428_v11  ;;  %v4723_v30 = vpop.f32.mrb[95].mxu1  ;;  %11279 = vmatmul.mubr.msk.bf16.gmra.mrb[200].mxu0 %vm2521_vm1, %v2365_v54  ;;  %v1453_v50 = vadd.f32 %v13340_v7, %v934_v0  ;;  %v935_v13 = vmul.f32 %v13320_v38, %v416_v35  ;;  %v1963_v47 = vmax.f32 %v13632_v34, 0.0 }
 0x1ab   : > { %10609 = vst [vmem:[%s12554_s13 + $0x170] sm:$0xff] %v9517_v26   ;;  %v10157_v33 = vpack.c.bf16 %v4723_v30, %v4720_v19  ;;  %11282 = vmatprep.mubr.msk.bf16.mxu0 %vm2521_vm1, %v2366_v62  ;;  %v936_v51 = vmul.f32 %v13320_v38, %v417_v36  ;;  %v1708_v54 = vadd.f32 %v13340_v7, %v1189_v5  ;;  %v2218_v62 = vmax.f32 %v13640_v28, 0.0  ;;  %v421_v26 = vld [vmem:[%s11668_s25 + $0x6d8] sm:$0xff] }
 0x1ac   : > { %10738 = vst [vmem:[%s12554_s13 + $0x578] sm:$0xff] %v10162_v29   ;;  %11535 = vmatmul.mubr.msk.bf16.gmra.mrb[200].mxu1 %vm2521_vm1, %v2493_v56  ;;  %v1191_v56 = vmul.f32 %v13320_v38, %v672_v39  ;;  %v1192_v57 = vmul.f32 %v13320_v38, %v673_v42  ;;  %v1709_v1 = vadd.f32 %v13340_v7, %v1190_v40  ;;  %v2219_v9 = vmax.f32 %v1707_v15, 0.0  ;;  %v676_v29 = vld [vmem:[%s11668_s25 + $0xed0] sm:$0xff]  ;;  %v422_v42 = vld [vmem:[%s11668_s25 + $0x6e0] sm:$0xff] }
 0x1ad   : > { %10737 = vst [vmem:[%s12554_s13 + $0x570] sm:$0xff] %v10157_v33   ;;  %v11176_v48 = vpop.f32.mrb[96].mxu0  ;;  %11538 = vmatprep.mubr.msk.bf16.mxu1 %vm2521_vm1, %v2494_v61  ;;  %v937_v22 = vmul.f32 %v13320_v38, %v418_v45  ;;  %v938_v53 = vmul.f32 %v13320_v38, %v419_v23  ;;  %v2496_v61 = vpack.c.bf16 %v2217_v43, %v2216_v37  ;;  %v1964_v4 = vmax.f32 %v1452_v44, 0.0  ;;  %v423_v37 = vld [vmem:[%s11668_s25 + $0x6e8] sm:$0xff] }
 0x1ae   : > { %v3712_v32 = vpop.f32.mrb[97].mxu0  ;;  %v1965_v11 = vmax.f32 %v1453_v50, 0.0  ;;  %v13666_v14 = vadd.f32 %v13340_v7, %v935_v13  ;;  %v13669_v12 = vadd.f32 %v13340_v7, %v936_v51  ;;  %v2220_v19 = vmax.f32 %v1708_v54, 0.0  ;;  %v678_v50 = vld [vmem:[%s11668_s25 + $0xee0] sm:$0xff] }
 0x1af   : > { %v11432_v60 = vpop.f32.mrb[96].mxu1  ;;  %v11177_v55 = vpop.f32.mrb[98].mxu0  ;;  %v13676_v58 = vadd.f32 %v13340_v7, %v1191_v56  ;;  %v1711_v20 = vadd.f32 %v13340_v7, %v1192_v57  ;;  %v2221_v17 = vmax.f32 %v1709_v1, 0.0  ;;  %v13683_v24 = vadd.f32 %v13340_v7, %v937_v22  ;;  %v679_v56 = vld [vmem:[%s11668_s25 + $0xee8] sm:$0xff] }
 0x1b0   : > { %v4736_v6 = vpop.f32.mrb[97].mxu1  ;;  %v9532_v3 = vpack.c.bf16 %v11177_v55, %v11176_v48  ;;  %v3715_v8 = vpop.f32.mrb[99].mxu0  ;;  %v13686_v52 = vadd.f32 %v13340_v7, %v938_v53  ;;  %v1193_v59 = vmul.f32 %v13320_v38, %v674_v46  ;;  %v1194_v0 = vmul.f32 %v13320_v38, %v675_v16  ;;  %v13710_v48 = vld [vmem:[%s14221_s1] ss:$0 sm:$0xff] }
 0x1b1   : > { %v11433_v10 = vpop.f32.mrb[98].mxu1  ;;  %v9527_v41 = vpack.c.bf16 %v3715_v8, %v3712_v32  ;;  %v2497_v34 = vpack.c.bf16 %v2219_v9, %v2218_v62  ;;  %v2370_v5 = vpack.c.bf16 %v1965_v11, %v1964_v4  ;;  %v1966_v35 = vmax.f32 %v13666_v14, 0.0  ;;  %v425_v11 = vld [vmem:[%s11668_s25 + $0x6f8] sm:$0xff]  ;;  %v680_v14 = vld [vmem:[%s11668_s25 + $0xef0] sm:$0xff] }
 0x1b2   : > { %10612 = vst [vmem:[%s12554_s13 + $0x188] sm:$0xff] %v9532_v3   ;;  %v10172_v63 = vpack.c.bf16 %v11433_v10, %v11432_v60  ;;  %v4739_v18 = vpop.f32.mrb[99].mxu1  ;;  %11283 = vmatmul.mubr.msk.bf16.gmra.mrb[204].mxu0 %vm2521_vm1, %v2367_v27  ;;  %v2369_v27 = vpack.c.bf16 %v1963_v47, %v1962_v49  ;;  %v939_v36 = vmul.f32 %v13320_v38, %v420_v21  ;;  %v2222_v28 = vmax.f32 %v13676_v58, 0.0  ;;  %v13737_v10 = vld [vmem:[%s14222_s2] ss:$0 sm:$0xff] }
 0x1b3   : > { %10611 = vst [vmem:[%s12554_s13 + $0x180] sm:$0xff] %v9527_v41   ;;  %v10167_v2 = vpack.c.bf16 %v4739_v18, %v4736_v6  ;;  %11286 = vmatprep.mubr.msk.bf16.mxu0 %vm2521_vm1, %v2368_v25  ;;  %v1967_v25 = vmax.f32 %v13669_v12, 0.0  ;;  %v2223_v40 = vmax.f32 %v1711_v20, 0.0  ;;  %v940_v39 = vmul.f32 %v13320_v38, %v421_v26  ;;  %v681_v18 = vld [vmem:[%s11668_s25 + $0xef8] sm:$0xff] }
 0x1b4   : > { %10740 = vst [vmem:[%s12554_s13 + $0x588] sm:$0xff] %v10172_v63   ;;  %11539 = vmatmul.mubr.msk.bf16.gmra.mrb[204].mxu1 %vm2521_vm1, %v13629_v31  ;;  %v677_v31 = vld [vmem:[%s11668_s25 + $0xed8] sm:$0xff]  ;;  %v2498_v44 = vpack.c.bf16 %v2221_v17, %v2220_v19  ;;  %v1968_v45 = vmax.f32 %v13683_v24, 0.0  ;;  %v1969_v23 = vmax.f32 %v13686_v52, 0.0  ;;  %v1195_v49 = vmul.f32 %v13710_v48, %v676_v29  ;;  %v426_v19 = vld [vmem:[%s11668_s25 + $0x700] sm:$0xff]  ;;  %v427_v24 = vld [vmem:[%s11668_s25 + $0x708] sm:$0xff] }
 0x1b5   : > { %10739 = vst [vmem:[%s12554_s13 + $0x580] sm:$0xff] %v10167_v2   ;;  %v11180_v30 = vpop.f32.mrb[100].mxu0  ;;  %11542 = vmatprep.mubr.msk.bf16.mxu1 %vm2521_vm1, %v2496_v61  ;;  %v1712_v32 = vadd.f32 %v13340_v7, %v1193_v59  ;;  %v1713_v47 = vadd.f32 %v13340_v7, %v1194_v0  ;;  %v1196_v54 = vmul.f32 %v13710_v48, %v677_v31  ;;  %v424_v61 = vld [vmem:[%s11668_s25 + $0x6f0] sm:$0xff] }
 0x1b6   : > { %v3728_v33 = vpop.f32.mrb[101].mxu0  ;;  %v13719_v55 = vadd.f32 %v13340_v7, %v939_v36  ;;  %v941_v62 = vmul.f32 %v13710_v48, %v422_v42  ;;  %v942_v1 = vmul.f32 %v13710_v48, %v423_v37  ;;  %v2371_v6 = vpack.c.bf16 %v1967_v25, %v1966_v35 }
 0x1b7   : > { %v11436_v43 = vpop.f32.mrb[100].mxu1  ;;  %v11181_v15 = vpop.f32.mrb[102].mxu0  ;;  %v13726_v3 = vadd.f32 %v13340_v7, %v940_v39  ;;  %v1197_v8 = vmul.f32 %v13710_v48, %v678_v50  ;;  %v13732_v4 = vpack.c.bf16 %v2223_v40, %v2222_v28  ;;  %v13740_v7 = vadd.f32 %v13737_v10, %v1195_v49 }
 0x1b8   : > { %v4752_v38 = vpop.f32.mrb[101].mxu1  ;;  %v9542_v13 = vpack.c.bf16 %v11181_v15, %v11180_v30  ;;  %v3731_v51 = vpop.f32.mrb[103].mxu0  ;;  %v1198_v41 = vmul.f32 %v13710_v48, %v679_v56  ;;  %v2372_v12 = vpack.c.bf16 %v1969_v23, %v1968_v45  ;;  %v2224_v46 = vmax.f32 %v1712_v32, 0.0  ;;  %v682_v45 = vld [vmem:[%s11668_s25 + $0xf00] sm:$0xff]  ;;  %v683_v23 = vld [vmem:[%s11668_s25 + $0xf08] sm:$0xff]  ;;  %v428_v32 = vld [vmem:[%s11668_s25 + $0x710] sm:$0xff] }
 0x1b9   : > { %v11437_v57 = vpop.f32.mrb[102].mxu1  ;;  %v9537_v60 = vpack.c.bf16 %v3731_v51, %v3728_v33  ;;  %v2225_v16 = vmax.f32 %v1713_v47, 0.0  ;;  %v1715_v63 = vadd.f32 %v13737_v10, %v1196_v54  ;;  %v1970_v20 = vmax.f32 %v13719_v55, 0.0  ;;  %v684_v55 = vld [vmem:[%s11668_s25 + $0xf10] sm:$0xff] }
 0x1ba   : > { %10614 = vst [vmem:[%s12554_s13 + $0x198] sm:$0xff] %v9542_v13   ;;  %v10182_v22 = vpack.c.bf16 %v11437_v57, %v11436_v43  ;;  %v4755_v53 = vpop.f32.mrb[103].mxu1  ;;  %11287 = vmatmul.mubr.msk.bf16.gmra.mrb[208].mxu0 %vm2521_vm1, %v2369_v27  ;;  %v1460_v21 = vadd.f32 %v13737_v10, %v941_v62  ;;  %v1461_v2 = vadd.f32 %v13737_v10, %v942_v1  ;;  %v1971_v26 = vmax.f32 %v13726_v3, 0.0 }
 0x1bb   : > { %10613 = vst [vmem:[%s12554_s13 + $0x190] sm:$0xff] %v9537_v60   ;;  %v10177_v9 = vpack.c.bf16 %v4755_v53, %v4752_v38  ;;  %11290 = vmatprep.mubr.msk.bf16.mxu0 %vm2521_vm1, %v2370_v5  ;;  %v943_v17 = vmul.f32 %v13710_v48, %v424_v61  ;;  %v1716_v27 = vadd.f32 %v13737_v10, %v1197_v8  ;;  %v2227_v40 = vmax.f32 %v1715_v63, 0.0  ;;  %v429_v60 = vld [vmem:[%s11668_s25 + $0x718] sm:$0xff] }
 0x1bc   : > { %10742 = vst [vmem:[%s12554_s13 + $0x598] sm:$0xff] %v10182_v22   ;;  %11543 = vmatmul.mubr.msk.bf16.gmra.mrb[208].mxu1 %vm2521_vm1, %v2497_v34  ;;  %v944_v59 = vmul.f32 %v13710_v48, %v425_v11  ;;  %v1199_v0 = vmul.f32 %v13710_v48, %v680_v14  ;;  %v2226_v34 = vmax.f32 %v13740_v7, 0.0  ;;  %v1717_v5 = vadd.f32 %v13737_v10, %v1198_v41 }
 0x1bd   : > { %10741 = vst [vmem:[%s12554_s13 + $0x590] sm:$0xff] %v10177_v9   ;;  %v11184_v58 = vpop.f32.mrb[104].mxu0  ;;  %11546 = vmatprep.mubr.msk.bf16.mxu1 %vm2521_vm1, %v2498_v44  ;;  %v1200_v35 = vmul.f32 %v13710_v48, %v681_v18  ;;  %v945_v36 = vmul.f32 %v13710_v48, %v426_v19  ;;  %v2500_v28 = vpack.c.bf16 %v2225_v16, %v2224_v46  ;;  %v1972_v43 = vmax.f32 %v1460_v21, 0.0  ;;  %v430_v46 = vld [vmem:[%s11668_s25 + $0x720] sm:$0xff]  ;;  %v431_v16 = vld [vmem:[%s11668_s25 + $0x728] sm:$0xff] }
 0x1be   : > { %v3744_v52 = vpop.f32.mrb[105].mxu0  ;;  %v946_v39 = vmul.f32 %v13710_v48, %v427_v24  ;;  %v1973_v15 = vmax.f32 %v1461_v2, 0.0  ;;  %v13767_v44 = vadd.f32 %v13737_v10, %v943_v17  ;;  %v2228_v38 = vmax.f32 %v1716_v27, 0.0 }
 0x1bf   : > { %v11440_v29 = vpop.f32.mrb[104].mxu1  ;;  %v11185_v30 = vpop.f32.mrb[106].mxu0  ;;  %v1463_v13 = vadd.f32 %v13737_v10, %v944_v59  ;;  %v13775_v51 = vadd.f32 %v13737_v10, %v1199_v0  ;;  %v2229_v54 = vmax.f32 %v1717_v5, 0.0  ;;  %v1719_v56 = vadd.f32 %v13737_v10, %v1200_v35  ;;  %v686_v59 = vld [vmem:[%s11668_s25 + $0xf20] sm:$0xff]  ;;  %v687_v35 = vld [vmem:[%s11668_s25 + $0xf28] sm:$0xff] }
 0x1c0   : > { %v4768_v31 = vpop.f32.mrb[105].mxu1  ;;  %v9552_v33 = vpack.c.bf16 %v11185_v30, %v11184_v58  ;;  %v3747_v25 = vpop.f32.mrb[107].mxu0  ;;  %v1464_v57 = vadd.f32 %v13737_v10, %v945_v36  ;;  %v2373_v62 = vpack.c.bf16 %v1971_v26, %v1970_v20  ;;  %v1465_v1 = vadd.f32 %v13737_v10, %v946_v39 }
 0x1c1   : > { %v11441_v42 = vpop.f32.mrb[106].mxu1  ;;  %v9547_v37 = vpack.c.bf16 %v3747_v25, %v3744_v52  ;;  %v1201_v22 = vmul.f32 %v13710_v48, %v682_v45  ;;  %v1202_v53 = vmul.f32 %v13710_v48, %v683_v23  ;;  %v2501_v8 = vpack.c.bf16 %v2227_v40, %v2226_v34 }
 0x1c2   : > { %10616 = vst [vmem:[%s12554_s13 + $0x1a8] sm:$0xff] %v9552_v33   ;;  %v10192_v49 = vpack.c.bf16 %v11441_v42, %v11440_v29  ;;  %v4771_v50 = vpop.f32.mrb[107].mxu1  ;;  %11291 = vmatmul.mubr.msk.bf16.gmra.mrb[212].mxu0 %vm2521_vm1, %v2371_v6  ;;  %v685_v6 = vld [vmem:[%s11668_s25 + $0xf18] sm:$0xff]  ;;  %v2374_v61 = vpack.c.bf16 %v1973_v15, %v1972_v43  ;;  %v1974_v9 = vmax.f32 %v13767_v44, 0.0  ;;  %v1975_v41 = vmax.f32 %v1463_v13, 0.0 }
 0x1c3   : > { %10615 = vst [vmem:[%s12554_s13 + $0x1a0] sm:$0xff] %v9547_v37   ;;  %v10187_v47 = vpack.c.bf16 %v4771_v50, %v4768_v31  ;;  %11294 = vmatprep.mubr.msk.bf16.mxu0 %vm2521_vm1, %v2372_v12  ;;  %v2230_v11 = vmax.f32 %v13775_v51, 0.0  ;;  %v948_v14 = vmul.f32 %v13710_v48, %v429_v60  ;;  %v1203_v12 = vmul.f32 %v13710_v48, %v684_v55  ;;  %v432_v37 = vld [vmem:[%s11668_s25 + $0x730] sm:$0xff]  ;;  %v433_v43 = vld [vmem:[%s11668_s25 + $0x738] sm:$0xff] }
 0x1c4   : > { %10744 = vst [vmem:[%s12554_s13 + $0x5a8] sm:$0xff] %v10192_v49   ;;  %11547 = vmatmul.mubr.msk.bf16.gmra.mrb[212].mxu1 %vm2521_vm1, %v13732_v4  ;;  %v947_v4 = vmul.f32 %v13710_v48, %v428_v32  ;;  %v2502_v19 = vpack.c.bf16 %v2229_v54, %v2228_v38  ;;  %v2231_v58 = vmax.f32 %v1719_v56, 0.0  ;;  %v1976_v20 = vmax.f32 %v1464_v57, 0.0  ;;  %v688_v49 = vld [vmem:[%s11668_s25 + $0xf30] sm:$0xff]  ;;  %v689_v50 = vld [vmem:[%s11668_s25 + $0xf38] sm:$0xff]  ;;  %v434_v54 = vld [vmem:[%s11668_s25 + $0x740] sm:$0xff] }
 0x1c5   : > { %10743 = vst [vmem:[%s12554_s13 + $0x5a0] sm:$0xff] %v10187_v47   ;;  %v11188_v3 = vpop.f32.mrb[108].mxu0  ;;  %11550 = vmatprep.mubr.msk.bf16.mxu1 %vm2521_vm1, %v2500_v28  ;;  %v1204_v21 = vmul.f32 %v13710_v48, %v685_v6  ;;  %v1977_v52 = vmax.f32 %v1465_v1, 0.0  ;;  %v1720_v26 = vadd.f32 %v13737_v10, %v1201_v22  ;;  %v1721_v27 = vadd.f32 %v13737_v10, %v1202_v53  ;;  %v435_v56 = vld [vmem:[%s11668_s25 + $0x748] sm:$0xff] }
 0x1c6   : > { %v3760_v7 = vpop.f32.mrb[109].mxu0  ;;  %v13805_v30 = vadd.f32 %v13737_v10, %v947_v4  ;;  %v949_v34 = vmul.f32 %v13710_v48, %v430_v46  ;;  %v950_v5 = vmul.f32 %v13710_v48, %v431_v16  ;;  %v1467_v33 = vadd.f32 %v13737_v10, %v948_v14 }
 0x1c7   : > { %v11444_v63 = vpop.f32.mrb[108].mxu1  ;;  %v11189_v18 = vpop.f32.mrb[110].mxu0  ;;  %v13814_v25 = vadd.f32 %v13737_v10, %v1203_v12  ;;  %v2375_v40 = vpack.c.bf16 %v1975_v41, %v1974_v9  ;;  %v13819_v39 = vadd.f32 %v13737_v10, %v1204_v21  ;;  %v1205_v42 = vmul.f32 %v13710_v48, %v686_v59  ;;  %v436_v59 = vld [vmem:[%s11668_s25 + $0x750] sm:$0xff] }
 0x1c8   : > { %v4784_v2 = vpop.f32.mrb[109].mxu1  ;;  %v9562_v17 = vpack.c.bf16 %v11189_v18, %v11188_v3  ;;  %v3763_v24 = vpop.f32.mrb[111].mxu0  ;;  %v2503_v15 = vpack.c.bf16 %v2231_v58, %v2230_v11  ;;  %v2376_v44 = vpack.c.bf16 %v1977_v52, %v1976_v20  ;;  %v2232_v45 = vmax.f32 %v1720_v26, 0.0 }
 0x1c9   : > { %v11445_v0 = vpop.f32.mrb[110].mxu1  ;;  %v9557_v29 = vpack.c.bf16 %v3763_v24, %v3760_v7  ;;  %v1206_v23 = vmul.f32 %v13710_v48, %v687_v35  ;;  %v2233_v13 = vmax.f32 %v1721_v27, 0.0  ;;  %v1978_v51 = vmax.f32 %v13805_v30, 0.0  ;;  %v692_v35 = vld [vmem:[%s11668_s25 + $0xf50] sm:$0xff] }
 0x1ca   : > { %10618 = vst [vmem:[%s12554_s13 + $0x1b8] sm:$0xff] %v9562_v17   ;;  %v10202_v36 = vpack.c.bf16 %v11445_v0, %v11444_v63  ;;  %v4787_v31 = vpop.f32.mrb[111].mxu1  ;;  %11295 = vmatmul.mubr.msk.bf16.gmra.mrb[216].mxu0 %vm2521_vm1, %v2373_v62  ;;  %v1468_v32 = vadd.f32 %v13737_v10, %v949_v34  ;;  %v1469_v47 = vadd.f32 %v13737_v10, %v950_v5  ;;  %v1979_v60 = vmax.f32 %v1467_v33, 0.0  ;;  %v691_v17 = vld [vmem:[%s11668_s25 + $0xf48] sm:$0xff]  ;;  %v437_v0 = vld [vmem:[%s11668_s25 + $0x758] sm:$0xff] }
 0x1cb   : > { %10617 = vst [vmem:[%s12554_s13 + $0x1b0] sm:$0xff] %v9557_v29   ;;  %v10197_v28 = vpack.c.bf16 %v4787_v31, %v4784_v2  ;;  %11298 = vmatprep.mubr.msk.bf16.mxu0 %vm2521_vm1, %v2374_v61  ;;  %v2234_v55 = vmax.f32 %v13814_v25, 0.0  ;;  %v951_v62 = vmul.f32 %v13710_v48, %v432_v37  ;;  %v952_v1 = vmul.f32 %v13710_v48, %v433_v43  ;;  %v690_v2 = vld [vmem:[%s11668_s25 + $0xf40] sm:$0xff] }
 0x1cc   : > { %10746 = vst [vmem:[%s12554_s13 + $0x5b8] sm:$0xff] %v10202_v36   ;;  %11551 = vmatmul.mubr.msk.bf16.gmra.mrb[216].mxu1 %vm2521_vm1, %v2501_v8  ;;  %v2235_v6 = vmax.f32 %v13819_v39, 0.0  ;;  %v1724_v3 = vadd.f32 %v13737_v10, %v1205_v42  ;;  %v1207_v8 = vmul.f32 %v13710_v48, %v688_v49  ;;  %v1208_v61 = vmul.f32 %v13710_v48, %v689_v50  ;;  %v693_v36 = vld [vmem:[%s11668_s25 + $0xf58] sm:$0xff] }
 0x1cd   : > { %10745 = vst [vmem:[%s12554_s13 + $0x5b0] sm:$0xff] %v10197_v28   ;;  %v11192_v38 = vpop.f32.mrb[112].mxu0  ;;  %11554 = vmatprep.mubr.msk.bf16.mxu1 %vm2521_vm1, %v2502_v19  ;;  %v1725_v41 = vadd.f32 %v13737_v10, %v1206_v23  ;;  %v953_v11 = vmul.f32 %v13710_v48, %v434_v54  ;;  %v954_v14 = vmul.f32 %v13710_v48, %v435_v56  ;;  %v1980_v63 = vmax.f32 %v1468_v32, 0.0 }
 0x1ce   : > { %v3776_v57 = vpop.f32.mrb[113].mxu0  ;;  %v2504_v16 = vpack.c.bf16 %v2233_v13, %v2232_v45  ;;  %v1981_v18 = vmax.f32 %v1469_v47, 0.0  ;;  %v13849_v20 = vadd.f32 %v13737_v10, %v951_v62  ;;  %v13852_v21 = vadd.f32 %v13737_v10, %v952_v1 }
 0x1cf   : > { %v11448_v22 = vpop.f32.mrb[112].mxu1  ;;  %v11193_v53 = vpop.f32.mrb[114].mxu0  ;;  %v2377_v52 = vpack.c.bf16 %v1979_v60, %v1978_v51  ;;  %v1726_v26 = vadd.f32 %v13737_v10, %v1207_v8  ;;  %v1727_v27 = vadd.f32 %v13737_v10, %v1208_v61  ;;  %v2236_v29 = vmax.f32 %v1724_v3, 0.0  ;;  %v439_v51 = vld [vmem:[%s11668_s25 + $0x768] sm:$0xff] }
 0x1d0   : > { %v4800_v9 = vpop.f32.mrb[113].mxu1  ;;  %v9572_v4 = vpack.c.bf16 %v11193_v53, %v11192_v38  ;;  %v3779_v7 = vpop.f32.mrb[115].mxu0  ;;  %v2237_v30 = vmax.f32 %v1725_v41, 0.0  ;;  %v1472_v34 = vadd.f32 %v13737_v10, %v953_v11  ;;  %v1473_v5 = vadd.f32 %v13737_v10, %v954_v14  ;;  %v695_v3 = vld [vmem:[%s11668_s25 + $0xf68] sm:$0xff] }
 0x1d1   : > { %v11449_v12 = vpop.f32.mrb[114].mxu1  ;;  %v9567_v46 = vpack.c.bf16 %v3779_v7, %v3776_v57  ;;  %v2505_v33 = vpack.c.bf16 %v2235_v6, %v2234_v55  ;;  %v2378_v25 = vpack.c.bf16 %v1981_v18, %v1980_v63  ;;  %v1209_v28 = vmul.f32 %v13710_v48, %v690_v2  ;;  %v694_v6 = vld [vmem:[%s11668_s25 + $0xf60] sm:$0xff] }
 0x1d2   : > { %10620 = vst [vmem:[%s12554_s13 + $0x1c8] sm:$0xff] %v9572_v4   ;;  %v10212_v19 = vpack.c.bf16 %v11449_v12, %v11448_v22  ;;  %v4803_v58 = vpop.f32.mrb[115].mxu1  ;;  %11299 = vmatmul.mubr.msk.bf16.gmra.mrb[220].mxu0 %vm2521_vm1, %v2375_v40  ;;  %v1210_v40 = vmul.f32 %v13710_v48, %v691_v17  ;;  %v1982_v42 = vmax.f32 %v13849_v20, 0.0  ;;  %v1983_v37 = vmax.f32 %v13852_v21, 0.0  ;;  %v440_v12 = vld [vmem:[%s11668_s25 + $0x770] sm:$0xff] }
 0x1d3   : > { %10619 = vst [vmem:[%s12554_s13 + $0x1c0] sm:$0xff] %v9567_v46   ;;  %v10207_v24 = vpack.c.bf16 %v4803_v58, %v4800_v9  ;;  %11302 = vmatprep.mubr.msk.bf16.mxu0 %vm2521_vm1, %v2376_v44  ;;  %v955_v43 = vmul.f32 %v13710_v48, %v436_v59  ;;  %v438_v44 = vld [vmem:[%s11668_s25 + $0x760] sm:$0xff]  ;;  %v2238_v49 = vmax.f32 %v1726_v26, 0.0  ;;  %v2239_v50 = vmax.f32 %v1727_v27, 0.0  ;;  %v696_v58 = vld [vmem:[%s11668_s25 + $0xf70] sm:$0xff] }
 0x1d4   : > { %10748 = vst [vmem:[%s12554_s13 + $0x5c8] sm:$0xff] %v10212_v19   ;;  %11555 = vmatmul.mubr.msk.bf16.gmra.mrb[220].mxu1 %vm2521_vm1, %v2503_v15  ;;  %v956_v15 = vmul.f32 %v13710_v48, %v437_v0  ;;  %v1211_v38 = vmul.f32 %v13710_v48, %v692_v35  ;;  %v1212_v13 = vmul.f32 %v13710_v48, %v693_v36  ;;  %v1984_v57 = vmax.f32 %v1472_v34, 0.0  ;;  %v441_v19 = vld [vmem:[%s11668_s25 + $0x778] sm:$0xff] }
 0x1d5   : > { %10747 = vst [vmem:[%s12554_s13 + $0x5c0] sm:$0xff] %v10207_v24   ;;  %v11196_v31 = vpop.f32.mrb[116].mxu0  ;;  %11558 = vmatprep.mubr.msk.bf16.mxu1 %vm2521_vm1, %v2504_v16  ;;  %v2506_v56 = vpack.c.bf16 %v2237_v30, %v2236_v29  ;;  %v1985_v60 = vmax.f32 %v1473_v5, 0.0  ;;  %v1728_v1 = vadd.f32 %v13737_v10, %v1209_v28  ;;  %v1729_v22 = vadd.f32 %v13737_v10, %v1210_v40  ;;  %v442_v30 = vld [vmem:[%s11668_s25 + $0x780] sm:$0xff] }
 0x1d6   : > { %v3792_v39 = vpop.f32.mrb[117].mxu0  ;;  %v957_v53 = vmul.f32 %v13710_v48, %v438_v44  ;;  %v13888_v9 = vadd.f32 %v13737_v10, %v955_v43  ;;  %v13891_v4 = vadd.f32 %v13737_v10, %v956_v15  ;;  %v958_v7 = vmul.f32 %v13710_v48, %v439_v51 }
 0x1d7   : > { %v11452_v45 = vpop.f32.mrb[116].mxu1  ;;  %v11197_v23 = vpop.f32.mrb[118].mxu0  ;;  %v13897_v11 = vadd.f32 %v13737_v10, %v1211_v38  ;;  %v13900_v14 = vadd.f32 %v13737_v10, %v1212_v13  ;;  %v2379_v46 = vpack.c.bf16 %v1983_v37, %v1982_v42  ;;  %v2507_v16 = vpack.c.bf16 %v2239_v50, %v2238_v49 }
 0x1d8   : > { %v4816_v32 = vpop.f32.mrb[117].mxu1  ;;  %v9582_v47 = vpack.c.bf16 %v11197_v23, %v11196_v31  ;;  %v3795_v54 = vpop.f32.mrb[119].mxu0  ;;  %v1213_v63 = vmul.f32 %v13710_v48, %v694_v6  ;;  %v1214_v18 = vmul.f32 %v13710_v48, %v695_v3  ;;  %v2380_v21 = vpack.c.bf16 %v1985_v60, %v1984_v57  ;;  %v445_v6 = vld [vmem:[%s11668_s25 + $0x798] sm:$0xff]  ;;  %v700_v3 = vld [vmem:[%s11668_s25 + $0xf90] sm:$0xff] }
 0x1d9   : > { %v11453_v55 = vpop.f32.mrb[118].mxu1  ;;  %v9577_v62 = vpack.c.bf16 %v3795_v54, %v3792_v39  ;;  %v2240_v2 = vmax.f32 %v1728_v1, 0.0  ;;  %v2241_v17 = vmax.f32 %v1729_v22, 0.0  ;;  %v1476_v24 = vadd.f32 %v13737_v10, %v957_v53  ;;  %v699_v54 = vld [vmem:[%s11668_s25 + $0xf88] sm:$0xff] }
 0x1da   : > { %10622 = vst [vmem:[%s12554_s13 + $0x1d8] sm:$0xff] %v9582_v47   ;;  %v10222_v8 = vpack.c.bf16 %v11453_v55, %v11452_v45  ;;  %v4819_v61 = vpop.f32.mrb[119].mxu1  ;;  %11303 = vmatmul.mubr.msk.bf16.gmra.mrb[224].mxu0 %vm2521_vm1, %v2377_v52  ;;  %v697_v52 = vld [vmem:[%s11668_s25 + $0xf78] sm:$0xff]  ;;  %v1986_v27 = vmax.f32 %v13888_v9, 0.0  ;;  %v1987_v59 = vmax.f32 %v13891_v4, 0.0  ;;  %v1477_v0 = vadd.f32 %v13737_v10, %v958_v7  ;;  %v698_v47 = vld [vmem:[%s11668_s25 + $0xf80] sm:$0xff] }
 0x1db   : > { %10621 = vst [vmem:[%s12554_s13 + $0x1d0] sm:$0xff] %v9577_v62   ;;  %v10217_v41 = vpack.c.bf16 %v4819_v61, %v4816_v32  ;;  %11306 = vmatprep.mubr.msk.bf16.mxu0 %vm2521_vm1, %v2378_v25  ;;  %v959_v29 = vmul.f32 %v13710_v48, %v440_v12  ;;  %v2242_v35 = vmax.f32 %v13897_v11, 0.0  ;;  %v2243_v36 = vmax.f32 %v13900_v14, 0.0  ;;  %v443_v25 = vld [vmem:[%s11668_s25 + $0x788] sm:$0xff]  ;;  %v444_v55 = vld [vmem:[%s11668_s25 + $0x790] sm:$0xff] }
 0x1dc   : > { %10750 = vst [vmem:[%s12554_s13 + $0x5d8] sm:$0xff] %v10222_v8   ;;  %11559 = vmatmul.mubr.msk.bf16.gmra.mrb[224].mxu1 %vm2521_vm1, %v2505_v33  ;;  %v960_v31 = vmul.f32 %v13710_v48, %v441_v19  ;;  %v1215_v33 = vmul.f32 %v13710_v48, %v696_v58  ;;  %v1732_v42 = vadd.f32 %v13737_v10, %v1213_v63  ;;  %v1988_v23 = vmax.f32 %v1476_v24, 0.0 }
 0x1dd   : > { %10749 = vst [vmem:[%s12554_s13 + $0x5d0] sm:$0xff] %v10217_v41   ;;  %v11200_v20 = vpop.f32.mrb[120].mxu0  ;;  %11562 = vmatprep.mubr.msk.bf16.mxu1 %vm2521_vm1, %v2506_v56  ;;  %v1733_v37 = vadd.f32 %v13737_v10, %v1214_v18  ;;  %v1216_v43 = vmul.f32 %v13710_v48, %v697_v52  ;;  %v2508_v45 = vpack.c.bf16 %v2241_v17, %v2240_v2  ;;  %v1989_v13 = vmax.f32 %v1477_v0, 0.0  ;;  %v701_v41 = vld [vmem:[%s11668_s25 + $0xf98] sm:$0xff]  ;;  %v446_v2 = vld [vmem:[%s11668_s25 + $0x7a0] sm:$0xff]  ;;  %v447_v0 = vld [vmem:[%s11668_s25 + $0x7a8] sm:$0xff] }
 0x1de   : > { %v3808_v26 = vpop.f32.mrb[121].mxu0  ;;  %v961_v49 = vmul.f32 %v13710_v48, %v442_v30  ;;  %v13930_v51 = vadd.f32 %v13737_v10, %v959_v29  ;;  %v962_v32 = vmul.f32 %v13710_v48, %v443_v25  ;;  %v1479_v57 = vadd.f32 %v13737_v10, %v960_v31 }
 0x1df   : > { %v11456_v34 = vpop.f32.mrb[120].mxu1  ;;  %v11201_v5 = vpop.f32.mrb[122].mxu0  ;;  %v13939_v60 = vadd.f32 %v13737_v10, %v1215_v33  ;;  %v2381_v62 = vpack.c.bf16 %v1987_v59, %v1986_v27  ;;  %v2244_v1 = vmax.f32 %v1732_v42, 0.0  ;;  %v2245_v22 = vmax.f32 %v1733_v37, 0.0 }
 0x1e0   : > { %v4832_v28 = vpop.f32.mrb[121].mxu1  ;;  %v9592_v40 = vpack.c.bf16 %v11201_v5, %v11200_v20  ;;  %v3811_v39 = vpop.f32.mrb[123].mxu0  ;;  %v13945_v53 = vadd.f32 %v13737_v10, %v1216_v43  ;;  %v2509_v61 = vpack.c.bf16 %v2243_v36, %v2242_v35  ;;  %v1480_v9 = vadd.f32 %v13737_v10, %v961_v49 }
 0x1e1   : > { %v11457_v15 = vpop.f32.mrb[122].mxu1  ;;  %v9587_v44 = vpack.c.bf16 %v3811_v39, %v3808_v26  ;;  %v1217_v4 = vmul.f32 %v13710_v48, %v698_v47  ;;  %v1218_v7 = vmul.f32 %v13710_v48, %v699_v54  ;;  %v2382_v14 = vpack.c.bf16 %v1989_v13, %v1988_v23  ;;  %v703_v39 = vld [vmem:[%s11668_s25 + $0xfa8] sm:$0xff]  ;;  %v448_v23 = vld [vmem:[%s11668_s25 + $0x7b0] sm:$0xff] }
 0x1e2   : > { %10624 = vst [vmem:[%s12554_s13 + $0x1e8] sm:$0xff] %v9592_v40   ;;  %v10232_v50 = vpack.c.bf16 %v11457_v15, %v11456_v34  ;;  %v4835_v38 = vpop.f32.mrb[123].mxu1  ;;  %11307 = vmatmul.mubr.msk.bf16.gmra.mrb[228].mxu0 %vm2521_vm1, %v2379_v46  ;;  %v1990_v12 = vmax.f32 %v13930_v51, 0.0  ;;  %v1481_v46 = vadd.f32 %v13737_v10, %v962_v32  ;;  %v1991_v19 = vmax.f32 %v1479_v57, 0.0  ;;  %v702_v40 = vld [vmem:[%s11668_s25 + $0xfa0] sm:$0xff]  ;;  %v449_v32 = vld [vmem:[%s11668_s25 + $0x7b8] sm:$0xff] }
 0x1e3   : > { %10623 = vst [vmem:[%s12554_s13 + $0x1e0] sm:$0xff] %v9587_v44   ;;  %v10227_v56 = vpack.c.bf16 %v4835_v38, %v4832_v28  ;;  %11310 = vmatprep.mubr.msk.bf16.mxu0 %vm2521_vm1, %v2380_v21  ;;  %v2246_v58 = vmax.f32 %v13939_v60, 0.0  ;;  %v964_v20 = vmul.f32 %v13710_v48, %v445_v6  ;;  %v1219_v21 = vmul.f32 %v13710_v48, %v700_v3  ;;  %v704_v47 = vld [vmem:[%s11668_s25 + $0xfb0] sm:$0xff] }
 0x1e4   : > { %10752 = vst [vmem:[%s12554_s13 + $0x5e8] sm:$0xff] %v10232_v50   ;;  %11563 = vmatmul.mubr.msk.bf16.gmra.mrb[228].mxu1 %vm2521_vm1, %v2507_v16  ;;  %v963_v16 = vmul.f32 %v13710_v48, %v444_v55  ;;  %v2510_v26 = vpack.c.bf16 %v2245_v22, %v2244_v1  ;;  %v2247_v27 = vmax.f32 %v13945_v53, 0.0  ;;  %v1220_v59 = vmul.f32 %v13710_v48, %v701_v41 }
 0x1e5   : > { %10751 = vst [vmem:[%s12554_s13 + $0x5e0] sm:$0xff] %v10227_v56   ;;  %v11204_v8 = vpop.f32.mrb[124].mxu0  ;;  %11566 = vmatprep.mubr.msk.bf16.mxu1 %vm2521_vm1, %v2508_v45  ;;  %v1992_v34 = vmax.f32 %v1480_v9, 0.0  ;;  %v1736_v5 = vadd.f32 %v13737_v10, %v1217_v4  ;;  %v1737_v35 = vadd.f32 %v13737_v10, %v1218_v7  ;;  %v1993_v33 = vmax.f32 %v1481_v46, 0.0 }
 0x1e6   : > { %v3824_v11 = vpop.f32.mrb[125].mxu0  ;;  %v13970_v25 = vadd.f32 %v13737_v10, %v963_v16  ;;  %v965_v28 = vmul.f32 %v13710_v48, %v446_v2  ;;  %v13978_v37 = vadd.f32 %v13737_v10, %v964_v20  ;;  %v13981_v43 = vadd.f32 %v13737_v10, %v1219_v21 }
 0x1e7   : > { %v11460_v63 = vpop.f32.mrb[124].mxu1  ;;  %v11205_v18 = vpop.f32.mrb[126].mxu0  ;;  %v966_v15 = vmul.f32 %v13710_v48, %v447_v0  ;;  %v2383_v44 = vpack.c.bf16 %v1991_v19, %v1990_v12  ;;  %v13987_v45 = vadd.f32 %v13737_v10, %v1220_v59  ;;  %v2248_v50 = vmax.f32 %v1736_v5, 0.0  ;;  %v451_v12 = vld [vmem:[%s11668_s25 + $0x7c8] sm:$0xff] }
 0x1e8   : > { %v4848_v17 = vpop.f32.mrb[125].mxu1  ;;  %v9602_v24 = vpack.c.bf16 %v11205_v18, %v11204_v8  ;;  %v3827_v52 = vpop.f32.mrb[127].mxu0  ;;  %v2249_v38 = vmax.f32 %v1737_v35, 0.0  ;;  %v1221_v13 = vmul.f32 %v13710_v48, %v702_v40  ;;  %v1222_v51 = vmul.f32 %v13710_v48, %v703_v39  ;;  %v705_v8 = vld [vmem:[%s11668_s25 + $0xfb8] sm:$0xff] }
 0x1e9   : > { %v11461_v29 = vpop.f32.mrb[126].mxu1  ;;  %v9597_v30 = vpack.c.bf16 %v3827_v52, %v3824_v11  ;;  %v2511_v56 = vpack.c.bf16 %v2247_v27, %v2246_v58  ;;  %v2384_v57 = vpack.c.bf16 %v1993_v33, %v1992_v34  ;;  %v1994_v60 = vmax.f32 %v13970_v25, 0.0  ;;  %v707_v52 = vld [vmem:[%s11668_s25 + $0xfc8] sm:$0xff]  ;;  %v452_v33 = vld [vmem:[%s11668_s25 + $0x7d0] sm:$0xff] }
 0x1ea   : > { %10626 = vst [vmem:[%s12554_s13 + $0x1f8] sm:$0xff] %v9602_v24   ;;  %v10242_v36 = vpack.c.bf16 %v11461_v29, %v11460_v63  ;;  %v4851_v31 = vpop.f32.mrb[127].mxu1  ;;  %11311 = vmatmul.mubr.msk.bf16.gmra.mrb[232].mxu0 %vm2521_vm1, %v2381_v62  ;;  %v1484_v55 = vadd.f32 %v13737_v10, %v965_v28  ;;  %v1995_v22 = vmax.f32 %v13978_v37, 0.0  ;;  %v2250_v53 = vmax.f32 %v13981_v43, 0.0  ;;  %v706_v24 = vld [vmem:[%s11668_s25 + $0xfc0] sm:$0xff] }
 0x1eb   : > { %10625 = vst [vmem:[%s12554_s13 + $0x1f0] sm:$0xff] %v9597_v30   ;;  %v10237_v42 = vpack.c.bf16 %v4851_v31, %v4848_v17  ;;  %11314 = vmatprep.mubr.msk.bf16.mxu0 %vm2521_vm1, %v2382_v14  ;;  %v1485_v6 = vadd.f32 %v13737_v10, %v966_v15  ;;  %v967_v3 = vmul.f32 %v13710_v48, %v448_v23  ;;  %v2251_v41 = vmax.f32 %v13987_v45, 0.0  ;;  %v453_v23 = vld [vmem:[%s11668_s25 + $0x7d8] sm:$0xff] }
 0x1ec   : > { %10754 = vst [vmem:[%s12554_s13 + $0x5f8] sm:$0xff] %v10242_v36   ;;  %11567 = vmatmul.mubr.msk.bf16.gmra.mrb[232].mxu1 %vm2521_vm1, %v2509_v61  ;;  %v450_v61 = vld [vmem:[%s11668_s25 + $0x7c0] sm:$0xff]  ;;  %v968_v11 = vmul.f32 %v13710_v48, %v449_v32  ;;  %v1223_v14 = vmul.f32 %v13710_v48, %v704_v47  ;;  %v2512_v63 = vpack.c.bf16 %v2249_v38, %v2248_v50  ;;  %v1996_v21 = vmax.f32 %v1484_v55, 0.0 }
 0x1ed   : > { %10753 = vst [vmem:[%s12554_s13 + $0x5f0] sm:$0xff] %v10237_v42   ;;  %v11208_v49 = vpop.f32.mrb[128].mxu0  ;;  %11570 = vmatprep.mubr.msk.bf16.mxu1 %vm2521_vm1, %v2510_v26  ;;  %v1740_v18 = vadd.f32 %v13737_v10, %v1221_v13  ;;  %v1741_v19 = vadd.f32 %v13737_v10, %v1222_v51  ;;  %v1224_v2 = vmul.f32 %v13710_v48, %v705_v8  ;;  %v1997_v27 = vmax.f32 %v1485_v6, 0.0  ;;  %v454_v47 = vld [vmem:[%s11668_s25 + $0x7e0] sm:$0xff] }
 0x1ee   : > { %v3840_v54 = vpop.f32.mrb[129].mxu0  ;;  %v969_v17 = vmul.f32 %v13710_v48, %v450_v61  ;;  %v14019_v59 = vadd.f32 %v13737_v10, %v967_v3  ;;  %v970_v0 = vmul.f32 %v13710_v48, %v451_v12  ;;  %v14025_v29 = vadd.f32 %v13737_v10, %v968_v11 }
 0x1ef   : > { %v11464_v62 = vpop.f32.mrb[128].mxu1  ;;  %v11209_v1 = vpop.f32.mrb[130].mxu0  ;;  %v14028_v30 = vadd.f32 %v13737_v10, %v1223_v14  ;;  %v2252_v5 = vmax.f32 %v1740_v18, 0.0  ;;  %v2253_v35 = vmax.f32 %v1741_v19, 0.0  ;;  %v1225_v36 = vmul.f32 %v13710_v48, %v706_v24 }
 0x1f0   : > { %v4864_v9 = vpop.f32.mrb[129].mxu1  ;;  %v9612_v4 = vpack.c.bf16 %v11209_v1, %v11208_v49  ;;  %v3843_v7 = vpop.f32.mrb[131].mxu0  ;;  %v1226_v31 = vmul.f32 %v13710_v48, %v707_v52  ;;  %v2385_v28 = vpack.c.bf16 %v1995_v22, %v1994_v60  ;;  %v1743_v40 = vadd.f32 %v13737_v10, %v1224_v2  ;;  %v708_v1 = vld [vmem:[%s11668_s25 + $0xfd0] sm:$0xff]  ;;  %v709_v22 = vld [vmem:[%s11668_s25 + $0xfd8] sm:$0xff] }
 0x1f1   : > { %v11465_v46 = vpop.f32.mrb[130].mxu1  ;;  %v9607_v16 = vpack.c.bf16 %v3843_v7, %v3840_v54  ;;  %v1488_v39 = vadd.f32 %v13737_v10, %v969_v17  ;;  %v2513_v43 = vpack.c.bf16 %v2251_v41, %v2250_v53  ;;  %v2386_v15 = vpack.c.bf16 %v1997_v27, %v1996_v21  ;;  %v455_v54 = vld [vmem:[%s11668_s25 + $0x7e8] sm:$0xff] }
 0x1f2   : > { %10628 = vst [vmem:[%s12554_s13 + $0x208] sm:$0xff] %v9612_v4   ;;  %v10252_v58 = vpack.c.bf16 %v11465_v46, %v11464_v62  ;;  %v4867_v20 = vpop.f32.mrb[131].mxu1  ;;  %11315 = vmatmul.mubr.msk.bf16.gmra.mrb[236].mxu0 %vm2521_vm1, %v2383_v44  ;;  %v1998_v44 = vmax.f32 %v14019_v59, 0.0  ;;  %v1489_v45 = vadd.f32 %v13737_v10, %v970_v0  ;;  %v1999_v13 = vmax.f32 %v14025_v29, 0.0  ;;  %v711_v4 = vld [vmem:[%s11668_s25 + $0xfe8] sm:$0xff]  ;;  %v456_v29 = vld [vmem:[%s11668_s25 + $0x7f0] sm:$0xff] }
 0x1f3   : > { %10627 = vst [vmem:[%s12554_s13 + $0x200] sm:$0xff] %v9607_v16   ;;  %v10247_v26 = vpack.c.bf16 %v4867_v20, %v4864_v9  ;;  %11318 = vmatprep.mubr.msk.bf16.mxu0 %vm2521_vm1, %v2384_v57  ;;  %v2254_v51 = vmax.f32 %v14028_v30, 0.0  ;;  %v971_v32 = vmul.f32 %v13710_v48, %v452_v33  ;;  %v2514_v60 = vpack.c.bf16 %v2253_v35, %v2252_v5  ;;  %v710_v9 = vld [vmem:[%s11668_s25 + $0xfe0] sm:$0xff]  ;;  %v457_v30 = vld [vmem:[%s11668_s25 + $0x7f8] sm:$0xff] }
 0x1f4   : > { %10756 = vst [vmem:[%s12554_s13 + $0x608] sm:$0xff] %v10252_v58   ;;  %11571 = vmatmul.mubr.msk.bf16.gmra.mrb[236].mxu1 %vm2521_vm1, %v2511_v56  ;;  %v1744_v55 = vadd.f32 %v13737_v10, %v1225_v36  ;;  %v1745_v62 = vadd.f32 %v13737_v10, %v1226_v31  ;;  %v2255_v3 = vmax.f32 %v1743_v40, 0.0  ;;  %v2000_v8 = vmax.f32 %v1488_v39, 0.0 }
 0x1f5   : > { %10755 = vst [vmem:[%s12554_s13 + $0x600] sm:$0xff] %v10247_v26   ;;  %v11212_v34 = vpop.f32.mrb[132].mxu0  ;;  %11574 = vmatprep.mubr.msk.bf16.mxu1 %vm2521_vm1, %v2512_v63  ;;  %v972_v61 = vmul.f32 %v13710_v48, %v453_v23  ;;  %v2001_v41 = vmax.f32 %v1489_v45, 0.0  ;;  %v973_v11 = vmul.f32 %v13710_v48, %v454_v47  ;;  %v974_v14 = vmul.f32 %v13710_v48, %v455_v54  ;;  %v11612_v47 = vld [vmem:[%s14221_s1] ss:$0 sm:$0xff] }
 0x1f6   : > { %v3856_v25 = vpop.f32.mrb[133].mxu0  ;;  %v1490_v12 = vadd.f32 %v13737_v10, %v971_v32  ;;  %v1227_v46 = vmul.f32 %v13710_v48, %v708_v1  ;;  %v1228_v16 = vmul.f32 %v13710_v48, %v709_v22  ;;  %v2256_v18 = vmax.f32 %v1744_v55, 0.0 }
 0x1f7   : > { %v11468_v42 = vpop.f32.mrb[132].mxu1  ;;  %v11213_v37 = vpop.f32.mrb[134].mxu0  ;;  %v2257_v19 = vmax.f32 %v1745_v62, 0.0  ;;  %v1229_v58 = vmul.f32 %v13710_v48, %v710_v9  ;;  %v1230_v20 = vmul.f32 %v13710_v48, %v711_v4  ;;  %v2387_v2 = vpack.c.bf16 %v1999_v13, %v1998_v44 }
 0x1f8   : > { %v4880_v49 = vpop.f32.mrb[133].mxu1  ;;  %v9622_v50 = vpack.c.bf16 %v11213_v37, %v11212_v34  ;;  %v3859_v38 = vpop.f32.mrb[135].mxu0  ;;  %v1491_v17 = vadd.f32 %v13737_v10, %v972_v61  ;;  %v2515_v26 = vpack.c.bf16 %v2255_v3, %v2254_v51  ;;  %v2388_v27 = vpack.c.bf16 %v2001_v41, %v2000_v8  ;;  %v712_v37 = vld [vmem:[%s11668_s25 + $0xff0] sm:$0xff] }
 0x1f9   : > { %v11469_v56 = vpop.f32.mrb[134].mxu1  ;;  %v9617_v57 = vpack.c.bf16 %v3859_v38, %v3856_v25  ;;  %v1492_v59 = vadd.f32 %v13737_v10, %v973_v11  ;;  %v1493_v0 = vadd.f32 %v13737_v10, %v974_v14  ;;  %v2002_v36 = vmax.f32 %v1490_v12, 0.0 }
 0x1fa   : > { %10630 = vst [vmem:[%s12554_s13 + $0x218] sm:$0xff] %v9622_v50   ;;  %v10262_v53 = vpack.c.bf16 %v11469_v56, %v11468_v42  ;;  %v4883_v6 = vpop.f32.mrb[135].mxu1  ;;  %11319 = vmatmul.mubr.msk.bf16.gmra.mrb[240].mxu0 %vm2521_vm1, %v2385_v28  ;;  %v1746_v31 = vadd.f32 %v13737_v10, %v1227_v46  ;;  %v1747_v33 = vadd.f32 %v13737_v10, %v1228_v16  ;;  %v2003_v45 = vmax.f32 %v1491_v17, 0.0 }
 0x1fb   : > { %10629 = vst [vmem:[%s12554_s13 + $0x210] sm:$0xff] %v9617_v57   ;;  %v10257_v7 = vpack.c.bf16 %v4883_v6, %v4880_v49  ;;  %11322 = vmatprep.mubr.msk.bf16.mxu0 %vm2521_vm1, %v2386_v15  ;;  %v2516_v40 = vpack.c.bf16 %v2257_v19, %v2256_v18  ;;  %v1748_v39 = vadd.f32 %v13737_v10, %v1229_v58  ;;  %v2004_v38 = vmax.f32 %v1492_v59, 0.0 }
 0x1fc   : > { %10758 = vst [vmem:[%s12554_s13 + $0x618] sm:$0xff] %v10262_v53   ;;  %11575 = vmatmul.mubr.msk.bf16.gmra.mrb[240].mxu1 %vm2521_vm1, %v2513_v43  ;;  %v1749_v42 = vadd.f32 %v13737_v10, %v1230_v20  ;;  %v713_v43 = vld [vmem:[%s11668_s25 + $0xff8] sm:$0xff]  ;;  %v975_v23 = vmul.f32 %v13710_v48, %v456_v29  ;;  %v976_v49 = vmul.f32 %v13710_v48, %v457_v30  ;;  %v2005_v13 = vmax.f32 %v1493_v0, 0.0 }
 0x1fd   : > { %10757 = vst [vmem:[%s12554_s13 + $0x610] sm:$0xff] %v10257_v7   ;;  %v11216_v63 = vpop.f32.mrb[136].mxu0  ;;  %11578 = vmatprep.mubr.msk.bf16.mxu1 %vm2521_vm1, %v2514_v60  ;;  %v2258_v51 = vmax.f32 %v1746_v31, 0.0  ;;  %v2259_v32 = vmax.f32 %v1747_v33, 0.0  ;;  %v1231_v54 = vmul.f32 %v11612_v47, %v712_v37  ;;  %v1232_v56 = vmul.f32 %v11612_v47, %v713_v43 }
 0x1fe   : > { %v3872_v21 = vpop.f32.mrb[137].mxu0  ;;  %v2260_v48 = vmax.f32 %v1748_v39, 0.0  ;;  %v2261_v60 = vmax.f32 %v1749_v42, 0.0  ;;  %v2389_v62 = vpack.c.bf16 %v2003_v45, %v2002_v36  ;;  %v1494_v1 = vadd.f32 %v13737_v10, %v975_v23 }
 0x1ff   : > { %v11472_v24 = vpop.f32.mrb[136].mxu1  ;;  %v11217_v52 = vpop.f32.mrb[138].mxu0  ;;  %v1495_v22 = vadd.f32 %v13737_v10, %v976_v49  ;;  %v2390_v3 = vpack.c.bf16 %v2005_v13, %v2004_v38  ;;  %v2517_v4 = vpack.c.bf16 %v2259_v32, %v2258_v51  ;;  %v1750_v7 = vadd.f32 %v13737_v10, %v1231_v54 }
 0x200   : > { %v4896_v34 = vpop.f32.mrb[137].mxu1  ;;  %v9632_v5 = vpack.c.bf16 %v11217_v52, %v11216_v63  ;;  %v3875_v35 = vpop.f32.mrb[139].mxu0  ;;  %v1751_v41 = vadd.f32 %v13737_v10, %v1232_v56  ;;  %v2518_v12 = vpack.c.bf16 %v2261_v60, %v2260_v48  ;;  %v2006_v63 = vmax.f32 %v1494_v1, 0.0 }
 0x201   : > { %v11473_v25 = vpop.f32.mrb[138].mxu1  ;;  %v9627_v28 = vpack.c.bf16 %v3875_v35, %v3872_v21  ;;  %v2007_v18 = vmax.f32 %v1495_v22, 0.0  ;;  %v2262_v10 = vmax.f32 %v1750_v7, 0.0 }
 0x202   : > { %10632 = vst [vmem:[%s12554_s13 + $0x228] sm:$0xff] %v9632_v5   ;;  %v10272_v15 = vpack.c.bf16 %v11473_v25, %v11472_v24  ;;  %v4899_v44 = vpop.f32.mrb[139].mxu1  ;;  %11323 = vmatmul.mubr.msk.bf16.gmra.mrb[244].mxu0 %vm2521_vm1, %v2387_v2  ;;  %v2263_v58 = vmax.f32 %v1751_v41, 0.0 }
 0x203   : > { %10631 = vst [vmem:[%s12554_s13 + $0x220] sm:$0xff] %v9627_v28   ;;  %v10267_v50 = vpack.c.bf16 %v4899_v44, %v4896_v34  ;;  %11326 = vmatprep.mubr.msk.bf16.mxu0 %vm2521_vm1, %v2388_v27  ;;  %v2391_v2 = vpack.c.bf16 %v2007_v18, %v2006_v63 }
 0x204   : > { %10760 = vst [vmem:[%s12554_s13 + $0x628] sm:$0xff] %v10272_v15   ;;  %11579 = vmatmul.mubr.msk.bf16.gmra.mrb[244].mxu1 %vm2521_vm1, %v2515_v26  ;;  %v2519_v59 = vpack.c.bf16 %v2263_v58, %v2262_v10 }
 0x205   : > { %10759 = vst [vmem:[%s12554_s13 + $0x620] sm:$0xff] %v10267_v50   ;;  %v11220_v57 = vpop.f32.mrb[140].mxu0  ;;  %11582 = vmatprep.mubr.msk.bf16.mxu1 %vm2521_vm1, %v2516_v40 }
 0x206   : > { %v3888_v55 = vpop.f32.mrb[141].mxu0 }
 0x207   : > { %v11476_v53 = vpop.f32.mrb[140].mxu1  ;;  %v11221_v6 = vpop.f32.mrb[142].mxu0 }
 0x208   : > { %v4912_v8 = vpop.f32.mrb[141].mxu1  ;;  %v9642_v61 = vpack.c.bf16 %v11221_v6, %v11220_v57  ;;  %v3891_v9 = vpop.f32.mrb[143].mxu0 }
 0x209   : > { %v11477_v11 = vpop.f32.mrb[142].mxu1  ;;  %v9637_v14 = vpack.c.bf16 %v3891_v9, %v3888_v55 }
 0x20a   : > { %10634 = vst [vmem:[%s12554_s13 + $0x238] sm:$0xff] %v9642_v61   ;;  %v10282_v46 = vpack.c.bf16 %v11477_v11, %v11476_v53  ;;  %v4915_v16 = vpop.f32.mrb[143].mxu1  ;;  %11327 = vmatmul.mubr.msk.bf16.gmra.mrb[248].mxu0 %vm2521_vm1, %v2389_v62 }
 0x20b   : > { %10633 = vst [vmem:[%s12554_s13 + $0x230] sm:$0xff] %v9637_v14   ;;  %v10277_v19 = vpack.c.bf16 %v4915_v16, %v4912_v8  ;;  %11330 = vmatprep.mubr.msk.bf16.mxu0 %vm2521_vm1, %v2390_v3 }
 0x20c   : > { %10762 = vst [vmem:[%s12554_s13 + $0x638] sm:$0xff] %v10282_v46   ;;  %11583 = vmatmul.mubr.msk.bf16.gmra.mrb[248].mxu1 %vm2521_vm1, %v2517_v4 }
 0x20d   : > { %10761 = vst [vmem:[%s12554_s13 + $0x630] sm:$0xff] %v10277_v19   ;;  %v11224_v20 = vpop.f32.mrb[144].mxu0  ;;  %11586 = vmatprep.mubr.msk.bf16.mxu1 %vm2521_vm1, %v2518_v12 }
 0x20e   : > { %v3904_v21 = vpop.f32.mrb[145].mxu0 }
 0x20f   : > { %v11480_v17 = vpop.f32.mrb[144].mxu1  ;;  %v11225_v24 = vpop.f32.mrb[146].mxu0 }
 0x210   : > { %v4928_v52 = vpop.f32.mrb[145].mxu1  ;;  %v9652_v26 = vpack.c.bf16 %v11225_v24, %v11224_v20  ;;  %v3907_v27 = vpop.f32.mrb[147].mxu0 }
 0x211   : > { %v11481_v0 = vpop.f32.mrb[146].mxu1  ;;  %v9647_v29 = vpack.c.bf16 %v3907_v27, %v3904_v21 }
 0x212   : > { %10636 = vst [vmem:[%s12554_s13 + $0x248] sm:$0xff] %v9652_v26   ;;  %v10292_v30 = vpack.c.bf16 %v11481_v0, %v11480_v17  ;;  %v4931_v34 = vpop.f32.mrb[147].mxu1  ;;  %11331 = vmatmul.mubr.msk.bf16.gmra.mrb[252].mxu0 %vm2521_vm1, %v2391_v2 }
 0x213   : > { %10635 = vst [vmem:[%s12554_s13 + $0x240] sm:$0xff] %v9647_v29   ;;  %v10287_v5 = vpack.c.bf16 %v4931_v34, %v4928_v52 }
 0x214   : > { %10764 = vst [vmem:[%s12554_s13 + $0x648] sm:$0xff] %v10292_v30   ;;  %11587 = vmatmul.mubr.msk.bf16.gmra.mrb[252].mxu1 %vm2521_vm1, %v2519_v59 }
 0x215   : > { %10763 = vst [vmem:[%s12554_s13 + $0x640] sm:$0xff] %v10287_v5   ;;  %v11228_v35 = vpop.f32.mrb[148].mxu0 }
 0x216   : > { %v3920_v36 = vpop.f32.mrb[149].mxu0 }
 0x217   : > { %v11484_v31 = vpop.f32.mrb[148].mxu1  ;;  %v11229_v33 = vpop.f32.mrb[150].mxu0 }
 0x218   : > { %v4944_v25 = vpop.f32.mrb[149].mxu1  ;;  %v9662_v28 = vpack.c.bf16 %v11229_v33, %v11228_v35  ;;  %v3923_v40 = vpop.f32.mrb[151].mxu0 }
 0x219   : > { %v11485_v39 = vpop.f32.mrb[150].mxu1  ;;  %v9657_v42 = vpack.c.bf16 %v3923_v40, %v3920_v36 }
 0x21a   : > { %10638 = vst [vmem:[%s12554_s13 + $0x258] sm:$0xff] %v9662_v28   ;;  %v10302_v37 = vpack.c.bf16 %v11485_v39, %v11484_v31  ;;  %v4947_v43 = vpop.f32.mrb[151].mxu1 }
 0x21b   : > { %10637 = vst [vmem:[%s12554_s13 + $0x250] sm:$0xff] %v9657_v42   ;;  %v10297_v15 = vpack.c.bf16 %v4947_v43, %v4944_v25 }
 0x21c   : > { %10766 = vst [vmem:[%s12554_s13 + $0x658] sm:$0xff] %v10302_v37  }
 0x21d   : > { %10765 = vst [vmem:[%s12554_s13 + $0x650] sm:$0xff] %v10297_v15   ;;  %v11232_v44 = vpop.f32.mrb[152].mxu0 }
 0x21e   : > { %v3936_v45 = vpop.f32.mrb[153].mxu0 }
 0x21f   : > { %v11488_v23 = vpop.f32.mrb[152].mxu1  ;;  %v11233_v49 = vpop.f32.mrb[154].mxu0 }
 0x220   : > { %v4960_v50 = vpop.f32.mrb[153].mxu1  ;;  %v9672_v38 = vpack.c.bf16 %v11233_v49, %v11232_v44  ;;  %v3939_v13 = vpop.f32.mrb[155].mxu0 }
 0x221   : > { %v11489_v51 = vpop.f32.mrb[154].mxu1  ;;  %v9667_v32 = vpack.c.bf16 %v3939_v13, %v3936_v45 }
 0x222   : > { %10640 = vst [vmem:[%s12554_s13 + $0x268] sm:$0xff] %v9672_v38   ;;  %v10312_v47 = vpack.c.bf16 %v11489_v51, %v11488_v23  ;;  %v4963_v54 = vpop.f32.mrb[155].mxu1 }
 0x223   : > { %10639 = vst [vmem:[%s12554_s13 + $0x260] sm:$0xff] %v9667_v32   ;;  %v10307_v56 = vpack.c.bf16 %v4963_v54, %v4960_v50 }
 0x224   : > { %10768 = vst [vmem:[%s12554_s13 + $0x668] sm:$0xff] %v10312_v47  }
 0x225   : > { %10767 = vst [vmem:[%s12554_s13 + $0x660] sm:$0xff] %v10307_v56   ;;  %v11236_v57 = vpop.f32.mrb[156].mxu0 }
 0x226   : > { %v3952_v48 = vpop.f32.mrb[157].mxu0 }
 0x227   : > { %v11492_v60 = vpop.f32.mrb[156].mxu1  ;;  %v11237_v55 = vpop.f32.mrb[158].mxu0 }
 0x228   : > { %v4976_v62 = vpop.f32.mrb[157].mxu1  ;;  %v9682_v1 = vpack.c.bf16 %v11237_v55, %v11236_v57  ;;  %v3955_v22 = vpop.f32.mrb[159].mxu0 }
 0x229   : > { %v11493_v53 = vpop.f32.mrb[158].mxu1  ;;  %v9677_v6 = vpack.c.bf16 %v3955_v22, %v3952_v48 }
 0x22a   : > { %10642 = vst [vmem:[%s12554_s13 + $0x278] sm:$0xff] %v9682_v1   ;;  %v10322_v3 = vpack.c.bf16 %v11493_v53, %v11492_v60  ;;  %v4979_v8 = vpop.f32.mrb[159].mxu1 }
 0x22b   : > { %10641 = vst [vmem:[%s12554_s13 + $0x270] sm:$0xff] %v9677_v6   ;;  %v10317_v61 = vpack.c.bf16 %v4979_v8, %v4976_v62 }
 0x22c   : > { %10770 = vst [vmem:[%s12554_s13 + $0x678] sm:$0xff] %v10322_v3  }
 0x22d   : > { %10769 = vst [vmem:[%s12554_s13 + $0x670] sm:$0xff] %v10317_v61   ;;  %v11240_v9 = vpop.f32.mrb[160].mxu0 }
 0x22e   : > { %v3968_v4 = vpop.f32.mrb[161].mxu0 }
 0x22f   : > { %v11496_v7 = vpop.f32.mrb[160].mxu1  ;;  %v11241_v41 = vpop.f32.mrb[162].mxu0 }
 0x230   : > { %v4992_v11 = vpop.f32.mrb[161].mxu1  ;;  %v9692_v14 = vpack.c.bf16 %v11241_v41, %v11240_v9  ;;  %v3971_v12 = vpop.f32.mrb[163].mxu0 }
 0x231   : > { %v11497_v46 = vpop.f32.mrb[162].mxu1  ;;  %v9687_v16 = vpack.c.bf16 %v3971_v12, %v3968_v4 }
 0x232   : > { %10644 = vst [vmem:[%s12554_s13 + $0x288] sm:$0xff] %v9692_v14   ;;  %v10332_v63 = vpack.c.bf16 %v11497_v46, %v11496_v7  ;;  %v4995_v18 = vpop.f32.mrb[163].mxu1 }
 0x233   : > { %10643 = vst [vmem:[%s12554_s13 + $0x280] sm:$0xff] %v9687_v16   ;;  %v10327_v19 = vpack.c.bf16 %v4995_v18, %v4992_v11 }
 0x234   : > { %10772 = vst [vmem:[%s12554_s13 + $0x688] sm:$0xff] %v10332_v63  }
 0x235   : > { %10771 = vst [vmem:[%s12554_s13 + $0x680] sm:$0xff] %v10327_v19   ;;  %v11244_v10 = vpop.f32.mrb[164].mxu0 }
 0x236   : > { %v3984_v58 = vpop.f32.mrb[165].mxu0 }
 0x237   : > { %v11500_v20 = vpop.f32.mrb[164].mxu1  ;;  %v11245_v21 = vpop.f32.mrb[166].mxu0 }
 0x238   : > { %v5008_v2 = vpop.f32.mrb[165].mxu1  ;;  %v9702_v17 = vpack.c.bf16 %v11245_v21, %v11244_v10  ;;  %v3987_v24 = vpop.f32.mrb[167].mxu0 }
 0x239   : > { %v11501_v52 = vpop.f32.mrb[166].mxu1  ;;  %v9697_v26 = vpack.c.bf16 %v3987_v24, %v3984_v58 }
 0x23a   : > { %10646 = vst [vmem:[%s12554_s13 + $0x298] sm:$0xff] %v9702_v17   ;;  %v10342_v27 = vpack.c.bf16 %v11501_v52, %v11500_v20  ;;  %v5011_v59 = vpop.f32.mrb[167].mxu1 }
 0x23b   : > { %10645 = vst [vmem:[%s12554_s13 + $0x290] sm:$0xff] %v9697_v26   ;;  %v10337_v0 = vpack.c.bf16 %v5011_v59, %v5008_v2 }
 0x23c   : > { %10774 = vst [vmem:[%s12554_s13 + $0x698] sm:$0xff] %v10342_v27  }
 0x23d   : > { %10773 = vst [vmem:[%s12554_s13 + $0x690] sm:$0xff] %v10337_v0   ;;  %v11248_v29 = vpop.f32.mrb[168].mxu0 }
 0x23e   : > { %v4000_v30 = vpop.f32.mrb[169].mxu0 }
 0x23f   : > { %v11504_v34 = vpop.f32.mrb[168].mxu1  ;;  %v11249_v5 = vpop.f32.mrb[170].mxu0 }
 0x240   : > { %v5024_v35 = vpop.f32.mrb[169].mxu1  ;;  %v9712_v36 = vpack.c.bf16 %v11249_v5, %v11248_v29  ;;  %v4003_v31 = vpop.f32.mrb[171].mxu0 }
 0x241   : > { %v11505_v33 = vpop.f32.mrb[170].mxu1  ;;  %v9707_v25 = vpack.c.bf16 %v4003_v31, %v4000_v30 }
 0x242   : > { %10648 = vst [vmem:[%s12554_s13 + $0x2a8] sm:$0xff] %v9712_v36   ;;  %v10352_v28 = vpack.c.bf16 %v11505_v33, %v11504_v34  ;;  %v5027_v40 = vpop.f32.mrb[171].mxu1 }
 0x243   : > { %10647 = vst [vmem:[%s12554_s13 + $0x2a0] sm:$0xff] %v9707_v25   ;;  %v10347_v39 = vpack.c.bf16 %v5027_v40, %v5024_v35 }
 0x244   : > { %10776 = vst [vmem:[%s12554_s13 + $0x6a8] sm:$0xff] %v10352_v28  }
 0x245   : > { %10775 = vst [vmem:[%s12554_s13 + $0x6a0] sm:$0xff] %v10347_v39   ;;  %v11252_v42 = vpop.f32.mrb[172].mxu0 }
 0x246   : > { %v4016_v37 = vpop.f32.mrb[173].mxu0 }
 0x247   : > { %v11508_v43 = vpop.f32.mrb[172].mxu1  ;;  %v11253_v15 = vpop.f32.mrb[174].mxu0 }
 0x248   : > { %v5040_v44 = vpop.f32.mrb[173].mxu1  ;;  %v9722_v45 = vpack.c.bf16 %v11253_v15, %v11252_v42  ;;  %v4019_v23 = vpop.f32.mrb[175].mxu0 }
 0x249   : > { %v11509_v49 = vpop.f32.mrb[174].mxu1  ;;  %v9717_v50 = vpack.c.bf16 %v4019_v23, %v4016_v37 }
 0x24a   : > { %10650 = vst [vmem:[%s12554_s13 + $0x2b8] sm:$0xff] %v9722_v45   ;;  %v10362_v38 = vpack.c.bf16 %v11509_v49, %v11508_v43  ;;  %v5043_v13 = vpop.f32.mrb[175].mxu1 }
 0x24b   : > { %10649 = vst [vmem:[%s12554_s13 + $0x2b0] sm:$0xff] %v9717_v50   ;;  %v10357_v51 = vpack.c.bf16 %v5043_v13, %v5040_v44 }
 0x24c   : > { %10778 = vst [vmem:[%s12554_s13 + $0x6b8] sm:$0xff] %v10362_v38  }
 0x24d   : > { %10777 = vst [vmem:[%s12554_s13 + $0x6b0] sm:$0xff] %v10357_v51   ;;  %v11256_v32 = vpop.f32.mrb[176].mxu0 }
 0x24e   : > { %v4032_v47 = vpop.f32.mrb[177].mxu0 }
 0x24f   : > { %v11512_v54 = vpop.f32.mrb[176].mxu1  ;;  %v11257_v56 = vpop.f32.mrb[178].mxu0 }
 0x250   : > { %v5056_v57 = vpop.f32.mrb[177].mxu1  ;;  %v9732_v48 = vpack.c.bf16 %v11257_v56, %v11256_v32  ;;  %v4035_v60 = vpop.f32.mrb[179].mxu0 }
 0x251   : > { %v11513_v55 = vpop.f32.mrb[178].mxu1  ;;  %v9727_v62 = vpack.c.bf16 %v4035_v60, %v4032_v47 }
 0x252   : > { %10652 = vst [vmem:[%s12554_s13 + $0x2c8] sm:$0xff] %v9732_v48   ;;  %v10372_v1 = vpack.c.bf16 %v11513_v55, %v11512_v54  ;;  %v5059_v22 = vpop.f32.mrb[179].mxu1 }
 0x253   : > { %10651 = vst [vmem:[%s12554_s13 + $0x2c0] sm:$0xff] %v9727_v62   ;;  %v10367_v53 = vpack.c.bf16 %v5059_v22, %v5056_v57 }
 0x254   : > { %10780 = vst [vmem:[%s12554_s13 + $0x6c8] sm:$0xff] %v10372_v1  }
 0x255   : > { %10779 = vst [vmem:[%s12554_s13 + $0x6c0] sm:$0xff] %v10367_v53   ;;  %v11260_v6 = vpop.f32.mrb[180].mxu0 }
 0x256   : > { %v4048_v3 = vpop.f32.mrb[181].mxu0 }
 0x257   : > { %v11516_v8 = vpop.f32.mrb[180].mxu1  ;;  %v11261_v61 = vpop.f32.mrb[182].mxu0 }
 0x258   : > { %v5072_v9 = vpop.f32.mrb[181].mxu1  ;;  %v9742_v4 = vpack.c.bf16 %v11261_v61, %v11260_v6  ;;  %v4051_v7 = vpop.f32.mrb[183].mxu0 }
 0x259   : > { %v11517_v41 = vpop.f32.mrb[182].mxu1  ;;  %v9737_v11 = vpack.c.bf16 %v4051_v7, %v4048_v3 }
 0x25a   : > { %10654 = vst [vmem:[%s12554_s13 + $0x2d8] sm:$0xff] %v9742_v4   ;;  %v10382_v14 = vpack.c.bf16 %v11517_v41, %v11516_v8  ;;  %v5075_v12 = vpop.f32.mrb[183].mxu1 }
 0x25b   : > { %10653 = vst [vmem:[%s12554_s13 + $0x2d0] sm:$0xff] %v9737_v11   ;;  %v10377_v46 = vpack.c.bf16 %v5075_v12, %v5072_v9 }
 0x25c   : > { %10782 = vst [vmem:[%s12554_s13 + $0x6d8] sm:$0xff] %v10382_v14  }
 0x25d   : > { %10781 = vst [vmem:[%s12554_s13 + $0x6d0] sm:$0xff] %v10377_v46   ;;  %v11264_v16 = vpop.f32.mrb[184].mxu0 }
 0x25e   : > { %v4064_v63 = vpop.f32.mrb[185].mxu0 }
 0x25f   : > { %v11520_v18 = vpop.f32.mrb[184].mxu1  ;;  %v11265_v19 = vpop.f32.mrb[186].mxu0 }
 0x260   : > { %v5088_v10 = vpop.f32.mrb[185].mxu1  ;;  %v9752_v58 = vpack.c.bf16 %v11265_v19, %v11264_v16  ;;  %v4067_v20 = vpop.f32.mrb[187].mxu0 }
 0x261   : > { %v11521_v21 = vpop.f32.mrb[186].mxu1  ;;  %v9747_v2 = vpack.c.bf16 %v4067_v20, %v4064_v63 }
 0x262   : > { %10656 = vst [vmem:[%s12554_s13 + $0x2e8] sm:$0xff] %v9752_v58   ;;  %v10392_v17 = vpack.c.bf16 %v11521_v21, %v11520_v18  ;;  %v5091_v24 = vpop.f32.mrb[187].mxu1 }
 0x263   : > { %10655 = vst [vmem:[%s12554_s13 + $0x2e0] sm:$0xff] %v9747_v2   ;;  %v10387_v52 = vpack.c.bf16 %v5091_v24, %v5088_v10 }
 0x264   : > { %10784 = vst [vmem:[%s12554_s13 + $0x6e8] sm:$0xff] %v10392_v17  }
 0x265   : > { %10783 = vst [vmem:[%s12554_s13 + $0x6e0] sm:$0xff] %v10387_v52   ;;  %v11268_v26 = vpop.f32.mrb[188].mxu0 }
 0x266   : > { %v4080_v27 = vpop.f32.mrb[189].mxu0 }
 0x267   : > { %v11524_v59 = vpop.f32.mrb[188].mxu1  ;;  %v11269_v0 = vpop.f32.mrb[190].mxu0 }
 0x268   : > { %v5104_v29 = vpop.f32.mrb[189].mxu1  ;;  %v9762_v30 = vpack.c.bf16 %v11269_v0, %v11268_v26  ;;  %v4083_v34 = vpop.f32.mrb[191].mxu0 }
 0x269   : > { %v11525_v5 = vpop.f32.mrb[190].mxu1  ;;  %v9757_v35 = vpack.c.bf16 %v4083_v34, %v4080_v27 }
 0x26a   : > { %10658 = vst [vmem:[%s12554_s13 + $0x2f8] sm:$0xff] %v9762_v30   ;;  %v10402_v36 = vpack.c.bf16 %v11525_v5, %v11524_v59  ;;  %v5107_v31 = vpop.f32.mrb[191].mxu1 }
 0x26b   : > { %10657 = vst [vmem:[%s12554_s13 + $0x2f0] sm:$0xff] %v9757_v35   ;;  %v10397_v33 = vpack.c.bf16 %v5107_v31, %v5104_v29 }
 0x26c   : > { %10786 = vst [vmem:[%s12554_s13 + $0x6f8] sm:$0xff] %v10402_v36  }
 0x26d   : > { %10785 = vst [vmem:[%s12554_s13 + $0x6f0] sm:$0xff] %v10397_v33   ;;  %v11272_v25 = vpop.f32.mrb[192].mxu0 }
 0x26e   : > { %v4096_v28 = vpop.f32.mrb[193].mxu0 }
 0x26f   : > { %v11528_v40 = vpop.f32.mrb[192].mxu1  ;;  %v11273_v39 = vpop.f32.mrb[194].mxu0 }
 0x270   : > { %v5120_v42 = vpop.f32.mrb[193].mxu1  ;;  %v9772_v37 = vpack.c.bf16 %v11273_v39, %v11272_v25  ;;  %v4099_v43 = vpop.f32.mrb[195].mxu0 }
 0x271   : > { %v11529_v15 = vpop.f32.mrb[194].mxu1  ;;  %v9767_v44 = vpack.c.bf16 %v4099_v43, %v4096_v28 }
 0x272   : > { %10660 = vst [vmem:[%s12554_s13 + $0x308] sm:$0xff] %v9772_v37   ;;  %v10412_v45 = vpack.c.bf16 %v11529_v15, %v11528_v40  ;;  %v5123_v23 = vpop.f32.mrb[195].mxu1 }
 0x273   : > { %10659 = vst [vmem:[%s12554_s13 + $0x300] sm:$0xff] %v9767_v44   ;;  %v10407_v49 = vpack.c.bf16 %v5123_v23, %v5120_v42 }
 0x274   : > { %10788 = vst [vmem:[%s12554_s13 + $0x708] sm:$0xff] %v10412_v45  }
 0x275   : > { %10787 = vst [vmem:[%s12554_s13 + $0x700] sm:$0xff] %v10407_v49   ;;  %v11276_v50 = vpop.f32.mrb[196].mxu0 }
 0x276   : > { %v4112_v38 = vpop.f32.mrb[197].mxu0 }
 0x277   : > { %v11532_v13 = vpop.f32.mrb[196].mxu1  ;;  %v11277_v51 = vpop.f32.mrb[198].mxu0 }
 0x278   : > { %v5136_v32 = vpop.f32.mrb[197].mxu1  ;;  %v9782_v47 = vpack.c.bf16 %v11277_v51, %v11276_v50  ;;  %v4115_v54 = vpop.f32.mrb[199].mxu0 }
 0x279   : > { %v11533_v56 = vpop.f32.mrb[198].mxu1  ;;  %v9777_v57 = vpack.c.bf16 %v4115_v54, %v4112_v38 }
 0x27a   : > { %10662 = vst [vmem:[%s12554_s13 + $0x318] sm:$0xff] %v9782_v47   ;;  %v10422_v48 = vpack.c.bf16 %v11533_v56, %v11532_v13  ;;  %v5139_v60 = vpop.f32.mrb[199].mxu1 }
 0x27b   : > { %10661 = vst [vmem:[%s12554_s13 + $0x310] sm:$0xff] %v9777_v57   ;;  %v10417_v55 = vpack.c.bf16 %v5139_v60, %v5136_v32 }
 0x27c   : > { %10790 = vst [vmem:[%s12554_s13 + $0x718] sm:$0xff] %v10422_v48  }
 0x27d   : > { %10789 = vst [vmem:[%s12554_s13 + $0x710] sm:$0xff] %v10417_v55   ;;  %v11280_v62 = vpop.f32.mrb[200].mxu0 }
 0x27e   : > { %v4128_v1 = vpop.f32.mrb[201].mxu0 }
 0x27f   : > { %v11536_v22 = vpop.f32.mrb[200].mxu1  ;;  %v11281_v53 = vpop.f32.mrb[202].mxu0 }
 0x280   : > { %v5152_v6 = vpop.f32.mrb[201].mxu1  ;;  %v9792_v3 = vpack.c.bf16 %v11281_v53, %v11280_v62  ;;  %v4131_v8 = vpop.f32.mrb[203].mxu0 }
 0x281   : > { %v11537_v61 = vpop.f32.mrb[202].mxu1  ;;  %v9787_v9 = vpack.c.bf16 %v4131_v8, %v4128_v1 }
 0x282   : > { %10664 = vst [vmem:[%s12554_s13 + $0x328] sm:$0xff] %v9792_v3   ;;  %v10432_v4 = vpack.c.bf16 %v11537_v61, %v11536_v22  ;;  %v5155_v7 = vpop.f32.mrb[203].mxu1 }
 0x283   : > { %10663 = vst [vmem:[%s12554_s13 + $0x320] sm:$0xff] %v9787_v9   ;;  %v10427_v41 = vpack.c.bf16 %v5155_v7, %v5152_v6 }
 0x284   : > { %10792 = vst [vmem:[%s12554_s13 + $0x728] sm:$0xff] %v10432_v4  }
 0x285   : > { %10791 = vst [vmem:[%s12554_s13 + $0x720] sm:$0xff] %v10427_v41   ;;  %v11284_v11 = vpop.f32.mrb[204].mxu0 }
 0x286   : > { %v4144_v14 = vpop.f32.mrb[205].mxu0 }
 0x287   : > { %v11540_v12 = vpop.f32.mrb[204].mxu1  ;;  %v11285_v46 = vpop.f32.mrb[206].mxu0 }
 0x288   : > { %v5168_v16 = vpop.f32.mrb[205].mxu1  ;;  %v9802_v63 = vpack.c.bf16 %v11285_v46, %v11284_v11  ;;  %v4147_v18 = vpop.f32.mrb[207].mxu0 }
 0x289   : > { %v11541_v19 = vpop.f32.mrb[206].mxu1  ;;  %v9797_v10 = vpack.c.bf16 %v4147_v18, %v4144_v14 }
 0x28a   : > { %10666 = vst [vmem:[%s12554_s13 + $0x338] sm:$0xff] %v9802_v63   ;;  %v10442_v58 = vpack.c.bf16 %v11541_v19, %v11540_v12  ;;  %v5171_v20 = vpop.f32.mrb[207].mxu1 }
 0x28b   : > { %10665 = vst [vmem:[%s12554_s13 + $0x330] sm:$0xff] %v9797_v10   ;;  %v10437_v21 = vpack.c.bf16 %v5171_v20, %v5168_v16 }
 0x28c   : > { %10794 = vst [vmem:[%s12554_s13 + $0x738] sm:$0xff] %v10442_v58  }
 0x28d   : > { %10793 = vst [vmem:[%s12554_s13 + $0x730] sm:$0xff] %v10437_v21   ;;  %v11288_v2 = vpop.f32.mrb[208].mxu0 }
 0x28e   : > { %v4160_v17 = vpop.f32.mrb[209].mxu0 }
 0x28f   : > { %v11544_v24 = vpop.f32.mrb[208].mxu1  ;;  %v11289_v52 = vpop.f32.mrb[210].mxu0 }
 0x290   : > { %v5184_v26 = vpop.f32.mrb[209].mxu1  ;;  %v9812_v27 = vpack.c.bf16 %v11289_v52, %v11288_v2  ;;  %v4163_v59 = vpop.f32.mrb[211].mxu0 }
 0x291   : > { %v11545_v0 = vpop.f32.mrb[210].mxu1  ;;  %v9807_v29 = vpack.c.bf16 %v4163_v59, %v4160_v17 }
 0x292   : > { %10668 = vst [vmem:[%s12554_s13 + $0x348] sm:$0xff] %v9812_v27   ;;  %v10452_v30 = vpack.c.bf16 %v11545_v0, %v11544_v24  ;;  %v5187_v34 = vpop.f32.mrb[211].mxu1 }
 0x293   : > { %10667 = vst [vmem:[%s12554_s13 + $0x340] sm:$0xff] %v9807_v29   ;;  %v10447_v5 = vpack.c.bf16 %v5187_v34, %v5184_v26 }
 0x294   : > { %10796 = vst [vmem:[%s12554_s13 + $0x748] sm:$0xff] %v10452_v30  }
 0x295   : > { %10795 = vst [vmem:[%s12554_s13 + $0x740] sm:$0xff] %v10447_v5   ;;  %v11292_v35 = vpop.f32.mrb[212].mxu0 }
 0x296   : > { %v4176_v36 = vpop.f32.mrb[213].mxu0 }
 0x297   : > { %v11548_v31 = vpop.f32.mrb[212].mxu1  ;;  %v11293_v33 = vpop.f32.mrb[214].mxu0 }
 0x298   : > { %v5200_v25 = vpop.f32.mrb[213].mxu1  ;;  %v9822_v28 = vpack.c.bf16 %v11293_v33, %v11292_v35  ;;  %v4179_v40 = vpop.f32.mrb[215].mxu0 }
 0x299   : > { %v11549_v39 = vpop.f32.mrb[214].mxu1  ;;  %v9817_v42 = vpack.c.bf16 %v4179_v40, %v4176_v36 }
 0x29a   : > { %10670 = vst [vmem:[%s12554_s13 + $0x358] sm:$0xff] %v9822_v28   ;;  %v10462_v37 = vpack.c.bf16 %v11549_v39, %v11548_v31  ;;  %v5203_v43 = vpop.f32.mrb[215].mxu1 }
 0x29b   : > { %10669 = vst [vmem:[%s12554_s13 + $0x350] sm:$0xff] %v9817_v42   ;;  %v10457_v15 = vpack.c.bf16 %v5203_v43, %v5200_v25 }
 0x29c   : > { %10798 = vst [vmem:[%s12554_s13 + $0x758] sm:$0xff] %v10462_v37  }
 0x29d   : > { %10797 = vst [vmem:[%s12554_s13 + $0x750] sm:$0xff] %v10457_v15   ;;  %v11296_v44 = vpop.f32.mrb[216].mxu0 }
 0x29e   : > { %v4192_v45 = vpop.f32.mrb[217].mxu0 }
 0x29f   : > { %v11552_v23 = vpop.f32.mrb[216].mxu1  ;;  %v11297_v49 = vpop.f32.mrb[218].mxu0 }
 0x2a0   : > { %v5216_v50 = vpop.f32.mrb[217].mxu1  ;;  %v9832_v38 = vpack.c.bf16 %v11297_v49, %v11296_v44  ;;  %v4195_v13 = vpop.f32.mrb[219].mxu0 }
 0x2a1   : > { %v11553_v51 = vpop.f32.mrb[218].mxu1  ;;  %v9827_v32 = vpack.c.bf16 %v4195_v13, %v4192_v45 }
 0x2a2   : > { %10672 = vst [vmem:[%s12554_s13 + $0x368] sm:$0xff] %v9832_v38   ;;  %v10472_v47 = vpack.c.bf16 %v11553_v51, %v11552_v23  ;;  %v5219_v54 = vpop.f32.mrb[219].mxu1 }
 0x2a3   : > { %10671 = vst [vmem:[%s12554_s13 + $0x360] sm:$0xff] %v9827_v32   ;;  %v10467_v56 = vpack.c.bf16 %v5219_v54, %v5216_v50 }
 0x2a4   : > { %10800 = vst [vmem:[%s12554_s13 + $0x768] sm:$0xff] %v10472_v47  }
 0x2a5   : > { %10799 = vst [vmem:[%s12554_s13 + $0x760] sm:$0xff] %v10467_v56   ;;  %v11300_v57 = vpop.f32.mrb[220].mxu0 }
 0x2a6   : > { %v4208_v48 = vpop.f32.mrb[221].mxu0 }
 0x2a7   : > { %v11556_v60 = vpop.f32.mrb[220].mxu1  ;;  %v11301_v55 = vpop.f32.mrb[222].mxu0 }
 0x2a8   : > { %v5232_v62 = vpop.f32.mrb[221].mxu1  ;;  %v9842_v1 = vpack.c.bf16 %v11301_v55, %v11300_v57  ;;  %v4211_v22 = vpop.f32.mrb[223].mxu0 }
 0x2a9   : > { %v11557_v53 = vpop.f32.mrb[222].mxu1  ;;  %v9837_v6 = vpack.c.bf16 %v4211_v22, %v4208_v48 }
 0x2aa   : > { %10674 = vst [vmem:[%s12554_s13 + $0x378] sm:$0xff] %v9842_v1   ;;  %v10482_v3 = vpack.c.bf16 %v11557_v53, %v11556_v60  ;;  %v5235_v8 = vpop.f32.mrb[223].mxu1 }
 0x2ab   : > { %10673 = vst [vmem:[%s12554_s13 + $0x370] sm:$0xff] %v9837_v6   ;;  %v10477_v61 = vpack.c.bf16 %v5235_v8, %v5232_v62 }
 0x2ac   : > { %10802 = vst [vmem:[%s12554_s13 + $0x778] sm:$0xff] %v10482_v3  }
 0x2ad   : > { %10801 = vst [vmem:[%s12554_s13 + $0x770] sm:$0xff] %v10477_v61   ;;  %v11304_v9 = vpop.f32.mrb[224].mxu0 }
 0x2ae   : > { %v4224_v4 = vpop.f32.mrb[225].mxu0 }
 0x2af   : > { %v11560_v7 = vpop.f32.mrb[224].mxu1  ;;  %v11305_v41 = vpop.f32.mrb[226].mxu0 }
 0x2b0   : > { %v5248_v11 = vpop.f32.mrb[225].mxu1  ;;  %v9852_v14 = vpack.c.bf16 %v11305_v41, %v11304_v9  ;;  %v4227_v12 = vpop.f32.mrb[227].mxu0 }
 0x2b1   : > { %v11561_v46 = vpop.f32.mrb[226].mxu1  ;;  %v9847_v16 = vpack.c.bf16 %v4227_v12, %v4224_v4 }
 0x2b2   : > { %10676 = vst [vmem:[%s12554_s13 + $0x388] sm:$0xff] %v9852_v14   ;;  %v10492_v63 = vpack.c.bf16 %v11561_v46, %v11560_v7  ;;  %v5251_v18 = vpop.f32.mrb[227].mxu1 }
 0x2b3   : > { %10675 = vst [vmem:[%s12554_s13 + $0x380] sm:$0xff] %v9847_v16   ;;  %v10487_v19 = vpack.c.bf16 %v5251_v18, %v5248_v11 }
 0x2b4   : > { %10804 = vst [vmem:[%s12554_s13 + $0x788] sm:$0xff] %v10492_v63  }
 0x2b5   : > { %10803 = vst [vmem:[%s12554_s13 + $0x780] sm:$0xff] %v10487_v19   ;;  %v11308_v10 = vpop.f32.mrb[228].mxu0 }
 0x2b6   : > { %v4240_v58 = vpop.f32.mrb[229].mxu0 }
 0x2b7   : > { %v11564_v20 = vpop.f32.mrb[228].mxu1  ;;  %v11309_v21 = vpop.f32.mrb[230].mxu0 }
 0x2b8   : > { %v5264_v2 = vpop.f32.mrb[229].mxu1  ;;  %v9862_v17 = vpack.c.bf16 %v11309_v21, %v11308_v10  ;;  %v4243_v24 = vpop.f32.mrb[231].mxu0 }
 0x2b9   : > { %v11565_v52 = vpop.f32.mrb[230].mxu1  ;;  %v9857_v26 = vpack.c.bf16 %v4243_v24, %v4240_v58 }
 0x2ba   : > { %10678 = vst [vmem:[%s12554_s13 + $0x398] sm:$0xff] %v9862_v17   ;;  %v10502_v27 = vpack.c.bf16 %v11565_v52, %v11564_v20  ;;  %v5267_v59 = vpop.f32.mrb[231].mxu1 }
 0x2bb   : > { %10677 = vst [vmem:[%s12554_s13 + $0x390] sm:$0xff] %v9857_v26   ;;  %v10497_v0 = vpack.c.bf16 %v5267_v59, %v5264_v2 }
 0x2bc   : > { %10806 = vst [vmem:[%s12554_s13 + $0x798] sm:$0xff] %v10502_v27  }
 0x2bd   : > { %10805 = vst [vmem:[%s12554_s13 + $0x790] sm:$0xff] %v10497_v0   ;;  %v11312_v29 = vpop.f32.mrb[232].mxu0 }
 0x2be   : > { %v4256_v30 = vpop.f32.mrb[233].mxu0 }
 0x2bf   : > { %v11568_v34 = vpop.f32.mrb[232].mxu1  ;;  %v11313_v5 = vpop.f32.mrb[234].mxu0 }
 0x2c0   : > { %v5280_v35 = vpop.f32.mrb[233].mxu1  ;;  %v9872_v36 = vpack.c.bf16 %v11313_v5, %v11312_v29  ;;  %v4259_v31 = vpop.f32.mrb[235].mxu0 }
 0x2c1   : > { %v11569_v33 = vpop.f32.mrb[234].mxu1  ;;  %v9867_v25 = vpack.c.bf16 %v4259_v31, %v4256_v30 }
 0x2c2   : > { %10680 = vst [vmem:[%s12554_s13 + $0x3a8] sm:$0xff] %v9872_v36   ;;  %v10512_v28 = vpack.c.bf16 %v11569_v33, %v11568_v34  ;;  %v5283_v40 = vpop.f32.mrb[235].mxu1 }
 0x2c3   : > { %10679 = vst [vmem:[%s12554_s13 + $0x3a0] sm:$0xff] %v9867_v25   ;;  %v10507_v39 = vpack.c.bf16 %v5283_v40, %v5280_v35 }
 0x2c4   : > { %10808 = vst [vmem:[%s12554_s13 + $0x7a8] sm:$0xff] %v10512_v28  }
 0x2c5   : > { %10807 = vst [vmem:[%s12554_s13 + $0x7a0] sm:$0xff] %v10507_v39   ;;  %v11316_v42 = vpop.f32.mrb[236].mxu0 }
 0x2c6   : > { %v4272_v37 = vpop.f32.mrb[237].mxu0 }
 0x2c7   : > { %v11572_v43 = vpop.f32.mrb[236].mxu1  ;;  %v11317_v15 = vpop.f32.mrb[238].mxu0 }
 0x2c8   : > { %v5296_v44 = vpop.f32.mrb[237].mxu1  ;;  %v9882_v45 = vpack.c.bf16 %v11317_v15, %v11316_v42  ;;  %v4275_v23 = vpop.f32.mrb[239].mxu0 }
 0x2c9   : > { %v11573_v49 = vpop.f32.mrb[238].mxu1  ;;  %v9877_v50 = vpack.c.bf16 %v4275_v23, %v4272_v37 }
 0x2ca   : > { %10682 = vst [vmem:[%s12554_s13 + $0x3b8] sm:$0xff] %v9882_v45   ;;  %v10522_v38 = vpack.c.bf16 %v11573_v49, %v11572_v43  ;;  %v5299_v13 = vpop.f32.mrb[239].mxu1 }
 0x2cb   : > { %10681 = vst [vmem:[%s12554_s13 + $0x3b0] sm:$0xff] %v9877_v50   ;;  %v10517_v51 = vpack.c.bf16 %v5299_v13, %v5296_v44 }
 0x2cc   : > { %10810 = vst [vmem:[%s12554_s13 + $0x7b8] sm:$0xff] %v10522_v38  }
 0x2cd   : > { %10809 = vst [vmem:[%s12554_s13 + $0x7b0] sm:$0xff] %v10517_v51   ;;  %v11320_v32 = vpop.f32.mrb[240].mxu0 }
 0x2ce   : > { %v4288_v47 = vpop.f32.mrb[241].mxu0 }
 0x2cf   : > { %v11576_v54 = vpop.f32.mrb[240].mxu1  ;;  %v11321_v56 = vpop.f32.mrb[242].mxu0 }
 0x2d0   : > { %v5312_v57 = vpop.f32.mrb[241].mxu1  ;;  %v9892_v48 = vpack.c.bf16 %v11321_v56, %v11320_v32  ;;  %v4291_v60 = vpop.f32.mrb[243].mxu0 }
 0x2d1   : > { %v11577_v55 = vpop.f32.mrb[242].mxu1  ;;  %v9887_v62 = vpack.c.bf16 %v4291_v60, %v4288_v47 }
 0x2d2   : > { %10684 = vst [vmem:[%s12554_s13 + $0x3c8] sm:$0xff] %v9892_v48   ;;  %v10532_v1 = vpack.c.bf16 %v11577_v55, %v11576_v54  ;;  %v5315_v22 = vpop.f32.mrb[243].mxu1 }
 0x2d3   : > { %10683 = vst [vmem:[%s12554_s13 + $0x3c0] sm:$0xff] %v9887_v62   ;;  %v10527_v53 = vpack.c.bf16 %v5315_v22, %v5312_v57 }
 0x2d4   : > { %10812 = vst [vmem:[%s12554_s13 + $0x7c8] sm:$0xff] %v10532_v1  }
 0x2d5   : > { %10811 = vst [vmem:[%s12554_s13 + $0x7c0] sm:$0xff] %v10527_v53   ;;  %v11324_v6 = vpop.f32.mrb[244].mxu0 }
 0x2d6   : > { %v4304_v3 = vpop.f32.mrb[245].mxu0 }
 0x2d7   : > { %v11580_v8 = vpop.f32.mrb[244].mxu1  ;;  %v11325_v61 = vpop.f32.mrb[246].mxu0 }
 0x2d8   : > { %v5328_v9 = vpop.f32.mrb[245].mxu1  ;;  %v9902_v4 = vpack.c.bf16 %v11325_v61, %v11324_v6  ;;  %v4307_v7 = vpop.f32.mrb[247].mxu0 }
 0x2d9   : > { %v11581_v41 = vpop.f32.mrb[246].mxu1  ;;  %v9897_v11 = vpack.c.bf16 %v4307_v7, %v4304_v3 }
 0x2da   : > { %10686 = vst [vmem:[%s12554_s13 + $0x3d8] sm:$0xff] %v9902_v4   ;;  %v10542_v14 = vpack.c.bf16 %v11581_v41, %v11580_v8  ;;  %v5331_v12 = vpop.f32.mrb[247].mxu1 }
 0x2db   : > { %10685 = vst [vmem:[%s12554_s13 + $0x3d0] sm:$0xff] %v9897_v11   ;;  %v10537_v46 = vpack.c.bf16 %v5331_v12, %v5328_v9 }
 0x2dc   : > { %10814 = vst [vmem:[%s12554_s13 + $0x7d8] sm:$0xff] %v10542_v14  }
 0x2dd   : > { %10813 = vst [vmem:[%s12554_s13 + $0x7d0] sm:$0xff] %v10537_v46   ;;  %v11328_v16 = vpop.f32.mrb[248].mxu0 }
 0x2de   : > { %v4320_v63 = vpop.f32.mrb[249].mxu0 }
 0x2df   : > { %v11584_v18 = vpop.f32.mrb[248].mxu1  ;;  %v11329_v19 = vpop.f32.mrb[250].mxu0 }
 0x2e0   : > { %v5344_v10 = vpop.f32.mrb[249].mxu1  ;;  %v9912_v58 = vpack.c.bf16 %v11329_v19, %v11328_v16  ;;  %v4323_v20 = vpop.f32.mrb[251].mxu0 }
 0x2e1   : > { %v11585_v21 = vpop.f32.mrb[250].mxu1  ;;  %v9907_v2 = vpack.c.bf16 %v4323_v20, %v4320_v63 }
 0x2e2   : > { %10688 = vst [vmem:[%s12554_s13 + $0x3e8] sm:$0xff] %v9912_v58   ;;  %v10552_v17 = vpack.c.bf16 %v11585_v21, %v11584_v18  ;;  %v5347_v24 = vpop.f32.mrb[251].mxu1 }
 0x2e3   : > { %10687 = vst [vmem:[%s12554_s13 + $0x3e0] sm:$0xff] %v9907_v2   ;;  %v10547_v52 = vpack.c.bf16 %v5347_v24, %v5344_v10 }
 0x2e4   : > { %10816 = vst [vmem:[%s12554_s13 + $0x7e8] sm:$0xff] %v10552_v17  }
 0x2e5   : > { %10815 = vst [vmem:[%s12554_s13 + $0x7e0] sm:$0xff] %v10547_v52   ;;  %v11332_v26 = vpop.f32.mrb[252].mxu0 }
 0x2e6   : > { %v4336_v27 = vpop.f32.mrb[253].mxu0 }
 0x2e7   : > { %v11588_v59 = vpop.f32.mrb[252].mxu1  ;;  %v11333_v0 = vpop.f32.mrb[254].mxu0 }
 0x2e8   : > { %v5360_v29 = vpop.f32.mrb[253].mxu1  ;;  %v9922_v30 = vpack.c.bf16 %v11333_v0, %v11332_v26  ;;  %v4339_v34 = vpop.f32.mrb[255].mxu0 }
 0x2e9   : > { %v11589_v5 = vpop.f32.mrb[254].mxu1  ;;  %v9917_v35 = vpack.c.bf16 %v4339_v34, %v4336_v27 }
 0x2ea   : > { %10690 = vst [vmem:[%s12554_s13 + $0x3f8] sm:$0xff] %v9922_v30   ;;  %v10562_v36 = vpack.c.bf16 %v11589_v5, %v11588_v59  ;;  %v5363_v31 = vpop.f32.mrb[255].mxu1 }
 0x2eb   : > { %10689 = vst [vmem:[%s12554_s13 + $0x3f0] sm:$0xff] %v9917_v35   ;;  %v10557_v33 = vpack.c.bf16 %v5363_v31, %v5360_v29 }
 0x2ec   : > { %10818 = vst [vmem:[%s12554_s13 + $0x7f8] sm:$0xff] %v10562_v36  }
 0x2ed   : > { %10817 = vst [vmem:[%s12554_s13 + $0x7f0] sm:$0xff] %v10557_v33  }
 0x2ee PF: > { %s14_s15 = sadd.s32 1, %s11619_s15  }
 0x2ef   : > { %p11_p4 = scmp.ge.s32.totalorder %s14_s15, 4  }
 0x2f1   :  { %13 = sbr.rel (!%p11_p4) target bundleno = 1 (0x1), region = 66 }

</bundles_post_ra>
